<compile_context>
chip_gen: v5e
topology: v5e:2x2
jax: 0.10.0
libtpu: 0.0.40
codegen_flags: <defaults>
</compile_context>

<pallas_src>
import functools

import jax
import jax.numpy as jnp
from jax.experimental import pallas as pl
from jax.experimental.pallas import tpu as pltpu


VMEM_LIMIT = 48 * 1024 * 1024  # <= v7x 64 MiB physical; ample on v5e/v6e (128 MiB)


def _round_up(x, m):
    return (x + m - 1) // m * m


def _pick_tile_m(M, *, max_tile, align=16):
    """Choose (tile_m, padded_M).

    Preferences, in order: tile divides M exactly (no row pad, no out[:M]
    slice), >= 2 grid steps (v7x megacore), 16-row alignment (bf16 sublane
    packing), and as large as possible up to max_tile.
    """
    if M < 2 * align:
        t = _round_up(max(M, align), align)
        return t, t
    limit = min(max_tile, M // 2)
    limit -= limit % align
    for t in range(limit, align - 1, -align):
        if M % t == 0:
            return t, M                      # exact divisor: Mp == M
    t = min(max_tile, _round_up((M + 1) // 2, align))
    return t, _round_up(M, t)


# --------------------------------------------------------------------------
# Kernels
# --------------------------------------------------------------------------

def _matmul_bias_act_kernel(x_ref, w_ref, b_ref, o_ref, *, apply_relu):
    # x_ref: (TILE_M, Kp) bf16, streamed over M.  w_ref/b_ref: resident.
    acc = jnp.dot(x_ref[...], w_ref[...], preferred_element_type=jnp.float32)
    acc = acc + b_ref[...]                       # f32 epilogue
    if apply_relu:
        acc = jnp.maximum(acc, 0.0)
    o_ref[...] = acc.astype(o_ref.dtype)         # cast only at the final store


def _fused_head_kernel(x_ref, w1_ref, b1_ref, w2_ref, b2_ref, o_ref):
    # fc1 + ReLU + fc2 fused; the 512-wide hidden activation never leaves VMEM.
    h = jnp.dot(x_ref[...], w1_ref[...], preferred_element_type=jnp.float32)
    h = jnp.maximum(h + b1_ref[...], 0.0)
    q = jnp.dot(h.astype(jnp.bfloat16), w2_ref[...],
                preferred_element_type=jnp.float32)
    o_ref[...] = (q + b2_ref[...]).astype(o_ref.dtype)


# --------------------------------------------------------------------------
# Pallas wrappers
# --------------------------------------------------------------------------

def pallas_matmul_bias(x, w_pad, b_pad, *, relu, out_dtype, max_tile=1024):
    """y = act(x @ w + b).  x: (M, K) bf16; w_pad: (Kp, Np) bf16 pre-padded;
    b_pad: (1, Np) f32 pre-padded.  Returns (M, Np) in out_dtype."""
    M, K = x.shape
    Kp, Np = w_pad.shape
    tile_m, Mp = _pick_tile_m(M, max_tile=max_tile)

    if x.dtype != jnp.bfloat16:
        x = x.astype(jnp.bfloat16)
    if Mp != M or Kp != K:
        x = jnp.pad(x, ((0, Mp - M), (0, Kp - K)))

    out = pl.pallas_call(
        functools.partial(_matmul_bias_act_kernel, apply_relu=relu),
        out_shape=jax.ShapeDtypeStruct((Mp, Np), out_dtype),
        grid=(Mp // tile_m,),
        in_specs=[
            pl.BlockSpec((tile_m, Kp), lambda i: (i, 0)),   # x: streams over M
            pl.BlockSpec((Kp, Np), lambda i: (0, 0)),       # w: resident
            pl.BlockSpec((1, Np), lambda i: (0, 0)),        # b: resident
        ],
        out_specs=pl.BlockSpec((tile_m, Np), lambda i: (i, 0)),
        compiler_params=pltpu.CompilerParams(
            dimension_semantics=("parallel",),
            vmem_limit_bytes=VMEM_LIMIT),
    )(x, w_pad, b_pad)
    return out if Mp == M else out[:M]


def pallas_fused_head(x, w1_pad, b1_pad, w2_pad, b2_pad, *, max_tile=512):
    """Q = relu(x @ w1 + b1) @ w2 + b2, one kernel launch.  x: (M, K)."""
    M, K = x.shape
    K1p, H = w1_pad.shape
    _, Np = w2_pad.shape
    tile_m, Mp = _pick_tile_m(M, max_tile=max_tile)

    if x.dtype != jnp.bfloat16:
        x = x.astype(jnp.bfloat16)
    if Mp != M or K1p != K:
        x = jnp.pad(x, ((0, Mp - M), (0, K1p - K)))

    out = pl.pallas_call(
        _fused_head_kernel,
        out_shape=jax.ShapeDtypeStruct((Mp, Np), jnp.float32),
        grid=(Mp // tile_m,),
        in_specs=[
            pl.BlockSpec((tile_m, K1p), lambda i: (i, 0)),  # x: streams over M
            pl.BlockSpec((K1p, H), lambda i: (0, 0)),       # fc1 w: resident
            pl.BlockSpec((1, H), lambda i: (0, 0)),
            pl.BlockSpec((H, Np), lambda i: (0, 0)),        # fc2 w: resident
            pl.BlockSpec((1, Np), lambda i: (0, 0)),
        ],
        out_specs=pl.BlockSpec((tile_m, Np), lambda i: (i, 0)),
        compiler_params=pltpu.CompilerParams(
            dimension_semantics=("parallel",),
            vmem_limit_bytes=VMEM_LIMIT),
    )(x, w1_pad, b1_pad, w2_pad, b2_pad)
    return out if Mp == M else out[:M]


# --------------------------------------------------------------------------
# Conv layer: NHWC im2col (transpose-free, bf16) + Pallas matmul
# --------------------------------------------------------------------------

def _im2col_nhwc(x, kh, kw, stride):
    """x: (N, H, W, C) -> (N*Ho*Wo, kh*kw*C) patches with (kh, kw, C) ordering."""
    N, H, W, C = x.shape
    Ho = (H - kh) // stride + 1
    Wo = (W - kw) // stride + 1
    cols = []
    for i in range(kh):
        for j in range(kw):
            cols.append(x[:, i:i + stride * Ho:stride,
                             j:j + stride * Wo:stride, :])   # (N, Ho, Wo, C)
    patches = jnp.stack(cols, axis=3)                        # (N, Ho, Wo, kh*kw, C)
    patches = patches.reshape(N * Ho * Wo, kh * kw * C)
    return patches, Ho, Wo


def conv2d_relu_nhwc(x, layer):
    """PyTorch-semantics Conv2d (valid padding) + ReLU; NHWC bf16 in/out."""
    N = x.shape[0]
    kh, kw, stride, c_out = layer["kh"], layer["kw"], layer["stride"], layer["c_out"]
    patches, Ho, Wo = _im2col_nhwc(x, kh, kw, stride)        # already bf16
    y = pallas_matmul_bias(patches, layer["w"], layer["b"],
                           relu=True, out_dtype=jnp.bfloat16)
    y = y[:, :c_out].reshape(N, Ho, Wo, c_out)
    return y


# --------------------------------------------------------------------------
# Parameters: torch-layout init + one-time conversion to padded bf16 layout
# --------------------------------------------------------------------------

def init_dqn_params(key, input_shape, n_actions):
    """Deterministic parameter init matching nn.Conv2d/nn.Linear shapes."""
    c_in, H, W = input_shape
    keys = jax.random.split(key, 10)

    def u(k, shape, fan_in):
        bound = 1.0 / jnp.sqrt(fan_in)
        return jax.random.uniform(k, shape, jnp.float32, -bound, bound)

    params = {}
    params["w1"] = u(keys[0], (32, c_in, 8, 8), c_in * 8 * 8)
    params["b1"] = u(keys[1], (32,), c_in * 8 * 8)
    params["w2"] = u(keys[2], (64, 32, 4, 4), 32 * 4 * 4)
    params["b2"] = u(keys[3], (64,), 32 * 4 * 4)
    params["w3"] = u(keys[4], (64, 64, 3, 3), 64 * 3 * 3)
    params["b3"] = u(keys[5], (64,), 64 * 3 * 3)

    h1, w1 = (H - 8) // 4 + 1, (W - 8) // 4 + 1
    h2, w2 = (h1 - 4) // 2 + 1, (w1 - 4) // 2 + 1
    h3, w3 = (h2 - 3) // 1 + 1, (w2 - 3) // 1 + 1
    conv_out_size = 64 * h3 * w3

    params["fc1_w"] = u(keys[6], (conv_out_size, 512), conv_out_size)
    params["fc1_b"] = u(keys[7], (512,), conv_out_size)
    params["fc2_w"] = u(keys[8], (512, n_actions), 512)
    params["fc2_b"] = u(keys[9], (n_actions,), 512)
    return params, (h3, w3)


def _prep_conv(weight, bias, stride):
    """(C_out, C_in, kh, kw) torch layout -> padded bf16 (Kp, Np) matmul layout
    with (kh, kw, C_in) row ordering (matches NHWC im2col)."""
    c_out, c_in, kh, kw = weight.shape
    K = kh * kw * c_in
    Kp, Np = _round_up(K, 128), _round_up(c_out, 128)
    w_mat = weight.transpose(2, 3, 1, 0).reshape(K, c_out)
    w_pad = jnp.pad(w_mat, ((0, Kp - K), (0, Np - c_out))).astype(jnp.bfloat16)
    b_pad = jnp.pad(bias.astype(jnp.float32), ((0, Np - c_out),)).reshape(1, Np)
    return {"w": w_pad, "b": b_pad, "kh": kh, "kw": kw,
            "stride": stride, "c_out": c_out}


def prepare_params(params, conv_out_hw, n_actions):
    """One-time layout conversion / padding / bf16 cast of all weights."""
    h3, w3 = conv_out_hw
    prepped = {
        "conv1": _prep_conv(params["w1"], params["b1"], stride=4),
        "conv2": _prep_conv(params["w2"], params["b2"], stride=2),
        "conv3": _prep_conv(params["w3"], params["b3"], stride=1),
    }

    # fc1: rows are in NCHW flatten order (c, h, w) per PyTorch .view();
    # permute once to NHWC flatten order (h, w, c) so the conv activations can
    # stay channels-last end-to-end with identical semantics.
    K = params["fc1_w"].shape[0]
    fc1_w = params["fc1_w"].reshape(64, h3, w3, 512).transpose(1, 2, 0, 3)
    fc1_w = fc1_w.reshape(K, 512)
    K1p = _round_up(K, 128)
    prepped["fc1_w"] = jnp.pad(fc1_w, ((0, K1p - K), (0, 0))).astype(jnp.bfloat16)
    prepped["fc1_b"] = params["fc1_b"].astype(jnp.float32).reshape(1, 512)

    Np = _round_up(n_actions, 128)
    prepped["fc2_w"] = jnp.pad(params["fc2_w"],
                               ((0, 0), (0, Np - n_actions))).astype(jnp.bfloat16)
    prepped["fc2_b"] = jnp.pad(params["fc2_b"].astype(jnp.float32),
                               ((0, Np - n_actions),)).reshape(1, Np)
    prepped["n_actions"] = n_actions
    return prepped


# --------------------------------------------------------------------------
# Forward
# --------------------------------------------------------------------------

def dqn_forward(prepped, x):
    """x: (N, C, H, W) float32 (torch layout) -> Q-values (N, n_actions) f32."""
    # bf16 once, before the layout transpose and before im2col (halves the
    # largest HBM traffic in the network: conv1's patch materialization).
    x = x.astype(jnp.bfloat16).transpose(0, 2, 3, 1)          # NCHW -> NHWC
    x = conv2d_relu_nhwc(x, prepped["conv1"])
    x = conv2d_relu_nhwc(x, prepped["conv2"])
    x = conv2d_relu_nhwc(x, prepped["conv3"])
    N = x.shape[0]
    x = x.reshape(N, -1)                  # NHWC flatten (fc1_w permuted to match)
    q = pallas_fused_head(x, prepped["fc1_w"], prepped["fc1_b"],
                          prepped["fc2_w"], prepped["fc2_b"])
    return q[:, :prepped["n_actions"]]


if __name__ == "__main__":
    # input_shape implied by the env wrappers: 4 stacked 84x84 grayscale frames.
    batch = 2
    input_shape = (4, 84, 84)
    n_actions = 7

    key = jax.random.PRNGKey(0)
    k_param, k_x = jax.random.split(key)
    params, conv_out_hw = init_dqn_params(k_param, input_shape, n_actions)
    prepped = prepare_params(params, conv_out_hw, n_actions)
    x = jax.random.uniform(k_x, (batch, *input_shape), jnp.float32, 0.0, 255.0)

    fwd = jax.jit(functools.partial(dqn_forward, prepped))
    q = fwd(x)
    jax.block_until_ready(q)
    assert q.shape == (batch, n_actions), q.shape
    print("KERNEL_OK")
</pallas_src>

<mosaic_0001>
module attributes {stable_mosaic.version = 11 : i64} {
  func.func @_matmul_bias_act_kernel(%arg0: i32, %arg1: memref<400x256xbf16, #tpu.memory_space<vmem>>, %arg2: memref<256x128xbf16, #tpu.memory_space<vmem>>, %arg3: memref<1x128xf32, #tpu.memory_space<vmem>>, %arg4: memref<400x128xbf16, #tpu.memory_space<vmem>>) attributes {dimension_semantics = [#tpu.dimension_semantics<parallel>], iteration_bounds = array<i64: 2>, scalar_prefetch = 0 : i64, scratch_operands = 0 : i64, tpu.core_type = #tpu.core_type<tc>, window_params = [{transform_indices = @transform_0, window_bounds = array<i64: 400, 256>}, {pipeline_mode = #tpu.pipeline_mode<synchronous>, transform_indices = @transform_1, window_bounds = array<i64: 256, 128>}, {pipeline_mode = #tpu.pipeline_mode<synchronous>, transform_indices = @transform_2, window_bounds = array<i64: 1, 128>}, {transform_indices = @transform_3, window_bounds = array<i64: 400, 128>}]} {
    %c0 = arith.constant 0 : index
    %c0_0 = arith.constant 0 : index
    %0 = vector.load %arg1[%c0, %c0_0] : memref<400x256xbf16, #tpu.memory_space<vmem>>, vector<400x256xbf16>
    %c0_1 = arith.constant 0 : index
    %c0_2 = arith.constant 0 : index
    %1 = vector.load %arg2[%c0_1, %c0_2] : memref<256x128xbf16, #tpu.memory_space<vmem>>, vector<256x128xbf16>
    %cst = arith.constant dense<0.000000e+00> : vector<400x128xf32>
    %2 = tpu.matmul %0, %1, %cst {dimension_numbers = #tpu.dot_dimension_numbers<[1], [0], [0], [1], [0, 0, 1, 1], [], []>} : vector<400x256xbf16>, vector<256x128xbf16>, vector<400x128xf32> -> vector<400x128xf32>
    %c0_3 = arith.constant 0 : index
    %c0_4 = arith.constant 0 : index
    %3 = vector.load %arg3[%c0_3, %c0_4] : memref<1x128xf32, #tpu.memory_space<vmem>>, vector<1x128xf32>
    %4 = vector.broadcast %3 : vector<1x128xf32> to vector<400x128xf32>
    %5 = arith.addf %2, %4 : vector<400x128xf32>
    %cst_5 = arith.constant 0.000000e+00 : f32
    %6 = vector.broadcast %cst_5 : f32 to vector<400x128xf32>
    %7 = arith.maximumf %5, %6 : vector<400x128xf32>
    %8 = arith.truncf %7 : vector<400x128xf32> to vector<400x128xbf16>
    %c0_6 = arith.constant 0 : index
    %c0_7 = arith.constant 0 : index
    %9 = vector.load %arg4[%c0_6, %c0_7] : memref<400x128xbf16, #tpu.memory_space<vmem>>, vector<400x128xbf16>
    tpu.vector_store %arg4[%c0_6, %c0_7], %8 {strides = array<i32>} : memref<400x128xbf16, #tpu.memory_space<vmem>>, vector<400x128xbf16>,
    return
  }
  func.func @transform_0(%arg0: i32) -> (i32, i32) {
    %c0_i32 = arith.constant 0 : i32
    %c0_i32_0 = arith.constant 0 : i32
    return %arg0, %c0_i32 : i32, i32
  }
  func.func @transform_1(%arg0: i32) -> (i32, i32) {
    %c0_i32 = arith.constant 0 : i32
    %c0_i32_0 = arith.constant 0 : i32
    %c0_i32_1 = arith.constant 0 : i32
    return %c0_i32, %c0_i32_0 : i32, i32
  }
  func.func @transform_2(%arg0: i32) -> (i32, i32) {
    %c0_i32 = arith.constant 0 : i32
    %c0_i32_0 = arith.constant 0 : i32
    %c0_i32_1 = arith.constant 0 : i32
    return %c0_i32, %c0_i32_0 : i32, i32
  }
  func.func @transform_3(%arg0: i32) -> (i32, i32) {
    %c0_i32 = arith.constant 0 : i32
    %c0_i32_0 = arith.constant 0 : i32
    return %arg0, %c0_i32 : i32, i32
  }
}

module attributes {stable_mosaic.version = 11 : i64} {
  func.func @_matmul_bias_act_kernel(%arg0: i32, %arg1: memref<96x512xbf16, #tpu.memory_space<vmem>>, %arg2: memref<512x128xbf16, #tpu.memory_space<vmem>>, %arg3: memref<1x128xf32, #tpu.memory_space<vmem>>, %arg4: memref<96x128xbf16, #tpu.memory_space<vmem>>) attributes {dimension_semantics = [#tpu.dimension_semantics<parallel>], iteration_bounds = array<i64: 2>, scalar_prefetch = 0 : i64, scratch_operands = 0 : i64, tpu.core_type = #tpu.core_type<tc>, window_params = [{transform_indices = @transform_0, window_bounds = array<i64: 96, 512>}, {pipeline_mode = #tpu.pipeline_mode<synchronous>, transform_indices = @transform_1, window_bounds = array<i64: 512, 128>}, {pipeline_mode = #tpu.pipeline_mode<synchronous>, transform_indices = @transform_2, window_bounds = array<i64: 1, 128>}, {transform_indices = @transform_3, window_bounds = array<i64: 96, 128>}]} {
    %c0 = arith.constant 0 : index
    %c0_0 = arith.constant 0 : index
    %0 = vector.load %arg1[%c0, %c0_0] : memref<96x512xbf16, #tpu.memory_space<vmem>>, vector<96x512xbf16>
    %c0_1 = arith.constant 0 : index
    %c0_2 = arith.constant 0 : index
    %1 = vector.load %arg2[%c0_1, %c0_2] : memref<512x128xbf16, #tpu.memory_space<vmem>>, vector<512x128xbf16>
    %cst = arith.constant dense<0.000000e+00> : vector<96x128xf32>
    %2 = tpu.matmul %0, %1, %cst {dimension_numbers = #tpu.dot_dimension_numbers<[1], [0], [0], [1], [0, 0, 1, 1], [], []>} : vector<96x512xbf16>, vector<512x128xbf16>, vector<96x128xf32> -> vector<96x128xf32>
    %c0_3 = arith.constant 0 : index
    %c0_4 = arith.constant 0 : index
    %3 = vector.load %arg3[%c0_3, %c0_4] : memref<1x128xf32, #tpu.memory_space<vmem>>, vector<1x128xf32>
    %4 = vector.broadcast %3 : vector<1x128xf32> to vector<96x128xf32>
    %5 = arith.addf %2, %4 : vector<96x128xf32>
    %cst_5 = arith.constant 0.000000e+00 : f32
    %6 = vector.broadcast %cst_5 : f32 to vector<96x128xf32>
    %7 = arith.maximumf %5, %6 : vector<96x128xf32>
    %8 = arith.truncf %7 : vector<96x128xf32> to vector<96x128xbf16>
    %c0_6 = arith.constant 0 : index
    %c0_7 = arith.constant 0 : index
    %9 = vector.load %arg4[%c0_6, %c0_7] : memref<96x128xbf16, #tpu.memory_space<vmem>>, vector<96x128xbf16>
    tpu.vector_store %arg4[%c0_6, %c0_7], %8 {strides = array<i32>} : memref<96x128xbf16, #tpu.memory_space<vmem>>, vector<96x128xbf16>,
    return
  }
  func.func @transform_0(%arg0: i32) -> (i32, i32) {
    %c0_i32 = arith.constant 0 : i32
    %c0_i32_0 = arith.constant 0 : i32
    return %arg0, %c0_i32 : i32, i32
  }
  func.func @transform_1(%arg0: i32) -> (i32, i32) {
    %c0_i32 = arith.constant 0 : i32
    %c0_i32_0 = arith.constant 0 : i32
    %c0_i32_1 = arith.constant 0 : i32
    return %c0_i32, %c0_i32_0 : i32, i32
  }
  func.func @transform_2(%arg0: i32) -> (i32, i32) {
    %c0_i32 = arith.constant 0 : i32
    %c0_i32_0 = arith.constant 0 : i32
    %c0_i32_1 = arith.constant 0 : i32
    return %c0_i32, %c0_i32_0 : i32, i32
  }
  func.func @transform_3(%arg0: i32) -> (i32, i32) {
    %c0_i32 = arith.constant 0 : i32
    %c0_i32_0 = arith.constant 0 : i32
    return %arg0, %c0_i32 : i32, i32
  }
}

module attributes {stable_mosaic.version = 11 : i64} {
  func.func @_matmul_bias_act_kernel(%arg0: i32, %arg1: memref<64x640xbf16, #tpu.memory_space<vmem>>, %arg2: memref<640x128xbf16, #tpu.memory_space<vmem>>, %arg3: memref<1x128xf32, #tpu.memory_space<vmem>>, %arg4: memref<64x128xbf16, #tpu.memory_space<vmem>>) attributes {dimension_semantics = [#tpu.dimension_semantics<parallel>], iteration_bounds = array<i64: 2>, scalar_prefetch = 0 : i64, scratch_operands = 0 : i64, tpu.core_type = #tpu.core_type<tc>, window_params = [{transform_indices = @transform_0, window_bounds = array<i64: 64, 640>}, {pipeline_mode = #tpu.pipeline_mode<synchronous>, transform_indices = @transform_1, window_bounds = array<i64: 640, 128>}, {pipeline_mode = #tpu.pipeline_mode<synchronous>, transform_indices = @transform_2, window_bounds = array<i64: 1, 128>}, {transform_indices = @transform_3, window_bounds = array<i64: 64, 128>}]} {
    %c0 = arith.constant 0 : index
    %c0_0 = arith.constant 0 : index
    %0 = vector.load %arg1[%c0, %c0_0] : memref<64x640xbf16, #tpu.memory_space<vmem>>, vector<64x640xbf16>
    %c0_1 = arith.constant 0 : index
    %c0_2 = arith.constant 0 : index
    %1 = vector.load %arg2[%c0_1, %c0_2] : memref<640x128xbf16, #tpu.memory_space<vmem>>, vector<640x128xbf16>
    %cst = arith.constant dense<0.000000e+00> : vector<64x128xf32>
    %2 = tpu.matmul %0, %1, %cst {dimension_numbers = #tpu.dot_dimension_numbers<[1], [0], [0], [1], [0, 0, 1, 1], [], []>} : vector<64x640xbf16>, vector<640x128xbf16>, vector<64x128xf32> -> vector<64x128xf32>
    %c0_3 = arith.constant 0 : index
    %c0_4 = arith.constant 0 : index
    %3 = vector.load %arg3[%c0_3, %c0_4] : memref<1x128xf32, #tpu.memory_space<vmem>>, vector<1x128xf32>
    %4 = vector.broadcast %3 : vector<1x128xf32> to vector<64x128xf32>
    %5 = arith.addf %2, %4 : vector<64x128xf32>
    %cst_5 = arith.constant 0.000000e+00 : f32
    %6 = vector.broadcast %cst_5 : f32 to vector<64x128xf32>
    %7 = arith.maximumf %5, %6 : vector<64x128xf32>
    %8 = arith.truncf %7 : vector<64x128xf32> to vector<64x128xbf16>
    %c0_6 = arith.constant 0 : index
    %c0_7 = arith.constant 0 : index
    %9 = vector.load %arg4[%c0_6, %c0_7] : memref<64x128xbf16, #tpu.memory_space<vmem>>, vector<64x128xbf16>
    tpu.vector_store %arg4[%c0_6, %c0_7], %8 {strides = array<i32>} : memref<64x128xbf16, #tpu.memory_space<vmem>>, vector<64x128xbf16>,
    return
  }
  func.func @transform_0(%arg0: i32) -> (i32, i32) {
    %c0_i32 = arith.constant 0 : i32
    %c0_i32_0 = arith.constant 0 : i32
    return %arg0, %c0_i32 : i32, i32
  }
  func.func @transform_1(%arg0: i32) -> (i32, i32) {
    %c0_i32 = arith.constant 0 : i32
    %c0_i32_0 = arith.constant 0 : i32
    %c0_i32_1 = arith.constant 0 : i32
    return %c0_i32, %c0_i32_0 : i32, i32
  }
  func.func @transform_2(%arg0: i32) -> (i32, i32) {
    %c0_i32 = arith.constant 0 : i32
    %c0_i32_0 = arith.constant 0 : i32
    %c0_i32_1 = arith.constant 0 : i32
    return %c0_i32, %c0_i32_0 : i32, i32
  }
  func.func @transform_3(%arg0: i32) -> (i32, i32) {
    %c0_i32 = arith.constant 0 : i32
    %c0_i32_0 = arith.constant 0 : i32
    return %arg0, %c0_i32 : i32, i32
  }
}

module attributes {stable_mosaic.version = 11 : i64} {
  func.func @_fused_head_kernel(%arg0: i32, %arg1: memref<16x3200xbf16, #tpu.memory_space<vmem>>, %arg2: memref<3200x512xbf16, #tpu.memory_space<vmem>>, %arg3: memref<1x512xf32, #tpu.memory_space<vmem>>, %arg4: memref<512x128xbf16, #tpu.memory_space<vmem>>, %arg5: memref<1x128xf32, #tpu.memory_space<vmem>>, %arg6: memref<16x128xf32, #tpu.memory_space<vmem>>) attributes {dimension_semantics = [#tpu.dimension_semantics<parallel>], iteration_bounds = array<i64: 1>, scalar_prefetch = 0 : i64, scratch_operands = 0 : i64, tpu.core_type = #tpu.core_type<tc>, window_params = [{transform_indices = @transform_0, window_bounds = array<i64: 16, 3200>}, {pipeline_mode = #tpu.pipeline_mode<synchronous>, transform_indices = @transform_1, window_bounds = array<i64: 3200, 512>}, {pipeline_mode = #tpu.pipeline_mode<synchronous>, transform_indices = @transform_2, window_bounds = array<i64: 1, 512>}, {pipeline_mode = #tpu.pipeline_mode<synchronous>, transform_indices = @transform_3, window_bounds = array<i64: 512, 128>}, {pipeline_mode = #tpu.pipeline_mode<synchronous>, transform_indices = @transform_4, window_bounds = array<i64: 1, 128>}, {transform_indices = @transform_5, window_bounds = array<i64: 16, 128>}]} {
    %c0 = arith.constant 0 : index
    %c0_0 = arith.constant 0 : index
    %0 = vector.load %arg1[%c0, %c0_0] : memref<16x3200xbf16, #tpu.memory_space<vmem>>, vector<16x3200xbf16>
    %c0_1 = arith.constant 0 : index
    %c0_2 = arith.constant 0 : index
    %1 = vector.load %arg2[%c0_1, %c0_2] : memref<3200x512xbf16, #tpu.memory_space<vmem>>, vector<3200x512xbf16>
    %cst = arith.constant dense<0.000000e+00> : vector<16x512xf32>
    %2 = tpu.matmul %0, %1, %cst {dimension_numbers = #tpu.dot_dimension_numbers<[1], [0], [0], [1], [0, 0, 1, 1], [], []>} : vector<16x3200xbf16>, vector<3200x512xbf16>, vector<16x512xf32> -> vector<16x512xf32>
    %c0_3 = arith.constant 0 : index
    %c0_4 = arith.constant 0 : index
    %3 = vector.load %arg3[%c0_3, %c0_4] : memref<1x512xf32, #tpu.memory_space<vmem>>, vector<1x512xf32>
    %4 = vector.broadcast %3 : vector<1x512xf32> to vector<16x512xf32>
    %5 = arith.addf %2, %4 : vector<16x512xf32>
    %cst_5 = arith.constant 0.000000e+00 : f32
    %6 = vector.broadcast %cst_5 : f32 to vector<16x512xf32>
    %7 = arith.maximumf %5, %6 : vector<16x512xf32>
    %8 = arith.truncf %7 : vector<16x512xf32> to vector<16x512xbf16>
    %c0_6 = arith.constant 0 : index
    %c0_7 = arith.constant 0 : index
    %9 = vector.load %arg4[%c0_6, %c0_7] : memref<512x128xbf16, #tpu.memory_space<vmem>>, vector<512x128xbf16>
    %cst_8 = arith.constant dense<0.000000e+00> : vector<16x128xf32>
    %10 = tpu.matmul %8, %9, %cst_8 {dimension_numbers = #tpu.dot_dimension_numbers<[1], [0], [0], [1], [0, 0, 1, 1], [], []>} : vector<16x512xbf16>, vector<512x128xbf16>, vector<16x128xf32> -> vector<16x128xf32>
    %c0_9 = arith.constant 0 : index
    %c0_10 = arith.constant 0 : index
    %11 = vector.load %arg5[%c0_9, %c0_10] : memref<1x128xf32, #tpu.memory_space<vmem>>, vector<1x128xf32>
    %12 = vector.broadcast %11 : vector<1x128xf32> to vector<16x128xf32>
    %13 = arith.addf %10, %12 : vector<16x128xf32>
    %c0_11 = arith.constant 0 : index
    %c0_12 = arith.constant 0 : index
    %14 = vector.load %arg6[%c0_11, %c0_12] : memref<16x128xf32, #tpu.memory_space<vmem>>, vector<16x128xf32>
    tpu.vector_store %arg6[%c0_11, %c0_12], %13 {strides = array<i32>} : memref<16x128xf32, #tpu.memory_space<vmem>>, vector<16x128xf32>,
    return
  }
  func.func @transform_0(%arg0: i32) -> (i32, i32) {
    %c0_i32 = arith.constant 0 : i32
    %c0_i32_0 = arith.constant 0 : i32
    return %arg0, %c0_i32 : i32, i32
  }
  func.func @transform_1(%arg0: i32) -> (i32, i32) {
    %c0_i32 = arith.constant 0 : i32
    %c0_i32_0 = arith.constant 0 : i32
    %c0_i32_1 = arith.constant 0 : i32
    return %c0_i32, %c0_i32_0 : i32, i32
  }
  func.func @transform_2(%arg0: i32) -> (i32, i32) {
    %c0_i32 = arith.constant 0 : i32
    %c0_i32_0 = arith.constant 0 : i32
    %c0_i32_1 = arith.constant 0 : i32
    return %c0_i32, %c0_i32_0 : i32, i32
  }
  func.func @transform_3(%arg0: i32) -> (i32, i32) {
    %c0_i32 = arith.constant 0 : i32
    %c0_i32_0 = arith.constant 0 : i32
    %c0_i32_1 = arith.constant 0 : i32
    return %c0_i32, %c0_i32_0 : i32, i32
  }
  func.func @transform_4(%arg0: i32) -> (i32, i32) {
    %c0_i32 = arith.constant 0 : i32
    %c0_i32_0 = arith.constant 0 : i32
    %c0_i32_1 = arith.constant 0 : i32
    return %c0_i32, %c0_i32_0 : i32, i32
  }
  func.func @transform_5(%arg0: i32) -> (i32, i32) {
    %c0_i32 = arith.constant 0 : i32
    %c0_i32_0 = arith.constant 0 : i32
    return %arg0, %c0_i32 : i32, i32
  }
}

</mosaic_0001>

<bundles_post_ra>
// kernel: dqn_forward.4
= control target key start
LH: loop header
LB: loop body
LE: loop exit
PB: predicated region body
PF: predicated region fallthrough
CT: control target
= control target key end

     0   :  { %s1626_s12 = smov 0   ;;  %s1885_s0 = inlined_call_operand.vmem [shape: bf16[800,256], index: 0, kind: input, shape index: {}]   ;;  %s1886_s1 = inlined_call_operand.vmem [shape: bf16[256,128], index: 1, kind: input, shape index: {}]   ;;  %s1887_s2 = inlined_call_operand.vmem [shape: f32[1,128], index: 2, kind: input, shape index: {}]   ;;  %s1888_s3 = inlined_call_operand.vmem [shape: bf16[800,128], index: 3, kind: output, shape index: {}]  }
   0x1 LB: > { %s1083_s13 = sadd.s32 4294967295, %s1604_s12   ;;  %p1087_p0 = scmp.ge.s32.totalorder %s1604_s12, 1  ;;  %s1604_s12 = sphi %s1626_s12, %s13_s12  }
   0x2   : > { %p139_p1 = scmp.lt.s32.totalorder %s1604_s12, 3 }
   0x4   : > { %p140_p2 = pnand %p1087_p0, %p139_p1 }
   0x5   : > { %s164_s26 = smul.u32 (!%p140_p2), 50, %s1083_s13 }
   0x6   : > { %143 = sbr.rel (%p140_p2) target bundleno = 384 (0x180), region = 32 }
   0x7   : > { %p165_p3 = scmp.lt.s32.totalorder (!%p140_p2), %s164_s26, 99 }
   0xb   : > { %v1415_v0 = vld [vmem:[%s1886_s1 + $0x38] sm:$0xff]  ;;  %v1414_v2 = vld [vmem:[%s1886_s1 + $0x30] sm:$0xff]  ;;  %v1413_v4 = vld [vmem:[%s1886_s1 + $0x28] sm:$0xff]  ;;  %s1890_s26 = smov (!%p165_p3, %s164_s26), 99 }
   0xc   : > { %v1423_v1 = vld [vmem:[%s1886_s1 + $0x78] sm:$0xff]  ;;  %609 = vmatpush.bf16.msra.mxu0 %v1415_v0  ;;  %1573 = vmatpush.bf16.msra.mxu2 %v1415_v0  ;;  %v1422_v3 = vld [vmem:[%s1886_s1 + $0x70] sm:$0xff]  ;;  %v1421_v5 = vld [vmem:[%s1886_s1 + $0x68] sm:$0xff]  ;;  %s1357_s13 = sshll.u32 %s1890_s26, 3  ;;  %s1090_s28 = sshll.u32 %s1890_s26, 2 }
   0xd   : > { %743 = vmatpush.bf16.msra.mxu1 %v1423_v1  ;;  %1581 = vmatpush.bf16.msra.mxu3 %v1423_v1  ;;  %v1412_v6 = vld [vmem:[%s1886_s1 + $0x20] sm:$0xff]  ;;  %v1411_v8 = vld [vmem:[%s1886_s1 + $0x18] sm:$0xff]  ;;  %v1410_v10 = vld [vmem:[%s1886_s1 + $0x10] sm:$0xff]  ;;  %s1679_s18 = scalar_lea.vmem %s1885_s0, %s1357_s13  ;;  %s1783_s4 = scalar_lea.vmem %s1888_s3, %s1090_s28 }
   0xe   : > { %v1420_v7 = vld [vmem:[%s1886_s1 + $0x60] sm:$0xff]  ;;  %v1419_v9 = vld [vmem:[%s1886_s1 + $0x58] sm:$0xff]  ;;  %v1418_v11 = vld [vmem:[%s1886_s1 + $0x50] sm:$0xff] }
   0xf   : > { %v1409_v12 = vld [vmem:[%s1886_s1 + $0x8] sm:$0xff]  ;;  %v1408_v14 = vld [vmem:[%s1886_s1] sm:$0xff]  ;;  %v1384_v22 = vld [vmem:[%s1679_s18 + $0xd4] sm:$0xf] }
  0x10   : > { %610 = vmatpush.bf16.msra.mxu0 %v1414_v2  ;;  %1574 = vmatpush.bf16.msra.mxu2 %v1414_v2  ;;  %v1417_v13 = vld [vmem:[%s1886_s1 + $0x48] sm:$0xff]  ;;  %v1416_v15 = vld [vmem:[%s1886_s1 + $0x40] sm:$0xff]  ;;  %v1199_v23 = vld [vmem:[%s1679_s18 + $0xd8] sm:$0xf0] }
  0x11   : > { %744 = vmatpush.bf16.msra.mxu1 %v1422_v3  ;;  %1582 = vmatpush.bf16.msra.mxu3 %v1422_v3  ;;  %v1093_v16 = vld [vmem:[%s1679_s18] sm:$0xf]  ;;  %v1359_v17 = vld [vmem:[%s1679_s18 + $0x4] sm:$0xf0]  ;;  %v1358_v20 = vld [vmem:[%s1679_s18 + $0x4] sm:$0xf]  ;;  %v1202_v27 = vor.u32 %v1384_v22, %v1199_v23 }
  0x12   : > { %v1189_v18 = vld [vmem:[%s1679_s18 + $0xc0] sm:$0xf]  ;;  %v1383_v19 = vld [vmem:[%s1679_s18 + $0xc4] sm:$0xf0]  ;;  %v1095_v21 = vld [vmem:[%s1679_s18 + $0x8] sm:$0xf0]  ;;  %v1094_v24 = vor.u32 %v1359_v17, %v1093_v16 }
  0x13   : > { %v1190_v25 = vor.u32 %v1383_v19, %v1189_v18  ;;  %v1098_v26 = vor.u32 %v1358_v20, %v1095_v21  ;;  %v1101_v28 = vld [vmem:[%s1679_s18 + $0x10] sm:$0xf]  ;;  %v1361_v29 = vld [vmem:[%s1679_s18 + $0x14] sm:$0xf0]  ;;  %v1360_v32 = vld [vmem:[%s1679_s18 + $0x14] sm:$0xf] }
  0x14   : > { %611 = vmatpush.bf16.msra.mxu0 %v1413_v4  ;;  %1575 = vmatpush.bf16.msra.mxu2 %v1413_v4  ;;  %v1197_v30 = vld [vmem:[%s1679_s18 + $0xd0] sm:$0xf]  ;;  %v1385_v31 = vld [vmem:[%s1679_s18 + $0xd4] sm:$0xf0]  ;;  %v1103_v33 = vld [vmem:[%s1679_s18 + $0x18] sm:$0xf0]  ;;  %v1102_v36 = vor.u32 %v1361_v29, %v1101_v28 }
  0x15   : > { %745 = vmatpush.bf16.msra.mxu1 %v1421_v5  ;;  %1583 = vmatpush.bf16.msra.mxu3 %v1421_v5  ;;  %v1386_v34 = vld [vmem:[%s1679_s18 + $0xe4] sm:$0xf]  ;;  %v1207_v35 = vld [vmem:[%s1679_s18 + $0xe8] sm:$0xf0]  ;;  %v1198_v37 = vor.u32 %v1385_v31, %v1197_v30  ;;  %v1106_v38 = vor.u32 %v1360_v32, %v1103_v33  ;;  %v1109_v40 = vld [vmem:[%s1679_s18 + $0x20] sm:$0xf] }
  0x16   : > { %v1210_v39 = vor.u32 %v1386_v34, %v1207_v35  ;;  %v1363_v41 = vld [vmem:[%s1679_s18 + $0x24] sm:$0xf0]  ;;  %v1205_v42 = vld [vmem:[%s1679_s18 + $0xe0] sm:$0xf]  ;;  %v1362_v44 = vld [vmem:[%s1679_s18 + $0x24] sm:$0xf] }
  0x17   : > { %v1387_v43 = vld [vmem:[%s1679_s18 + $0xe4] sm:$0xf0]  ;;  %v1111_v45 = vld [vmem:[%s1679_s18 + $0x28] sm:$0xf0]  ;;  %v1388_v46 = vld [vmem:[%s1679_s18 + $0xf4] sm:$0xf]  ;;  %v1110_v48 = vor.u32 %v1363_v41, %v1109_v40 }
  0x18   : > { %612 = vmatpush.bf16.msra.mxu0 %v1412_v6  ;;  %1576 = vmatpush.bf16.msra.mxu2 %v1412_v6  ;;  %v1215_v47 = vld [vmem:[%s1679_s18 + $0xf8] sm:$0xf0]  ;;  %v1206_v49 = vor.u32 %v1387_v43, %v1205_v42  ;;  %v1114_v50 = vor.u32 %v1362_v44, %v1111_v45  ;;  %v1117_v52 = vld [vmem:[%s1679_s18 + $0x30] sm:$0xf]  ;;  %v1365_v53 = vld [vmem:[%s1679_s18 + $0x34] sm:$0xf0] }
  0x19   : > { %746 = vmatpush.bf16.msra.mxu1 %v1420_v7  ;;  %1584 = vmatpush.bf16.msra.mxu3 %v1420_v7  ;;  %v1218_v51 = vor.u32 %v1388_v46, %v1215_v47  ;;  %v1213_v54 = vld [vmem:[%s1679_s18 + $0xf0] sm:$0xf]  ;;  %v1389_v55 = vld [vmem:[%s1679_s18 + $0xf4] sm:$0xf0]  ;;  %v1364_v56 = vld [vmem:[%s1679_s18 + $0x34] sm:$0xf]  ;;  %v1118_v60 = vor.u32 %v1365_v53, %v1117_v52 }
  0x1a   : > { %v1119_v57 = vld [vmem:[%s1679_s18 + $0x38] sm:$0xf0]  ;;  %v1390_v58 = vld [vmem:[%s1679_s18 + $0x104] sm:$0xf]  ;;  %v1223_v59 = vld [vmem:[%s1679_s18 + $0x108] sm:$0xf0]  ;;  %v1214_v61 = vor.u32 %v1389_v55, %v1213_v54 }
  0x1b   : > { %v1122_v62 = vor.u32 %v1364_v56, %v1119_v57  ;;  %v1226_v63 = vor.u32 %v1390_v58, %v1223_v59  ;;  %v1125_v0 = vld [vmem:[%s1679_s18 + $0x40] sm:$0xf]  ;;  %v1367_v1 = vld [vmem:[%s1679_s18 + $0x44] sm:$0xf0]  ;;  %v1366_v4 = vld [vmem:[%s1679_s18 + $0x44] sm:$0xf] }
  0x1c   : > { %613 = vmatpush.bf16.msra.mxu0 %v1411_v8  ;;  %1577 = vmatpush.bf16.msra.mxu2 %v1411_v8  ;;  %v1221_v2 = vld [vmem:[%s1679_s18 + $0x100] sm:$0xf]  ;;  %v1391_v3 = vld [vmem:[%s1679_s18 + $0x104] sm:$0xf0]  ;;  %v1127_v5 = vld [vmem:[%s1679_s18 + $0x48] sm:$0xf0]  ;;  %v1126_v8 = vor.u32 %v1367_v1, %v1125_v0 }
  0x1d   : > { %747 = vmatpush.bf16.msra.mxu1 %v1419_v9  ;;  %1585 = vmatpush.bf16.msra.mxu3 %v1419_v9  ;;  %v1392_v6 = vld [vmem:[%s1679_s18 + $0x114] sm:$0xf]  ;;  %v1231_v7 = vld [vmem:[%s1679_s18 + $0x118] sm:$0xf0]  ;;  %v1222_v9 = vor.u32 %v1391_v3, %v1221_v2  ;;  %v1394_v18 = vld [vmem:[%s1679_s18 + $0x124] sm:$0xf] }
  0x1e   : > { %v1368_v16 = vld [vmem:[%s1679_s18 + $0x54] sm:$0xf]  ;;  %v1135_v17 = vld [vmem:[%s1679_s18 + $0x58] sm:$0xf0]  ;;  %v1239_v19 = vld [vmem:[%s1679_s18 + $0x128] sm:$0xf0] }
  0x1f   : > { %v1138_v22 = vor.u32 %v1368_v16, %v1135_v17  ;;  %v1242_v23 = vor.u32 %v1394_v18, %v1239_v19  ;;  %v1370_v28 = vld [vmem:[%s1679_s18 + $0x64] sm:$0xf]  ;;  %v1143_v29 = vld [vmem:[%s1679_s18 + $0x68] sm:$0xf0]  ;;  %v1396_v30 = vld [vmem:[%s1679_s18 + $0x134] sm:$0xf] }
  0x20   : > { %614 = vmatpush.bf16.msra.mxu0 %v1410_v10  ;;  %1578 = vmatpush.bf16.msra.mxu2 %v1410_v10  ;;  %v1130_v10 = vor.u32 %v1366_v4, %v1127_v5  ;;  %v1247_v31 = vld [vmem:[%s1679_s18 + $0x138] sm:$0xf0]  ;;  %v1146_v34 = vor.u32 %v1370_v28, %v1143_v29  ;;  %v1372_v40 = vld [vmem:[%s1679_s18 + $0x74] sm:$0xf]  ;;  %v1398_v42 = vld [vmem:[%s1679_s18 + $0x144] sm:$0xf] }
  0x21   : > { %748 = vmatpush.bf16.msra.mxu1 %v1418_v11  ;;  %1586 = vmatpush.bf16.msra.mxu3 %v1418_v11  ;;  %v1234_v11 = vor.u32 %v1392_v6, %v1231_v7  ;;  %v1250_v35 = vor.u32 %v1396_v30, %v1247_v31  ;;  %v1151_v41 = vld [vmem:[%s1679_s18 + $0x78] sm:$0xf0]  ;;  %v1255_v43 = vld [vmem:[%s1679_s18 + $0x148] sm:$0xf0]  ;;  %v1374_v52 = vld [vmem:[%s1679_s18 + $0x84] sm:$0xf] }
  0x22   : > { %v1154_v46 = vor.u32 %v1372_v40, %v1151_v41  ;;  %v1258_v47 = vor.u32 %v1398_v42, %v1255_v43  ;;  %v1159_v53 = vld [vmem:[%s1679_s18 + $0x88] sm:$0xf0]  ;;  %v1400_v54 = vld [vmem:[%s1679_s18 + $0x154] sm:$0xf]  ;;  %v1263_v55 = vld [vmem:[%s1679_s18 + $0x158] sm:$0xf0] }
  0x23   : > { %v1162_v59 = vor.u32 %v1374_v52, %v1159_v53  ;;  %v1165_v7 = vld [vmem:[%s1679_s18 + $0x90] sm:$0xf]  ;;  %v1271_v16 = vld [vmem:[%s1679_s18 + $0x168] sm:$0xf0]  ;;  %v1404_v43 = vld [vmem:[%s1679_s18 + $0x174] sm:$0xf] }
  0x24   : > { %615 = vmatpush.bf16.msra.mxu0 %v1409_v12  ;;  %1579 = vmatpush.bf16.msra.mxu2 %v1409_v12  ;;  %v1133_v12 = vld [vmem:[%s1679_s18 + $0x50] sm:$0xf]  ;;  %v1175_v40 = vld [vmem:[%s1679_s18 + $0xa8] sm:$0xf0] }
  0x25   : > { %749 = vmatpush.bf16.msra.mxu1 %v1417_v13  ;;  %1587 = vmatpush.bf16.msra.mxu3 %v1417_v13  ;;  %v1369_v13 = vld [vmem:[%s1679_s18 + $0x54] sm:$0xf0] }
  0x26   : > { %v1134_v20 = vor.u32 %v1369_v13, %v1133_v12  ;;  %v1167_v12 = vld [vmem:[%s1679_s18 + $0x98] sm:$0xf0] }
  0x28   : > { %616 = vmatpush.bf16.msra.mxu0 %v1408_v14  ;;  %1580 = vmatpush.bf16.msra.mxu2 %v1408_v14  ;;  %v1229_v14 = vld [vmem:[%s1679_s18 + $0x110] sm:$0xf] }
  0x29   : > { %750 = vmatpush.bf16.msra.mxu1 %v1416_v15  ;;  %1588 = vmatpush.bf16.msra.mxu3 %v1416_v15  ;;  %v1393_v15 = vld [vmem:[%s1679_s18 + $0x114] sm:$0xf0] }
  0x2a   : > { %v1230_v21 = vor.u32 %v1393_v15, %v1229_v14  ;;  %v1402_v15 = vld [vmem:[%s1679_s18 + $0x164] sm:$0xf] }
  0x2b   : > { %617 = vmatmul.bf16.vlgmr.msra.gmra.mxu0 %v1094_v24  ;;  %677 = vmatmul.bf16.vlgmr.msra.gmra.mxu2 %v1190_v25  ;;  %v1141_v24 = vld [vmem:[%s1679_s18 + $0x60] sm:$0xf]  ;;  %v1371_v25 = vld [vmem:[%s1679_s18 + $0x64] sm:$0xf0] }
  0x2c   : > { %751 = vmatmul.bf16.vlgmr.msra.gmra.mxu1 %v1098_v26  ;;  %816 = vmatmul.bf16.vlgmr.msra.gmra.mxu3 %v1202_v27  ;;  %v1237_v26 = vld [vmem:[%s1679_s18 + $0x120] sm:$0xf]  ;;  %v1395_v27 = vld [vmem:[%s1679_s18 + $0x124] sm:$0xf0]  ;;  %v1142_v32 = vor.u32 %v1371_v25, %v1141_v24  ;;  %v1274_v24 = vor.u32 %v1402_v15, %v1271_v16  ;;  %v1406_v15 = vld [vmem:[%s1679_s18 + $0x184] sm:$0xf] }
  0x2d   : > { %v1238_v33 = vor.u32 %v1395_v27, %v1237_v26  ;;  %v1287_v16 = vld [vmem:[%s1679_s18 + $0x188] sm:$0xf0] }
  0x3b   : > { %622 = vmatmul.bf16.gmra.mxu0 %v1102_v36  ;;  %682 = vmatmul.bf16.gmra.mxu2 %v1198_v37  ;;  %v1149_v36 = vld [vmem:[%s1679_s18 + $0x70] sm:$0xf]  ;;  %v1373_v37 = vld [vmem:[%s1679_s18 + $0x74] sm:$0xf0] }
  0x3c   : > { %756 = vmatmul.bf16.gmra.mxu1 %v1106_v38  ;;  %821 = vmatmul.bf16.gmra.mxu3 %v1210_v39  ;;  %v1245_v38 = vld [vmem:[%s1679_s18 + $0x130] sm:$0xf]  ;;  %v1397_v39 = vld [vmem:[%s1679_s18 + $0x134] sm:$0xf0]  ;;  %v1150_v44 = vor.u32 %v1373_v37, %v1149_v36  ;;  %v1379_v36 = vld [vmem:[%s1679_s18 + $0xa4] sm:$0xf0] }
  0x3d   : > { %v1246_v45 = vor.u32 %v1397_v39, %v1245_v38  ;;  %v1269_v37 = vld [vmem:[%s1679_s18 + $0x160] sm:$0xf]  ;;  %v1403_v38 = vld [vmem:[%s1679_s18 + $0x164] sm:$0xf0]  ;;  %v1378_v39 = vld [vmem:[%s1679_s18 + $0xa4] sm:$0xf] }
  0x3e   : > { %v1178_v53 = vor.u32 %v1378_v39, %v1175_v40 }
  0x4b   : > { %627 = vmatmul.bf16.gmra.mxu0 %v1110_v48  ;;  %687 = vmatmul.bf16.gmra.mxu2 %v1206_v49  ;;  %v1157_v48 = vld [vmem:[%s1679_s18 + $0x80] sm:$0xf]  ;;  %v1375_v49 = vld [vmem:[%s1679_s18 + $0x84] sm:$0xf0] }
  0x4c   : > { %761 = vmatmul.bf16.gmra.mxu1 %v1114_v50  ;;  %826 = vmatmul.bf16.gmra.mxu3 %v1218_v51  ;;  %v1253_v50 = vld [vmem:[%s1679_s18 + $0x140] sm:$0xf]  ;;  %v1399_v51 = vld [vmem:[%s1679_s18 + $0x144] sm:$0xf0]  ;;  %v1158_v56 = vor.u32 %v1375_v49, %v1157_v48 }
  0x4d   : > { %v1254_v57 = vor.u32 %v1399_v51, %v1253_v50  ;;  %v1270_v50 = vor.u32 %v1403_v38, %v1269_v37 }
  0x5b   : > { %632 = vmatmul.bf16.gmra.mxu0 %v1118_v60  ;;  %692 = vmatmul.bf16.gmra.mxu2 %v1214_v61  ;;  %v1266_v60 = vor.u32 %v1400_v54, %v1263_v55  ;;  %v1765_v61 = vld [vmem:[%s1887_s2] ss:$0 sm:$0xff] }
  0x5c   : > { %766 = vmatmul.bf16.gmra.mxu1 %v1122_v62  ;;  %831 = vmatmul.bf16.gmra.mxu3 %v1226_v63 }
  0x6b   : > { %637 = vmatmul.bf16.gmra.mxu0 %v1126_v8  ;;  %697 = vmatmul.bf16.gmra.mxu2 %v1222_v9  ;;  %v1377_v8 = vld [vmem:[%s1679_s18 + $0x94] sm:$0xf0]  ;;  %v1261_v9 = vld [vmem:[%s1679_s18 + $0x150] sm:$0xf] }
  0x6c   : > { %771 = vmatmul.bf16.gmra.mxu1 %v1130_v10  ;;  %836 = vmatmul.bf16.gmra.mxu3 %v1234_v11  ;;  %v1401_v10 = vld [vmem:[%s1679_s18 + $0x154] sm:$0xf0]  ;;  %v1376_v11 = vld [vmem:[%s1679_s18 + $0x94] sm:$0xf]  ;;  %v1166_v19 = vor.u32 %v1377_v8, %v1165_v7  ;;  %v1181_v7 = vld [vmem:[%s1679_s18 + $0xb0] sm:$0xf] }
  0x6d   : > { %v1381_v8 = vld [vmem:[%s1679_s18 + $0xb4] sm:$0xf0] }
  0x7b   : > { %642 = vmatmul.bf16.gmra.mxu0 %v1134_v20  ;;  %702 = vmatmul.bf16.gmra.mxu2 %v1230_v21  ;;  %v1262_v20 = vor.u32 %v1401_v10, %v1261_v9  ;;  %v1277_v9 = vld [vmem:[%s1679_s18 + $0x170] sm:$0xf]  ;;  %v1405_v10 = vld [vmem:[%s1679_s18 + $0x174] sm:$0xf0] }
  0x7c   : > { %776 = vmatmul.bf16.gmra.mxu1 %v1138_v22  ;;  %841 = vmatmul.bf16.gmra.mxu3 %v1242_v23  ;;  %v1170_v23 = vor.u32 %v1376_v11, %v1167_v12  ;;  %v1380_v11 = vld [vmem:[%s1679_s18 + $0xb4] sm:$0xf]  ;;  %v1183_v12 = vld [vmem:[%s1679_s18 + $0xb8] sm:$0xf0] }
  0x8b   : > { %647 = vmatmul.bf16.gmra.mxu0 %v1142_v32  ;;  %707 = vmatmul.bf16.gmra.mxu2 %v1238_v33 }
  0x8c   : > { %781 = vmatmul.bf16.gmra.mxu1 %v1146_v34  ;;  %846 = vmatmul.bf16.gmra.mxu3 %v1250_v35  ;;  %v1173_v35 = vld [vmem:[%s1679_s18 + $0xa0] sm:$0xf] }
  0x9b   : > { %652 = vmatmul.bf16.gmra.mxu0 %v1150_v44  ;;  %712 = vmatmul.bf16.gmra.mxu2 %v1246_v45  ;;  %v1279_v44 = vld [vmem:[%s1679_s18 + $0x178] sm:$0xf0] }
  0x9c   : > { %786 = vmatmul.bf16.gmra.mxu1 %v1154_v46  ;;  %851 = vmatmul.bf16.gmra.mxu3 %v1258_v47  ;;  %v1174_v46 = vor.u32 %v1379_v36, %v1173_v35  ;;  %v1282_v54 = vor.u32 %v1404_v43, %v1279_v44  ;;  %v1407_v43 = vld [vmem:[%s1679_s18 + $0x184] sm:$0xf0] }
  0xa8   : > { %v618_v58 = vpop.f32.mrf.mxu0 }
  0xa9   : > { %v752_v62 = vpop.f32.mrf.mxu1  ;;  %v619_v63 = vadd.f32 %v1765_v61, %v618_v58 }
  0xab   : > { %657 = vmatmul.bf16.gmra.mxu0 %v1158_v56  ;;  %717 = vmatmul.bf16.gmra.mxu2 %v1254_v57  ;;  %v753_v3 = vadd.f32 %v752_v62, %v619_v63 }
  0xac   : > { %791 = vmatmul.bf16.gmra.mxu1 %v1162_v59  ;;  %856 = vmatmul.bf16.gmra.mxu3 %v1266_v60 }
  0xad   : > { %v877_v13 = vmax.f32 %v753_v3, 0.0 }
  0xae   : > { %v1768_v0 = vpop.f32.mrf.mxu2 }
  0xaf   : > { %v817_v1 = vpop.f32.mrf.mxu3 }
  0xb0   : > { %v620_v2 = vpop.f32.mrf.mxu0 }
  0xb1   : > { %v621_v4 = vadd.f32 %v1765_v61, %v620_v2  ;;  %v754_v5 = vpop.f32.mrf.mxu1 }
  0xb3   : > { %v755_v6 = vadd.f32 %v754_v5, %v621_v4 }
  0xb5   : > { %v878_v14 = vmax.f32 %v755_v6, 0.0 }
  0xb6   : > { %v1785_v17 = vpop.f32.mrf.mxu2 }
  0xb7   : > { %v1427_v18 = vpack.c.bf16 %v878_v14, %v877_v13  ;;  %v819_v21 = vpop.f32.mrf.mxu3 }
  0xb8   : > { %v623_v22 = vpop.f32.mrf.mxu0 }
  0xb9   : > { %1428 = vst [vmem:[%s1783_s4] sm:$0xff] %v1427_v18   ;;  %v757_v25 = vpop.f32.mrf.mxu1  ;;  %v624_v26 = vadd.f32 %v1765_v61, %v623_v22 }
  0xbb   : > { %662 = vmatmul.bf16.gmra.mxu0 %v1166_v19  ;;  %722 = vmatmul.bf16.gmra.mxu2 %v1262_v20  ;;  %v758_v30 = vadd.f32 %v757_v25, %v624_v26  ;;  %v1182_v19 = vor.u32 %v1381_v8, %v1181_v7  ;;  %v1186_v26 = vor.u32 %v1380_v11, %v1183_v12 }
  0xbc   : > { %796 = vmatmul.bf16.gmra.mxu1 %v1170_v23  ;;  %861 = vmatmul.bf16.gmra.mxu3 %v1274_v24  ;;  %v1278_v23 = vor.u32 %v1405_v10, %v1277_v9 }
  0xbd   : > { %v879_v41 = vmax.f32 %v758_v30, 0.0 }
  0xbe   : > { %v683_v27 = vpop.f32.mrf.mxu2 }
  0xbf   : > { %v822_v28 = vpop.f32.mrf.mxu3  ;;  %v684_v33 = vadd.f32 %v1765_v61, %v683_v27  ;;  %v1290_v27 = vor.u32 %v1406_v15, %v1287_v16 }
  0xc0   : > { %v625_v29 = vpop.f32.mrf.mxu0 }
  0xc1   : > { %v626_v31 = vadd.f32 %v1765_v61, %v625_v29  ;;  %v759_v32 = vpop.f32.mrf.mxu1  ;;  %v818_v47 = vadd.f32 %v817_v1, %v684_v33 }
  0xc3   : > { %v760_v34 = vadd.f32 %v759_v32, %v626_v31  ;;  %v903_v57 = vmax.f32 %v818_v47, 0.0  ;;  %v1191_v47 = vld [vmem:[%s1679_s18 + $0xc8] sm:$0xf0] }
  0xc5   : > { %v880_v42 = vmax.f32 %v760_v34, 0.0 }
  0xc6   : > { %v685_v45 = vpop.f32.mrf.mxu2 }
  0xc7   : > { %v1432_v48 = vpack.c.bf16 %v880_v42, %v879_v41  ;;  %v686_v49 = vadd.f32 %v1765_v61, %v685_v45  ;;  %v824_v51 = vpop.f32.mrf.mxu3  ;;  %v1285_v42 = vld [vmem:[%s1679_s18 + $0x180] sm:$0xf] }
  0xc8   : > { %v628_v52 = vpop.f32.mrf.mxu0 }
  0xc9   : > { %1549 = vst [vmem:[%s1783_s4 + $0x8] sm:$0xff] %v1432_v48   ;;  %v820_v55 = vadd.f32 %v819_v21, %v686_v49  ;;  %v762_v56 = vpop.f32.mrf.mxu1  ;;  %v629_v60 = vadd.f32 %v1765_v61, %v628_v52  ;;  %v1286_v52 = vor.u32 %v1407_v43, %v1285_v42 }
  0xcb   : > { %v904_v58 = vmax.f32 %v820_v55, 0.0  ;;  %667 = vmatmul.bf16.gmra.mxu0 %v1174_v46  ;;  %727 = vmatmul.bf16.gmra.mxu2 %v1270_v50  ;;  %v763_v2 = vadd.f32 %v762_v56, %v629_v60  ;;  %v1382_v46 = vld [vmem:[%s1679_s18 + $0xc4] sm:$0xf] }
  0xcc   : > { %801 = vmatmul.bf16.gmra.mxu1 %v1178_v53  ;;  %866 = vmatmul.bf16.gmra.mxu3 %v1282_v54  ;;  %v1194_v55 = vor.u32 %v1382_v46, %v1191_v47 }
  0xcd   : > { %v1492_v59 = vpack.c.bf16 %v904_v58, %v903_v57  ;;  %v881_v13 = vmax.f32 %v763_v2, 0.0 }
  0xce   : > { %v688_v62 = vpop.f32.mrf.mxu2 }
  0xcf   : > { %1561 = vst [vmem:[%s1783_s4 + $0x68] sm:$0xff] %v1492_v59   ;;  %v827_v63 = vpop.f32.mrf.mxu3  ;;  %v689_v5 = vadd.f32 %v1765_v61, %v688_v62 }
  0xd0   : > { %v630_v1 = vpop.f32.mrf.mxu0 }
  0xd1   : > { %v631_v3 = vadd.f32 %v1765_v61, %v630_v1  ;;  %v764_v4 = vpop.f32.mrf.mxu1  ;;  %v823_v20 = vadd.f32 %v822_v28, %v689_v5 }
  0xd3   : > { %v765_v6 = vadd.f32 %v764_v4, %v631_v3  ;;  %v905_v31 = vmax.f32 %v823_v20, 0.0 }
  0xd5   : > { %v882_v14 = vmax.f32 %v765_v6, 0.0 }
  0xd6   : > { %v690_v18 = vpop.f32.mrf.mxu2 }
  0xd7   : > { %v1437_v21 = vpack.c.bf16 %v882_v14, %v881_v13  ;;  %v691_v22 = vadd.f32 %v1765_v61, %v690_v18  ;;  %v829_v24 = vpop.f32.mrf.mxu3 }
  0xd8   : > { %v633_v25 = vpop.f32.mrf.mxu0 }
  0xd9   : > { %1550 = vst [vmem:[%s1783_s4 + $0x10] sm:$0xff] %v1437_v21   ;;  %v825_v29 = vadd.f32 %v824_v51, %v691_v22  ;;  %v767_v30 = vpop.f32.mrf.mxu1  ;;  %v634_v33 = vadd.f32 %v1765_v61, %v633_v25 }
  0xdb   : > { %v906_v32 = vmax.f32 %v825_v29, 0.0  ;;  %672 = vmatmul.bf16.gmra.mxu0 %v1182_v19  ;;  %732 = vmatmul.bf16.gmra.mxu2 %v1278_v23  ;;  %v768_v37 = vadd.f32 %v767_v30, %v634_v33 }
  0xdc   : > { %806 = vmatmul.bf16.gmra.mxu1 %v1186_v26  ;;  %871 = vmatmul.bf16.gmra.mxu3 %v1290_v27 }
  0xdd   : > { %v1497_v28 = vpack.c.bf16 %v906_v32, %v905_v31  ;;  %v883_v44 = vmax.f32 %v768_v37, 0.0 }
  0xde   : > { %v693_v34 = vpop.f32.mrf.mxu2 }
  0xdf   : > { %1562 = vst [vmem:[%s1783_s4 + $0x70] sm:$0xff] %v1497_v28   ;;  %v832_v35 = vpop.f32.mrf.mxu3  ;;  %v694_v40 = vadd.f32 %v1765_v61, %v693_v34 }
  0xe0   : > { %v635_v36 = vpop.f32.mrf.mxu0 }
  0xe1   : > { %v636_v38 = vadd.f32 %v1765_v61, %v635_v36  ;;  %v769_v39 = vpop.f32.mrf.mxu1  ;;  %v828_v49 = vadd.f32 %v827_v63, %v694_v40 }
  0xe3   : > { %v770_v41 = vadd.f32 %v769_v39, %v636_v38  ;;  %v907_v58 = vmax.f32 %v828_v49, 0.0 }
  0xe5   : > { %v884_v45 = vmax.f32 %v770_v41, 0.0 }
  0xe6   : > { %v695_v48 = vpop.f32.mrf.mxu2 }
  0xe7   : > { %v1442_v50 = vpack.c.bf16 %v884_v45, %v883_v44  ;;  %v696_v51 = vadd.f32 %v1765_v61, %v695_v48  ;;  %v834_v53 = vpop.f32.mrf.mxu3 }
  0xe8   : > { %v638_v54 = vpop.f32.mrf.mxu0 }
  0xe9   : > { %1551 = vst [vmem:[%s1783_s4 + $0x18] sm:$0xff] %v1442_v50   ;;  %v830_v56 = vadd.f32 %v829_v24, %v696_v51  ;;  %v772_v57 = vpop.f32.mrf.mxu1  ;;  %v639_v62 = vadd.f32 %v1765_v61, %v638_v54 }
  0xeb   : > { %v908_v59 = vmax.f32 %v830_v56, 0.0  ;;  %737 = vmatmul.bf16.gmra.mxu2 %v1286_v52  ;;  %v773_v3 = vadd.f32 %v772_v57, %v639_v62 }
  0xec   : > { %811 = vmatmul.bf16.gmra.mxu1 %v1194_v55 }
  0xed   : > { %v1502_v60 = vpack.c.bf16 %v908_v59, %v907_v58  ;;  %v885_v8 = vmax.f32 %v773_v3, 0.0 }
  0xee   : > { %v698_v1 = vpop.f32.mrf.mxu2 }
  0xef   : > { %1563 = vst [vmem:[%s1783_s4 + $0x78] sm:$0xff] %v1502_v60   ;;  %v837_v63 = vpop.f32.mrf.mxu3  ;;  %v699_v6 = vadd.f32 %v1765_v61, %v698_v1 }
  0xf0   : > { %v640_v2 = vpop.f32.mrf.mxu0 }
  0xf1   : > { %v641_v4 = vadd.f32 %v1765_v61, %v640_v2  ;;  %v774_v5 = vpop.f32.mrf.mxu1  ;;  %v833_v11 = vadd.f32 %v832_v35, %v699_v6 }
  0xf3   : > { %v775_v7 = vadd.f32 %v774_v5, %v641_v4  ;;  %v909_v19 = vmax.f32 %v833_v11, 0.0 }
  0xf5   : > { %v886_v9 = vmax.f32 %v775_v7, 0.0 }
  0xf6   : > { %v700_v10 = vpop.f32.mrf.mxu2 }
  0xf7   : > { %v1447_v12 = vpack.c.bf16 %v886_v9, %v885_v8  ;;  %v701_v13 = vadd.f32 %v1765_v61, %v700_v10  ;;  %v839_v14 = vpop.f32.mrf.mxu3 }
  0xf8   : > { %v643_v15 = vpop.f32.mrf.mxu0 }
  0xf9   : > { %1552 = vst [vmem:[%s1783_s4 + $0x20] sm:$0xff] %v1447_v12   ;;  %v835_v16 = vadd.f32 %v834_v53, %v701_v13  ;;  %v777_v18 = vpop.f32.mrf.mxu1  ;;  %v644_v22 = vadd.f32 %v1765_v61, %v643_v15 }
  0xfb   : > { %v910_v20 = vmax.f32 %v835_v16, 0.0  ;;  %v778_v26 = vadd.f32 %v777_v18, %v644_v22 }
  0xfd   : > { %v1507_v21 = vpack.c.bf16 %v910_v20, %v909_v19  ;;  %v887_v32 = vmax.f32 %v778_v26, 0.0 }
  0xfe   : > { %v703_v23 = vpop.f32.mrf.mxu2 }
  0xff   : > { %1564 = vst [vmem:[%s1783_s4 + $0x80] sm:$0xff] %v1507_v21   ;;  %v842_v24 = vpop.f32.mrf.mxu3  ;;  %v704_v30 = vadd.f32 %v1765_v61, %v703_v23 }
 0x100   : > { %v645_v25 = vpop.f32.mrf.mxu0 }
 0x101   : > { %v646_v27 = vadd.f32 %v1765_v61, %v645_v25  ;;  %v779_v29 = vpop.f32.mrf.mxu1  ;;  %v838_v34 = vadd.f32 %v837_v63, %v704_v30 }
 0x103   : > { %v780_v31 = vadd.f32 %v779_v29, %v646_v27  ;;  %v911_v41 = vmax.f32 %v838_v34, 0.0 }
 0x105   : > { %v888_v28 = vmax.f32 %v780_v31, 0.0 }
 0x106   : > { %v705_v33 = vpop.f32.mrf.mxu2 }
 0x107   : > { %v1452_v35 = vpack.c.bf16 %v888_v28, %v887_v32  ;;  %v706_v36 = vadd.f32 %v1765_v61, %v705_v33  ;;  %v844_v37 = vpop.f32.mrf.mxu3 }
 0x108   : > { %v648_v38 = vpop.f32.mrf.mxu0 }
 0x109   : > { %1553 = vst [vmem:[%s1783_s4 + $0x28] sm:$0xff] %v1452_v35   ;;  %v840_v39 = vadd.f32 %v839_v14, %v706_v36  ;;  %v782_v40 = vpop.f32.mrf.mxu1  ;;  %v649_v44 = vadd.f32 %v1765_v61, %v648_v38 }
 0x10b   : > { %v912_v42 = vmax.f32 %v840_v39, 0.0  ;;  %v783_v48 = vadd.f32 %v782_v40, %v649_v44 }
 0x10d   : > { %v1512_v43 = vpack.c.bf16 %v912_v42, %v911_v41  ;;  %v889_v53 = vmax.f32 %v783_v48, 0.0 }
 0x10e   : > { %v708_v45 = vpop.f32.mrf.mxu2 }
 0x10f   : > { %1565 = vst [vmem:[%s1783_s4 + $0x88] sm:$0xff] %v1512_v43   ;;  %v847_v46 = vpop.f32.mrf.mxu3  ;;  %v709_v51 = vadd.f32 %v1765_v61, %v708_v45 }
 0x110   : > { %v650_v47 = vpop.f32.mrf.mxu0 }
 0x111   : > { %v651_v49 = vadd.f32 %v1765_v61, %v650_v47  ;;  %v784_v50 = vpop.f32.mrf.mxu1  ;;  %v843_v56 = vadd.f32 %v842_v24, %v709_v51 }
 0x113   : > { %v785_v52 = vadd.f32 %v784_v50, %v651_v49  ;;  %v913_v63 = vmax.f32 %v843_v56, 0.0 }
 0x115   : > { %v890_v54 = vmax.f32 %v785_v52, 0.0 }
 0x116   : > { %v710_v55 = vpop.f32.mrf.mxu2 }
 0x117   : > { %v1457_v57 = vpack.c.bf16 %v890_v54, %v889_v53  ;;  %v711_v58 = vadd.f32 %v1765_v61, %v710_v55  ;;  %v849_v59 = vpop.f32.mrf.mxu3 }
 0x118   : > { %v653_v60 = vpop.f32.mrf.mxu0 }
 0x119   : > { %1554 = vst [vmem:[%s1783_s4 + $0x30] sm:$0xff] %v1457_v57   ;;  %v845_v62 = vadd.f32 %v844_v37, %v711_v58  ;;  %v787_v1 = vpop.f32.mrf.mxu1  ;;  %v654_v4 = vadd.f32 %v1765_v61, %v653_v60 }
 0x11b   : > { %v914_v2 = vmax.f32 %v845_v62, 0.0  ;;  %v788_v8 = vadd.f32 %v787_v1, %v654_v4 }
 0x11d   : > { %v1517_v3 = vpack.c.bf16 %v914_v2, %v913_v63  ;;  %v891_v13 = vmax.f32 %v788_v8, 0.0 }
 0x11e   : > { %v713_v5 = vpop.f32.mrf.mxu2 }
 0x11f   : > { %1566 = vst [vmem:[%s1783_s4 + $0x90] sm:$0xff] %v1517_v3   ;;  %v852_v6 = vpop.f32.mrf.mxu3  ;;  %v714_v11 = vadd.f32 %v1765_v61, %v713_v5 }
 0x120   : > { %v655_v7 = vpop.f32.mrf.mxu0 }
 0x121   : > { %v656_v9 = vadd.f32 %v1765_v61, %v655_v7  ;;  %v789_v10 = vpop.f32.mrf.mxu1  ;;  %v848_v16 = vadd.f32 %v847_v46, %v714_v11 }
 0x123   : > { %v790_v12 = vadd.f32 %v789_v10, %v656_v9  ;;  %v915_v24 = vmax.f32 %v848_v16, 0.0 }
 0x125   : > { %v892_v14 = vmax.f32 %v790_v12, 0.0 }
 0x126   : > { %v715_v15 = vpop.f32.mrf.mxu2 }
 0x127   : > { %v1462_v18 = vpack.c.bf16 %v892_v14, %v891_v13  ;;  %v716_v19 = vadd.f32 %v1765_v61, %v715_v15  ;;  %v854_v21 = vpop.f32.mrf.mxu3 }
 0x128   : > { %v658_v20 = vpop.f32.mrf.mxu0 }
 0x129   : > { %1555 = vst [vmem:[%s1783_s4 + $0x38] sm:$0xff] %v1462_v18   ;;  %v850_v22 = vadd.f32 %v849_v59, %v716_v19  ;;  %v792_v23 = vpop.f32.mrf.mxu1  ;;  %v659_v27 = vadd.f32 %v1765_v61, %v658_v20 }
 0x12b   : > { %v916_v25 = vmax.f32 %v850_v22, 0.0  ;;  %v793_v31 = vadd.f32 %v792_v23, %v659_v27 }
 0x12d   : > { %v1522_v26 = vpack.c.bf16 %v916_v25, %v915_v24  ;;  %v893_v36 = vmax.f32 %v793_v31, 0.0 }
 0x12e   : > { %v718_v29 = vpop.f32.mrf.mxu2 }
 0x12f   : > { %1567 = vst [vmem:[%s1783_s4 + $0x98] sm:$0xff] %v1522_v26   ;;  %v857_v33 = vpop.f32.mrf.mxu3  ;;  %v719_v34 = vadd.f32 %v1765_v61, %v718_v29 }
 0x130   : > { %v660_v30 = vpop.f32.mrf.mxu0 }
 0x131   : > { %v661_v32 = vadd.f32 %v1765_v61, %v660_v30  ;;  %v794_v28 = vpop.f32.mrf.mxu1  ;;  %v853_v39 = vadd.f32 %v852_v6, %v719_v34 }
 0x133   : > { %v795_v35 = vadd.f32 %v794_v28, %v661_v32  ;;  %v917_v45 = vmax.f32 %v853_v39, 0.0 }
 0x135   : > { %v894_v37 = vmax.f32 %v795_v35, 0.0 }
 0x136   : > { %v720_v38 = vpop.f32.mrf.mxu2 }
 0x137   : > { %v1467_v40 = vpack.c.bf16 %v894_v37, %v893_v36  ;;  %v721_v41 = vadd.f32 %v1765_v61, %v720_v38  ;;  %v859_v47 = vpop.f32.mrf.mxu3 }
 0x138   : > { %v663_v42 = vpop.f32.mrf.mxu0 }
 0x139   : > { %1556 = vst [vmem:[%s1783_s4 + $0x40] sm:$0xff] %v1467_v40   ;;  %v855_v43 = vadd.f32 %v854_v21, %v721_v41  ;;  %v797_v44 = vpop.f32.mrf.mxu1  ;;  %v664_v49 = vadd.f32 %v1765_v61, %v663_v42 }
 0x13b   : > { %v918_v46 = vmax.f32 %v855_v43, 0.0  ;;  %v798_v52 = vadd.f32 %v797_v44, %v664_v49 }
 0x13d   : > { %v1527_v48 = vpack.c.bf16 %v918_v46, %v917_v45  ;;  %v895_v57 = vmax.f32 %v798_v52, 0.0 }
 0x13e   : > { %v723_v50 = vpop.f32.mrf.mxu2 }
 0x13f   : > { %1568 = vst [vmem:[%s1783_s4 + $0xa0] sm:$0xff] %v1527_v48   ;;  %v724_v55 = vadd.f32 %v1765_v61, %v723_v50  ;;  %v862_v60 = vpop.f32.mrf.mxu3 }
 0x140   : > { %v665_v51 = vpop.f32.mrf.mxu0 }
 0x141   : > { %v666_v53 = vadd.f32 %v1765_v61, %v665_v51  ;;  %v799_v54 = vpop.f32.mrf.mxu1  ;;  %v858_v62 = vadd.f32 %v857_v33, %v724_v55  ;;  %v679_v51 = vadd.f32 %v1765_v61, %v1768_v0 }
 0x143   : > { %v800_v56 = vadd.f32 %v799_v54, %v666_v53  ;;  %v919_v5 = vmax.f32 %v858_v62, 0.0  ;;  %v681_v54 = vadd.f32 %v1765_v61, %v1785_v17 }
 0x145   : > { %v896_v58 = vmax.f32 %v800_v56, 0.0 }
 0x146   : > { %v725_v59 = vpop.f32.mrf.mxu2 }
 0x147   : > { %v1472_v1 = vpack.c.bf16 %v896_v58, %v895_v57  ;;  %v726_v63 = vadd.f32 %v1765_v61, %v725_v59  ;;  %v864_v11 = vpop.f32.mrf.mxu3 }
 0x148   : > { %v668_v2 = vpop.f32.mrf.mxu0 }
 0x149   : > { %1557 = vst [vmem:[%s1783_s4 + $0x48] sm:$0xff] %v1472_v1   ;;  %v860_v3 = vadd.f32 %v859_v47, %v726_v63  ;;  %v802_v4 = vpop.f32.mrf.mxu1  ;;  %v669_v8 = vadd.f32 %v1765_v61, %v668_v2 }
 0x14b   : > { %v920_v6 = vmax.f32 %v860_v3, 0.0  ;;  %v803_v12 = vadd.f32 %v802_v4, %v669_v8 }
 0x14d   : > { %v1532_v7 = vpack.c.bf16 %v920_v6, %v919_v5  ;;  %v897_v18 = vmax.f32 %v803_v12, 0.0 }
 0x14e   : > { %v728_v9 = vpop.f32.mrf.mxu2 }
 0x14f   : > { %1569 = vst [vmem:[%s1783_s4 + $0xa8] sm:$0xff] %v1532_v7   ;;  %v729_v15 = vadd.f32 %v1765_v61, %v728_v9  ;;  %v867_v27 = vpop.f32.mrf.mxu3 }
 0x150   : > { %v670_v10 = vpop.f32.mrf.mxu0 }
 0x151   : > { %v671_v13 = vadd.f32 %v1765_v61, %v670_v10  ;;  %v804_v14 = vpop.f32.mrf.mxu1  ;;  %v863_v21 = vadd.f32 %v862_v60, %v729_v15 }
 0x153   : > { %v805_v16 = vadd.f32 %v804_v14, %v671_v13  ;;  %v921_v29 = vmax.f32 %v863_v21, 0.0 }
 0x155   : > { %v898_v19 = vmax.f32 %v805_v16, 0.0 }
 0x156   : > { %v730_v20 = vpop.f32.mrf.mxu2 }
 0x157   : > { %v1477_v22 = vpack.c.bf16 %v898_v19, %v897_v18  ;;  %v731_v23 = vadd.f32 %v1765_v61, %v730_v20  ;;  %v869_v39 = vpop.f32.mrf.mxu3 }
 0x158   : > { %v673_v24 = vpop.f32.mrf.mxu0 }
 0x159   : > { %1558 = vst [vmem:[%s1783_s4 + $0x50] sm:$0xff] %v1477_v22   ;;  %v865_v25 = vadd.f32 %v864_v11, %v731_v23  ;;  %v807_v26 = vpop.f32.mrf.mxu1  ;;  %v674_v32 = vadd.f32 %v1765_v61, %v673_v24 }
 0x15b   : > { %v922_v30 = vmax.f32 %v865_v25, 0.0  ;;  %v808_v34 = vadd.f32 %v807_v26, %v674_v32 }
 0x15d   : > { %v1537_v31 = vpack.c.bf16 %v922_v30, %v921_v29  ;;  %v899_v40 = vmax.f32 %v808_v34, 0.0 }
 0x15e   : > { %v733_v28 = vpop.f32.mrf.mxu2 }
 0x15f   : > { %1570 = vst [vmem:[%s1783_s4 + $0xb0] sm:$0xff] %v1537_v31   ;;  %v734_v37 = vadd.f32 %v1765_v61, %v733_v28  ;;  %v872_v52 = vpop.f32.mrf.mxu3 }
 0x160   : > { %v675_v33 = vpop.f32.mrf.mxu0 }
 0x161   : > { %v676_v35 = vadd.f32 %v1765_v61, %v675_v33  ;;  %v809_v36 = vpop.f32.mrf.mxu1  ;;  %v868_v43 = vadd.f32 %v867_v27, %v734_v37 }
 0x163   : > { %v810_v38 = vadd.f32 %v809_v36, %v676_v35  ;;  %v923_v48 = vmax.f32 %v868_v43, 0.0 }
 0x165   : > { %v900_v41 = vmax.f32 %v810_v38, 0.0 }
 0x166   : > { %v735_v42 = vpop.f32.mrf.mxu2 }
 0x167   : > { %v1482_v44 = vpack.c.bf16 %v900_v41, %v899_v40  ;;  %v736_v45 = vadd.f32 %v1765_v61, %v735_v42  ;;  %v874_v0 = vpop.f32.mrf.mxu3 }
 0x169   : > { %1559 = vst [vmem:[%s1783_s4 + $0x58] sm:$0xff] %v1482_v44   ;;  %v870_v46 = vadd.f32 %v869_v39, %v736_v45  ;;  %v812_v47 = vpop.f32.mrf.mxu1 }
 0x16a   : > { %v813_v55 = vadd.f32 %v812_v47, %v679_v51 }
 0x16b   : > { %v924_v49 = vmax.f32 %v870_v46, 0.0 }
 0x16c   : > { %v901_v59 = vmax.f32 %v813_v55, 0.0 }
 0x16d   : > { %v1542_v50 = vpack.c.bf16 %v924_v49, %v923_v48 }
 0x16e   : > { %v738_v53 = vpop.f32.mrf.mxu2 }
 0x16f   : > { %1571 = vst [vmem:[%s1783_s4 + $0xb8] sm:$0xff] %v1542_v50   ;;  %v739_v58 = vadd.f32 %v1765_v61, %v738_v53 }
 0x171   : > { %v814_v56 = vpop.f32.mrf.mxu1  ;;  %v873_v63 = vadd.f32 %v872_v52, %v739_v58 }
 0x172   : > { %v815_v57 = vadd.f32 %v814_v56, %v681_v54 }
 0x173   : > { %v925_v4 = vmax.f32 %v873_v63, 0.0 }
 0x174   : > { %v902_v60 = vmax.f32 %v815_v57, 0.0 }
 0x176   : > { %v1487_v62 = vpack.c.bf16 %v902_v60, %v901_v59  ;;  %v740_v1 = vpop.f32.mrf.mxu2 }
 0x177   : > { %v741_v2 = vadd.f32 %v1765_v61, %v740_v1 }
 0x178   : > { %1560 = vst [vmem:[%s1783_s4 + $0x60] sm:$0xff] %v1487_v62  }
 0x179   : > { %v875_v3 = vadd.f32 %v874_v0, %v741_v2 }
 0x17b   : > { %v926_v5 = vmax.f32 %v875_v3, 0.0 }
 0x17d   : > { %v1547_v6 = vpack.c.bf16 %v926_v5, %v925_v4 }
 0x17f   : > { %1572 = vst [vmem:[%s1783_s4 + $0xc0] sm:$0xff] %v1547_v6  }
 0x180 PF: > { %s13_s12 = sadd.s32 1, %s1604_s12  }
 0x181   : > { %p10_p4 = scmp.ge.s32.totalorder %s13_s12, 4  }
 0x183   :  { %12 = sbr.rel (!%p10_p4) target bundleno = 1 (0x1), region = 62 }

// kernel: dqn_forward.5
= control target key start
LH: loop header
LB: loop body
LE: loop exit
PB: predicated region body
PF: predicated region fallthrough
CT: control target
= control target key end

     0   :  { %s1192_s12 = smov 0   ;;  %s1384_s0 = inlined_call_operand.vmem [shape: bf16[192,512], index: 0, kind: input, shape index: {}]   ;;  %s1385_s1 = inlined_call_operand.vmem [shape: bf16[512,128], index: 1, kind: input, shape index: {}]   ;;  %s1386_s2 = inlined_call_operand.vmem [shape: f32[1,128], index: 2, kind: input, shape index: {}]   ;;  %s1387_s3 = inlined_call_operand.vmem [shape: bf16[192,128], index: 3, kind: output, shape index: {}]  }
   0x1 LB: > { %s829_s13 = sadd.s32 4294967295, %s1170_s12   ;;  %p833_p0 = scmp.ge.s32.totalorder %s1170_s12, 1  ;;  %s1170_s12 = sphi %s1192_s12, %s13_s12  }
   0x2   : > { %p139_p1 = scmp.lt.s32.totalorder %s1170_s12, 3 }
   0x4   : > { %p140_p2 = pnand %p833_p0, %p139_p1 }
   0x5   : > { %s164_s11 = smul.u32 (!%p140_p2), 12, %s829_s13 }
   0x6   : > { %143 = sbr.rel (%p140_p2) target bundleno = 274 (0x112), region = 32 }
   0x7   : > { %p165_p3 = scmp.lt.s32.totalorder (!%p140_p2), %s164_s11, 23 }
   0xb   : > { %v1095_v0 = vld [vmem:[%s1385_s1 + $0x38] sm:$0xff]  ;;  %v1094_v4 = vld [vmem:[%s1385_s1 + $0x30] sm:$0xff]  ;;  %v1093_v8 = vld [vmem:[%s1385_s1 + $0x28] sm:$0xff]  ;;  %s1389_s11 = smov (!%p165_p3, %s164_s11), 23 }
   0xc   : > { %v1103_v1 = vld [vmem:[%s1385_s1 + $0x78] sm:$0xff]  ;;  %581 = vmatpush.bf16.msra.mxu0 %v1095_v0  ;;  %v1102_v5 = vld [vmem:[%s1385_s1 + $0x70] sm:$0xff]  ;;  %v1101_v9 = vld [vmem:[%s1385_s1 + $0x68] sm:$0xff]  ;;  %s1063_s10 = sshll.u32 %s1389_s11, 4  ;;  %s836_s7 = sshll.u32 %s1389_s11, 2 }
   0xd   : > { %v1111_v2 = vld [vmem:[%s1385_s1 + $0xb8] sm:$0xff]  ;;  %620 = vmatpush.bf16.msra.mxu1 %v1103_v1  ;;  %v1110_v6 = vld [vmem:[%s1385_s1 + $0xb0] sm:$0xff]  ;;  %v1109_v10 = vld [vmem:[%s1385_s1 + $0xa8] sm:$0xff]  ;;  %s1284_s20 = scalar_lea.vmem %s1384_s0, %s1063_s10  ;;  %s1364_s10 = scalar_lea.vmem %s1387_s3, %s836_s7 }
   0xe   : > { %v1119_v3 = vld [vmem:[%s1385_s1 + $0xf8] sm:$0xff]  ;;  %659 = vmatpush.bf16.msra.mxu2 %v1111_v2  ;;  %v1118_v7 = vld [vmem:[%s1385_s1 + $0xf0] sm:$0xff]  ;;  %v1117_v11 = vld [vmem:[%s1385_s1 + $0xe8] sm:$0xff] }
   0xf   : > { %698 = vmatpush.bf16.msra.mxu3 %v1119_v3  ;;  %v1092_v12 = vld [vmem:[%s1385_s1 + $0x20] sm:$0xff]  ;;  %v1091_v16 = vld [vmem:[%s1385_s1 + $0x18] sm:$0xff]  ;;  %v1090_v20 = vld [vmem:[%s1385_s1 + $0x10] sm:$0xff] }
  0x10   : > { %582 = vmatpush.bf16.msra.mxu0 %v1094_v4  ;;  %v1100_v13 = vld [vmem:[%s1385_s1 + $0x60] sm:$0xff]  ;;  %v1099_v17 = vld [vmem:[%s1385_s1 + $0x58] sm:$0xff]  ;;  %v1098_v21 = vld [vmem:[%s1385_s1 + $0x50] sm:$0xff] }
  0x11   : > { %621 = vmatpush.bf16.msra.mxu1 %v1102_v5  ;;  %v1108_v14 = vld [vmem:[%s1385_s1 + $0xa0] sm:$0xff]  ;;  %v1107_v18 = vld [vmem:[%s1385_s1 + $0x98] sm:$0xff]  ;;  %v1106_v22 = vld [vmem:[%s1385_s1 + $0x90] sm:$0xff] }
  0x12   : > { %660 = vmatpush.bf16.msra.mxu2 %v1110_v6  ;;  %v1116_v15 = vld [vmem:[%s1385_s1 + $0xe0] sm:$0xff]  ;;  %v1115_v19 = vld [vmem:[%s1385_s1 + $0xd8] sm:$0xff]  ;;  %v1114_v23 = vld [vmem:[%s1385_s1 + $0xd0] sm:$0xff] }
  0x13   : > { %699 = vmatpush.bf16.msra.mxu3 %v1118_v7  ;;  %v1089_v24 = vld [vmem:[%s1385_s1 + $0x8] sm:$0xff]  ;;  %v1088_v28 = vld [vmem:[%s1385_s1] sm:$0xff]  ;;  %v1066_v33 = vld [vmem:[%s1284_s20 + $0xc] sm:$0xf0] }
  0x14   : > { %583 = vmatpush.bf16.msra.mxu0 %v1093_v8  ;;  %v1097_v25 = vld [vmem:[%s1385_s1 + $0x48] sm:$0xff]  ;;  %v1096_v29 = vld [vmem:[%s1385_s1 + $0x40] sm:$0xff]  ;;  %v841_v35 = vld [vmem:[%s1284_s20 + $0x10] sm:$0xf0] }
  0x15   : > { %622 = vmatpush.bf16.msra.mxu1 %v1101_v9  ;;  %v1105_v26 = vld [vmem:[%s1385_s1 + $0x88] sm:$0xff]  ;;  %v1104_v30 = vld [vmem:[%s1385_s1 + $0x80] sm:$0xff]  ;;  %v1067_v37 = vld [vmem:[%s1284_s20 + $0x14] sm:$0xf0] }
  0x16   : > { %661 = vmatpush.bf16.msra.mxu2 %v1109_v10  ;;  %v1113_v27 = vld [vmem:[%s1385_s1 + $0xc8] sm:$0xff]  ;;  %v1112_v31 = vld [vmem:[%s1385_s1 + $0xc0] sm:$0xff]  ;;  %v849_v39 = vld [vmem:[%s1284_s20 + $0x18] sm:$0xf0] }
  0x17   : > { %700 = vmatpush.bf16.msra.mxu3 %v1117_v11  ;;  %v839_v32 = vld [vmem:[%s1284_s20] sm:$0xf]  ;;  %v1064_v34 = vld [vmem:[%s1284_s20 + $0x4] sm:$0xf]  ;;  %v847_v36 = vld [vmem:[%s1284_s20 + $0x8] sm:$0xf] }
  0x18   : > { %584 = vmatpush.bf16.msra.mxu0 %v1092_v12  ;;  %v1065_v38 = vld [vmem:[%s1284_s20 + $0xc] sm:$0xf]  ;;  %v840_v40 = vor.u32 %v1066_v33, %v839_v32  ;;  %v844_v41 = vor.u32 %v1064_v34, %v841_v35  ;;  %v848_v42 = vor.u32 %v1067_v37, %v847_v36  ;;  %v855_v44 = vld [vmem:[%s1284_s20 + $0x20] sm:$0xf]  ;;  %v1070_v45 = vld [vmem:[%s1284_s20 + $0x2c] sm:$0xf0] }
  0x19   : > { %623 = vmatpush.bf16.msra.mxu1 %v1100_v13  ;;  %v852_v43 = vor.u32 %v1065_v38, %v849_v39  ;;  %v1068_v46 = vld [vmem:[%s1284_s20 + $0x24] sm:$0xf]  ;;  %v857_v47 = vld [vmem:[%s1284_s20 + $0x30] sm:$0xf0]  ;;  %v863_v48 = vld [vmem:[%s1284_s20 + $0x28] sm:$0xf]  ;;  %v856_v52 = vor.u32 %v1070_v45, %v855_v44 }
  0x1a   : > { %662 = vmatpush.bf16.msra.mxu2 %v1108_v14  ;;  %v1071_v49 = vld [vmem:[%s1284_s20 + $0x34] sm:$0xf0]  ;;  %v1069_v50 = vld [vmem:[%s1284_s20 + $0x2c] sm:$0xf]  ;;  %v865_v51 = vld [vmem:[%s1284_s20 + $0x38] sm:$0xf0]  ;;  %v860_v53 = vor.u32 %v1068_v46, %v857_v47 }
  0x1b   : > { %701 = vmatpush.bf16.msra.mxu3 %v1116_v15  ;;  %v864_v54 = vor.u32 %v1071_v49, %v863_v48  ;;  %v868_v55 = vor.u32 %v1069_v50, %v865_v51  ;;  %v871_v56 = vld [vmem:[%s1284_s20 + $0x40] sm:$0xf]  ;;  %v1074_v57 = vld [vmem:[%s1284_s20 + $0x4c] sm:$0xf0]  ;;  %v1072_v58 = vld [vmem:[%s1284_s20 + $0x44] sm:$0xf] }
  0x1c   : > { %585 = vmatpush.bf16.msra.mxu0 %v1091_v16  ;;  %v873_v59 = vld [vmem:[%s1284_s20 + $0x50] sm:$0xf0]  ;;  %v879_v60 = vld [vmem:[%s1284_s20 + $0x48] sm:$0xf]  ;;  %v1075_v61 = vld [vmem:[%s1284_s20 + $0x54] sm:$0xf0]  ;;  %v872_v0 = vor.u32 %v1074_v57, %v871_v56 }
  0x1d   : > { %624 = vmatpush.bf16.msra.mxu1 %v1099_v17  ;;  %v1073_v62 = vld [vmem:[%s1284_s20 + $0x4c] sm:$0xf]  ;;  %v881_v63 = vld [vmem:[%s1284_s20 + $0x58] sm:$0xf0]  ;;  %v876_v1 = vor.u32 %v1072_v58, %v873_v59  ;;  %v880_v2 = vor.u32 %v1075_v61, %v879_v60  ;;  %v887_v4 = vld [vmem:[%s1284_s20 + $0x60] sm:$0xf] }
  0x1e   : > { %663 = vmatpush.bf16.msra.mxu2 %v1107_v18  ;;  %v884_v3 = vor.u32 %v1073_v62, %v881_v63  ;;  %v1078_v5 = vld [vmem:[%s1284_s20 + $0x6c] sm:$0xf0]  ;;  %v1076_v6 = vld [vmem:[%s1284_s20 + $0x64] sm:$0xf]  ;;  %v889_v7 = vld [vmem:[%s1284_s20 + $0x70] sm:$0xf0] }
  0x1f   : > { %702 = vmatpush.bf16.msra.mxu3 %v1115_v19  ;;  %v895_v8 = vld [vmem:[%s1284_s20 + $0x68] sm:$0xf]  ;;  %v1079_v9 = vld [vmem:[%s1284_s20 + $0x74] sm:$0xf0]  ;;  %v1077_v10 = vld [vmem:[%s1284_s20 + $0x6c] sm:$0xf]  ;;  %v888_v12 = vor.u32 %v1078_v5, %v887_v4  ;;  %v892_v13 = vor.u32 %v1076_v6, %v889_v7 }
  0x20   : > { %586 = vmatpush.bf16.msra.mxu0 %v1090_v20  ;;  %v897_v11 = vld [vmem:[%s1284_s20 + $0x78] sm:$0xf0]  ;;  %v896_v14 = vor.u32 %v1079_v9, %v895_v8  ;;  %v903_v16 = vld [vmem:[%s1284_s20 + $0x80] sm:$0xf]  ;;  %v1082_v17 = vld [vmem:[%s1284_s20 + $0x8c] sm:$0xf0] }
  0x21   : > { %625 = vmatpush.bf16.msra.mxu1 %v1098_v21  ;;  %v900_v15 = vor.u32 %v1077_v10, %v897_v11  ;;  %v1080_v18 = vld [vmem:[%s1284_s20 + $0x84] sm:$0xf]  ;;  %v905_v19 = vld [vmem:[%s1284_s20 + $0x90] sm:$0xf0]  ;;  %v911_v20 = vld [vmem:[%s1284_s20 + $0x88] sm:$0xf] }
  0x22   : > { %664 = vmatpush.bf16.msra.mxu2 %v1106_v22  ;;  %v1083_v21 = vld [vmem:[%s1284_s20 + $0x94] sm:$0xf0]  ;;  %v1081_v22 = vld [vmem:[%s1284_s20 + $0x8c] sm:$0xf]  ;;  %v927_v32 = vld [vmem:[%s1284_s20 + $0xa8] sm:$0xf] }
  0x23   : > { %703 = vmatpush.bf16.msra.mxu3 %v1114_v23  ;;  %v913_v23 = vld [vmem:[%s1284_s20 + $0x98] sm:$0xf0]  ;;  %v1087_v33 = vld [vmem:[%s1284_s20 + $0xb4] sm:$0xf0]  ;;  %v1085_v34 = vld [vmem:[%s1284_s20 + $0xac] sm:$0xf] }
  0x24   : > { %587 = vmatpush.bf16.msra.mxu0 %v1089_v24  ;;  %v904_v24 = vor.u32 %v1082_v17, %v903_v16  ;;  %v929_v35 = vld [vmem:[%s1284_s20 + $0xb8] sm:$0xf0]  ;;  %v928_v38 = vor.u32 %v1087_v33, %v927_v32 }
  0x25   : > { %626 = vmatpush.bf16.msra.mxu1 %v1097_v25  ;;  %v908_v25 = vor.u32 %v1080_v18, %v905_v19  ;;  %v932_v39 = vor.u32 %v1085_v34, %v929_v35 }
  0x26   : > { %665 = vmatpush.bf16.msra.mxu2 %v1105_v26  ;;  %v912_v26 = vor.u32 %v1083_v21, %v911_v20 }
  0x27   : > { %704 = vmatpush.bf16.msra.mxu3 %v1113_v27  ;;  %v916_v27 = vor.u32 %v1081_v22, %v913_v23 }
  0x28   : > { %588 = vmatpush.bf16.msra.mxu0 %v1088_v28  ;;  %v919_v28 = vld [vmem:[%s1284_s20 + $0xa0] sm:$0xf] }
  0x29   : > { %627 = vmatpush.bf16.msra.mxu1 %v1096_v29  ;;  %v1086_v29 = vld [vmem:[%s1284_s20 + $0xac] sm:$0xf0] }
  0x2a   : > { %666 = vmatpush.bf16.msra.mxu2 %v1104_v30  ;;  %v1084_v30 = vld [vmem:[%s1284_s20 + $0xa4] sm:$0xf]  ;;  %v920_v36 = vor.u32 %v1086_v29, %v919_v28 }
  0x2b   : > { %705 = vmatpush.bf16.msra.mxu3 %v1112_v31  ;;  %589 = vmatmul.bf16.vlgmr.msra.gmra.mxu0 %v840_v40  ;;  %v921_v31 = vld [vmem:[%s1284_s20 + $0xb0] sm:$0xf0]  ;;  %v1355_v40 = vld [vmem:[%s1386_s2] ss:$0 sm:$0xff] }
  0x2c   : > { %628 = vmatmul.bf16.vlgmr.msra.gmra.mxu1 %v844_v41  ;;  %v924_v37 = vor.u32 %v1084_v30, %v921_v31 }
  0x2d   : > { %667 = vmatmul.bf16.vlgmr.msra.gmra.mxu2 %v848_v42 }
  0x2e   : > { %706 = vmatmul.bf16.vlgmr.msra.gmra.mxu3 %v852_v43 }
  0x3b   : > { %594 = vmatmul.bf16.gmra.mxu0 %v856_v52 }
  0x3c   : > { %633 = vmatmul.bf16.gmra.mxu1 %v860_v53 }
  0x3d   : > { %672 = vmatmul.bf16.gmra.mxu2 %v864_v54 }
  0x3e   : > { %711 = vmatmul.bf16.gmra.mxu3 %v868_v55 }
  0x4b   : > { %599 = vmatmul.bf16.gmra.mxu0 %v872_v0 }
  0x4c   : > { %638 = vmatmul.bf16.gmra.mxu1 %v876_v1 }
  0x4d   : > { %677 = vmatmul.bf16.gmra.mxu2 %v880_v2 }
  0x4e   : > { %716 = vmatmul.bf16.gmra.mxu3 %v884_v3 }
  0x5b   : > { %604 = vmatmul.bf16.gmra.mxu0 %v888_v12 }
  0x5c   : > { %643 = vmatmul.bf16.gmra.mxu1 %v892_v13 }
  0x5d   : > { %682 = vmatmul.bf16.gmra.mxu2 %v896_v14 }
  0x5e   : > { %721 = vmatmul.bf16.gmra.mxu3 %v900_v15 }
  0x6b   : > { %609 = vmatmul.bf16.gmra.mxu0 %v904_v24 }
  0x6c   : > { %648 = vmatmul.bf16.gmra.mxu1 %v908_v25 }
  0x6d   : > { %687 = vmatmul.bf16.gmra.mxu2 %v912_v26 }
  0x6e   : > { %726 = vmatmul.bf16.gmra.mxu3 %v916_v27 }
  0x7b   : > { %614 = vmatmul.bf16.gmra.mxu0 %v920_v36 }
  0x7c   : > { %653 = vmatmul.bf16.gmra.mxu1 %v924_v37 }
  0x7d   : > { %692 = vmatmul.bf16.gmra.mxu2 %v928_v38 }
  0x7e   : > { %731 = vmatmul.bf16.gmra.mxu3 %v932_v39 }
  0xa8   : > { %v590_v41 = vpop.f32.mrf.mxu0 }
  0xa9   : > { %v629_v42 = vpop.f32.mrf.mxu1  ;;  %v591_v43 = vadd.f32 %v1355_v40, %v590_v41 }
  0xab   : > { %v630_v46 = vadd.f32 %v629_v42, %v591_v43 }
  0xb0   : > { %v668_v44 = vpop.f32.mrf.mxu2  ;;  %v592_v47 = vpop.f32.mrf.mxu0 }
  0xb1   : > { %v707_v45 = vpop.f32.mrf.mxu3  ;;  %v631_v48 = vpop.f32.mrf.mxu1  ;;  %v593_v49 = vadd.f32 %v1355_v40, %v592_v47  ;;  %v669_v50 = vadd.f32 %v668_v44, %v630_v46 }
  0xb3   : > { %v632_v51 = vadd.f32 %v631_v48, %v593_v49  ;;  %v708_v54 = vadd.f32 %v707_v45, %v669_v50 }
  0xb5   : > { %v737_v59 = vmax.f32 %v708_v54, 0.0 }
  0xb8   : > { %v670_v52 = vpop.f32.mrf.mxu2  ;;  %v595_v56 = vpop.f32.mrf.mxu0 }
  0xb9   : > { %v709_v53 = vpop.f32.mrf.mxu3  ;;  %v671_v55 = vadd.f32 %v670_v52, %v632_v51  ;;  %v634_v57 = vpop.f32.mrf.mxu1  ;;  %v596_v61 = vadd.f32 %v1355_v40, %v595_v56 }
  0xbb   : > { %v710_v58 = vadd.f32 %v709_v53, %v671_v55  ;;  %v635_v1 = vadd.f32 %v634_v57, %v596_v61 }
  0xbd   : > { %v738_v60 = vmax.f32 %v710_v58, 0.0 }
  0xbf   : > { %v1123_v62 = vpack.c.bf16 %v738_v60, %v737_v59 }
  0xc0   : > { %v673_v63 = vpop.f32.mrf.mxu2  ;;  %v597_v2 = vpop.f32.mrf.mxu0 }
  0xc1   : > { %v712_v0 = vpop.f32.mrf.mxu3  ;;  %1124 = vst [vmem:[%s1364_s10] sm:$0xff] %v1123_v62   ;;  %v636_v3 = vpop.f32.mrf.mxu1  ;;  %v598_v4 = vadd.f32 %v1355_v40, %v597_v2  ;;  %v674_v5 = vadd.f32 %v673_v63, %v635_v1 }
  0xc3   : > { %v637_v6 = vadd.f32 %v636_v3, %v598_v4  ;;  %v713_v9 = vadd.f32 %v712_v0, %v674_v5 }
  0xc5   : > { %v739_v14 = vmax.f32 %v713_v9, 0.0 }
  0xc8   : > { %v675_v7 = vpop.f32.mrf.mxu2  ;;  %v600_v11 = vpop.f32.mrf.mxu0 }
  0xc9   : > { %v714_v8 = vpop.f32.mrf.mxu3  ;;  %v676_v10 = vadd.f32 %v675_v7, %v637_v6  ;;  %v639_v12 = vpop.f32.mrf.mxu1  ;;  %v601_v16 = vadd.f32 %v1355_v40, %v600_v11 }
  0xcb   : > { %v715_v13 = vadd.f32 %v714_v8, %v676_v10  ;;  %v640_v20 = vadd.f32 %v639_v12, %v601_v16 }
  0xcd   : > { %v740_v15 = vmax.f32 %v715_v13, 0.0 }
  0xcf   : > { %v1128_v17 = vpack.c.bf16 %v740_v15, %v739_v14 }
  0xd0   : > { %v678_v18 = vpop.f32.mrf.mxu2  ;;  %v602_v21 = vpop.f32.mrf.mxu0 }
  0xd1   : > { %v717_v19 = vpop.f32.mrf.mxu3  ;;  %1150 = vst [vmem:[%s1364_s10 + $0x8] sm:$0xff] %v1128_v17   ;;  %v641_v22 = vpop.f32.mrf.mxu1  ;;  %v603_v23 = vadd.f32 %v1355_v40, %v602_v21  ;;  %v679_v24 = vadd.f32 %v678_v18, %v640_v20 }
  0xd3   : > { %v642_v25 = vadd.f32 %v641_v22, %v603_v23  ;;  %v718_v28 = vadd.f32 %v717_v19, %v679_v24 }
  0xd5   : > { %v741_v33 = vmax.f32 %v718_v28, 0.0 }
  0xd8   : > { %v680_v26 = vpop.f32.mrf.mxu2  ;;  %v605_v30 = vpop.f32.mrf.mxu0 }
  0xd9   : > { %v719_v27 = vpop.f32.mrf.mxu3  ;;  %v681_v29 = vadd.f32 %v680_v26, %v642_v25  ;;  %v644_v31 = vpop.f32.mrf.mxu1  ;;  %v606_v35 = vadd.f32 %v1355_v40, %v605_v30 }
  0xdb   : > { %v720_v32 = vadd.f32 %v719_v27, %v681_v29  ;;  %v645_v39 = vadd.f32 %v644_v31, %v606_v35 }
  0xdd   : > { %v742_v34 = vmax.f32 %v720_v32, 0.0 }
  0xdf   : > { %v1133_v36 = vpack.c.bf16 %v742_v34, %v741_v33 }
  0xe0   : > { %v683_v37 = vpop.f32.mrf.mxu2  ;;  %v607_v41 = vpop.f32.mrf.mxu0 }
  0xe1   : > { %v722_v38 = vpop.f32.mrf.mxu3  ;;  %1151 = vst [vmem:[%s1364_s10 + $0x10] sm:$0xff] %v1133_v36   ;;  %v646_v42 = vpop.f32.mrf.mxu1  ;;  %v608_v43 = vadd.f32 %v1355_v40, %v607_v41  ;;  %v684_v44 = vadd.f32 %v683_v37, %v645_v39 }
  0xe3   : > { %v647_v45 = vadd.f32 %v646_v42, %v608_v43  ;;  %v723_v48 = vadd.f32 %v722_v38, %v684_v44 }
  0xe5   : > { %v743_v53 = vmax.f32 %v723_v48, 0.0 }
  0xe8   : > { %v685_v46 = vpop.f32.mrf.mxu2  ;;  %v610_v50 = vpop.f32.mrf.mxu0 }
  0xe9   : > { %v724_v47 = vpop.f32.mrf.mxu3  ;;  %v686_v49 = vadd.f32 %v685_v46, %v647_v45  ;;  %v649_v51 = vpop.f32.mrf.mxu1  ;;  %v611_v55 = vadd.f32 %v1355_v40, %v610_v50 }
  0xeb   : > { %v725_v52 = vadd.f32 %v724_v47, %v686_v49  ;;  %v650_v59 = vadd.f32 %v649_v51, %v611_v55 }
  0xed   : > { %v744_v54 = vmax.f32 %v725_v52, 0.0 }
  0xef   : > { %v1138_v56 = vpack.c.bf16 %v744_v54, %v743_v53 }
  0xf0   : > { %v688_v57 = vpop.f32.mrf.mxu2  ;;  %v612_v60 = vpop.f32.mrf.mxu0 }
  0xf1   : > { %v727_v58 = vpop.f32.mrf.mxu3  ;;  %1152 = vst [vmem:[%s1364_s10 + $0x18] sm:$0xff] %v1138_v56   ;;  %v651_v61 = vpop.f32.mrf.mxu1  ;;  %v613_v62 = vadd.f32 %v1355_v40, %v612_v60  ;;  %v689_v63 = vadd.f32 %v688_v57, %v650_v59 }
  0xf3   : > { %v652_v0 = vadd.f32 %v651_v61, %v613_v62  ;;  %v728_v3 = vadd.f32 %v727_v58, %v689_v63 }
  0xf5   : > { %v745_v8 = vmax.f32 %v728_v3, 0.0 }
  0xf8   : > { %v690_v1 = vpop.f32.mrf.mxu2  ;;  %v615_v5 = vpop.f32.mrf.mxu0 }
  0xf9   : > { %v729_v2 = vpop.f32.mrf.mxu3  ;;  %v691_v4 = vadd.f32 %v690_v1, %v652_v0  ;;  %v654_v7 = vpop.f32.mrf.mxu1  ;;  %v616_v10 = vadd.f32 %v1355_v40, %v615_v5 }
  0xfb   : > { %v730_v6 = vadd.f32 %v729_v2, %v691_v4  ;;  %v655_v14 = vadd.f32 %v654_v7, %v616_v10 }
  0xfd   : > { %v746_v9 = vmax.f32 %v730_v6, 0.0 }
  0xff   : > { %v1143_v11 = vpack.c.bf16 %v746_v9, %v745_v8 }
 0x100   : > { %v693_v12 = vpop.f32.mrf.mxu2  ;;  %v617_v15 = vpop.f32.mrf.mxu0 }
 0x101   : > { %v732_v13 = vpop.f32.mrf.mxu3  ;;  %1153 = vst [vmem:[%s1364_s10 + $0x20] sm:$0xff] %v1143_v11   ;;  %v618_v16 = vadd.f32 %v1355_v40, %v617_v15  ;;  %v694_v17 = vadd.f32 %v693_v12, %v655_v14  ;;  %v656_v18 = vpop.f32.mrf.mxu1 }
 0x103   : > { %v657_v19 = vadd.f32 %v656_v18, %v618_v16  ;;  %v733_v21 = vadd.f32 %v732_v13, %v694_v17 }
 0x105   : > { %v747_v25 = vmax.f32 %v733_v21, 0.0 }
 0x108   : > { %v695_v20 = vpop.f32.mrf.mxu2 }
 0x109   : > { %v696_v22 = vadd.f32 %v695_v20, %v657_v19  ;;  %v734_v23 = vpop.f32.mrf.mxu3 }
 0x10b   : > { %v735_v24 = vadd.f32 %v734_v23, %v696_v22 }
 0x10d   : > { %v748_v26 = vmax.f32 %v735_v24, 0.0 }
 0x10f   : > { %v1148_v27 = vpack.c.bf16 %v748_v26, %v747_v25 }
 0x111   : > { %1154 = vst [vmem:[%s1364_s10 + $0x28] sm:$0xff] %v1148_v27  }
 0x112 PF: > { %s13_s12 = sadd.s32 1, %s1170_s12  }
 0x113   : > { %p10_p4 = scmp.ge.s32.totalorder %s13_s12, 4  }
 0x115   :  { %12 = sbr.rel (!%p10_p4) target bundleno = 1 (0x1), region = 62 }

// kernel: dqn_forward.6
= control target key start
LH: loop header
LB: loop body
LE: loop exit
PB: predicated region body
PF: predicated region fallthrough
CT: control target
= control target key end

     0   :  { %s1242_s12 = smov 0   ;;  %s1450_s0 = inlined_call_operand.vmem [shape: bf16[128,640], index: 0, kind: input, shape index: {}]   ;;  %s1451_s1 = inlined_call_operand.vmem [shape: bf16[640,128], index: 1, kind: input, shape index: {}]   ;;  %s1452_s2 = inlined_call_operand.vmem [shape: f32[1,128], index: 2, kind: input, shape index: {}]   ;;  %s1453_s3 = inlined_call_operand.vmem [shape: bf16[128,128], index: 3, kind: output, shape index: {}]  }
   0x1 LB: > { %s854_s13 = sadd.s32 4294967295, %s1220_s12   ;;  %p858_p0 = scmp.ge.s32.totalorder %s1220_s12, 1  ;;  %s1220_s12 = sphi %s1242_s12, %s13_s12  }
   0x2   : > { %p139_p1 = scmp.lt.s32.totalorder %s1220_s12, 3 }
   0x4   : > { %p140_p2 = pnand %p858_p0, %p139_p1 }
   0x5   : > { %s859_s30 = sshll.u32 (!%p140_p2), %s854_s13, 3 }
   0x6   : > { %143 = sbr.rel (%p140_p2) target bundleno = 270 (0x10e), region = 32  ;;  %p165_p3 = scmp.lt.s32.totalorder (!%p140_p2), %s859_s30, 15 }
   0xb   : > { %v1132_v0 = vld [vmem:[%s1451_s1 + $0x38] sm:$0xff]  ;;  %v1131_v2 = vld [vmem:[%s1451_s1 + $0x30] sm:$0xff]  ;;  %v1130_v6 = vld [vmem:[%s1451_s1 + $0x28] sm:$0xff]  ;;  %s1455_s30 = smov (!%p165_p3, %s859_s30), 15 }
   0xc   : > { %v1148_v1 = vld [vmem:[%s1451_s1 + $0xb8] sm:$0xff]  ;;  %1188 = vmatpush.bf16.msra.mxu1 %v1132_v0  ;;  %629 = vmatpush.bf16.msra.mxu0 %v1132_v0  ;;  %v1147_v3 = vld [vmem:[%s1451_s1 + $0xb0] sm:$0xff]  ;;  %v1146_v7 = vld [vmem:[%s1451_s1 + $0xa8] sm:$0xff]  ;;  %s1204_s21 = smul.u32 20, %s1455_s30 }
   0xd   : > { %687 = vmatpush.bf16.msra.mxu2 %v1148_v1  ;;  %v1156_v4 = vld [vmem:[%s1451_s1 + $0xf8] sm:$0xff]  ;;  %v1155_v5 = vld [vmem:[%s1451_s1 + $0xf0] sm:$0xff]  ;;  %v1154_v8 = vld [vmem:[%s1451_s1 + $0xe8] sm:$0xff] }
   0xe   : > { %716 = vmatpush.bf16.msra.mxu3 %v1156_v4  ;;  %v1129_v9 = vld [vmem:[%s1451_s1 + $0x20] sm:$0xff]  ;;  %v1128_v12 = vld [vmem:[%s1451_s1 + $0x18] sm:$0xff]  ;;  %v1127_v15 = vld [vmem:[%s1451_s1 + $0x10] sm:$0xff]  ;;  %s1313_s4 = scalar_lea.vmem %s1450_s0, %s1204_s21 }
   0xf   : > { %v1145_v10 = vld [vmem:[%s1451_s1 + $0xa0] sm:$0xff]  ;;  %v1144_v13 = vld [vmem:[%s1451_s1 + $0x98] sm:$0xff]  ;;  %v1143_v16 = vld [vmem:[%s1451_s1 + $0x90] sm:$0xff] }
  0x10   : > { %1189 = vmatpush.bf16.msra.mxu1 %v1131_v2  ;;  %630 = vmatpush.bf16.msra.mxu0 %v1131_v2  ;;  %v1153_v11 = vld [vmem:[%s1451_s1 + $0xe0] sm:$0xff]  ;;  %v1152_v14 = vld [vmem:[%s1451_s1 + $0xd8] sm:$0xff]  ;;  %v1151_v17 = vld [vmem:[%s1451_s1 + $0xd0] sm:$0xff] }
  0x11   : > { %688 = vmatpush.bf16.msra.mxu2 %v1147_v3  ;;  %v1126_v18 = vld [vmem:[%s1451_s1 + $0x8] sm:$0xff]  ;;  %v1125_v20 = vld [vmem:[%s1451_s1] sm:$0xff]  ;;  %v905_v21 = vld [vmem:[%s1313_s4 + $0x50] sm:$0xf] }
  0x12   : > { %717 = vmatpush.bf16.msra.mxu3 %v1155_v5  ;;  %v1142_v19 = vld [vmem:[%s1451_s1 + $0x88] sm:$0xff]  ;;  %v1140_v22 = vld [vmem:[%s1451_s1 + $0x78] sm:$0xff]  ;;  %v1117_v24 = vld [vmem:[%s1313_s4 + $0x60] sm:$0xf0] }
  0x13   : > { %v1150_v23 = vld [vmem:[%s1451_s1 + $0xc8] sm:$0xff]  ;;  %v865_v25 = vld [vmem:[%s1313_s4] sm:$0xf]  ;;  %v1107_v26 = vld [vmem:[%s1313_s4 + $0x10] sm:$0xf0]  ;;  %v906_v31 = vor.u32 %v1117_v24, %v905_v21 }
  0x14   : > { %1190 = vmatpush.bf16.msra.mxu1 %v1130_v6  ;;  %631 = vmatpush.bf16.msra.mxu0 %v1130_v6  ;;  %v1141_v27 = vld [vmem:[%s1451_s1 + $0x80] sm:$0xff]  ;;  %v873_v28 = vld [vmem:[%s1313_s4 + $0x8] sm:$0xf]  ;;  %v1108_v29 = vld [vmem:[%s1313_s4 + $0x18] sm:$0xf0]  ;;  %v866_v32 = vor.u32 %v1107_v26, %v865_v25 }
  0x15   : > { %689 = vmatpush.bf16.msra.mxu2 %v1146_v7  ;;  %v1164_v30 = vld [vmem:[%s1451_s1 + $0x138] sm:$0xff]  ;;  %v874_v33 = vor.u32 %v1108_v29, %v873_v28  ;;  %v1149_v34 = vld [vmem:[%s1451_s1 + $0xc0] sm:$0xff]  ;;  %v1106_v35 = vld [vmem:[%s1313_s4 + $0xc] sm:$0xf] }
  0x16   : > { %718 = vmatpush.bf16.msra.mxu3 %v1154_v8  ;;  %v875_v36 = vld [vmem:[%s1313_s4 + $0x1c] sm:$0xf0]  ;;  %v1139_v37 = vld [vmem:[%s1451_s1 + $0x70] sm:$0xff]  ;;  %v1138_v40 = vld [vmem:[%s1451_s1 + $0x68] sm:$0xff] }
  0x17   : > { %v1163_v38 = vld [vmem:[%s1451_s1 + $0x130] sm:$0xff]  ;;  %v878_v39 = vor.u32 %v1106_v35, %v875_v36  ;;  %v1162_v41 = vld [vmem:[%s1451_s1 + $0x128] sm:$0xff]  ;;  %v1137_v42 = vld [vmem:[%s1451_s1 + $0x60] sm:$0xff] }
  0x18   : > { %1191 = vmatpush.bf16.msra.mxu1 %v1129_v9  ;;  %632 = vmatpush.bf16.msra.mxu0 %v1129_v9  ;;  %v1161_v43 = vld [vmem:[%s1451_s1 + $0x120] sm:$0xff]  ;;  %v925_v44 = vld [vmem:[%s1313_s4 + $0x78] sm:$0xf]  ;;  %v1122_v45 = vld [vmem:[%s1313_s4 + $0x88] sm:$0xf0] }
  0x19   : > { %690 = vmatpush.bf16.msra.mxu2 %v1145_v10  ;;  %v885_v46 = vld [vmem:[%s1313_s4 + $0x28] sm:$0xf]  ;;  %v1112_v47 = vld [vmem:[%s1313_s4 + $0x38] sm:$0xf0]  ;;  %v893_v49 = vld [vmem:[%s1313_s4 + $0x30] sm:$0xf]  ;;  %v926_v52 = vor.u32 %v1122_v45, %v925_v44 }
  0x1a   : > { %719 = vmatpush.bf16.msra.mxu3 %v1153_v11  ;;  %v1136_v48 = vld [vmem:[%s1451_s1 + $0x58] sm:$0xff]  ;;  %v1113_v50 = vld [vmem:[%s1313_s4 + $0x40] sm:$0xf0]  ;;  %v886_v53 = vor.u32 %v1112_v47, %v885_v46  ;;  %v1111_v55 = vld [vmem:[%s1313_s4 + $0x34] sm:$0xf] }
  0x1b   : > { %v1160_v51 = vld [vmem:[%s1451_s1 + $0x118] sm:$0xff]  ;;  %v894_v54 = vor.u32 %v1113_v50, %v893_v49  ;;  %v895_v56 = vld [vmem:[%s1313_s4 + $0x44] sm:$0xf0]  ;;  %v1135_v57 = vld [vmem:[%s1451_s1 + $0x50] sm:$0xff] }
  0x1c   : > { %1192 = vmatpush.bf16.msra.mxu1 %v1128_v12  ;;  %633 = vmatpush.bf16.msra.mxu0 %v1128_v12  ;;  %v1159_v58 = vld [vmem:[%s1451_s1 + $0x110] sm:$0xff]  ;;  %v898_v59 = vor.u32 %v1111_v55, %v895_v56  ;;  %v1134_v60 = vld [vmem:[%s1451_s1 + $0x48] sm:$0xff]  ;;  %v1133_v62 = vld [vmem:[%s1451_s1 + $0x40] sm:$0xff] }
  0x1d   : > { %691 = vmatpush.bf16.msra.mxu2 %v1144_v13  ;;  %v1158_v61 = vld [vmem:[%s1451_s1 + $0x108] sm:$0xff]  ;;  %v1157_v63 = vld [vmem:[%s1451_s1 + $0x100] sm:$0xff]  ;;  %v867_v1 = vld [vmem:[%s1313_s4 + $0x14] sm:$0xf0] }
  0x1e   : > { %720 = vmatpush.bf16.msra.mxu3 %v1152_v14  ;;  %v1105_v0 = vld [vmem:[%s1313_s4 + $0x4] sm:$0xf]  ;;  %v881_v2 = vld [vmem:[%s1313_s4 + $0x10] sm:$0xf]  ;;  %v913_v4 = vld [vmem:[%s1313_s4 + $0x58] sm:$0xf] }
  0x1f   : > { %v1109_v3 = vld [vmem:[%s1313_s4 + $0x20] sm:$0xf0]  ;;  %v1118_v5 = vld [vmem:[%s1313_s4 + $0x68] sm:$0xf0]  ;;  %v870_v6 = vor.u32 %v1105_v0, %v867_v1  ;;  %v1116_v9 = vld [vmem:[%s1313_s4 + $0x5c] sm:$0xf] }
  0x20   : > { %1193 = vmatpush.bf16.msra.mxu1 %v1127_v15  ;;  %634 = vmatpush.bf16.msra.mxu0 %v1127_v15  ;;  %v882_v7 = vor.u32 %v1109_v3, %v881_v2  ;;  %v914_v8 = vor.u32 %v1118_v5, %v913_v4  ;;  %v915_v10 = vld [vmem:[%s1313_s4 + $0x6c] sm:$0xf0]  ;;  %v1110_v12 = vld [vmem:[%s1313_s4 + $0x2c] sm:$0xf]  ;;  %v887_v13 = vld [vmem:[%s1313_s4 + $0x3c] sm:$0xf0] }
  0x21   : > { %692 = vmatpush.bf16.msra.mxu2 %v1143_v16  ;;  %v918_v11 = vor.u32 %v1116_v9, %v915_v10  ;;  %v901_v14 = vld [vmem:[%s1313_s4 + $0x38] sm:$0xf]  ;;  %v1114_v15 = vld [vmem:[%s1313_s4 + $0x48] sm:$0xf0]  ;;  %v933_v16 = vld [vmem:[%s1313_s4 + $0x80] sm:$0xf] }
  0x22   : > { %721 = vmatpush.bf16.msra.mxu3 %v1151_v17  ;;  %v1123_v17 = vld [vmem:[%s1313_s4 + $0x90] sm:$0xf0]  ;;  %v1121_v21 = vld [vmem:[%s1313_s4 + $0x84] sm:$0xf]  ;;  %v907_v25 = vld [vmem:[%s1313_s4 + $0x64] sm:$0xf0] }
  0x23   : > { %v1115_v24 = vld [vmem:[%s1313_s4 + $0x54] sm:$0xf]  ;;  %v921_v26 = vld [vmem:[%s1313_s4 + $0x60] sm:$0xf]  ;;  %v941_v28 = vld [vmem:[%s1313_s4 + $0x88] sm:$0xf] }
  0x24   : > { %1194 = vmatpush.bf16.msra.mxu1 %v1126_v18  ;;  %635 = vmatpush.bf16.msra.mxu0 %v1126_v18  ;;  %v890_v18 = vor.u32 %v1110_v12, %v887_v13  ;;  %v1124_v29 = vld [vmem:[%s1313_s4 + $0x98] sm:$0xf0] }
  0x25   : > { %693 = vmatpush.bf16.msra.mxu2 %v1142_v19  ;;  %v902_v19 = vor.u32 %v1114_v15, %v901_v14 }
  0x26   : > { %722 = vmatpush.bf16.msra.mxu3 %v1150_v23 }
  0x28   : > { %1195 = vmatpush.bf16.msra.mxu1 %v1125_v20  ;;  %636 = vmatpush.bf16.msra.mxu0 %v1125_v20  ;;  %v934_v20 = vor.u32 %v1123_v17, %v933_v16 }
  0x29   : > { %694 = vmatpush.bf16.msra.mxu2 %v1141_v27  ;;  %v1119_v27 = vld [vmem:[%s1313_s4 + $0x70] sm:$0xf0] }
  0x2a   : > { %723 = vmatpush.bf16.msra.mxu3 %v1149_v34  ;;  %v927_v34 = vld [vmem:[%s1313_s4 + $0x8c] sm:$0xf0] }
  0x2b   : > { %647 = vmatmul.bf16.vlgmr.msra.gmra.mxu1 %v906_v31  ;;  %637 = vmatmul.bf16.vlgmr.msra.gmra.mxu0 %v866_v32  ;;  %v922_v31 = vor.u32 %v1119_v27, %v921_v26  ;;  %v942_v32 = vor.u32 %v1124_v29, %v941_v28 }
  0x2c   : > { %658 = vmatpush.bf16.msrb.mxu1 %v1140_v22  ;;  %745 = vmatpush.bf16.msrb.mxu0 %v1164_v30  ;;  %v935_v22 = vld [vmem:[%s1313_s4 + $0x94] sm:$0xf0] }
  0x2d   : > { %1196 = vmatpush.bf16.msrb.mxu2 %v1164_v30  ;;  %724 = vmatmul.bf16.vlgmr.msra.gmra.mxu3 %v878_v39  ;;  %v938_v23 = vor.u32 %v1121_v21, %v935_v22  ;;  %v910_v30 = vor.u32 %v1115_v24, %v907_v25 }
  0x2e   : > { %695 = vmatmul.bf16.vlgmr.msra.gmra.mxu2 %v874_v33  ;;  %v1120_v33 = vld [vmem:[%s1313_s4 + $0x7c] sm:$0xf]  ;;  %s862_s4 = sshll.u32 %s1455_s30, 2 }
  0x2f   : > { %v930_v35 = vor.u32 %v1120_v33, %v927_v34  ;;  %s1434_s28 = scalar_lea.vmem %s1453_s3, %s862_s4 }
  0x30   : > { %659 = vmatpush.bf16.msrb.mxu1 %v1139_v37  ;;  %746 = vmatpush.bf16.msrb.mxu0 %v1163_v38 }
  0x31   : > { %1197 = vmatpush.bf16.msrb.mxu2 %v1163_v38 }
  0x34   : > { %660 = vmatpush.bf16.msrb.mxu1 %v1138_v40  ;;  %747 = vmatpush.bf16.msrb.mxu0 %v1162_v41 }
  0x35   : > { %1198 = vmatpush.bf16.msrb.mxu2 %v1162_v41 }
  0x38   : > { %661 = vmatpush.bf16.msrb.mxu1 %v1137_v42  ;;  %748 = vmatpush.bf16.msrb.mxu0 %v1161_v43 }
  0x39   : > { %1199 = vmatpush.bf16.msrb.mxu2 %v1161_v43 }
  0x3b   : > { %652 = vmatmul.bf16.gmra.mxu1 %v926_v52  ;;  %642 = vmatmul.bf16.gmra.mxu0 %v886_v53 }
  0x3c   : > { %662 = vmatpush.bf16.msrb.mxu1 %v1136_v48  ;;  %749 = vmatpush.bf16.msrb.mxu0 %v1160_v51  ;;  %v1425_v48 = vld [vmem:[%s1452_s2] ss:$0 sm:$0xff] }
  0x3d   : > { %1200 = vmatpush.bf16.msrb.mxu2 %v1160_v51  ;;  %729 = vmatmul.bf16.gmra.mxu3 %v898_v59 }
  0x3e   : > { %700 = vmatmul.bf16.gmra.mxu2 %v894_v54 }
  0x40   : > { %663 = vmatpush.bf16.msrb.mxu1 %v1135_v57  ;;  %750 = vmatpush.bf16.msrb.mxu0 %v1159_v58 }
  0x41   : > { %1201 = vmatpush.bf16.msrb.mxu2 %v1159_v58 }
  0x44   : > { %664 = vmatpush.bf16.msrb.mxu1 %v1134_v60  ;;  %751 = vmatpush.bf16.msrb.mxu0 %v1158_v61 }
  0x45   : > { %1202 = vmatpush.bf16.msrb.mxu2 %v1158_v61 }
  0x48   : > { %665 = vmatpush.bf16.msrb.mxu1 %v1133_v62  ;;  %752 = vmatpush.bf16.msrb.mxu0 %v1157_v63 }
  0x49   : > { %1203 = vmatpush.bf16.msrb.mxu2 %v1157_v63 }
  0x4b   : > { %666 = vmatmul.bf16.vlgmr.msrb.gmra.mxu1 %v870_v6  ;;  %753 = vmatmul.bf16.vlgmr.msrb.gmra.mxu0 %v882_v7 }
  0x4d   : > { %734 = vmatmul.bf16.gmra.mxu3 %v918_v11 }
  0x4e   : > { %705 = vmatmul.bf16.gmra.mxu2 %v914_v8 }
  0x5b   : > { %671 = vmatmul.bf16.gmra.mxu1 %v890_v18  ;;  %758 = vmatmul.bf16.gmra.mxu0 %v902_v19 }
  0x5d   : > { %739 = vmatmul.bf16.gmra.mxu3 %v938_v23 }
  0x5e   : > { %710 = vmatmul.bf16.gmra.mxu2 %v934_v20 }
  0x6b   : > { %676 = vmatmul.bf16.gmra.mxu1 %v910_v30  ;;  %763 = vmatmul.bf16.gmra.mxu0 %v922_v31 }
  0x6e   : > { %768 = vmatmul.bf16.vlgmr.msrb.gmra.mxu2 %v942_v32 }
  0x7b   : > { %681 = vmatmul.bf16.gmra.mxu1 %v930_v35 }
  0xa8   : > { %v648_v36 = vpop.f32.mrf.mxu1  ;;  %v638_v37 = vpop.f32.mrf.mxu0 }
  0xa9   : > { %v639_v49 = vadd.f32 %v1425_v48, %v638_v37  ;;  %v649_v22 = vadd.f32 %v1425_v48, %v648_v36 }
  0xb0   : > { %v650_v39 = vpop.f32.mrf.mxu1  ;;  %v640_v40 = vpop.f32.mrf.mxu0 }
  0xb1   : > { %v696_v38 = vpop.f32.mrf.mxu2  ;;  %v725_v44 = vpop.f32.mrf.mxu3  ;;  %v641_v56 = vadd.f32 %v1425_v48, %v640_v40  ;;  %v651_v32 = vadd.f32 %v1425_v48, %v650_v39 }
  0xb8   : > { %v1418_v42 = vpop.f32.mrf.mxu1  ;;  %v643_v43 = vpop.f32.mrf.mxu0 }
  0xb9   : > { %v698_v41 = vpop.f32.mrf.mxu2  ;;  %v727_v50 = vpop.f32.mrf.mxu3  ;;  %v644_v2 = vadd.f32 %v1425_v48, %v643_v43 }
  0xc0   : > { %v1420_v46 = vpop.f32.mrf.mxu1  ;;  %v645_v47 = vpop.f32.mrf.mxu0 }
  0xc1   : > { %v701_v45 = vpop.f32.mrf.mxu2  ;;  %v730_v61 = vpop.f32.mrf.mxu3  ;;  %v646_v13 = vadd.f32 %v1425_v48, %v645_v47 }
  0xc8   : > { %v667_v51 = vpop.f32.mrf.mxu1  ;;  %v754_v52 = vpop.f32.mrf.mxu0 }
  0xc9   : > { %v668_v53 = vadd.f32 %v667_v51, %v639_v49  ;;  %v703_v54 = vpop.f32.mrf.mxu2  ;;  %v732_v10 = vpop.f32.mrf.mxu3 }
  0xcb   : > { %v697_v55 = vadd.f32 %v696_v38, %v668_v53 }
  0xcd   : > { %v726_v59 = vadd.f32 %v725_v44, %v697_v55  ;;  %v654_v44 = vadd.f32 %v1425_v48, %v1418_v42  ;;  %v656_v55 = vadd.f32 %v1425_v48, %v1420_v46 }
  0xcf   : > { %v755_v0 = vadd.f32 %v754_v52, %v726_v59 }
  0xd0   : > { %v669_v57 = vpop.f32.mrf.mxu1  ;;  %v756_v58 = vpop.f32.mrf.mxu0 }
  0xd1   : > { %v670_v60 = vadd.f32 %v669_v57, %v641_v56  ;;  %v706_v63 = vpop.f32.mrf.mxu2  ;;  %v774_v6 = vmax.f32 %v755_v0, 0.0  ;;  %v735_v21 = vpop.f32.mrf.mxu3 }
  0xd3   : > { %v699_v62 = vadd.f32 %v698_v41, %v670_v60 }
  0xd5   : > { %v728_v1 = vadd.f32 %v727_v50, %v699_v62 }
  0xd7   : > { %v757_v3 = vadd.f32 %v756_v58, %v728_v1 }
  0xd8   : > { %v672_v4 = vpop.f32.mrf.mxu1  ;;  %v759_v5 = vpop.f32.mrf.mxu0 }
  0xd9   : > { %v775_v7 = vmax.f32 %v757_v3, 0.0  ;;  %v673_v8 = vadd.f32 %v672_v4, %v644_v2  ;;  %v708_v12 = vpop.f32.mrf.mxu2  ;;  %v737_v33 = vpop.f32.mrf.mxu3 }
  0xdb   : > { %v1168_v9 = vpack.c.bf16 %v775_v7, %v774_v6  ;;  %v702_v11 = vadd.f32 %v701_v45, %v673_v8 }
  0xdd   : > { %1169 = vst [vmem:[%s1434_s28] sm:$0xff] %v1168_v9   ;;  %v731_v16 = vadd.f32 %v730_v61, %v702_v11 }
  0xdf   : > { %v760_v19 = vadd.f32 %v759_v5, %v731_v16 }
  0xe0   : > { %v674_v14 = vpop.f32.mrf.mxu1  ;;  %v761_v15 = vpop.f32.mrf.mxu0 }
  0xe1   : > { %v675_v17 = vadd.f32 %v674_v14, %v646_v13  ;;  %v711_v24 = vpop.f32.mrf.mxu2  ;;  %v776_v26 = vmax.f32 %v760_v19, 0.0  ;;  %v740_v52 = vpop.f32.mrf.mxu3 }
  0xe3   : > { %v704_v18 = vadd.f32 %v703_v54, %v675_v17 }
  0xe5   : > { %v733_v20 = vadd.f32 %v732_v10, %v704_v18 }
  0xe7   : > { %v762_v23 = vadd.f32 %v761_v15, %v733_v20 }
  0xe8   : > { %v677_v25 = vpop.f32.mrf.mxu1  ;;  %v764_v29 = vpop.f32.mrf.mxu0 }
  0xe9   : > { %v777_v27 = vmax.f32 %v762_v23, 0.0  ;;  %v678_v28 = vadd.f32 %v677_v25, %v649_v22  ;;  %v713_v38 = vpop.f32.mrf.mxu2  ;;  %v742_v60 = vpop.f32.mrf.mxu3 }
  0xeb   : > { %v1173_v30 = vpack.c.bf16 %v777_v27, %v776_v26  ;;  %v707_v31 = vadd.f32 %v706_v63, %v678_v28 }
  0xed   : > { %1185 = vst [vmem:[%s1434_s28 + $0x8] sm:$0xff] %v1173_v30   ;;  %v736_v35 = vadd.f32 %v735_v21, %v707_v31 }
  0xef   : > { %v765_v41 = vadd.f32 %v764_v29, %v736_v35 }
  0xf0   : > { %v679_v34 = vpop.f32.mrf.mxu1  ;;  %v766_v36 = vpop.f32.mrf.mxu0 }
  0xf1   : > { %v680_v37 = vadd.f32 %v679_v34, %v651_v32  ;;  %v778_v49 = vmax.f32 %v765_v41, 0.0  ;;  %v769_v53 = vpop.f32.mrf.mxu2 }
  0xf3   : > { %v709_v40 = vadd.f32 %v708_v12, %v680_v37 }
  0xf5   : > { %v738_v43 = vadd.f32 %v737_v33, %v709_v40 }
  0xf7   : > { %v767_v45 = vadd.f32 %v766_v36, %v738_v43 }
  0xf8   : > { %v682_v47 = vpop.f32.mrf.mxu1 }
  0xf9   : > { %v779_v50 = vmax.f32 %v767_v45, 0.0  ;;  %v683_v51 = vadd.f32 %v682_v47, %v654_v44  ;;  %v771_v62 = vpop.f32.mrf.mxu2 }
  0xfb   : > { %v1178_v39 = vpack.c.bf16 %v779_v50, %v778_v49  ;;  %v712_v54 = vadd.f32 %v711_v24, %v683_v51 }
  0xfd   : > { %1186 = vst [vmem:[%s1434_s28 + $0x10] sm:$0xff] %v1178_v39   ;;  %v741_v57 = vadd.f32 %v740_v52, %v712_v54 }
  0xff   : > { %v770_v42 = vadd.f32 %v769_v53, %v741_v57 }
 0x100   : > { %v684_v56 = vpop.f32.mrf.mxu1 }
 0x101   : > { %v685_v58 = vadd.f32 %v684_v56, %v656_v55  ;;  %v780_v0 = vmax.f32 %v770_v42, 0.0 }
 0x103   : > { %v714_v59 = vadd.f32 %v713_v38, %v685_v58 }
 0x105   : > { %v743_v61 = vadd.f32 %v742_v60, %v714_v59 }
 0x107   : > { %v772_v63 = vadd.f32 %v771_v62, %v743_v61 }
 0x109   : > { %v781_v1 = vmax.f32 %v772_v63, 0.0 }
 0x10b   : > { %v1183_v2 = vpack.c.bf16 %v781_v1, %v780_v0 }
 0x10d   : > { %1187 = vst [vmem:[%s1434_s28 + $0x18] sm:$0xff] %v1183_v2  }
 0x10e PF: > { %s13_s12 = sadd.s32 1, %s1220_s12  }
 0x10f   : > { %p10_p4 = scmp.ge.s32.totalorder %s13_s12, 4  }
 0x111   :  { %12 = sbr.rel (!%p10_p4) target bundleno = 1 (0x1), region = 62 }

// kernel: dqn_forward.7
= control target key start
LH: loop header
LB: loop body
LE: loop exit
PB: predicated region body
PF: predicated region fallthrough
CT: control target
= control target key end

     0   :  { %s16572_s1 = inlined_call_operand.vmem [shape: bf16[3200,512], index: 1, kind: input, shape index: {}]   ;;  %s16573_s0 = inlined_call_operand.vmem [shape: bf16[16,3200], index: 0, kind: input, shape index: {}]   ;;  %s16574_s2 = inlined_call_operand.vmem [shape: f32[1,512], index: 2, kind: input, shape index: {}]   ;;  %s16575_s3 = inlined_call_operand.vmem [shape: bf16[512,128], index: 3, kind: input, shape index: {}]   ;;  %s16576_s4 = inlined_call_operand.vmem [shape: f32[1,128], index: 4, kind: input, shape index: {}]   ;;  %s16577_s5 = inlined_call_operand.vmem [shape: f32[16,128], index: 5, kind: output, shape index: {}]  }
   0x1   :  { %v6930_v0 = vld [vmem:[%s16572_s1 + $0xe0] sm:$0xf]  ;;  %v10199_v1 = vld [vmem:[%s16572_s1 + $0xec] sm:$0xf0] }
   0x2   :  { %v7058_v2 = vld [vmem:[%s16572_s1 + $0x1e0] sm:$0xf]  ;;  %v6931_v3 = vor.u32 %v10199_v1, %v6930_v0  ;;  %v10231_v4 = vld [vmem:[%s16572_s1 + $0x1ec] sm:$0xf0] }
   0x3   :  { %v7186_v5 = vld [vmem:[%s16572_s1 + $0x2e0] sm:$0xf]  ;;  %v10263_v6 = vld [vmem:[%s16572_s1 + $0x2ec] sm:$0xf0]  ;;  %v7059_v7 = vor.u32 %v10231_v4, %v7058_v2 }
   0x4   :  { %v7187_v8 = vor.u32 %v10263_v6, %v7186_v5  ;;  %v7314_v9 = vld [vmem:[%s16572_s1 + $0x3e0] sm:$0xf]  ;;  %v10295_v10 = vld [vmem:[%s16572_s1 + $0x3ec] sm:$0xf0]  ;;  %4982 = vmatpush.bf16.msra.mxu0 %v6931_v3 }
   0x5   :  { %v6914_v11 = vld [vmem:[%s16572_s1 + $0xc0] sm:$0xf]  ;;  %v7315_v12 = vor.u32 %v10295_v10, %v7314_v9  ;;  %v10195_v13 = vld [vmem:[%s16572_s1 + $0xcc] sm:$0xf0]  ;;  %4996 = vmatpush.bf16.msra.mxu1 %v7059_v7 }
   0x6   :  { %v7042_v14 = vld [vmem:[%s16572_s1 + $0x1c0] sm:$0xf]  ;;  %v10227_v15 = vld [vmem:[%s16572_s1 + $0x1cc] sm:$0xf0]  ;;  %5010 = vmatpush.bf16.msra.mxu2 %v7187_v8  ;;  %v6915_v16 = vor.u32 %v10195_v13, %v6914_v11 }
   0x7   :  { %v7043_v17 = vor.u32 %v10227_v15, %v7042_v14  ;;  %v7170_v18 = vld [vmem:[%s16572_s1 + $0x2c0] sm:$0xf]  ;;  %v10259_v19 = vld [vmem:[%s16572_s1 + $0x2cc] sm:$0xf0]  ;;  %5024 = vmatpush.bf16.msra.mxu3 %v7315_v12 }
   0x8   :  { %v7298_v20 = vld [vmem:[%s16572_s1 + $0x3c0] sm:$0xf]  ;;  %v7171_v21 = vor.u32 %v10259_v19, %v7170_v18  ;;  %v10291_v22 = vld [vmem:[%s16572_s1 + $0x3cc] sm:$0xf0]  ;;  %4983 = vmatpush.bf16.msra.mxu0 %v6915_v16 }
   0x9   :  { %v6898_v23 = vld [vmem:[%s16572_s1 + $0xa0] sm:$0xf]  ;;  %v10191_v24 = vld [vmem:[%s16572_s1 + $0xac] sm:$0xf0]  ;;  %v7299_v25 = vor.u32 %v10291_v22, %v7298_v20  ;;  %4997 = vmatpush.bf16.msra.mxu1 %v7043_v17 }
   0xa   :  { %v7026_v26 = vld [vmem:[%s16572_s1 + $0x1a0] sm:$0xf]  ;;  %v10223_v27 = vld [vmem:[%s16572_s1 + $0x1ac] sm:$0xf0]  ;;  %v6899_v29 = vor.u32 %v10191_v24, %v6898_v23  ;;  %5011 = vmatpush.bf16.msra.mxu2 %v7171_v21 }
   0xb   :  { %v7154_v28 = vld [vmem:[%s16572_s1 + $0x2a0] sm:$0xf]  ;;  %v10255_v30 = vld [vmem:[%s16572_s1 + $0x2ac] sm:$0xf0]  ;;  %v7027_v33 = vor.u32 %v10223_v27, %v7026_v26  ;;  %5025 = vmatpush.bf16.msra.mxu3 %v7299_v25 }
   0xc   :  { %v7282_v31 = vld [vmem:[%s16572_s1 + $0x3a0] sm:$0xf]  ;;  %v10287_v32 = vld [vmem:[%s16572_s1 + $0x3ac] sm:$0xf0]  ;;  %v7155_v34 = vor.u32 %v10255_v30, %v7154_v28  ;;  %4984 = vmatpush.bf16.msra.mxu0 %v6899_v29 }
   0xd   :  { %v6882_v35 = vld [vmem:[%s16572_s1 + $0x80] sm:$0xf]  ;;  %v10187_v36 = vld [vmem:[%s16572_s1 + $0x8c] sm:$0xf0]  ;;  %v7283_v38 = vor.u32 %v10287_v32, %v7282_v31  ;;  %4998 = vmatpush.bf16.msra.mxu1 %v7027_v33 }
   0xe   :  { %v7010_v37 = vld [vmem:[%s16572_s1 + $0x180] sm:$0xf]  ;;  %v10219_v39 = vld [vmem:[%s16572_s1 + $0x18c] sm:$0xf0]  ;;  %v6883_v44 = vor.u32 %v10187_v36, %v6882_v35  ;;  %5012 = vmatpush.bf16.msra.mxu2 %v7155_v34 }
   0xf   :  { %v7138_v40 = vld [vmem:[%s16572_s1 + $0x280] sm:$0xf]  ;;  %v10251_v41 = vld [vmem:[%s16572_s1 + $0x28c] sm:$0xf0]  ;;  %v7011_v45 = vor.u32 %v10219_v39, %v7010_v37  ;;  %5026 = vmatpush.bf16.msra.mxu3 %v7283_v38 }
  0x10   :  { %v7266_v42 = vld [vmem:[%s16572_s1 + $0x380] sm:$0xf]  ;;  %v10283_v43 = vld [vmem:[%s16572_s1 + $0x38c] sm:$0xf0]  ;;  %v7139_v46 = vor.u32 %v10251_v41, %v7138_v40  ;;  %4985 = vmatpush.bf16.msra.mxu0 %v6883_v44 }
  0x11   :  { %v6866_v47 = vld [vmem:[%s16572_s1 + $0x60] sm:$0xf]  ;;  %v10183_v48 = vld [vmem:[%s16572_s1 + $0x6c] sm:$0xf0]  ;;  %v7267_v50 = vor.u32 %v10283_v43, %v7266_v42  ;;  %4999 = vmatpush.bf16.msra.mxu1 %v7011_v45 }
  0x12   :  { %v6994_v49 = vld [vmem:[%s16572_s1 + $0x160] sm:$0xf]  ;;  %v10215_v51 = vld [vmem:[%s16572_s1 + $0x16c] sm:$0xf0]  ;;  %v6867_v56 = vor.u32 %v10183_v48, %v6866_v47  ;;  %5013 = vmatpush.bf16.msra.mxu2 %v7139_v46 }
  0x13   :  { %v7122_v52 = vld [vmem:[%s16572_s1 + $0x260] sm:$0xf]  ;;  %v10247_v53 = vld [vmem:[%s16572_s1 + $0x26c] sm:$0xf0]  ;;  %v6995_v57 = vor.u32 %v10215_v51, %v6994_v49  ;;  %5027 = vmatpush.bf16.msra.mxu3 %v7267_v50 }
  0x14   :  { %v7250_v54 = vld [vmem:[%s16572_s1 + $0x360] sm:$0xf]  ;;  %v10279_v55 = vld [vmem:[%s16572_s1 + $0x36c] sm:$0xf0]  ;;  %v7123_v58 = vor.u32 %v10247_v53, %v7122_v52  ;;  %4986 = vmatpush.bf16.msra.mxu0 %v6867_v56  ;;  %v10156_v53 = vld [vmem:[%s16573_s0 + $0x60] sm:$0xf0] }
  0x15   :  { %v6850_v59 = vld [vmem:[%s16572_s1 + $0x40] sm:$0xf]  ;;  %v10179_v60 = vld [vmem:[%s16572_s1 + $0x4c] sm:$0xf0]  ;;  %v7251_v62 = vor.u32 %v10279_v55, %v7250_v54  ;;  %5000 = vmatpush.bf16.msra.mxu1 %v6995_v57  ;;  %v6726_v54 = vld [vmem:[%s16573_s0 + $0x8] sm:$0xf] }
  0x16   :  { %v6978_v61 = vld [vmem:[%s16572_s1 + $0x140] sm:$0xf]  ;;  %v10211_v63 = vld [vmem:[%s16572_s1 + $0x14c] sm:$0xf0]  ;;  %v6851_v4 = vor.u32 %v10179_v60, %v6850_v59  ;;  %5014 = vmatpush.bf16.msra.mxu2 %v7123_v58  ;;  %v10157_v59 = vld [vmem:[%s16573_s0 + $0x68] sm:$0xf0] }
  0x17   :  { %v7106_v0 = vld [vmem:[%s16572_s1 + $0x240] sm:$0xf]  ;;  %v10243_v1 = vld [vmem:[%s16572_s1 + $0x24c] sm:$0xf0]  ;;  %v6979_v5 = vor.u32 %v10211_v63, %v6978_v61  ;;  %5028 = vmatpush.bf16.msra.mxu3 %v7251_v62 }
  0x18   :  { %v7234_v2 = vld [vmem:[%s16572_s1 + $0x340] sm:$0xf]  ;;  %v10275_v3 = vld [vmem:[%s16572_s1 + $0x34c] sm:$0xf0]  ;;  %v7107_v6 = vor.u32 %v10243_v1, %v7106_v0  ;;  %4987 = vmatpush.bf16.msra.mxu0 %v6851_v4  ;;  %v11303_v1 = vor.u32 %v10157_v59, %v6726_v54 }
  0x19   :  { %v6834_v7 = vld [vmem:[%s16572_s1 + $0x20] sm:$0xf]  ;;  %v10175_v8 = vld [vmem:[%s16572_s1 + $0x2c] sm:$0xf0]  ;;  %v7235_v10 = vor.u32 %v10275_v3, %v7234_v2  ;;  %5001 = vmatpush.bf16.msra.mxu1 %v6979_v5 }
  0x1a   :  { %v6962_v9 = vld [vmem:[%s16572_s1 + $0x120] sm:$0xf]  ;;  %v10207_v11 = vld [vmem:[%s16572_s1 + $0x12c] sm:$0xf0]  ;;  %v6835_v16 = vor.u32 %v10175_v8, %v6834_v7  ;;  %5015 = vmatpush.bf16.msra.mxu2 %v7107_v6  ;;  %v10144_v6 = vld [vmem:[%s16573_s0 + $0x4] sm:$0xf] }
  0x1b   :  { %v7090_v12 = vld [vmem:[%s16572_s1 + $0x220] sm:$0xf]  ;;  %v10239_v13 = vld [vmem:[%s16572_s1 + $0x22c] sm:$0xf0]  ;;  %v6963_v19 = vor.u32 %v10207_v11, %v6962_v9  ;;  %5029 = vmatpush.bf16.msra.mxu3 %v7235_v10  ;;  %v6720_v7 = vld [vmem:[%s16573_s0 + $0x64] sm:$0xf0] }
  0x1c   :  { %v7218_v14 = vld [vmem:[%s16572_s1 + $0x320] sm:$0xf]  ;;  %v10271_v15 = vld [vmem:[%s16572_s1 + $0x32c] sm:$0xf0]  ;;  %v7091_v20 = vor.u32 %v10239_v13, %v7090_v12  ;;  %4988 = vmatpush.bf16.msra.mxu0 %v6835_v16  ;;  %v10145_v8 = vld [vmem:[%s16573_s0 + $0xc] sm:$0xf]  ;;  %v11325_v10 = vor.u32 %v10144_v6, %v6720_v7 }
  0x1d   :  { %v6818_v17 = vld [vmem:[%s16572_s1] sm:$0xf]  ;;  %v10171_v18 = vld [vmem:[%s16572_s1 + $0xc] sm:$0xf0]  ;;  %v7219_v24 = vor.u32 %v10271_v15, %v7218_v14  ;;  %5002 = vmatpush.bf16.msra.mxu1 %v6963_v19 }
  0x1e   :  { %v6946_v21 = vld [vmem:[%s16572_s1 + $0x100] sm:$0xf]  ;;  %v10203_v22 = vld [vmem:[%s16572_s1 + $0x10c] sm:$0xf0]  ;;  %v6819_v31 = vor.u32 %v10171_v18, %v6818_v17  ;;  %5016 = vmatpush.bf16.msra.mxu2 %v7091_v20 }
  0x1f   :  { %v7074_v23 = vld [vmem:[%s16572_s1 + $0x200] sm:$0xf]  ;;  %v10235_v25 = vld [vmem:[%s16572_s1 + $0x20c] sm:$0xf0]  ;;  %v6947_v35 = vor.u32 %v10203_v22, %v6946_v21  ;;  %5030 = vmatpush.bf16.msra.mxu3 %v7219_v24 }
  0x20   :  { %v7202_v26 = vld [vmem:[%s16572_s1 + $0x300] sm:$0xf]  ;;  %v10267_v27 = vld [vmem:[%s16572_s1 + $0x30c] sm:$0xf0]  ;;  %v7075_v36 = vor.u32 %v10235_v25, %v7074_v23  ;;  %4989 = vmatpush.bf16.msra.mxu0 %v6819_v31 }
  0x21   :  { %v7442_v28 = vld [vmem:[%s16572_s1 + $0x4e0] sm:$0xf]  ;;  %v10327_v29 = vld [vmem:[%s16572_s1 + $0x4ec] sm:$0xf0]  ;;  %v7203_v39 = vor.u32 %v10267_v27, %v7202_v26  ;;  %5003 = vmatpush.bf16.msra.mxu1 %v6947_v35 }
  0x22   :  { %v7570_v30 = vld [vmem:[%s16572_s1 + $0x5e0] sm:$0xf]  ;;  %v10359_v32 = vld [vmem:[%s16572_s1 + $0x5ec] sm:$0xf0]  ;;  %v7443_v40 = vor.u32 %v10327_v29, %v7442_v28  ;;  %5017 = vmatpush.bf16.msra.mxu2 %v7075_v36 }
  0x23   :  { %v7698_v33 = vld [vmem:[%s16572_s1 + $0x6e0] sm:$0xf]  ;;  %v10391_v34 = vld [vmem:[%s16572_s1 + $0x6ec] sm:$0xf0]  ;;  %v7571_v43 = vor.u32 %v10359_v32, %v7570_v30  ;;  %5031 = vmatpush.bf16.msra.mxu3 %v7203_v39 }
  0x24   :  { %v7826_v37 = vld [vmem:[%s16572_s1 + $0x7e0] sm:$0xf]  ;;  %v10423_v38 = vld [vmem:[%s16572_s1 + $0x7ec] sm:$0xf0]  ;;  %v7699_v44 = vor.u32 %v10391_v34, %v7698_v33  ;;  %5038 = vmatpush.bf16.msrb.mxu0 %v7443_v40  ;;  %5004 = vmatmul.bf16.vlgmr.msra.gmra.mxu1 %v11325_v10 }
  0x25   :  { %v7426_v41 = vld [vmem:[%s16572_s1 + $0x4c0] sm:$0xf]  ;;  %v10323_v42 = vld [vmem:[%s16572_s1 + $0x4cc] sm:$0xf0]  ;;  %v7827_v48 = vor.u32 %v10423_v38, %v7826_v37  ;;  %5052 = vmatpush.bf16.msrb.mxu1 %v7571_v43  ;;  %5018 = vmatmul.bf16.vlgmr.msra.gmra.mxu2 %v11303_v1 }
  0x26   :  { %v7554_v45 = vld [vmem:[%s16572_s1 + $0x5c0] sm:$0xf]  ;;  %v10355_v46 = vld [vmem:[%s16572_s1 + $0x5cc] sm:$0xf0]  ;;  %v7427_v55 = vor.u32 %v10323_v42, %v7426_v41  ;;  %5066 = vmatpush.bf16.msrb.mxu2 %v7699_v44 }
  0x27   :  { %v7682_v47 = vld [vmem:[%s16572_s1 + $0x6c0] sm:$0xf]  ;;  %v10387_v49 = vld [vmem:[%s16572_s1 + $0x6cc] sm:$0xf0]  ;;  %v7555_v60 = vor.u32 %v10355_v46, %v7554_v45  ;;  %5080 = vmatpush.bf16.msrb.mxu3 %v7827_v48 }
  0x28   :  { %v7810_v50 = vld [vmem:[%s16572_s1 + $0x7c0] sm:$0xf]  ;;  %v10419_v51 = vld [vmem:[%s16572_s1 + $0x7cc] sm:$0xf0]  ;;  %v7683_v61 = vor.u32 %v10387_v49, %v7682_v47  ;;  %5039 = vmatpush.bf16.msrb.mxu0 %v7427_v55 }
  0x29   :  { %v6718_v52 = vld [vmem:[%s16573_s0] sm:$0xf]  ;;  %v10319_v57 = vld [vmem:[%s16572_s1 + $0x4ac] sm:$0xf0]  ;;  %v7811_v2 = vor.u32 %v10419_v51, %v7810_v50  ;;  %5053 = vmatpush.bf16.msrb.mxu1 %v7555_v60 }
  0x2a   :  { %v7410_v56 = vld [vmem:[%s16572_s1 + $0x4a0] sm:$0xf]  ;;  %v11289_v58 = vor.u32 %v10156_v53, %v6718_v52  ;;  %v10351_v63 = vld [vmem:[%s16572_s1 + $0x5ac] sm:$0xf0]  ;;  %5067 = vmatpush.bf16.msrb.mxu2 %v7683_v61 }
  0x2b   :  { %v7538_v62 = vld [vmem:[%s16572_s1 + $0x5a0] sm:$0xf]  ;;  %v10383_v3 = vld [vmem:[%s16572_s1 + $0x6ac] sm:$0xf0]  ;;  %v7411_v9 = vor.u32 %v10319_v57, %v7410_v56  ;;  %5081 = vmatpush.bf16.msrb.mxu3 %v7811_v2 }
  0x2c   :  { %v7666_v0 = vld [vmem:[%s16572_s1 + $0x6a0] sm:$0xf]  ;;  %v10415_v5 = vld [vmem:[%s16572_s1 + $0x7ac] sm:$0xf0]  ;;  %4990 = vmatmul.bf16.vlgmr.msra.gmra.mxu0 %v11289_v58  ;;  %v7539_v12 = vor.u32 %v10351_v63, %v7538_v62 }
  0x2d   :  { %v7794_v4 = vld [vmem:[%s16572_s1 + $0x7a0] sm:$0xf]  ;;  %v6728_v11 = vld [vmem:[%s16573_s0 + $0x6c] sm:$0xf0]  ;;  %v7667_v13 = vor.u32 %v10383_v3, %v7666_v0  ;;  %5040 = vmatpush.bf16.msrb.mxu0 %v7411_v9 }
  0x2e   :  { %v7394_v14 = vld [vmem:[%s16572_s1 + $0x480] sm:$0xf]  ;;  %v10315_v15 = vld [vmem:[%s16572_s1 + $0x48c] sm:$0xf0]  ;;  %v11339_v17 = vor.u32 %v10145_v8, %v6728_v11  ;;  %v7795_v18 = vor.u32 %v10415_v5, %v7794_v4  ;;  %5054 = vmatpush.bf16.msrb.mxu1 %v7539_v12 }
  0x2f   :  { %v7522_v16 = vld [vmem:[%s16572_s1 + $0x580] sm:$0xf]  ;;  %v10347_v19 = vld [vmem:[%s16572_s1 + $0x58c] sm:$0xf0]  ;;  %v7395_v24 = vor.u32 %v10315_v15, %v7394_v14  ;;  %5068 = vmatpush.bf16.msrb.mxu2 %v7667_v13 }
  0x30   :  { %v7650_v20 = vld [vmem:[%s16572_s1 + $0x680] sm:$0xf]  ;;  %v10379_v21 = vld [vmem:[%s16572_s1 + $0x68c] sm:$0xf0]  ;;  %5032 = vmatmul.bf16.vlgmr.msra.gmra.mxu3 %v11339_v17  ;;  %v7523_v25 = vor.u32 %v10347_v19, %v7522_v16 }
  0x31   :  { %v7778_v22 = vld [vmem:[%s16572_s1 + $0x780] sm:$0xf]  ;;  %v10411_v23 = vld [vmem:[%s16572_s1 + $0x78c] sm:$0xf0]  ;;  %v7651_v26 = vor.u32 %v10379_v21, %v7650_v20  ;;  %5082 = vmatpush.bf16.msrb.mxu3 %v7795_v18  ;;  %5041 = vmatpush.bf16.msrb.mxu0 %v7395_v24 }
  0x32   :  { %v7378_v27 = vld [vmem:[%s16572_s1 + $0x460] sm:$0xf]  ;;  %v10311_v28 = vld [vmem:[%s16572_s1 + $0x46c] sm:$0xf0]  ;;  %v7779_v30 = vor.u32 %v10411_v23, %v7778_v22  ;;  %5055 = vmatpush.bf16.msrb.mxu1 %v7523_v25  ;;  %v10158_v22 = vld [vmem:[%s16573_s0 + $0x70] sm:$0xf0] }
  0x33   :  { %v7506_v29 = vld [vmem:[%s16572_s1 + $0x560] sm:$0xf]  ;;  %v10343_v31 = vld [vmem:[%s16572_s1 + $0x56c] sm:$0xf0]  ;;  %v7379_v36 = vor.u32 %v10311_v28, %v7378_v27  ;;  %5069 = vmatpush.bf16.msrb.mxu2 %v7651_v26  ;;  %v6742_v25 = vld [vmem:[%s16573_s0 + $0x18] sm:$0xf] }
  0x34   :  { %v7634_v32 = vld [vmem:[%s16572_s1 + $0x660] sm:$0xf]  ;;  %v10375_v33 = vld [vmem:[%s16572_s1 + $0x66c] sm:$0xf0]  ;;  %v7507_v37 = vor.u32 %v10343_v31, %v7506_v29  ;;  %v10159_v26 = vld [vmem:[%s16573_s0 + $0x78] sm:$0xf0] }
  0x35   :  { %v7762_v34 = vld [vmem:[%s16572_s1 + $0x760] sm:$0xf]  ;;  %v10407_v35 = vld [vmem:[%s16572_s1 + $0x76c] sm:$0xf0]  ;;  %v7635_v38 = vor.u32 %v10375_v33, %v7634_v32  ;;  %5083 = vmatpush.bf16.msrb.mxu3 %v7779_v30  ;;  %5042 = vmatpush.bf16.msrb.mxu0 %v7379_v36  ;;  %v10146_v27 = vld [vmem:[%s16573_s0 + $0x14] sm:$0xf] }
  0x36   :  { %v7362_v39 = vld [vmem:[%s16572_s1 + $0x440] sm:$0xf]  ;;  %v10307_v40 = vld [vmem:[%s16572_s1 + $0x44c] sm:$0xf0]  ;;  %v7763_v42 = vor.u32 %v10407_v35, %v7762_v34  ;;  %5056 = vmatpush.bf16.msrb.mxu1 %v7507_v37  ;;  %v6736_v30 = vld [vmem:[%s16573_s0 + $0x74] sm:$0xf0] }
  0x37   :  { %v7490_v41 = vld [vmem:[%s16572_s1 + $0x540] sm:$0xf]  ;;  %v10339_v43 = vld [vmem:[%s16572_s1 + $0x54c] sm:$0xf0]  ;;  %v7363_v48 = vor.u32 %v10307_v40, %v7362_v39  ;;  %5070 = vmatpush.bf16.msrb.mxu2 %v7635_v38  ;;  %v10147_v31 = vld [vmem:[%s16573_s0 + $0x1c] sm:$0xf] }
  0x38   :  { %v7618_v44 = vld [vmem:[%s16572_s1 + $0x640] sm:$0xf]  ;;  %v10371_v45 = vld [vmem:[%s16572_s1 + $0x64c] sm:$0xf0]  ;;  %v7491_v50 = vor.u32 %v10339_v43, %v7490_v41  ;;  %v11522_v43 = vor.u32 %v10159_v26, %v6742_v25 }
  0x39   :  { %v7746_v46 = vld [vmem:[%s16572_s1 + $0x740] sm:$0xf]  ;;  %v10403_v47 = vld [vmem:[%s16572_s1 + $0x74c] sm:$0xf0]  ;;  %v7619_v51 = vor.u32 %v10371_v45, %v7618_v44  ;;  %5084 = vmatpush.bf16.msrb.mxu3 %v7763_v42  ;;  %5043 = vmatpush.bf16.msrb.mxu0 %v7363_v48  ;;  %v11524_v44 = vor.u32 %v10146_v27, %v6736_v30 }
  0x3a   :  { %v7346_v49 = vld [vmem:[%s16572_s1 + $0x420] sm:$0xf]  ;;  %v10303_v52 = vld [vmem:[%s16572_s1 + $0x42c] sm:$0xf0]  ;;  %v7747_v55 = vor.u32 %v10403_v47, %v7746_v46  ;;  %5057 = vmatpush.bf16.msrb.mxu1 %v7491_v50 }
  0x3b   :  { %v7474_v53 = vld [vmem:[%s16572_s1 + $0x520] sm:$0xf]  ;;  %v10335_v54 = vld [vmem:[%s16572_s1 + $0x52c] sm:$0xf0]  ;;  %v7347_v63 = vor.u32 %v10303_v52, %v7346_v49  ;;  %5071 = vmatpush.bf16.msrb.mxu2 %v7619_v51 }
  0x3c   :  { %v7602_v56 = vld [vmem:[%s16572_s1 + $0x620] sm:$0xf]  ;;  %v10367_v57 = vld [vmem:[%s16572_s1 + $0x62c] sm:$0xf0]  ;;  %v7475_v5 = vor.u32 %v10335_v54, %v7474_v53 }
  0x3d   :  { %v7730_v59 = vld [vmem:[%s16572_s1 + $0x720] sm:$0xf]  ;;  %v10399_v60 = vld [vmem:[%s16572_s1 + $0x72c] sm:$0xf0]  ;;  %v7603_v6 = vor.u32 %v10367_v57, %v7602_v56  ;;  %5085 = vmatpush.bf16.msrb.mxu3 %v7747_v55  ;;  %5044 = vmatpush.bf16.msrb.mxu0 %v7347_v63 }
  0x3e   :  { %v7330_v61 = vld [vmem:[%s16572_s1 + $0x400] sm:$0xf]  ;;  %v10299_v62 = vld [vmem:[%s16572_s1 + $0x40c] sm:$0xf0]  ;;  %v7731_v11 = vor.u32 %v10399_v60, %v7730_v59  ;;  %5058 = vmatpush.bf16.msrb.mxu1 %v7475_v5 }
  0x3f   :  { %v7458_v0 = vld [vmem:[%s16572_s1 + $0x500] sm:$0xf]  ;;  %v10331_v2 = vld [vmem:[%s16572_s1 + $0x50c] sm:$0xf0]  ;;  %v7331_v19 = vor.u32 %v10299_v62, %v7330_v61  ;;  %5072 = vmatpush.bf16.msrb.mxu2 %v7603_v6 }
  0x40   :  { %v7586_v3 = vld [vmem:[%s16572_s1 + $0x600] sm:$0xf]  ;;  %v10363_v4 = vld [vmem:[%s16572_s1 + $0x60c] sm:$0xf0]  ;;  %v7459_v23 = vor.u32 %v10331_v2, %v7458_v0 }
  0x41   :  { %v7714_v7 = vld [vmem:[%s16572_s1 + $0x700] sm:$0xf]  ;;  %v10395_v8 = vld [vmem:[%s16572_s1 + $0x70c] sm:$0xf0]  ;;  %v7587_v24 = vor.u32 %v10363_v4, %v7586_v3  ;;  %5086 = vmatpush.bf16.msrb.mxu3 %v7731_v11  ;;  %5045 = vmatpush.bf16.msrb.mxu0 %v7331_v19 }
  0x42   :  { %v7954_v9 = vld [vmem:[%s16572_s1 + $0x8e0] sm:$0xf]  ;;  %v10455_v12 = vld [vmem:[%s16572_s1 + $0x8ec] sm:$0xf0]  ;;  %v7715_v28 = vor.u32 %v10395_v8, %v7714_v7  ;;  %5059 = vmatpush.bf16.msrb.mxu1 %v7459_v23 }
  0x43   :  { %v8082_v13 = vld [vmem:[%s16572_s1 + $0x9e0] sm:$0xf]  ;;  %v10487_v14 = vld [vmem:[%s16572_s1 + $0x9ec] sm:$0xf0]  ;;  %v7955_v29 = vor.u32 %v10455_v12, %v7954_v9  ;;  %5073 = vmatpush.bf16.msrb.mxu2 %v7587_v24 }
  0x44   :  { %v8210_v15 = vld [vmem:[%s16572_s1 + $0xae0] sm:$0xf]  ;;  %v10519_v16 = vld [vmem:[%s16572_s1 + $0xaec] sm:$0xf0]  ;;  %v8083_v33 = vor.u32 %v10487_v14, %v8082_v13 }
  0x45   :  { %v8338_v18 = vld [vmem:[%s16572_s1 + $0xbe0] sm:$0xf]  ;;  %v10551_v20 = vld [vmem:[%s16572_s1 + $0xbec] sm:$0xf0]  ;;  %v8211_v34 = vor.u32 %v10519_v16, %v8210_v15  ;;  %5087 = vmatpush.bf16.msrb.mxu3 %v7715_v28  ;;  %5094 = vmatpush.bf16.msra.mxu0 %v7955_v29 }
  0x46   :  { %v6734_v21 = vld [vmem:[%s16573_s0 + $0x10] sm:$0xf]  ;;  %v6744_v32 = vld [vmem:[%s16573_s0 + $0x7c] sm:$0xf0]  ;;  %v8339_v38 = vor.u32 %v10551_v20, %v8338_v18  ;;  %5108 = vmatpush.bf16.msra.mxu1 %v8083_v33  ;;  %5074 = vmatmul.bf16.vlgmr.msrb.gmra.mxu2 %v11522_v43 }
  0x47   :  { %v7938_v35 = vld [vmem:[%s16572_s1 + $0x8c0] sm:$0xf]  ;;  %v10451_v36 = vld [vmem:[%s16572_s1 + $0x8cc] sm:$0xf0]  ;;  %v11511_v39 = vor.u32 %v10158_v22, %v6734_v21  ;;  %v11532_v47 = vor.u32 %v10147_v31, %v6744_v32  ;;  %5122 = vmatpush.bf16.msra.mxu2 %v8211_v34  ;;  %5060 = vmatmul.bf16.vlgmr.msrb.gmra.mxu1 %v11524_v44 }
  0x48   :  { %v8066_v37 = vld [vmem:[%s16572_s1 + $0x9c0] sm:$0xf]  ;;  %v10483_v40 = vld [vmem:[%s16572_s1 + $0x9cc] sm:$0xf0]  ;;  %v7939_v48 = vor.u32 %v10451_v36, %v7938_v35 }
  0x49   :  { %v8194_v41 = vld [vmem:[%s16572_s1 + $0xac0] sm:$0xf]  ;;  %v10515_v42 = vld [vmem:[%s16572_s1 + $0xacc] sm:$0xf0]  ;;  %v8067_v49 = vor.u32 %v10483_v40, %v8066_v37  ;;  %5136 = vmatpush.bf16.msra.mxu3 %v8339_v38  ;;  %5046 = vmatmul.bf16.vlgmr.msrb.gmra.mxu0 %v11511_v39 }
  0x4a   :  { %v8322_v45 = vld [vmem:[%s16572_s1 + $0xbc0] sm:$0xf]  ;;  %v10547_v46 = vld [vmem:[%s16572_s1 + $0xbcc] sm:$0xf0]  ;;  %v8195_v50 = vor.u32 %v10515_v42, %v8194_v41  ;;  %5088 = vmatmul.bf16.vlgmr.msrb.gmra.mxu3 %v11532_v47  ;;  %5095 = vmatpush.bf16.msra.mxu0 %v7939_v48 }
  0x4b   :  { %v7922_v51 = vld [vmem:[%s16572_s1 + $0x8a0] sm:$0xf]  ;;  %v10447_v52 = vld [vmem:[%s16572_s1 + $0x8ac] sm:$0xf0]  ;;  %v8323_v54 = vor.u32 %v10547_v46, %v8322_v45  ;;  %5109 = vmatpush.bf16.msra.mxu1 %v8067_v49 }
  0x4c   :  { %v8050_v53 = vld [vmem:[%s16572_s1 + $0x9a0] sm:$0xf]  ;;  %v10479_v55 = vld [vmem:[%s16572_s1 + $0x9ac] sm:$0xf0]  ;;  %v7923_v61 = vor.u32 %v10447_v52, %v7922_v51  ;;  %5123 = vmatpush.bf16.msra.mxu2 %v8195_v50 }
  0x4d   :  { %v8178_v56 = vld [vmem:[%s16572_s1 + $0xaa0] sm:$0xf]  ;;  %v10511_v57 = vld [vmem:[%s16572_s1 + $0xaac] sm:$0xf0]  ;;  %v8051_v62 = vor.u32 %v10479_v55, %v8050_v53  ;;  %5137 = vmatpush.bf16.msra.mxu3 %v8323_v54 }
  0x4e   :  { %v8306_v59 = vld [vmem:[%s16572_s1 + $0xba0] sm:$0xf]  ;;  %v10543_v60 = vld [vmem:[%s16572_s1 + $0xbac] sm:$0xf0]  ;;  %v8179_v63 = vor.u32 %v10511_v57, %v8178_v56  ;;  %5096 = vmatpush.bf16.msra.mxu0 %v7923_v61 }
  0x4f   :  { %v7906_v0 = vld [vmem:[%s16572_s1 + $0x880] sm:$0xf]  ;;  %v10443_v2 = vld [vmem:[%s16572_s1 + $0x88c] sm:$0xf0]  ;;  %v8307_v4 = vor.u32 %v10543_v60, %v8306_v59  ;;  %5110 = vmatpush.bf16.msra.mxu1 %v8051_v62 }
  0x50   :  { %v8034_v3 = vld [vmem:[%s16572_s1 + $0x980] sm:$0xf]  ;;  %v10475_v5 = vld [vmem:[%s16572_s1 + $0x98c] sm:$0xf0]  ;;  %v7907_v11 = vor.u32 %v10443_v2, %v7906_v0  ;;  %5124 = vmatpush.bf16.msra.mxu2 %v8179_v63 }
  0x51   :  { %v8162_v6 = vld [vmem:[%s16572_s1 + $0xa80] sm:$0xf]  ;;  %v10507_v7 = vld [vmem:[%s16572_s1 + $0xa8c] sm:$0xf0]  ;;  %v8035_v12 = vor.u32 %v10475_v5, %v8034_v3  ;;  %5138 = vmatpush.bf16.msra.mxu3 %v8307_v4 }
  0x52   :  { %v8290_v8 = vld [vmem:[%s16572_s1 + $0xb80] sm:$0xf]  ;;  %v10539_v9 = vld [vmem:[%s16572_s1 + $0xb8c] sm:$0xf0]  ;;  %v8163_v13 = vor.u32 %v10507_v7, %v8162_v6  ;;  %5097 = vmatpush.bf16.msra.mxu0 %v7907_v11 }
  0x53   :  { %v7890_v14 = vld [vmem:[%s16572_s1 + $0x860] sm:$0xf]  ;;  %v10439_v15 = vld [vmem:[%s16572_s1 + $0x86c] sm:$0xf0]  ;;  %v8291_v18 = vor.u32 %v10539_v9, %v8290_v8  ;;  %5111 = vmatpush.bf16.msra.mxu1 %v8035_v12 }
  0x54   :  { %v8018_v16 = vld [vmem:[%s16572_s1 + $0x960] sm:$0xf]  ;;  %v10471_v19 = vld [vmem:[%s16572_s1 + $0x96c] sm:$0xf0]  ;;  %v7891_v24 = vor.u32 %v10439_v15, %v7890_v14  ;;  %5125 = vmatpush.bf16.msra.mxu2 %v8163_v13  ;;  %v10160_v13 = vld [vmem:[%s16573_s0 + $0x80] sm:$0xf0] }
  0x55   :  { %v8146_v20 = vld [vmem:[%s16572_s1 + $0xa60] sm:$0xf]  ;;  %v10503_v21 = vld [vmem:[%s16572_s1 + $0xa6c] sm:$0xf0]  ;;  %v8019_v25 = vor.u32 %v10471_v19, %v8018_v16  ;;  %5139 = vmatpush.bf16.msra.mxu3 %v8291_v18  ;;  %v6758_v16 = vld [vmem:[%s16573_s0 + $0x28] sm:$0xf] }
  0x56   :  { %v8274_v22 = vld [vmem:[%s16572_s1 + $0xb60] sm:$0xf]  ;;  %v10535_v23 = vld [vmem:[%s16572_s1 + $0xb6c] sm:$0xf0]  ;;  %v8147_v26 = vor.u32 %v10503_v21, %v8146_v20  ;;  %5098 = vmatpush.bf16.msra.mxu0 %v7891_v24  ;;  %v10161_v18 = vld [vmem:[%s16573_s0 + $0x88] sm:$0xf0] }
  0x57   :  { %v7874_v27 = vld [vmem:[%s16572_s1 + $0x840] sm:$0xf]  ;;  %v10435_v28 = vld [vmem:[%s16572_s1 + $0x84c] sm:$0xf0]  ;;  %v8275_v30 = vor.u32 %v10535_v23, %v8274_v22  ;;  %5112 = vmatpush.bf16.msra.mxu1 %v8019_v25  ;;  %v10148_v19 = vld [vmem:[%s16573_s0 + $0x24] sm:$0xf] }
  0x58   :  { %v8002_v29 = vld [vmem:[%s16572_s1 + $0x940] sm:$0xf]  ;;  %v10467_v31 = vld [vmem:[%s16572_s1 + $0x94c] sm:$0xf0]  ;;  %v7875_v36 = vor.u32 %v10435_v28, %v7874_v27  ;;  %5126 = vmatpush.bf16.msra.mxu2 %v8147_v26  ;;  %v6752_v22 = vld [vmem:[%s16573_s0 + $0x84] sm:$0xf0] }
  0x59   :  { %v8130_v32 = vld [vmem:[%s16572_s1 + $0xa40] sm:$0xf]  ;;  %v10499_v33 = vld [vmem:[%s16572_s1 + $0xa4c] sm:$0xf0]  ;;  %v8003_v38 = vor.u32 %v10467_v31, %v8002_v29  ;;  %5140 = vmatpush.bf16.msra.mxu3 %v8275_v30  ;;  %v10149_v23 = vld [vmem:[%s16573_s0 + $0x2c] sm:$0xf] }
  0x5a   :  { %v8258_v34 = vld [vmem:[%s16572_s1 + $0xb40] sm:$0xf]  ;;  %v10531_v35 = vld [vmem:[%s16572_s1 + $0xb4c] sm:$0xf0]  ;;  %v8131_v40 = vor.u32 %v10499_v33, %v8130_v32  ;;  %5099 = vmatpush.bf16.msra.mxu0 %v7875_v36  ;;  %v11752_v36 = vor.u32 %v10148_v19, %v6752_v22 }
  0x5b   :  { %v7858_v37 = vld [vmem:[%s16572_s1 + $0x820] sm:$0xf]  ;;  %v10431_v41 = vld [vmem:[%s16572_s1 + $0x82c] sm:$0xf0]  ;;  %v8259_v46 = vor.u32 %v10531_v35, %v8258_v34  ;;  %5113 = vmatpush.bf16.msra.mxu1 %v8003_v38  ;;  %v11750_v35 = vor.u32 %v10161_v18, %v6758_v16 }
  0x5c   :  { %v7986_v42 = vld [vmem:[%s16572_s1 + $0x920] sm:$0xf]  ;;  %v10463_v45 = vld [vmem:[%s16572_s1 + $0x92c] sm:$0xf0]  ;;  %v7859_v54 = vor.u32 %v10431_v41, %v7858_v37  ;;  %5127 = vmatpush.bf16.msra.mxu2 %v8131_v40 }
  0x5d   :  { %v8114_v48 = vld [vmem:[%s16572_s1 + $0xa20] sm:$0xf]  ;;  %v10495_v49 = vld [vmem:[%s16572_s1 + $0xa2c] sm:$0xf0]  ;;  %v7987_v60 = vor.u32 %v10463_v45, %v7986_v42  ;;  %5141 = vmatpush.bf16.msra.mxu3 %v8259_v46 }
  0x5e   :  { %v8242_v50 = vld [vmem:[%s16572_s1 + $0xb20] sm:$0xf]  ;;  %v10527_v51 = vld [vmem:[%s16572_s1 + $0xb2c] sm:$0xf0]  ;;  %v8115_v61 = vor.u32 %v10495_v49, %v8114_v48  ;;  %5100 = vmatpush.bf16.msra.mxu0 %v7859_v54 }
  0x5f   :  { %v7842_v52 = vld [vmem:[%s16572_s1 + $0x800] sm:$0xf]  ;;  %v10427_v53 = vld [vmem:[%s16572_s1 + $0x80c] sm:$0xf0]  ;;  %v8243_v2 = vor.u32 %v10527_v51, %v8242_v50  ;;  %5114 = vmatpush.bf16.msra.mxu1 %v7987_v60 }
  0x60   :  { %v7970_v55 = vld [vmem:[%s16572_s1 + $0x900] sm:$0xf]  ;;  %v10459_v56 = vld [vmem:[%s16572_s1 + $0x90c] sm:$0xf0]  ;;  %v7843_v9 = vor.u32 %v10427_v53, %v7842_v52  ;;  %5128 = vmatpush.bf16.msra.mxu2 %v8115_v61 }
  0x61   :  { %v8098_v57 = vld [vmem:[%s16572_s1 + $0xa00] sm:$0xf]  ;;  %v10491_v59 = vld [vmem:[%s16572_s1 + $0xa0c] sm:$0xf0]  ;;  %v7971_v14 = vor.u32 %v10459_v56, %v7970_v55  ;;  %5142 = vmatpush.bf16.msra.mxu3 %v8243_v2 }
  0x62   :  { %v8226_v62 = vld [vmem:[%s16572_s1 + $0xb00] sm:$0xf]  ;;  %v10523_v63 = vld [vmem:[%s16572_s1 + $0xb0c] sm:$0xf0]  ;;  %v8099_v15 = vor.u32 %v10491_v59, %v8098_v57  ;;  %5101 = vmatpush.bf16.msra.mxu0 %v7843_v9 }
  0x63   :  { %v8466_v0 = vld [vmem:[%s16572_s1 + $0xce0] sm:$0xf]  ;;  %v10583_v3 = vld [vmem:[%s16572_s1 + $0xcec] sm:$0xf0]  ;;  %v8227_v20 = vor.u32 %v10523_v63, %v8226_v62  ;;  %5115 = vmatpush.bf16.msra.mxu1 %v7971_v14 }
  0x64   :  { %v8594_v4 = vld [vmem:[%s16572_s1 + $0xde0] sm:$0xf]  ;;  %v10615_v5 = vld [vmem:[%s16572_s1 + $0xdec] sm:$0xf0]  ;;  %v8467_v21 = vor.u32 %v10583_v3, %v8466_v0  ;;  %5129 = vmatpush.bf16.msra.mxu2 %v8099_v15 }
  0x65   :  { %v8722_v6 = vld [vmem:[%s16572_s1 + $0xee0] sm:$0xf]  ;;  %v10647_v7 = vld [vmem:[%s16572_s1 + $0xeec] sm:$0xf0]  ;;  %v8595_v25 = vor.u32 %v10615_v5, %v8594_v4  ;;  %5143 = vmatpush.bf16.msra.mxu3 %v8227_v20 }
  0x66   :  { %v8850_v8 = vld [vmem:[%s16572_s1 + $0xfe0] sm:$0xf]  ;;  %v10679_v11 = vld [vmem:[%s16572_s1 + $0xfec] sm:$0xf0]  ;;  %v8723_v26 = vor.u32 %v10647_v7, %v8722_v6  ;;  %5150 = vmatpush.bf16.msrb.mxu0 %v8467_v21  ;;  %5116 = vmatmul.bf16.vlgmr.msra.gmra.mxu1 %v11752_v36 }
  0x67   :  { %v6750_v12 = vld [vmem:[%s16573_s0 + $0x20] sm:$0xf]  ;;  %v6760_v24 = vld [vmem:[%s16573_s0 + $0x8c] sm:$0xf0]  ;;  %v8851_v30 = vor.u32 %v10679_v11, %v8850_v8  ;;  %5164 = vmatpush.bf16.msrb.mxu1 %v8595_v25  ;;  %5130 = vmatmul.bf16.vlgmr.msra.gmra.mxu2 %v11750_v35 }
  0x68   :  { %v8450_v27 = vld [vmem:[%s16572_s1 + $0xcc0] sm:$0xf]  ;;  %v10579_v28 = vld [vmem:[%s16572_s1 + $0xccc] sm:$0xf0]  ;;  %v11739_v31 = vor.u32 %v10160_v13, %v6750_v12  ;;  %v11760_v40 = vor.u32 %v10149_v23, %v6760_v24  ;;  %5178 = vmatpush.bf16.msrb.mxu2 %v8723_v26 }
  0x69   :  { %v8578_v29 = vld [vmem:[%s16572_s1 + $0xdc0] sm:$0xf]  ;;  %v10611_v32 = vld [vmem:[%s16572_s1 + $0xdcc] sm:$0xf0]  ;;  %v8451_v41 = vor.u32 %v10579_v28, %v8450_v27  ;;  %5192 = vmatpush.bf16.msrb.mxu3 %v8851_v30 }
  0x6a   :  { %v8706_v33 = vld [vmem:[%s16572_s1 + $0xec0] sm:$0xf]  ;;  %v10643_v34 = vld [vmem:[%s16572_s1 + $0xecc] sm:$0xf0]  ;;  %v8579_v42 = vor.u32 %v10611_v32, %v8578_v29  ;;  %5102 = vmatmul.bf16.vlgmr.msra.gmra.mxu0 %v11739_v31  ;;  %5144 = vmatmul.bf16.vlgmr.msra.gmra.mxu3 %v11760_v40 }
  0x6b   :  { %v8834_v37 = vld [vmem:[%s16572_s1 + $0xfc0] sm:$0xf]  ;;  %v10675_v38 = vld [vmem:[%s16572_s1 + $0xfcc] sm:$0xf0]  ;;  %v8707_v45 = vor.u32 %v10643_v34, %v8706_v33  ;;  %5151 = vmatpush.bf16.msrb.mxu0 %v8451_v41 }
  0x6c   :  { %v8434_v46 = vld [vmem:[%s16572_s1 + $0xca0] sm:$0xf]  ;;  %v10575_v48 = vld [vmem:[%s16572_s1 + $0xcac] sm:$0xf0]  ;;  %v8835_v50 = vor.u32 %v10675_v38, %v8834_v37  ;;  %5165 = vmatpush.bf16.msrb.mxu1 %v8579_v42 }
  0x6d   :  { %v8562_v49 = vld [vmem:[%s16572_s1 + $0xda0] sm:$0xf]  ;;  %v10607_v51 = vld [vmem:[%s16572_s1 + $0xdac] sm:$0xf0]  ;;  %v8435_v56 = vor.u32 %v10575_v48, %v8434_v46  ;;  %5179 = vmatpush.bf16.msrb.mxu2 %v8707_v45 }
  0x6e   :  { %v8690_v52 = vld [vmem:[%s16572_s1 + $0xea0] sm:$0xf]  ;;  %v10639_v53 = vld [vmem:[%s16572_s1 + $0xeac] sm:$0xf0]  ;;  %v8563_v57 = vor.u32 %v10607_v51, %v8562_v49  ;;  %5193 = vmatpush.bf16.msrb.mxu3 %v8835_v50 }
  0x6f   :  { %v8818_v54 = vld [vmem:[%s16572_s1 + $0xfa0] sm:$0xf]  ;;  %v10671_v55 = vld [vmem:[%s16572_s1 + $0xfac] sm:$0xf0]  ;;  %v8691_v59 = vor.u32 %v10639_v53, %v8690_v52  ;;  %5152 = vmatpush.bf16.msrb.mxu0 %v8435_v56 }
  0x70   :  { %v8418_v60 = vld [vmem:[%s16572_s1 + $0xc80] sm:$0xf]  ;;  %v10571_v61 = vld [vmem:[%s16572_s1 + $0xc8c] sm:$0xf0]  ;;  %v8819_v63 = vor.u32 %v10671_v55, %v8818_v54  ;;  %5166 = vmatpush.bf16.msrb.mxu1 %v8563_v57 }
  0x71   :  { %v8546_v62 = vld [vmem:[%s16572_s1 + $0xd80] sm:$0xf]  ;;  %v10603_v0 = vld [vmem:[%s16572_s1 + $0xd8c] sm:$0xf0]  ;;  %v8419_v6 = vor.u32 %v10571_v61, %v8418_v60  ;;  %5180 = vmatpush.bf16.msrb.mxu2 %v8691_v59 }
  0x72   :  { %v8674_v2 = vld [vmem:[%s16572_s1 + $0xe80] sm:$0xf]  ;;  %v10635_v3 = vld [vmem:[%s16572_s1 + $0xe8c] sm:$0xf0]  ;;  %v8547_v7 = vor.u32 %v10603_v0, %v8546_v62  ;;  %5194 = vmatpush.bf16.msrb.mxu3 %v8819_v63 }
  0x73   :  { %v8802_v4 = vld [vmem:[%s16572_s1 + $0xf80] sm:$0xf]  ;;  %v10667_v5 = vld [vmem:[%s16572_s1 + $0xf8c] sm:$0xf0]  ;;  %v8675_v8 = vor.u32 %v10635_v3, %v8674_v2  ;;  %5153 = vmatpush.bf16.msrb.mxu0 %v8419_v6 }
  0x74   :  { %v8402_v9 = vld [vmem:[%s16572_s1 + $0xc60] sm:$0xf]  ;;  %v10567_v11 = vld [vmem:[%s16572_s1 + $0xc6c] sm:$0xf0]  ;;  %v8803_v13 = vor.u32 %v10667_v5, %v8802_v4  ;;  %5167 = vmatpush.bf16.msrb.mxu1 %v8547_v7 }
  0x75   :  { %v8530_v12 = vld [vmem:[%s16572_s1 + $0xd60] sm:$0xf]  ;;  %v10599_v14 = vld [vmem:[%s16572_s1 + $0xd6c] sm:$0xf0]  ;;  %v8403_v20 = vor.u32 %v10567_v11, %v8402_v9  ;;  %5181 = vmatpush.bf16.msrb.mxu2 %v8675_v8 }
  0x76   :  { %v8658_v15 = vld [vmem:[%s16572_s1 + $0xe60] sm:$0xf]  ;;  %v10631_v16 = vld [vmem:[%s16572_s1 + $0xe6c] sm:$0xf0]  ;;  %v8531_v21 = vor.u32 %v10599_v14, %v8530_v12  ;;  %5195 = vmatpush.bf16.msrb.mxu3 %v8803_v13  ;;  %v10162_v13 = vld [vmem:[%s16573_s0 + $0x90] sm:$0xf0] }
  0x77   :  { %v8786_v18 = vld [vmem:[%s16572_s1 + $0xf60] sm:$0xf]  ;;  %v10663_v19 = vld [vmem:[%s16572_s1 + $0xf6c] sm:$0xf0]  ;;  %v8659_v22 = vor.u32 %v10631_v16, %v8658_v15  ;;  %5154 = vmatpush.bf16.msrb.mxu0 %v8403_v20  ;;  %v6774_v16 = vld [vmem:[%s16573_s0 + $0x38] sm:$0xf] }
  0x78   :  { %v8386_v23 = vld [vmem:[%s16572_s1 + $0xc40] sm:$0xf]  ;;  %v10563_v24 = vld [vmem:[%s16572_s1 + $0xc4c] sm:$0xf0]  ;;  %v8787_v26 = vor.u32 %v10663_v19, %v8786_v18  ;;  %5168 = vmatpush.bf16.msrb.mxu1 %v8531_v21  ;;  %v10163_v18 = vld [vmem:[%s16573_s0 + $0x98] sm:$0xf0] }
  0x79   :  { %v8514_v25 = vld [vmem:[%s16572_s1 + $0xd40] sm:$0xf]  ;;  %v10595_v27 = vld [vmem:[%s16572_s1 + $0xd4c] sm:$0xf0]  ;;  %v8387_v33 = vor.u32 %v10563_v24, %v8386_v23  ;;  %5182 = vmatpush.bf16.msrb.mxu2 %v8659_v22  ;;  %v10150_v19 = vld [vmem:[%s16573_s0 + $0x34] sm:$0xf] }
  0x7a   :  { %v8642_v28 = vld [vmem:[%s16572_s1 + $0xe40] sm:$0xf]  ;;  %v10627_v29 = vld [vmem:[%s16572_s1 + $0xe4c] sm:$0xf0]  ;;  %v8515_v37 = vor.u32 %v10595_v27, %v8514_v25  ;;  %5196 = vmatpush.bf16.msrb.mxu3 %v8787_v26  ;;  %v6768_v22 = vld [vmem:[%s16573_s0 + $0x94] sm:$0xf0] }
  0x7b   :  { %v8770_v30 = vld [vmem:[%s16572_s1 + $0xf40] sm:$0xf]  ;;  %v10659_v32 = vld [vmem:[%s16572_s1 + $0xf4c] sm:$0xf0]  ;;  %v8643_v38 = vor.u32 %v10627_v29, %v8642_v28  ;;  %5155 = vmatpush.bf16.msrb.mxu0 %v8387_v33  ;;  %v10151_v23 = vld [vmem:[%s16573_s0 + $0x3c] sm:$0xf] }
  0x7c   :  { %v8370_v34 = vld [vmem:[%s16572_s1 + $0xc20] sm:$0xf]  ;;  %v10559_v41 = vld [vmem:[%s16572_s1 + $0xc2c] sm:$0xf0]  ;;  %v8771_v46 = vor.u32 %v10659_v32, %v8770_v30  ;;  %5169 = vmatpush.bf16.msrb.mxu1 %v8515_v37 }
  0x7d   :  { %v8498_v42 = vld [vmem:[%s16572_s1 + $0xd20] sm:$0xf]  ;;  %v10591_v45 = vld [vmem:[%s16572_s1 + $0xd2c] sm:$0xf0]  ;;  %v8371_v54 = vor.u32 %v10559_v41, %v8370_v34  ;;  %5183 = vmatpush.bf16.msrb.mxu2 %v8643_v38  ;;  %v11978_v38 = vor.u32 %v10163_v18, %v6774_v16  ;;  %v11980_v41 = vor.u32 %v10150_v19, %v6768_v22 }
  0x7e   :  { %v8626_v48 = vld [vmem:[%s16572_s1 + $0xe20] sm:$0xf]  ;;  %v10623_v49 = vld [vmem:[%s16572_s1 + $0xe2c] sm:$0xf0]  ;;  %v8499_v60 = vor.u32 %v10591_v45, %v8498_v42  ;;  %5197 = vmatpush.bf16.msrb.mxu3 %v8771_v46 }
  0x7f   :  { %v8754_v50 = vld [vmem:[%s16572_s1 + $0xf20] sm:$0xf]  ;;  %v10655_v51 = vld [vmem:[%s16572_s1 + $0xf2c] sm:$0xf0]  ;;  %v8627_v61 = vor.u32 %v10623_v49, %v8626_v48  ;;  %5156 = vmatpush.bf16.msrb.mxu0 %v8371_v54 }
  0x80   :  { %v8354_v52 = vld [vmem:[%s16572_s1 + $0xc00] sm:$0xf]  ;;  %v10555_v53 = vld [vmem:[%s16572_s1 + $0xc0c] sm:$0xf0]  ;;  %v8755_v2 = vor.u32 %v10655_v51, %v8754_v50  ;;  %5170 = vmatpush.bf16.msrb.mxu1 %v8499_v60 }
  0x81   :  { %v8482_v55 = vld [vmem:[%s16572_s1 + $0xd00] sm:$0xf]  ;;  %v10587_v56 = vld [vmem:[%s16572_s1 + $0xd0c] sm:$0xf0]  ;;  %v8355_v9 = vor.u32 %v10555_v53, %v8354_v52  ;;  %5184 = vmatpush.bf16.msrb.mxu2 %v8627_v61 }
  0x82   :  { %v8610_v57 = vld [vmem:[%s16572_s1 + $0xe00] sm:$0xf]  ;;  %v10619_v59 = vld [vmem:[%s16572_s1 + $0xe0c] sm:$0xf0]  ;;  %v8483_v14 = vor.u32 %v10587_v56, %v8482_v55  ;;  %5198 = vmatpush.bf16.msrb.mxu3 %v8755_v2 }
  0x83   :  { %v8738_v62 = vld [vmem:[%s16572_s1 + $0xf00] sm:$0xf]  ;;  %v10651_v63 = vld [vmem:[%s16572_s1 + $0xf0c] sm:$0xf0]  ;;  %v8611_v15 = vor.u32 %v10619_v59, %v8610_v57  ;;  %5157 = vmatpush.bf16.msrb.mxu0 %v8355_v9 }
  0x84   :  { %v8978_v0 = vld [vmem:[%s16572_s1 + $0x10e0] sm:$0xf]  ;;  %v10711_v3 = vld [vmem:[%s16572_s1 + $0x10ec] sm:$0xf0]  ;;  %v8739_v20 = vor.u32 %v10651_v63, %v8738_v62  ;;  %5171 = vmatpush.bf16.msrb.mxu1 %v8483_v14 }
  0x85   :  { %v9106_v4 = vld [vmem:[%s16572_s1 + $0x11e0] sm:$0xf]  ;;  %v10743_v5 = vld [vmem:[%s16572_s1 + $0x11ec] sm:$0xf0]  ;;  %v8979_v21 = vor.u32 %v10711_v3, %v8978_v0  ;;  %5185 = vmatpush.bf16.msrb.mxu2 %v8611_v15 }
  0x86   :  { %v9234_v6 = vld [vmem:[%s16572_s1 + $0x12e0] sm:$0xf]  ;;  %v10775_v7 = vld [vmem:[%s16572_s1 + $0x12ec] sm:$0xf0]  ;;  %v9107_v25 = vor.u32 %v10743_v5, %v9106_v4  ;;  %5199 = vmatpush.bf16.msrb.mxu3 %v8739_v20 }
  0x87   :  { %v9362_v8 = vld [vmem:[%s16572_s1 + $0x13e0] sm:$0xf]  ;;  %v10807_v11 = vld [vmem:[%s16572_s1 + $0x13ec] sm:$0xf0]  ;;  %v9235_v26 = vor.u32 %v10775_v7, %v9234_v6  ;;  %5206 = vmatpush.bf16.msra.mxu0 %v8979_v21  ;;  %5172 = vmatmul.bf16.vlgmr.msrb.gmra.mxu1 %v11980_v41 }
  0x88   :  { %v6766_v12 = vld [vmem:[%s16573_s0 + $0x30] sm:$0xf]  ;;  %v6776_v24 = vld [vmem:[%s16573_s0 + $0x9c] sm:$0xf0]  ;;  %v9363_v30 = vor.u32 %v10807_v11, %v9362_v8  ;;  %5220 = vmatpush.bf16.msra.mxu1 %v9107_v25  ;;  %5186 = vmatmul.bf16.vlgmr.msrb.gmra.mxu2 %v11978_v38 }
  0x89   :  { %v8962_v27 = vld [vmem:[%s16572_s1 + $0x10c0] sm:$0xf]  ;;  %v10707_v28 = vld [vmem:[%s16572_s1 + $0x10cc] sm:$0xf0]  ;;  %v11967_v32 = vor.u32 %v10162_v13, %v6766_v12  ;;  %v11988_v46 = vor.u32 %v10151_v23, %v6776_v24  ;;  %5234 = vmatpush.bf16.msra.mxu2 %v9235_v26 }
  0x8a   :  { %v9090_v29 = vld [vmem:[%s16572_s1 + $0x11c0] sm:$0xf]  ;;  %v10739_v33 = vld [vmem:[%s16572_s1 + $0x11cc] sm:$0xf0]  ;;  %v8963_v48 = vor.u32 %v10707_v28, %v8962_v27  ;;  %5248 = vmatpush.bf16.msra.mxu3 %v9363_v30 }
  0x8b   :  { %v9218_v34 = vld [vmem:[%s16572_s1 + $0x12c0] sm:$0xf]  ;;  %v10771_v37 = vld [vmem:[%s16572_s1 + $0x12cc] sm:$0xf0]  ;;  %v9091_v49 = vor.u32 %v10739_v33, %v9090_v29  ;;  %5158 = vmatmul.bf16.vlgmr.msrb.gmra.mxu0 %v11967_v32  ;;  %5200 = vmatmul.bf16.vlgmr.msrb.gmra.mxu3 %v11988_v46 }
  0x8c   :  { %v9346_v42 = vld [vmem:[%s16572_s1 + $0x13c0] sm:$0xf]  ;;  %v10803_v45 = vld [vmem:[%s16572_s1 + $0x13cc] sm:$0xf0]  ;;  %v9219_v50 = vor.u32 %v10771_v37, %v9218_v34  ;;  %5207 = vmatpush.bf16.msra.mxu0 %v8963_v48 }
  0x8d   :  { %v8946_v51 = vld [vmem:[%s16572_s1 + $0x10a0] sm:$0xf]  ;;  %v10703_v52 = vld [vmem:[%s16572_s1 + $0x10ac] sm:$0xf0]  ;;  %v9347_v54 = vor.u32 %v10803_v45, %v9346_v42  ;;  %5221 = vmatpush.bf16.msra.mxu1 %v9091_v49 }
  0x8e   :  { %v9074_v53 = vld [vmem:[%s16572_s1 + $0x11a0] sm:$0xf]  ;;  %v10735_v55 = vld [vmem:[%s16572_s1 + $0x11ac] sm:$0xf0]  ;;  %v8947_v61 = vor.u32 %v10703_v52, %v8946_v51  ;;  %5235 = vmatpush.bf16.msra.mxu2 %v9219_v50 }
  0x8f   :  { %v9202_v56 = vld [vmem:[%s16572_s1 + $0x12a0] sm:$0xf]  ;;  %v10767_v57 = vld [vmem:[%s16572_s1 + $0x12ac] sm:$0xf0]  ;;  %v9075_v62 = vor.u32 %v10735_v55, %v9074_v53  ;;  %5249 = vmatpush.bf16.msra.mxu3 %v9347_v54 }
  0x90   :  { %v9330_v59 = vld [vmem:[%s16572_s1 + $0x13a0] sm:$0xf]  ;;  %v10799_v60 = vld [vmem:[%s16572_s1 + $0x13ac] sm:$0xf0]  ;;  %v9203_v63 = vor.u32 %v10767_v57, %v9202_v56  ;;  %5208 = vmatpush.bf16.msra.mxu0 %v8947_v61 }
  0x91   :  { %v8930_v0 = vld [vmem:[%s16572_s1 + $0x1080] sm:$0xf]  ;;  %v10699_v2 = vld [vmem:[%s16572_s1 + $0x108c] sm:$0xf0]  ;;  %v9331_v4 = vor.u32 %v10799_v60, %v9330_v59  ;;  %5222 = vmatpush.bf16.msra.mxu1 %v9075_v62 }
  0x92   :  { %v9058_v3 = vld [vmem:[%s16572_s1 + $0x1180] sm:$0xf]  ;;  %v10731_v5 = vld [vmem:[%s16572_s1 + $0x118c] sm:$0xf0]  ;;  %v8931_v11 = vor.u32 %v10699_v2, %v8930_v0  ;;  %5236 = vmatpush.bf16.msra.mxu2 %v9203_v63 }
  0x93   :  { %v9186_v6 = vld [vmem:[%s16572_s1 + $0x1280] sm:$0xf]  ;;  %v10763_v7 = vld [vmem:[%s16572_s1 + $0x128c] sm:$0xf0]  ;;  %v9059_v12 = vor.u32 %v10731_v5, %v9058_v3  ;;  %5250 = vmatpush.bf16.msra.mxu3 %v9331_v4 }
  0x94   :  { %v9314_v8 = vld [vmem:[%s16572_s1 + $0x1380] sm:$0xf]  ;;  %v10795_v9 = vld [vmem:[%s16572_s1 + $0x138c] sm:$0xf0]  ;;  %v9187_v13 = vor.u32 %v10763_v7, %v9186_v6  ;;  %5209 = vmatpush.bf16.msra.mxu0 %v8931_v11 }
  0x95   :  { %v8914_v14 = vld [vmem:[%s16572_s1 + $0x1060] sm:$0xf]  ;;  %v10695_v15 = vld [vmem:[%s16572_s1 + $0x106c] sm:$0xf0]  ;;  %v9315_v18 = vor.u32 %v10795_v9, %v9314_v8  ;;  %5223 = vmatpush.bf16.msra.mxu1 %v9059_v12 }
  0x96   :  { %v9042_v16 = vld [vmem:[%s16572_s1 + $0x1160] sm:$0xf]  ;;  %v10727_v19 = vld [vmem:[%s16572_s1 + $0x116c] sm:$0xf0]  ;;  %v8915_v24 = vor.u32 %v10695_v15, %v8914_v14  ;;  %5237 = vmatpush.bf16.msra.mxu2 %v9187_v13 }
  0x97   :  { %v9170_v20 = vld [vmem:[%s16572_s1 + $0x1260] sm:$0xf]  ;;  %v10759_v21 = vld [vmem:[%s16572_s1 + $0x126c] sm:$0xf0]  ;;  %v9043_v25 = vor.u32 %v10727_v19, %v9042_v16  ;;  %5251 = vmatpush.bf16.msra.mxu3 %v9315_v18 }
  0x98   :  { %v9298_v22 = vld [vmem:[%s16572_s1 + $0x1360] sm:$0xf]  ;;  %v10791_v23 = vld [vmem:[%s16572_s1 + $0x136c] sm:$0xf0]  ;;  %v9171_v26 = vor.u32 %v10759_v21, %v9170_v20  ;;  %5210 = vmatpush.bf16.msra.mxu0 %v8915_v24 }
  0x99   :  { %v8898_v27 = vld [vmem:[%s16572_s1 + $0x1040] sm:$0xf]  ;;  %v10691_v28 = vld [vmem:[%s16572_s1 + $0x104c] sm:$0xf0]  ;;  %v9299_v30 = vor.u32 %v10791_v23, %v9298_v22  ;;  %5224 = vmatpush.bf16.msra.mxu1 %v9043_v25  ;;  %v10164_v22 = vld [vmem:[%s16573_s0 + $0xa0] sm:$0xf0] }
  0x9a   :  { %v9026_v29 = vld [vmem:[%s16572_s1 + $0x1140] sm:$0xf]  ;;  %v10723_v33 = vld [vmem:[%s16572_s1 + $0x114c] sm:$0xf0]  ;;  %v8899_v48 = vor.u32 %v10691_v28, %v8898_v27  ;;  %5238 = vmatpush.bf16.msra.mxu2 %v9171_v26  ;;  %v6790_v25 = vld [vmem:[%s16573_s0 + $0x48] sm:$0xf] }
  0x9b   :  { %v9154_v34 = vld [vmem:[%s16572_s1 + $0x1240] sm:$0xf]  ;;  %v10755_v37 = vld [vmem:[%s16572_s1 + $0x124c] sm:$0xf0]  ;;  %v9027_v50 = vor.u32 %v10723_v33, %v9026_v29  ;;  %5252 = vmatpush.bf16.msra.mxu3 %v9299_v30  ;;  %v10165_v26 = vld [vmem:[%s16573_s0 + $0xa8] sm:$0xf0] }
  0x9c   :  { %v9282_v42 = vld [vmem:[%s16572_s1 + $0x1340] sm:$0xf]  ;;  %v10787_v45 = vld [vmem:[%s16572_s1 + $0x134c] sm:$0xf0]  ;;  %v9155_v51 = vor.u32 %v10755_v37, %v9154_v34  ;;  %5211 = vmatpush.bf16.msra.mxu0 %v8899_v48  ;;  %v10152_v27 = vld [vmem:[%s16573_s0 + $0x44] sm:$0xf] }
  0x9d   :  { %v8882_v49 = vld [vmem:[%s16572_s1 + $0x1020] sm:$0xf]  ;;  %v10687_v52 = vld [vmem:[%s16572_s1 + $0x102c] sm:$0xf0]  ;;  %v9283_v55 = vor.u32 %v10787_v45, %v9282_v42  ;;  %5225 = vmatpush.bf16.msra.mxu1 %v9027_v50  ;;  %v6784_v30 = vld [vmem:[%s16573_s0 + $0xa4] sm:$0xf0] }
  0x9e   :  { %v9010_v53 = vld [vmem:[%s16572_s1 + $0x1120] sm:$0xf]  ;;  %v10719_v54 = vld [vmem:[%s16572_s1 + $0x112c] sm:$0xf0]  ;;  %v8883_v63 = vor.u32 %v10687_v52, %v8882_v49  ;;  %5239 = vmatpush.bf16.msra.mxu2 %v9155_v51  ;;  %v10153_v33 = vld [vmem:[%s16573_s0 + $0x4c] sm:$0xf] }
  0x9f   :  { %v9138_v56 = vld [vmem:[%s16572_s1 + $0x1220] sm:$0xf]  ;;  %v10751_v57 = vld [vmem:[%s16572_s1 + $0x122c] sm:$0xf0]  ;;  %v9011_v5 = vor.u32 %v10719_v54, %v9010_v53  ;;  %5253 = vmatpush.bf16.msra.mxu3 %v9283_v55  ;;  %v12206_v55 = vor.u32 %v10165_v26, %v6790_v25 }
  0xa0   :  { %v9266_v59 = vld [vmem:[%s16572_s1 + $0x1320] sm:$0xf]  ;;  %v10783_v60 = vld [vmem:[%s16572_s1 + $0x132c] sm:$0xf0]  ;;  %v9139_v6 = vor.u32 %v10751_v57, %v9138_v56  ;;  %5212 = vmatpush.bf16.msra.mxu0 %v8883_v63  ;;  %v12208_v56 = vor.u32 %v10152_v27, %v6784_v30 }
  0xa1   :  { %v8866_v61 = vld [vmem:[%s16572_s1 + $0x1000] sm:$0xf]  ;;  %v10683_v62 = vld [vmem:[%s16572_s1 + $0x100c] sm:$0xf0]  ;;  %v9267_v11 = vor.u32 %v10783_v60, %v9266_v59  ;;  %5226 = vmatpush.bf16.msra.mxu1 %v9011_v5 }
  0xa2   :  { %v8994_v0 = vld [vmem:[%s16572_s1 + $0x1100] sm:$0xf]  ;;  %v10715_v2 = vld [vmem:[%s16572_s1 + $0x110c] sm:$0xf0]  ;;  %v8867_v19 = vor.u32 %v10683_v62, %v8866_v61  ;;  %5240 = vmatpush.bf16.msra.mxu2 %v9139_v6 }
  0xa3   :  { %v9122_v3 = vld [vmem:[%s16572_s1 + $0x1200] sm:$0xf]  ;;  %v10747_v4 = vld [vmem:[%s16572_s1 + $0x120c] sm:$0xf0]  ;;  %v8995_v23 = vor.u32 %v10715_v2, %v8994_v0  ;;  %5254 = vmatpush.bf16.msra.mxu3 %v9267_v11 }
  0xa4   :  { %v9250_v7 = vld [vmem:[%s16572_s1 + $0x1300] sm:$0xf]  ;;  %v10779_v8 = vld [vmem:[%s16572_s1 + $0x130c] sm:$0xf0]  ;;  %v9123_v24 = vor.u32 %v10747_v4, %v9122_v3  ;;  %5213 = vmatpush.bf16.msra.mxu0 %v8867_v19 }
  0xa5   :  { %v9490_v9 = vld [vmem:[%s16572_s1 + $0x14e0] sm:$0xf]  ;;  %v10839_v12 = vld [vmem:[%s16572_s1 + $0x14ec] sm:$0xf0]  ;;  %v9251_v28 = vor.u32 %v10779_v8, %v9250_v7  ;;  %5227 = vmatpush.bf16.msra.mxu1 %v8995_v23 }
  0xa6   :  { %v9618_v13 = vld [vmem:[%s16572_s1 + $0x15e0] sm:$0xf]  ;;  %v10871_v14 = vld [vmem:[%s16572_s1 + $0x15ec] sm:$0xf0]  ;;  %v9491_v29 = vor.u32 %v10839_v12, %v9490_v9  ;;  %5241 = vmatpush.bf16.msra.mxu2 %v9123_v24 }
  0xa7   :  { %v9746_v15 = vld [vmem:[%s16572_s1 + $0x16e0] sm:$0xf]  ;;  %v10903_v16 = vld [vmem:[%s16572_s1 + $0x16ec] sm:$0xf0]  ;;  %v9619_v37 = vor.u32 %v10871_v14, %v9618_v13  ;;  %5255 = vmatpush.bf16.msra.mxu3 %v9251_v28 }
  0xa8   :  { %v9874_v18 = vld [vmem:[%s16572_s1 + $0x17e0] sm:$0xf]  ;;  %v10935_v20 = vld [vmem:[%s16572_s1 + $0x17ec] sm:$0xf0]  ;;  %v9747_v42 = vor.u32 %v10903_v16, %v9746_v15  ;;  %5262 = vmatpush.bf16.msrb.mxu0 %v9491_v29  ;;  %5228 = vmatmul.bf16.vlgmr.msra.gmra.mxu1 %v12208_v56 }
  0xa9   :  { %v6782_v21 = vld [vmem:[%s16573_s0 + $0x40] sm:$0xf]  ;;  %v6792_v34 = vld [vmem:[%s16573_s0 + $0xac] sm:$0xf0]  ;;  %v9875_v50 = vor.u32 %v10935_v20, %v9874_v18  ;;  %5276 = vmatpush.bf16.msrb.mxu1 %v9619_v37  ;;  %5242 = vmatmul.bf16.vlgmr.msra.gmra.mxu2 %v12206_v55  ;;  %v4991_v26 = vpop.f32.mrf.mxu0 }
  0xaa   :  { %v9474_v45 = vld [vmem:[%s16572_s1 + $0x14c0] sm:$0xf]  ;;  %v10835_v48 = vld [vmem:[%s16572_s1 + $0x14cc] sm:$0xf0]  ;;  %v12195_v51 = vor.u32 %v10164_v22, %v6782_v21  ;;  %v12216_v60 = vor.u32 %v10153_v33, %v6792_v34  ;;  %5290 = vmatpush.bf16.msrb.mxu2 %v9747_v42 }
  0xab   :  { %v9602_v49 = vld [vmem:[%s16572_s1 + $0x15c0] sm:$0xf]  ;;  %v10867_v52 = vld [vmem:[%s16572_s1 + $0x15cc] sm:$0xf0]  ;;  %v9475_v61 = vor.u32 %v10835_v48, %v9474_v45  ;;  %5304 = vmatpush.bf16.msrb.mxu3 %v9875_v50 }
  0xac   :  { %v9730_v53 = vld [vmem:[%s16572_s1 + $0x16c0] sm:$0xf]  ;;  %v10899_v54 = vld [vmem:[%s16572_s1 + $0x16cc] sm:$0xf0]  ;;  %v9603_v63 = vor.u32 %v10867_v52, %v9602_v49  ;;  %5214 = vmatmul.bf16.vlgmr.msra.gmra.mxu0 %v12195_v51  ;;  %5256 = vmatmul.bf16.vlgmr.msra.gmra.mxu3 %v12216_v60 }
  0xad   :  { %v9858_v57 = vld [vmem:[%s16572_s1 + $0x17c0] sm:$0xf]  ;;  %v10931_v59 = vld [vmem:[%s16572_s1 + $0x17cc] sm:$0xf0]  ;;  %v9731_v0 = vor.u32 %v10899_v54, %v9730_v53  ;;  %5263 = vmatpush.bf16.msrb.mxu0 %v9475_v61  ;;  %v5005_v53 = vpop.f32.mrf.mxu1 }
  0xae   :  { %v9458_v62 = vld [vmem:[%s16572_s1 + $0x14a0] sm:$0xf]  ;;  %v10831_v2 = vld [vmem:[%s16572_s1 + $0x14ac] sm:$0xf0]  ;;  %v9859_v5 = vor.u32 %v10931_v59, %v9858_v57  ;;  %5277 = vmatpush.bf16.msrb.mxu1 %v9603_v63 }
  0xaf   :  { %v9586_v3 = vld [vmem:[%s16572_s1 + $0x15a0] sm:$0xf]  ;;  %v10863_v6 = vld [vmem:[%s16572_s1 + $0x15ac] sm:$0xf0]  ;;  %v9459_v12 = vor.u32 %v10831_v2, %v9458_v62  ;;  %5291 = vmatpush.bf16.msrb.mxu2 %v9731_v0 }
  0xb0   :  { %v12230_v4 = vld [vmem:[%s16574_s2] sm:$0xf]  ;;  %v10895_v8 = vld [vmem:[%s16572_s1 + $0x16ac] sm:$0xf0]  ;;  %v9587_v14 = vor.u32 %v10863_v6, %v9586_v3  ;;  %5305 = vmatpush.bf16.msrb.mxu3 %v9859_v5 }
  0xb1   :  { %v9714_v7 = vld [vmem:[%s16572_s1 + $0x16a0] sm:$0xf]  ;;  %v10927_v11 = vld [vmem:[%s16572_s1 + $0x17ac] sm:$0xf0]  ;;  %v16578_v13 = vperm.slane %v12230_v4, 0  ;;  %5264 = vmatpush.bf16.msrb.mxu0 %v9459_v12 }
  0xb2   :  { %v9842_v9 = vld [vmem:[%s16572_s1 + $0x17a0] sm:$0xf]  ;;  %v9715_v15 = vor.u32 %v10895_v8, %v9714_v7  ;;  %v10827_v18 = vld [vmem:[%s16572_s1 + $0x148c] sm:$0xf0]  ;;  %5278 = vmatpush.bf16.msrb.mxu1 %v9587_v14  ;;  %v5019_v7 = vpop.f32.mrf.mxu2 }
  0xb3   :  { %v9442_v16 = vld [vmem:[%s16572_s1 + $0x1480] sm:$0xf]  ;;  %v9843_v20 = vor.u32 %v10927_v11, %v9842_v9  ;;  %v10859_v21 = vld [vmem:[%s16572_s1 + $0x158c] sm:$0xf0]  ;;  %v4992_v28 = vadd.f32 %v4991_v26, %v16578_v13 }
  0xb4   :  { %v9570_v19 = vld [vmem:[%s16572_s1 + $0x1580] sm:$0xf]  ;;  %v10891_v23 = vld [vmem:[%s16572_s1 + $0x168c] sm:$0xf0]  ;;  %v9443_v27 = vor.u32 %v10827_v18, %v9442_v16  ;;  %5292 = vmatpush.bf16.msrb.mxu2 %v9715_v15 }
  0xb5   :  { %v9698_v22 = vld [vmem:[%s16572_s1 + $0x1680] sm:$0xf]  ;;  %v10923_v25 = vld [vmem:[%s16572_s1 + $0x178c] sm:$0xf0]  ;;  %v9571_v29 = vor.u32 %v10859_v21, %v9570_v19  ;;  %5306 = vmatpush.bf16.msrb.mxu3 %v9843_v20  ;;  %v5006_v57 = vadd.f32 %v5005_v53, %v4992_v28 }
  0xb6   :  { %v9826_v24 = vld [vmem:[%s16572_s1 + $0x1780] sm:$0xf]  ;;  %v9699_v30 = vor.u32 %v10891_v23, %v9698_v22  ;;  %v10823_v34 = vld [vmem:[%s16572_s1 + $0x146c] sm:$0xf0]  ;;  %5265 = vmatpush.bf16.msrb.mxu0 %v9443_v27 }
  0xb7   :  { %v9426_v33 = vld [vmem:[%s16572_s1 + $0x1460] sm:$0xf]  ;;  %v9827_v42 = vor.u32 %v10923_v25, %v9826_v24  ;;  %v10855_v45 = vld [vmem:[%s16572_s1 + $0x156c] sm:$0xf0]  ;;  %5279 = vmatpush.bf16.msrb.mxu1 %v9571_v29  ;;  %v5020_v11 = vadd.f32 %v5019_v7, %v5006_v57  ;;  %v5033_v25 = vpop.f32.mrf.mxu3  ;;  %v10197_v57 = vld [vmem:[%s16572_s1 + $0xe4] sm:$0xf] }
  0xb8   :  { %v9554_v37 = vld [vmem:[%s16572_s1 + $0x1560] sm:$0xf]  ;;  %v10887_v49 = vld [vmem:[%s16572_s1 + $0x166c] sm:$0xf0]  ;;  %v9427_v54 = vor.u32 %v10823_v34, %v9426_v33  ;;  %5293 = vmatpush.bf16.msrb.mxu2 %v9699_v30 }
  0xb9   :  { %v9682_v48 = vld [vmem:[%s16572_s1 + $0x1660] sm:$0xf]  ;;  %v10919_v52 = vld [vmem:[%s16572_s1 + $0x176c] sm:$0xf0]  ;;  %v9555_v59 = vor.u32 %v10855_v45, %v9554_v37  ;;  %5307 = vmatpush.bf16.msrb.mxu3 %v9827_v42  ;;  %v12356_v29 = vadd.f32 %v5033_v25, %v5020_v11  ;;  %v10154_v11 = vld [vmem:[%s16573_s0 + $0x54] sm:$0xf] }
  0xba   :  { %v9810_v50 = vld [vmem:[%s16572_s1 + $0x1760] sm:$0xf]  ;;  %v9683_v61 = vor.u32 %v10887_v49, %v9682_v48  ;;  %v10819_v63 = vld [vmem:[%s16572_s1 + $0x144c] sm:$0xf0]  ;;  %5266 = vmatpush.bf16.msrb.mxu0 %v9427_v54 }
  0xbb   :  { %v9410_v62 = vld [vmem:[%s16572_s1 + $0x1440] sm:$0xf]  ;;  %v9811_v2 = vor.u32 %v10919_v52, %v9810_v50  ;;  %v10851_v3 = vld [vmem:[%s16572_s1 + $0x154c] sm:$0xf0]  ;;  %5280 = vmatpush.bf16.msrb.mxu1 %v9555_v59  ;;  %v6932_v59 = vld [vmem:[%s16572_s1 + $0xf0] sm:$0xf0] }
  0xbc   :  { %v9538_v0 = vld [vmem:[%s16572_s1 + $0x1540] sm:$0xf]  ;;  %v10883_v6 = vld [vmem:[%s16572_s1 + $0x164c] sm:$0xf0]  ;;  %v9411_v12 = vor.u32 %v10819_v63, %v9410_v62  ;;  %5294 = vmatpush.bf16.msrb.mxu2 %v9683_v61  ;;  %v10229_v61 = vld [vmem:[%s16572_s1 + $0x1e4] sm:$0xf] }
  0xbd   :  { %v9666_v5 = vld [vmem:[%s16572_s1 + $0x1640] sm:$0xf]  ;;  %v10915_v9 = vld [vmem:[%s16572_s1 + $0x174c] sm:$0xf0]  ;;  %v9539_v15 = vor.u32 %v10851_v3, %v9538_v0  ;;  %5308 = vmatpush.bf16.msrb.mxu3 %v9811_v2  ;;  %v7060_v62 = vld [vmem:[%s16572_s1 + $0x1f0] sm:$0xf0] }
  0xbe   :  { %v9794_v8 = vld [vmem:[%s16572_s1 + $0x1740] sm:$0xf]  ;;  %v9667_v16 = vor.u32 %v10883_v6, %v9666_v5  ;;  %v10815_v18 = vld [vmem:[%s16572_s1 + $0x142c] sm:$0xf0]  ;;  %5267 = vmatpush.bf16.msrb.mxu0 %v9411_v12  ;;  %v10261_v63 = vld [vmem:[%s16572_s1 + $0x2e4] sm:$0xf] }
  0xbf   :  { %v9394_v14 = vld [vmem:[%s16572_s1 + $0x1420] sm:$0xf]  ;;  %v10847_v20 = vld [vmem:[%s16572_s1 + $0x152c] sm:$0xf0]  ;;  %v9795_v21 = vor.u32 %v10915_v9, %v9794_v8  ;;  %5281 = vmatpush.bf16.msrb.mxu1 %v9539_v15  ;;  %v7188_v2 = vld [vmem:[%s16572_s1 + $0x2f0] sm:$0xf0] }
  0xc0   :  { %v9522_v19 = vld [vmem:[%s16572_s1 + $0x1520] sm:$0xf]  ;;  %v10879_v23 = vld [vmem:[%s16572_s1 + $0x162c] sm:$0xf0]  ;;  %v9395_v30 = vor.u32 %v10815_v18, %v9394_v14  ;;  %5295 = vmatpush.bf16.msrb.mxu2 %v9667_v16  ;;  %v10166_v5 = vld [vmem:[%s16573_s0 + $0xb0] sm:$0xf0]  ;;  %v7191_v25 = vor.u32 %v10261_v63, %v7188_v2 }
  0xc1   :  { %v9650_v22 = vld [vmem:[%s16572_s1 + $0x1620] sm:$0xf]  ;;  %v10911_v26 = vld [vmem:[%s16572_s1 + $0x172c] sm:$0xf0]  ;;  %v9523_v45 = vor.u32 %v10847_v20, %v9522_v19  ;;  %5309 = vmatpush.bf16.msrb.mxu3 %v9795_v21  ;;  %v6806_v8 = vld [vmem:[%s16573_s0 + $0x58] sm:$0xf]  ;;  %v6935_v19 = vor.u32 %v10197_v57, %v6932_v59  ;;  %v7063_v20 = vor.u32 %v10229_v61, %v7060_v62  ;;  %v12424_v21 = vpop.f32.mrf.mxu0 }
  0xc2   :  { %v9778_v24 = vld [vmem:[%s16572_s1 + $0x1720] sm:$0xf]  ;;  %v10811_v28 = vld [vmem:[%s16572_s1 + $0x140c] sm:$0xf0]  ;;  %v9651_v48 = vor.u32 %v10879_v23, %v9650_v22  ;;  %5268 = vmatpush.bf16.msrb.mxu0 %v9395_v30  ;;  %v10167_v9 = vld [vmem:[%s16573_s0 + $0xb8] sm:$0xf0] }
  0xc3   :  { %v9378_v27 = vld [vmem:[%s16572_s1 + $0x1400] sm:$0xf]  ;;  %v10843_v34 = vld [vmem:[%s16572_s1 + $0x150c] sm:$0xf0]  ;;  %v9779_v53 = vor.u32 %v10911_v26, %v9778_v24  ;;  %5282 = vmatpush.bf16.msrb.mxu1 %v9523_v45  ;;  %v6800_v15 = vld [vmem:[%s16573_s0 + $0xb4] sm:$0xf0]  ;;  %v12456_v45 = vpop.f32.mrf.mxu1 }
  0xc4   :  { %v9506_v33 = vld [vmem:[%s16572_s1 + $0x1500] sm:$0xf]  ;;  %v10875_v42 = vld [vmem:[%s16572_s1 + $0x160c] sm:$0xf0]  ;;  %v9379_v0 = vor.u32 %v10811_v28, %v9378_v27  ;;  %5296 = vmatpush.bf16.msrb.mxu2 %v9651_v48  ;;  %v10155_v16 = vld [vmem:[%s16573_s0 + $0x5c] sm:$0xf] }
  0xc5   :  { %v9634_v37 = vld [vmem:[%s16572_s1 + $0x1600] sm:$0xf]  ;;  %v10907_v50 = vld [vmem:[%s16572_s1 + $0x170c] sm:$0xf0]  ;;  %v9507_v6 = vor.u32 %v10843_v34, %v9506_v33  ;;  %5310 = vmatpush.bf16.msrb.mxu3 %v9779_v53  ;;  %v10193_v24 = vld [vmem:[%s16572_s1 + $0xc4] sm:$0xf]  ;;  %v12446_v33 = vor.u32 %v10167_v9, %v6806_v8  ;;  %v12448_v34 = vor.u32 %v10154_v11, %v6800_v15 }
  0xc6   :  { %v9762_v49 = vld [vmem:[%s16572_s1 + $0x1700] sm:$0xf]  ;;  %v10967_v54 = vld [vmem:[%s16572_s1 + $0x18ec] sm:$0xf0]  ;;  %v9635_v7 = vor.u32 %v10875_v42, %v9634_v37  ;;  %5269 = vmatpush.bf16.msrb.mxu0 %v9379_v0  ;;  %v6916_v27 = vld [vmem:[%s16572_s1 + $0xd0] sm:$0xf0] }
  0xc7   :  { %v10002_v52 = vld [vmem:[%s16572_s1 + $0x18e0] sm:$0xf]  ;;  %v6798_v3 = vld [vmem:[%s16573_s0 + $0x50] sm:$0xf]  ;;  %v9763_v12 = vor.u32 %v10907_v50, %v9762_v49  ;;  %v10225_v28 = vld [vmem:[%s16572_s1 + $0x1c4] sm:$0xf]  ;;  %5283 = vmatpush.bf16.msrb.mxu1 %v9507_v6  ;;  %v6919_v50 = vor.u32 %v10193_v24, %v6916_v27 }
  0xc8   :  { %v10003_v14 = vor.u32 %v10967_v54, %v10002_v52  ;;  %v6808_v18 = vld [vmem:[%s16573_s0 + $0xbc] sm:$0xf0]  ;;  %v10963_v23 = vld [vmem:[%s16572_s1 + $0x18cc] sm:$0xf0]  ;;  %v12435_v26 = vor.u32 %v10166_v5, %v6798_v3  ;;  %v7044_v30 = vld [vmem:[%s16572_s1 + $0x1d0] sm:$0xf0]  ;;  %5297 = vmatpush.bf16.msrb.mxu2 %v9635_v7  ;;  %v12488_v5 = vpop.f32.mrf.mxu2 }
  0xc9   :  { %v9986_v22 = vld [vmem:[%s16572_s1 + $0x18c0] sm:$0xf]  ;;  %v10257_v37 = vld [vmem:[%s16572_s1 + $0x2c4] sm:$0xf]  ;;  %v7172_v42 = vld [vmem:[%s16572_s1 + $0x2d0] sm:$0xf0]  ;;  %5311 = vmatpush.bf16.msrb.mxu3 %v9763_v12  ;;  %v12458_v48 = vor.u32 %v10155_v16, %v6808_v18  ;;  %v7047_v52 = vor.u32 %v10225_v28, %v7044_v30 }
  0xca   :  { %5318 = vmatpush.bf16.msra.mxu0 %v10003_v14  ;;  %v9987_v49 = vor.u32 %v10963_v23, %v9986_v22  ;;  %v9970_v53 = vld [vmem:[%s16572_s1 + $0x18a0] sm:$0xf]  ;;  %v10959_v54 = vld [vmem:[%s16572_s1 + $0x18ac] sm:$0xf0]  ;;  %v10189_v57 = vld [vmem:[%s16572_s1 + $0xa4] sm:$0xf]  ;;  %v7175_v59 = vor.u32 %v10257_v37, %v7172_v42  ;;  %5284 = vmatmul.bf16.vlgmr.msrb.gmra.mxu1 %v12448_v34  ;;  %v12499_v14 = vpop.f32.mrf.mxu3 }
  0xcb   :  { %5332 = vmatpush.bf16.msra.mxu1 %v6935_v19  ;;  %5270 = vmatmul.bf16.vlgmr.msrb.gmra.mxu0 %v12435_v26  ;;  %v6900_v61 = vld [vmem:[%s16572_s1 + $0xb0] sm:$0xf0]  ;;  %v10221_v62 = vld [vmem:[%s16572_s1 + $0x1a4] sm:$0xf]  ;;  %v9971_v3 = vor.u32 %v10959_v54, %v9970_v53  ;;  %v9954_v8 = vld [vmem:[%s16572_s1 + $0x1880] sm:$0xf]  ;;  %v5047_v19 = vpop.f32.mrf.mxu0  ;;  %v5061_v28 = vpop.f32.mrf.mxu1 }
  0xcc   :  { %5346 = vmatpush.bf16.msra.mxu2 %v7063_v20  ;;  %v7028_v63 = vld [vmem:[%s16572_s1 + $0x1b0] sm:$0xf0]  ;;  %v10253_v0 = vld [vmem:[%s16572_s1 + $0x2a4] sm:$0xf]  ;;  %5312 = vmatmul.bf16.vlgmr.msrb.gmra.mxu3 %v12458_v48  ;;  %v6903_v6 = vor.u32 %v10189_v57, %v6900_v61  ;;  %v10955_v9 = vld [vmem:[%s16572_s1 + $0x188c] sm:$0xf0]  ;;  %v5048_v23 = vadd.f32 %v5047_v19, %v12356_v29 }
  0xcd   :  { %5360 = vmatpush.bf16.msra.mxu3 %v7191_v25  ;;  %5298 = vmatmul.bf16.vlgmr.msrb.gmra.mxu2 %v12446_v33  ;;  %v7156_v2 = vld [vmem:[%s16572_s1 + $0x2b0] sm:$0xf0]  ;;  %v7031_v7 = vor.u32 %v10221_v62, %v7028_v63  ;;  %v10185_v11 = vld [vmem:[%s16572_s1 + $0x84] sm:$0xf]  ;;  %v9955_v24 = vor.u32 %v10955_v9, %v9954_v8  ;;  %v9938_v30 = vld [vmem:[%s16572_s1 + $0x1860] sm:$0xf] }
  0xce   :  { %5319 = vmatpush.bf16.msra.mxu0 %v9987_v49  ;;  %v7159_v12 = vor.u32 %v10253_v0, %v7156_v2  ;;  %v6884_v15 = vld [vmem:[%s16572_s1 + $0x90] sm:$0xf0]  ;;  %v10217_v16 = vld [vmem:[%s16572_s1 + $0x184] sm:$0xf]  ;;  %v10951_v37 = vld [vmem:[%s16572_s1 + $0x186c] sm:$0xf0]  ;;  %v5062_v49 = vadd.f32 %v5061_v28, %v5048_v23 }
  0xcf   :  { %5333 = vmatpush.bf16.msra.mxu1 %v6919_v50  ;;  %v7012_v18 = vld [vmem:[%s16572_s1 + $0x190] sm:$0xf0]  ;;  %v10249_v20 = vld [vmem:[%s16572_s1 + $0x284] sm:$0xf]  ;;  %v6887_v25 = vor.u32 %v10185_v11, %v6884_v15  ;;  %v9922_v63 = vld [vmem:[%s16572_s1 + $0x1840] sm:$0xf] }
  0xd0   :  { %5347 = vmatpush.bf16.msra.mxu2 %v7047_v52  ;;  %v7140_v22 = vld [vmem:[%s16572_s1 + $0x290] sm:$0xf0]  ;;  %v7015_v27 = vor.u32 %v10217_v16, %v7012_v18  ;;  %v10181_v42 = vld [vmem:[%s16572_s1 + $0x64] sm:$0xf]  ;;  %v10947_v0 = vld [vmem:[%s16572_s1 + $0x184c] sm:$0xf0] }
  0xd1   :  { %5361 = vmatpush.bf16.msra.mxu3 %v7175_v59  ;;  %v7143_v29 = vor.u32 %v10249_v20, %v7140_v22  ;;  %v6868_v50 = vld [vmem:[%s16572_s1 + $0x70] sm:$0xf0]  ;;  %v10213_v52 = vld [vmem:[%s16572_s1 + $0x164] sm:$0xf]  ;;  %v9939_v59 = vor.u32 %v10951_v37, %v9938_v30  ;;  %v9923_v18 = vor.u32 %v10947_v0, %v9922_v63  ;;  %v9906_v23 = vld [vmem:[%s16572_s1 + $0x1820] sm:$0xf] }
  0xd2   :  { %5320 = vmatpush.bf16.msra.mxu0 %v9971_v3  ;;  %v6996_v53 = vld [vmem:[%s16572_s1 + $0x170] sm:$0xf0]  ;;  %v10245_v54 = vld [vmem:[%s16572_s1 + $0x264] sm:$0xf]  ;;  %v6871_v61 = vor.u32 %v10181_v42, %v6868_v50  ;;  %v5089_v16 = vpop.f32.mrf.mxu3  ;;  %v9890_v50 = vld [vmem:[%s16572_s1 + $0x1800] sm:$0xf] }
  0xd3   :  { %5334 = vmatpush.bf16.msra.mxu1 %v6903_v6  ;;  %v7124_v57 = vld [vmem:[%s16572_s1 + $0x270] sm:$0xf0]  ;;  %v6999_v62 = vor.u32 %v10213_v52, %v6996_v53  ;;  %v10177_v2 = vld [vmem:[%s16572_s1 + $0x44] sm:$0xf]  ;;  %v5075_v6 = vpop.f32.mrf.mxu2  ;;  %v10939_v52 = vld [vmem:[%s16572_s1 + $0x180c] sm:$0xf0] }
  0xd4   :  { %5348 = vmatpush.bf16.msra.mxu2 %v7031_v7  ;;  %v7127_v3 = vor.u32 %v10245_v54, %v7124_v57  ;;  %v6852_v7 = vld [vmem:[%s16572_s1 + $0x50] sm:$0xf0]  ;;  %v10209_v8 = vld [vmem:[%s16572_s1 + $0x144] sm:$0xf]  ;;  %v5076_v11 = vadd.f32 %v5075_v6, %v5062_v49 }
  0xd5   :  { %5362 = vmatpush.bf16.msra.mxu3 %v7159_v12  ;;  %v6980_v9 = vld [vmem:[%s16572_s1 + $0x150] sm:$0xf0]  ;;  %v10241_v12 = vld [vmem:[%s16572_s1 + $0x244] sm:$0xf]  ;;  %v6855_v20 = vor.u32 %v10177_v2, %v6852_v7 }
  0xd6   :  { %5321 = vmatpush.bf16.msra.mxu0 %v9955_v24  ;;  %v7108_v15 = vld [vmem:[%s16572_s1 + $0x250] sm:$0xf0]  ;;  %v12565_v19 = vadd.f32 %v5089_v16, %v5076_v11  ;;  %v6983_v22 = vor.u32 %v10209_v8, %v6980_v9  ;;  %v10943_v24 = vld [vmem:[%s16572_s1 + $0x182c] sm:$0xf0]  ;;  %v10205_v30 = vld [vmem:[%s16572_s1 + $0x124] sm:$0xf]  ;;  %v9891_v9 = vor.u32 %v10939_v52, %v9890_v50 }
  0xd7   :  { %5335 = vmatpush.bf16.msra.mxu1 %v6887_v25  ;;  %v10173_v25 = vld [vmem:[%s16572_s1 + $0x24] sm:$0xf]  ;;  %v6836_v28 = vld [vmem:[%s16572_s1 + $0x30] sm:$0xf0]  ;;  %v9907_v49 = vor.u32 %v10943_v24, %v9906_v23 }
  0xd8   :  { %5349 = vmatpush.bf16.msra.mxu2 %v7015_v27  ;;  %v7111_v27 = vor.u32 %v10241_v12, %v7108_v15  ;;  %v6964_v37 = vld [vmem:[%s16572_s1 + $0x130] sm:$0xf0]  ;;  %v10237_v42 = vld [vmem:[%s16572_s1 + $0x224] sm:$0xf]  ;;  %v6839_v54 = vor.u32 %v10173_v25, %v6836_v28 }
  0xd9   :  { %5363 = vmatpush.bf16.msra.mxu3 %v7143_v29  ;;  %v7092_v29 = vld [vmem:[%s16572_s1 + $0x230] sm:$0xf0]  ;;  %v10169_v53 = vld [vmem:[%s16572_s1 + $0x4] sm:$0xf]  ;;  %v6967_v57 = vor.u32 %v10205_v30, %v6964_v37 }
  0xda   :  { %5322 = vmatpush.bf16.msra.mxu0 %v9939_v59  ;;  %v6820_v59 = vld [vmem:[%s16572_s1 + $0x10] sm:$0xf0]  ;;  %v7095_v63 = vor.u32 %v10237_v42, %v7092_v29  ;;  %v10233_v0 = vld [vmem:[%s16572_s1 + $0x204] sm:$0xf] }
  0xdb   :  { %5336 = vmatpush.bf16.msra.mxu1 %v6871_v61  ;;  %v10201_v61 = vld [vmem:[%s16572_s1 + $0x104] sm:$0xf]  ;;  %v7076_v2 = vld [vmem:[%s16572_s1 + $0x210] sm:$0xf0]  ;;  %v6823_v16 = vor.u32 %v10169_v53, %v6820_v59 }
  0xdc   :  { %5350 = vmatpush.bf16.msra.mxu2 %v6999_v62  ;;  %v6948_v62 = vld [vmem:[%s16572_s1 + $0x110] sm:$0xf0]  ;;  %v10325_v7 = vld [vmem:[%s16572_s1 + $0x4e4] sm:$0xf]  ;;  %v7079_v24 = vor.u32 %v10233_v0, %v7076_v2 }
  0xdd   :  { %5364 = vmatpush.bf16.msra.mxu3 %v7127_v3  ;;  %v10293_v3 = vld [vmem:[%s16572_s1 + $0x3e4] sm:$0xf]  ;;  %v7316_v6 = vld [vmem:[%s16572_s1 + $0x3f0] sm:$0xf0] }
  0xde   :  { %5323 = vmatpush.bf16.msra.mxu0 %v9923_v18  ;;  %v7444_v8 = vld [vmem:[%s16572_s1 + $0x4f0] sm:$0xf0]  ;;  %v10357_v11 = vld [vmem:[%s16572_s1 + $0x5e4] sm:$0xf]  ;;  %v6951_v18 = vor.u32 %v10201_v61, %v6948_v62  ;;  %v7319_v25 = vor.u32 %v10293_v3, %v7316_v6  ;;  %v12673_v61 = vpop.f32.mrf.mxu1 }
  0xdf   :  { %5337 = vmatpush.bf16.msra.mxu1 %v6855_v20  ;;  %v7572_v12 = vld [vmem:[%s16572_s1 + $0x5f0] sm:$0xf0]  ;;  %v10389_v15 = vld [vmem:[%s16572_s1 + $0x6e4] sm:$0xf] }
  0xe0   :  { %5351 = vmatpush.bf16.msra.mxu2 %v6983_v22  ;;  %v7700_v20 = vld [vmem:[%s16572_s1 + $0x6f0] sm:$0xf0]  ;;  %v6814_v22 = vld [vmem:[%s16573_s0 + $0x60] sm:$0xf]  ;;  %v10168_v23 = vld [vmem:[%s16573_s0 + $0xc0] sm:$0xf0]  ;;  %v7575_v28 = vor.u32 %v10357_v11, %v7572_v12 }
  0xe1   :  { %5365 = vmatpush.bf16.msra.mxu3 %v7111_v27  ;;  %v7447_v27 = vor.u32 %v10325_v7, %v7444_v8  ;;  %v10289_v30 = vld [vmem:[%s16572_s1 + $0x3c4] sm:$0xf]  ;;  %v7300_v37 = vld [vmem:[%s16572_s1 + $0x3d0] sm:$0xf0]  ;;  %v7703_v29 = vor.u32 %v10389_v15, %v7700_v20 }
  0xe2   :  { %5324 = vmatpush.bf16.msra.mxu0 %v9907_v49  ;;  %v10321_v42 = vld [vmem:[%s16572_s1 + $0x4c4] sm:$0xf]  ;;  %v12654_v49 = vor.u32 %v10168_v23, %v6814_v22  ;;  %v7428_v50 = vld [vmem:[%s16572_s1 + $0x4d0] sm:$0xf0]  ;;  %v7303_v62 = vor.u32 %v10289_v30, %v7300_v37 }
  0xe3   :  { %5338 = vmatpush.bf16.msra.mxu1 %v6839_v54  ;;  %v10353_v52 = vld [vmem:[%s16572_s1 + $0x5c4] sm:$0xf]  ;;  %v7556_v53 = vld [vmem:[%s16572_s1 + $0x5d0] sm:$0xf0]  ;;  %v12665_v54 = vpop.f32.mrf.mxu0 }
  0xe4   :  { %5352 = vmatpush.bf16.msra.mxu2 %v6967_v57  ;;  %v10385_v57 = vld [vmem:[%s16572_s1 + $0x6c4] sm:$0xf]  ;;  %v7684_v59 = vld [vmem:[%s16572_s1 + $0x6d0] sm:$0xf0]  ;;  %v7559_v0 = vor.u32 %v10353_v52, %v7556_v53 }
  0xe5   :  { %5366 = vmatpush.bf16.msra.mxu3 %v7095_v63  ;;  %v7431_v63 = vor.u32 %v10321_v42, %v7428_v50  ;;  %v10285_v2 = vld [vmem:[%s16572_s1 + $0x3a4] sm:$0xf]  ;;  %v7284_v3 = vld [vmem:[%s16572_s1 + $0x3b0] sm:$0xf0]  ;;  %v7687_v7 = vor.u32 %v10385_v57, %v7684_v59  ;;  %v12723_v42 = vpop.f32.mrf.mxu3 }
  0xe6   :  { %5325 = vmatpush.bf16.msra.mxu0 %v9891_v9  ;;  %v10317_v6 = vld [vmem:[%s16572_s1 + $0x4a4] sm:$0xf]  ;;  %v7412_v8 = vld [vmem:[%s16572_s1 + $0x4b0] sm:$0xf0]  ;;  %16581 = vst [vmem:[#allocation3_spill] sm:$0xff] %v12723_v42  ;;  %v5117_v59 = vpop.f32.mrf.mxu1 }
  0xe7   :  { %5339 = vmatpush.bf16.msra.mxu1 %v6823_v16  ;;  %v10349_v9 = vld [vmem:[%s16572_s1 + $0x5a4] sm:$0xf]  ;;  %v7540_v11 = vld [vmem:[%s16572_s1 + $0x5b0] sm:$0xf0]  ;;  %v7287_v16 = vor.u32 %v10285_v2, %v7284_v3 }
  0xe8   :  { %5353 = vmatpush.bf16.msra.mxu2 %v6951_v18  ;;  %v10381_v12 = vld [vmem:[%s16572_s1 + $0x6a4] sm:$0xf]  ;;  %v7668_v15 = vld [vmem:[%s16572_s1 + $0x6b0] sm:$0xf0]  ;;  %v7415_v18 = vor.u32 %v10317_v6, %v7412_v8  ;;  %v7543_v20 = vor.u32 %v10349_v9, %v7540_v11 }
  0xe9   :  { %5367 = vmatpush.bf16.msra.mxu3 %v7079_v24  ;;  %5326 = vmatmul.bf16.vlgmr.msra.gmra.mxu0 %v12654_v49  ;;  %v10281_v22 = vld [vmem:[%s16572_s1 + $0x384] sm:$0xf]  ;;  %v7268_v23 = vld [vmem:[%s16572_s1 + $0x390] sm:$0xf0] }
  0xea   :  { %5374 = vmatpush.bf16.msrb.mxu0 %v7319_v25  ;;  %5340 = vmatmul.bf16.vlgmr.msra.gmra.mxu1 %v11289_v58  ;;  %v10313_v24 = vld [vmem:[%s16572_s1 + $0x484] sm:$0xf]  ;;  %v12712_v25 = vpop.f32.mrf.mxu2  ;;  %v7524_v37 = vld [vmem:[%s16572_s1 + $0x590] sm:$0xf0]  ;;  %v7271_v57 = vor.u32 %v10281_v22, %v7268_v23 }
  0xeb   :  { %5388 = vmatpush.bf16.msrb.mxu1 %v7447_v27  ;;  %5354 = vmatmul.bf16.vlgmr.msra.gmra.mxu2 %v11325_v10  ;;  %16580 = vst [vmem:[#allocation2_spill] sm:$0xff] %v12712_v25  ;;  %v7671_v27 = vor.u32 %v10381_v12, %v7668_v15  ;;  %v10345_v30 = vld [vmem:[%s16572_s1 + $0x584] sm:$0xf]  ;;  %v7652_v52 = vld [vmem:[%s16572_s1 + $0x690] sm:$0xf0] }
  0xec   :  { %5402 = vmatpush.bf16.msrb.mxu2 %v7575_v28  ;;  %5368 = vmatmul.bf16.vlgmr.msra.gmra.mxu3 %v11303_v1  ;;  %v7396_v28 = vld [vmem:[%s16572_s1 + $0x490] sm:$0xf0]  ;;  %v10377_v50 = vld [vmem:[%s16572_s1 + $0x684] sm:$0xf] }
  0xed   :  { %5416 = vmatpush.bf16.msrb.mxu3 %v7703_v29  ;;  %v5103_v29 = vpop.f32.mrf.mxu0  ;;  %v7252_v2 = vld [vmem:[%s16572_s1 + $0x370] sm:$0xf0]  ;;  %v10309_v3 = vld [vmem:[%s16572_s1 + $0x464] sm:$0xf] }
  0xee   :  { %5375 = vmatpush.bf16.msrb.mxu0 %v7303_v62  ;;  %v5104_v53 = vadd.f32 %v5103_v29, %v12565_v19  ;;  %v7399_v62 = vor.u32 %v10313_v24, %v7396_v28  ;;  %v7655_v19 = vor.u32 %v10377_v50, %v7652_v52  ;;  %v10341_v8 = vld [vmem:[%s16572_s1 + $0x564] sm:$0xf]  ;;  %v7508_v9 = vld [vmem:[%s16572_s1 + $0x570] sm:$0xf0]  ;;  %v5145_v50 = vpop.f32.mrf.mxu3 }
  0xef   :  { %5389 = vmatpush.bf16.msrb.mxu1 %v7431_v63  ;;  %v7527_v63 = vor.u32 %v10345_v30, %v7524_v37  ;;  %v10373_v11 = vld [vmem:[%s16572_s1 + $0x664] sm:$0xf]  ;;  %v7636_v12 = vld [vmem:[%s16572_s1 + $0x670] sm:$0xf0] }
  0xf0   :  { %5403 = vmatpush.bf16.msrb.mxu2 %v7559_v0  ;;  %v10277_v0 = vld [vmem:[%s16572_s1 + $0x364] sm:$0xf]  ;;  %v5118_v6 = vadd.f32 %v5117_v59, %v5104_v53  ;;  %v7236_v22 = vld [vmem:[%s16572_s1 + $0x350] sm:$0xf0]  ;;  %v7639_v24 = vor.u32 %v10373_v11, %v7636_v12 }
  0xf1   :  { %5417 = vmatpush.bf16.msrb.mxu3 %v7687_v7  ;;  %v7380_v7 = vld [vmem:[%s16572_s1 + $0x470] sm:$0xf0]  ;;  %v7255_v15 = vor.u32 %v10277_v0, %v7252_v2  ;;  %v10305_v23 = vld [vmem:[%s16572_s1 + $0x444] sm:$0xf] }
  0xf2   :  { %5376 = vmatpush.bf16.msrb.mxu0 %v7287_v16  ;;  %v7383_v16 = vor.u32 %v10309_v3, %v7380_v7  ;;  %v7364_v28 = vld [vmem:[%s16572_s1 + $0x450] sm:$0xf0]  ;;  %v10337_v30 = vld [vmem:[%s16572_s1 + $0x544] sm:$0xf] }
  0xf3   :  { %5390 = vmatpush.bf16.msrb.mxu1 %v7415_v18  ;;  %v7511_v18 = vor.u32 %v10341_v8, %v7508_v9  ;;  %v7492_v37 = vld [vmem:[%s16572_s1 + $0x550] sm:$0xf0]  ;;  %v10369_v52 = vld [vmem:[%s16572_s1 + $0x644] sm:$0xf] }
  0xf4   :  { %5404 = vmatpush.bf16.msrb.mxu2 %v7543_v20  ;;  %v10273_v20 = vld [vmem:[%s16572_s1 + $0x344] sm:$0xf]  ;;  %v7620_v53 = vld [vmem:[%s16572_s1 + $0x650] sm:$0xf0] }
  0xf5   :  { %5418 = vmatpush.bf16.msrb.mxu3 %v7671_v27  ;;  %v5131_v27 = vpop.f32.mrf.mxu2  ;;  %v10269_v0 = vld [vmem:[%s16572_s1 + $0x324] sm:$0xf]  ;;  %v7220_v2 = vld [vmem:[%s16572_s1 + $0x330] sm:$0xf0] }
  0xf6   :  { %5377 = vmatpush.bf16.msrb.mxu0 %v7271_v57  ;;  %v5132_v29 = vadd.f32 %v5131_v27, %v5118_v6  ;;  %v7239_v57 = vor.u32 %v10273_v20, %v7236_v22  ;;  %v10301_v3 = vld [vmem:[%s16572_s1 + $0x424] sm:$0xf]  ;;  %v7348_v6 = vld [vmem:[%s16572_s1 + $0x430] sm:$0xf0]  ;;  %v7223_v12 = vor.u32 %v10269_v0, %v7220_v2 }
  0xf7   :  { %5391 = vmatpush.bf16.msrb.mxu1 %v7399_v62  ;;  %v7367_v62 = vor.u32 %v10305_v23, %v7364_v28  ;;  %v10333_v7 = vld [vmem:[%s16572_s1 + $0x524] sm:$0xf]  ;;  %v7476_v8 = vld [vmem:[%s16572_s1 + $0x530] sm:$0xf0] }
  0xf8   :  { %5405 = vmatpush.bf16.msrb.mxu2 %v7527_v63  ;;  %v12780_v59 = vadd.f32 %v5145_v50, %v5132_v29  ;;  %v7495_v63 = vor.u32 %v10337_v30, %v7492_v37  ;;  %v10365_v9 = vld [vmem:[%s16572_s1 + $0x624] sm:$0xf]  ;;  %v7604_v11 = vld [vmem:[%s16572_s1 + $0x630] sm:$0xf0]  ;;  %v7479_v20 = vor.u32 %v10333_v7, %v7476_v8 }
  0xf9   :  { %5419 = vmatpush.bf16.msrb.mxu3 %v7655_v19  ;;  %v7623_v19 = vor.u32 %v10369_v52, %v7620_v53  ;;  %v10297_v22 = vld [vmem:[%s16572_s1 + $0x404] sm:$0xf]  ;;  %v7332_v23 = vld [vmem:[%s16572_s1 + $0x410] sm:$0xf0]  ;;  %v7607_v27 = vor.u32 %v10365_v9, %v7604_v11 }
  0xfa   :  { %5378 = vmatpush.bf16.msrb.mxu0 %v7255_v15  ;;  %v10265_v15 = vld [vmem:[%s16572_s1 + $0x304] sm:$0xf]  ;;  %v7460_v28 = vld [vmem:[%s16572_s1 + $0x510] sm:$0xf0]  ;;  %v7335_v0 = vor.u32 %v10297_v22, %v7332_v23  ;;  %v12872_v23 = vpop.f32.mrf.mxu0 }
  0xfb   :  { %5392 = vmatpush.bf16.msrb.mxu1 %v7383_v16  ;;  %v7204_v16 = vld [vmem:[%s16572_s1 + $0x310] sm:$0xf0]  ;;  %v10361_v30 = vld [vmem:[%s16572_s1 + $0x604] sm:$0xf]  ;;  %16582 = vst [vmem:[#allocation4_spill] sm:$0xff] %v12872_v23 }
  0xfc   :  { %5406 = vmatpush.bf16.msrb.mxu2 %v7511_v18  ;;  %v7351_v18 = vor.u32 %v10301_v3, %v7348_v6  ;;  %v7588_v37 = vld [vmem:[%s16572_s1 + $0x610] sm:$0xf0]  ;;  %v10421_v29 = vld [vmem:[%s16572_s1 + $0x7e4] sm:$0xf]  ;;  %v7207_v53 = vor.u32 %v10265_v15, %v7204_v16 }
  0xfd   :  { %5420 = vmatpush.bf16.msrb.mxu3 %v7639_v24  ;;  %v10329_v24 = vld [vmem:[%s16572_s1 + $0x504] sm:$0xf]  ;;  %v7828_v50 = vld [vmem:[%s16572_s1 + $0x7f0] sm:$0xf0]  ;;  %v7591_v6 = vor.u32 %v10361_v30, %v7588_v37 }
  0xfe   :  { %5379 = vmatpush.bf16.msrb.mxu0 %v7239_v57  ;;  %v10453_v52 = vld [vmem:[%s16572_s1 + $0x8e4] sm:$0xf]  ;;  %v7956_v57 = vld [vmem:[%s16572_s1 + $0x8f0] sm:$0xf0]  ;;  %v7463_v2 = vor.u32 %v10329_v24, %v7460_v28  ;;  %v7831_v7 = vor.u32 %v10421_v29, %v7828_v50  ;;  %v12880_v28 = vpop.f32.mrf.mxu1 }
  0xff   :  { %5393 = vmatpush.bf16.msrb.mxu1 %v7367_v62  ;;  %v10485_v62 = vld [vmem:[%s16572_s1 + $0x9e4] sm:$0xf]  ;;  %v7959_v8 = vor.u32 %v10453_v52, %v7956_v57  ;;  %v8068_v22 = vld [vmem:[%s16572_s1 + $0x9d0] sm:$0xf0]  ;;  %16583 = vst [vmem:[#allocation5_spill] sm:$0xff] %v12880_v28 }
 0x100   :  { %5407 = vmatpush.bf16.msrb.mxu2 %v7495_v63  ;;  %v8084_v63 = vld [vmem:[%s16572_s1 + $0x9f0] sm:$0xf0]  ;;  %v10517_v3 = vld [vmem:[%s16572_s1 + $0xae4] sm:$0xf] }
 0x101   :  { %5421 = vmatpush.bf16.msrb.mxu3 %v7623_v19  ;;  %v8212_v19 = vld [vmem:[%s16572_s1 + $0xaf0] sm:$0xf0]  ;;  %v8087_v9 = vor.u32 %v10485_v62, %v8084_v63  ;;  %v10417_v11 = vld [vmem:[%s16572_s1 + $0x7c4] sm:$0xf] }
 0x102   :  { %5380 = vmatpush.bf16.msrb.mxu0 %v7223_v12  ;;  %v7812_v12 = vld [vmem:[%s16572_s1 + $0x7d0] sm:$0xf0]  ;;  %v10449_v15 = vld [vmem:[%s16572_s1 + $0x8c4] sm:$0xf]  ;;  %v8215_v16 = vor.u32 %v10517_v3, %v8212_v19 }
 0x103   :  { %5394 = vmatpush.bf16.msrb.mxu1 %v7351_v18  ;;  %v7940_v18 = vld [vmem:[%s16572_s1 + $0x8d0] sm:$0xf0]  ;;  %v10513_v24 = vld [vmem:[%s16572_s1 + $0xac4] sm:$0xf]  ;;  %v7815_v30 = vor.u32 %v10417_v11, %v7812_v12  ;;  %v12919_v12 = vpop.f32.mrf.mxu2 }
 0x104   :  { %5408 = vmatpush.bf16.msrb.mxu2 %v7479_v20  ;;  %v10481_v20 = vld [vmem:[%s16572_s1 + $0x9c4] sm:$0xf]  ;;  %v7943_v37 = vor.u32 %v10449_v15, %v7940_v18  ;;  %v7796_v52 = vld [vmem:[%s16572_s1 + $0x7b0] sm:$0xf0]  ;;  %16584 = vst [vmem:[#allocation6_spill] sm:$0xff] %v12919_v12 }
 0x105   :  { %5422 = vmatpush.bf16.msrb.mxu3 %v7607_v27  ;;  %v8196_v27 = vld [vmem:[%s16572_s1 + $0xad0] sm:$0xf0]  ;;  %v8071_v29 = vor.u32 %v10481_v20, %v8068_v22  ;;  %v10413_v50 = vld [vmem:[%s16572_s1 + $0x7a4] sm:$0xf]  ;;  %v12930_v22 = vpop.f32.mrf.mxu3 }
 0x106   :  { %5381 = vmatpush.bf16.msrb.mxu0 %v7207_v53  ;;  %v10445_v53 = vld [vmem:[%s16572_s1 + $0x8a4] sm:$0xf]  ;;  %v8199_v57 = vor.u32 %v10513_v24, %v8196_v27  ;;  %v7924_v62 = vld [vmem:[%s16572_s1 + $0x8b0] sm:$0xf0]  ;;  %v7799_v19 = vor.u32 %v10413_v50, %v7796_v52  ;;  %16585 = vst [vmem:[#allocation7_spill] sm:$0xff] %v12930_v22  ;;  %v5173_v50 = vpop.f32.mrf.mxu1 }
 0x107   :  { %5395 = vmatpush.bf16.msrb.mxu1 %v7335_v0  ;;  %v10477_v63 = vld [vmem:[%s16572_s1 + $0x9a4] sm:$0xf]  ;;  %v8052_v0 = vld [vmem:[%s16572_s1 + $0x9b0] sm:$0xf0] }
 0x108   :  { %5409 = vmatpush.bf16.msrb.mxu2 %v7463_v2  ;;  %v10509_v2 = vld [vmem:[%s16572_s1 + $0xaa4] sm:$0xf]  ;;  %v8180_v3 = vld [vmem:[%s16572_s1 + $0xab0] sm:$0xf0]  ;;  %v5159_v24 = vpop.f32.mrf.mxu0 }
 0x109   :  { %5423 = vmatpush.bf16.msrb.mxu3 %v7591_v6  ;;  %5382 = vmatmul.bf16.vlgmr.msrb.gmra.mxu0 %v11339_v17  ;;  %v7927_v6 = vor.u32 %v10445_v53, %v7924_v62  ;;  %v10441_v11 = vld [vmem:[%s16572_s1 + $0x884] sm:$0xf]  ;;  %v8183_v15 = vor.u32 %v10509_v2, %v8180_v3  ;;  %v8036_v20 = vld [vmem:[%s16572_s1 + $0x990] sm:$0xf0] }
 0x10a   :  { %5430 = vmatpush.bf16.msra.mxu0 %v7831_v7  ;;  %5396 = vmatmul.bf16.vlgmr.msrb.gmra.mxu1 %v11511_v39  ;;  %v8055_v7 = vor.u32 %v10477_v63, %v8052_v0  ;;  %v10473_v18 = vld [vmem:[%s16572_s1 + $0x984] sm:$0xf]  ;;  %v7764_v62 = vld [vmem:[%s16572_s1 + $0x770] sm:$0xf0] }
 0x10b   :  { %5444 = vmatpush.bf16.msra.mxu1 %v7959_v8  ;;  %5410 = vmatmul.bf16.vlgmr.msrb.gmra.mxu2 %v11524_v44  ;;  %v10409_v8 = vld [vmem:[%s16572_s1 + $0x784] sm:$0xf]  ;;  %v8039_v53 = vor.u32 %v10473_v18, %v8036_v20  ;;  %v7892_v2 = vld [vmem:[%s16572_s1 + $0x870] sm:$0xf0] }
 0x10c   :  { %5458 = vmatpush.bf16.msra.mxu2 %v8087_v9  ;;  %5424 = vmatmul.bf16.vlgmr.msrb.gmra.mxu3 %v11522_v43  ;;  %v7780_v9 = vld [vmem:[%s16572_s1 + $0x790] sm:$0xf0]  ;;  %v10505_v27 = vld [vmem:[%s16572_s1 + $0xa84] sm:$0xf] }
 0x10d   :  { %5472 = vmatpush.bf16.msra.mxu3 %v8215_v16  ;;  %v7908_v16 = vld [vmem:[%s16572_s1 + $0x890] sm:$0xf0]  ;;  %v10437_v63 = vld [vmem:[%s16572_s1 + $0x864] sm:$0xf] }
 0x10e   :  { %5431 = vmatpush.bf16.msra.mxu0 %v7815_v30  ;;  %v8164_v30 = vld [vmem:[%s16572_s1 + $0xa90] sm:$0xf0]  ;;  %v7911_v52 = vor.u32 %v10441_v11, %v7908_v16  ;;  %v10469_v3 = vld [vmem:[%s16572_s1 + $0x964] sm:$0xf] }
 0x10f   :  { %5445 = vmatpush.bf16.msra.mxu1 %v7943_v37  ;;  %v5160_v37 = vadd.f32 %v5159_v24, %v12780_v59  ;;  %v8167_v59 = vor.u32 %v10505_v27, %v8164_v30  ;;  %v7748_v16 = vld [vmem:[%s16572_s1 + $0x750] sm:$0xf0]  ;;  %v10433_v18 = vld [vmem:[%s16572_s1 + $0x844] sm:$0xf]  ;;  %v5187_v24 = vpop.f32.mrf.mxu2 }
 0x110   :  { %5459 = vmatpush.bf16.msra.mxu2 %v8071_v29  ;;  %v7783_v29 = vor.u32 %v10409_v8, %v7780_v9  ;;  %v7895_v9 = vor.u32 %v10437_v63, %v7892_v2  ;;  %v7876_v27 = vld [vmem:[%s16572_s1 + $0x850] sm:$0xf0]  ;;  %v10465_v30 = vld [vmem:[%s16572_s1 + $0x944] sm:$0xf] }
 0x111   :  { %5473 = vmatpush.bf16.msra.mxu3 %v8199_v57  ;;  %v10405_v57 = vld [vmem:[%s16572_s1 + $0x764] sm:$0xf]  ;;  %v5174_v0 = vadd.f32 %v5173_v50, %v5160_v37  ;;  %v8004_v37 = vld [vmem:[%s16572_s1 + $0x950] sm:$0xf0]  ;;  %v5201_v50 = vpop.f32.mrf.mxu3  ;;  %v7879_v63 = vor.u32 %v10433_v18, %v7876_v27 }
 0x112   :  { %5432 = vmatpush.bf16.msra.mxu0 %v7799_v19  ;;  %v8020_v19 = vld [vmem:[%s16572_s1 + $0x970] sm:$0xf0]  ;;  %v7767_v8 = vor.u32 %v10405_v57, %v7764_v62  ;;  %v10425_v27 = vld [vmem:[%s16572_s1 + $0x804] sm:$0xf] }
 0x113   :  { %5446 = vmatpush.bf16.msra.mxu1 %v7927_v6  ;;  %v10501_v6 = vld [vmem:[%s16572_s1 + $0xa64] sm:$0xf]  ;;  %v8023_v11 = vor.u32 %v10469_v3, %v8020_v19  ;;  %v7732_v2 = vld [vmem:[%s16572_s1 + $0x730] sm:$0xf0] }
 0x114   :  { %5460 = vmatpush.bf16.msra.mxu2 %v8055_v7  ;;  %v8148_v7 = vld [vmem:[%s16572_s1 + $0xa70] sm:$0xf0]  ;;  %v10429_v3 = vld [vmem:[%s16572_s1 + $0x824] sm:$0xf] }
 0x115   :  { %5474 = vmatpush.bf16.msra.mxu3 %v8183_v15  ;;  %v10401_v15 = vld [vmem:[%s16572_s1 + $0x744] sm:$0xf]  ;;  %v8151_v20 = vor.u32 %v10501_v6, %v8148_v7  ;;  %v7860_v6 = vld [vmem:[%s16572_s1 + $0x830] sm:$0xf0] }
 0x116   :  { %5433 = vmatpush.bf16.msra.mxu0 %v7783_v29  ;;  %v5188_v29 = vadd.f32 %v5187_v24, %v5174_v0  ;;  %v7751_v57 = vor.u32 %v10401_v15, %v7748_v16  ;;  %v10397_v0 = vld [vmem:[%s16572_s1 + $0x724] sm:$0xf]  ;;  %v7716_v18 = vld [vmem:[%s16572_s1 + $0x710] sm:$0xf0] }
 0x117   :  { %5447 = vmatpush.bf16.msra.mxu1 %v7911_v52  ;;  %v10497_v52 = vld [vmem:[%s16572_s1 + $0xa44] sm:$0xf]  ;;  %v7735_v15 = vor.u32 %v10397_v0, %v7732_v2  ;;  %v8468_v2 = vld [vmem:[%s16572_s1 + $0xcf0] sm:$0xf0] }
 0x118   :  { %5461 = vmatpush.bf16.msra.mxu2 %v8039_v53  ;;  %v8132_v53 = vld [vmem:[%s16572_s1 + $0xa50] sm:$0xf0]  ;;  %v12987_v62 = vadd.f32 %v5201_v50, %v5188_v29  ;;  %v10461_v7 = vld [vmem:[%s16572_s1 + $0x924] sm:$0xf] }
 0x119   :  { %5475 = vmatpush.bf16.msra.mxu3 %v8167_v59  ;;  %v8007_v59 = vor.u32 %v10465_v30, %v8004_v37  ;;  %v8135_v19 = vor.u32 %v10497_v52, %v8132_v53  ;;  %v10393_v16 = vld [vmem:[%s16572_s1 + $0x704] sm:$0xf]  ;;  %v7844_v30 = vld [vmem:[%s16572_s1 + $0x810] sm:$0xf0] }
 0x11a   :  { %5434 = vmatpush.bf16.msra.mxu0 %v7767_v8  ;;  %v7988_v8 = vld [vmem:[%s16572_s1 + $0x930] sm:$0xf0]  ;;  %v10457_v37 = vld [vmem:[%s16572_s1 + $0x904] sm:$0xf]  ;;  %v7719_v0 = vor.u32 %v10393_v16, %v7716_v18 }
 0x11b   :  { %5448 = vmatpush.bf16.msra.mxu1 %v7895_v9  ;;  %v10493_v9 = vld [vmem:[%s16572_s1 + $0xa24] sm:$0xf]  ;;  %v7991_v24 = vor.u32 %v10461_v7, %v7988_v8  ;;  %v7972_v50 = vld [vmem:[%s16572_s1 + $0x910] sm:$0xf0] }
 0x11c   :  { %5462 = vmatpush.bf16.msra.mxu2 %v8023_v11  ;;  %v8116_v11 = vld [vmem:[%s16572_s1 + $0xa30] sm:$0xf0]  ;;  %v10489_v52 = vld [vmem:[%s16572_s1 + $0xa04] sm:$0xf]  ;;  %v7975_v7 = vor.u32 %v10457_v37, %v7972_v50 }
 0x11d   :  { %5476 = vmatpush.bf16.msra.mxu3 %v8151_v20  ;;  %v7863_v20 = vor.u32 %v10429_v3, %v7860_v6  ;;  %v8119_v29 = vor.u32 %v10493_v9, %v8116_v11  ;;  %v8100_v53 = vld [vmem:[%s16572_s1 + $0xa10] sm:$0xf0]  ;;  %v10613_v3 = vld [vmem:[%s16572_s1 + $0xde4] sm:$0xf]  ;;  %v7847_v6 = vor.u32 %v10425_v27, %v7844_v30 }
 0x11e   :  { %5435 = vmatpush.bf16.msra.mxu0 %v7751_v57  ;;  %v10549_v57 = vld [vmem:[%s16572_s1 + $0xbe4] sm:$0xf]  ;;  %v8724_v9 = vld [vmem:[%s16572_s1 + $0xef0] sm:$0xf0]  ;;  %v8103_v11 = vor.u32 %v10489_v52, %v8100_v53  ;;  %v13079_v52 = vpop.f32.mrf.mxu0 }
 0x11f   :  { %5449 = vmatpush.bf16.msra.mxu1 %v7879_v63  ;;  %v8340_v63 = vld [vmem:[%s16572_s1 + $0xbf0] sm:$0xf0]  ;;  %v10645_v8 = vld [vmem:[%s16572_s1 + $0xee4] sm:$0xf]  ;;  %16586 = vst [vmem:[#allocation8_spill] sm:$0xff] %v13079_v52 }
 0x120   :  { %5463 = vmatpush.bf16.msra.mxu2 %v8007_v59  ;;  %v10581_v59 = vld [vmem:[%s16572_s1 + $0xce4] sm:$0xf]  ;;  %v8727_v30 = vor.u32 %v10645_v8, %v8724_v9  ;;  %v8452_v37 = vld [vmem:[%s16572_s1 + $0xcd0] sm:$0xf0] }
 0x121   :  { %5477 = vmatpush.bf16.msra.mxu3 %v8135_v19  ;;  %v8596_v19 = vld [vmem:[%s16572_s1 + $0xdf0] sm:$0xf0]  ;;  %v8471_v16 = vor.u32 %v10581_v59, %v8468_v2  ;;  %v10577_v27 = vld [vmem:[%s16572_s1 + $0xcc4] sm:$0xf] }
 0x122   :  { %5436 = vmatpush.bf16.msra.mxu0 %v7735_v15  ;;  %v8343_v15 = vor.u32 %v10549_v57, %v8340_v63  ;;  %v8599_v18 = vor.u32 %v10613_v3, %v8596_v19  ;;  %v8580_v50 = vld [vmem:[%s16572_s1 + $0xdd0] sm:$0xf0]  ;;  %v10641_v53 = vld [vmem:[%s16572_s1 + $0xec4] sm:$0xf]  ;;  %v13087_v63 = vpop.f32.mrf.mxu1 }
 0x123   :  { %5450 = vmatpush.bf16.msra.mxu1 %v7863_v20  ;;  %v10545_v20 = vld [vmem:[%s16572_s1 + $0xbc4] sm:$0xf]  ;;  %v8708_v57 = vld [vmem:[%s16572_s1 + $0xed0] sm:$0xf0]  ;;  %16587 = vst [vmem:[#allocation9_spill] sm:$0xff] %v13087_v63 }
 0x124   :  { %5464 = vmatpush.bf16.msra.mxu2 %v7991_v24  ;;  %v8324_v24 = vld [vmem:[%s16572_s1 + $0xbd0] sm:$0xf0]  ;;  %v10541_v3 = vld [vmem:[%s16572_s1 + $0xba4] sm:$0xf] }
 0x125   :  { %5478 = vmatpush.bf16.msra.mxu3 %v8119_v29  ;;  %v10609_v29 = vld [vmem:[%s16572_s1 + $0xdc4] sm:$0xf]  ;;  %v8327_v59 = vor.u32 %v10545_v20, %v8324_v24  ;;  %v8308_v19 = vld [vmem:[%s16572_s1 + $0xbb0] sm:$0xf0] }
 0x126   :  { %5437 = vmatpush.bf16.msra.mxu0 %v7719_v0  ;;  %v8455_v0 = vor.u32 %v10577_v27, %v8452_v37  ;;  %v8583_v2 = vor.u32 %v10609_v29, %v8580_v50  ;;  %v8436_v8 = vld [vmem:[%s16572_s1 + $0xcb0] sm:$0xf0]  ;;  %v10605_v9 = vld [vmem:[%s16572_s1 + $0xda4] sm:$0xf]  ;;  %v13126_v29 = vpop.f32.mrf.mxu2 }
 0x127   :  { %5451 = vmatpush.bf16.msra.mxu1 %v7847_v6  ;;  %v10573_v6 = vld [vmem:[%s16572_s1 + $0xca4] sm:$0xf]  ;;  %16588 = vst [vmem:[#allocation10_spill] sm:$0xff] %v13126_v29 }
 0x128   :  { %5465 = vmatpush.bf16.msra.mxu2 %v7975_v7  ;;  %v8711_v7 = vor.u32 %v10641_v53, %v8708_v57  ;;  %v8439_v20 = vor.u32 %v10573_v6, %v8436_v8  ;;  %v10537_v27 = vld [vmem:[%s16572_s1 + $0xb84] sm:$0xf]  ;;  %v8420_v53 = vld [vmem:[%s16572_s1 + $0xc90] sm:$0xf0] }
 0x129   :  { %5479 = vmatpush.bf16.msra.mxu3 %v8103_v11  ;;  %5438 = vmatmul.bf16.vlgmr.msra.gmra.mxu0 %v11532_v47  ;;  %v8564_v11 = vld [vmem:[%s16572_s1 + $0xdb0] sm:$0xf0]  ;;  %v10569_v37 = vld [vmem:[%s16572_s1 + $0xc84] sm:$0xf] }
 0x12a   :  { %5486 = vmatpush.bf16.msrb.mxu0 %v8343_v15  ;;  %5452 = vmatmul.bf16.vlgmr.msra.gmra.mxu1 %v11739_v31  ;;  %v10637_v15 = vld [vmem:[%s16572_s1 + $0xea4] sm:$0xf]  ;;  %v8567_v24 = vor.u32 %v10605_v9, %v8564_v11  ;;  %v5229_v8 = vpop.f32.mrf.mxu1  ;;  %v8423_v9 = vor.u32 %v10569_v37, %v8420_v53 }
 0x12b   :  { %5500 = vmatpush.bf16.msrb.mxu1 %v8471_v16  ;;  %5466 = vmatmul.bf16.vlgmr.msra.gmra.mxu2 %v11752_v36  ;;  %v8692_v16 = vld [vmem:[%s16572_s1 + $0xeb0] sm:$0xf0]  ;;  %v10601_v57 = vld [vmem:[%s16572_s1 + $0xd84] sm:$0xf] }
 0x12c   :  { %5514 = vmatpush.bf16.msrb.mxu2 %v8599_v18  ;;  %5480 = vmatmul.bf16.vlgmr.msra.gmra.mxu3 %v11750_v35  ;;  %v8311_v18 = vor.u32 %v10541_v3, %v8308_v19  ;;  %v8695_v50 = vor.u32 %v10637_v15, %v8692_v16  ;;  %v10633_v3 = vld [vmem:[%s16572_s1 + $0xe84] sm:$0xf]  ;;  %v8676_v19 = vld [vmem:[%s16572_s1 + $0xe90] sm:$0xf0] }
 0x12d   :  { %5528 = vmatpush.bf16.msrb.mxu3 %v8727_v30  ;;  %v8292_v30 = vld [vmem:[%s16572_s1 + $0xb90] sm:$0xf0]  ;;  %v10533_v15 = vld [vmem:[%s16572_s1 + $0xb64] sm:$0xf] }
 0x12e   :  { %5487 = vmatpush.bf16.msrb.mxu0 %v8327_v59  ;;  %v8548_v59 = vld [vmem:[%s16572_s1 + $0xd90] sm:$0xf0]  ;;  %v10629_v37 = vld [vmem:[%s16572_s1 + $0xe64] sm:$0xf] }
 0x12f   :  { %5501 = vmatpush.bf16.msrb.mxu1 %v8455_v0  ;;  %v13137_v0 = vpop.f32.mrf.mxu3  ;;  %v8551_v11 = vor.u32 %v10601_v57, %v8548_v59  ;;  %v8276_v16 = vld [vmem:[%s16572_s1 + $0xb70] sm:$0xf0] }
 0x130   :  { %5515 = vmatpush.bf16.msrb.mxu2 %v8583_v2  ;;  %16589 = vst [vmem:[#allocation11_spill] sm:$0xff] %v13137_v0  ;;  %v5215_v2 = vpop.f32.mrf.mxu0  ;;  %v8279_v53 = vor.u32 %v10533_v15, %v8276_v16 }
 0x131   :  { %5529 = vmatpush.bf16.msrb.mxu3 %v8711_v7  ;;  %v5216_v6 = vadd.f32 %v5215_v2, %v12987_v62  ;;  %v8295_v7 = vor.u32 %v10537_v27, %v8292_v30  ;;  %v8679_v62 = vor.u32 %v10633_v3, %v8676_v19  ;;  %v8532_v30 = vld [vmem:[%s16572_s1 + $0xd70] sm:$0xf0]  ;;  %v10529_v2 = vld [vmem:[%s16572_s1 + $0xb44] sm:$0xf] }
 0x132   :  { %5488 = vmatpush.bf16.msrb.mxu0 %v8311_v18  ;;  %v10565_v18 = vld [vmem:[%s16572_s1 + $0xc64] sm:$0xf]  ;;  %v8260_v3 = vld [vmem:[%s16572_s1 + $0xb50] sm:$0xf0] }
 0x133   :  { %5502 = vmatpush.bf16.msrb.mxu1 %v8439_v20  ;;  %v5230_v27 = vadd.f32 %v5229_v8, %v5216_v6  ;;  %v8404_v20 = vld [vmem:[%s16572_s1 + $0xc70] sm:$0xf0]  ;;  %v10561_v19 = vld [vmem:[%s16572_s1 + $0xc44] sm:$0xf] }
 0x134   :  { %5516 = vmatpush.bf16.msrb.mxu2 %v8567_v24  ;;  %v10597_v24 = vld [vmem:[%s16572_s1 + $0xd64] sm:$0xf]  ;;  %v8407_v57 = vor.u32 %v10565_v18, %v8404_v20  ;;  %v8388_v8 = vld [vmem:[%s16572_s1 + $0xc50] sm:$0xf0]  ;;  %v8263_v20 = vor.u32 %v10529_v2, %v8260_v3 }
 0x135   :  { %5530 = vmatpush.bf16.msrb.mxu3 %v8695_v50  ;;  %v8660_v50 = vld [vmem:[%s16572_s1 + $0xe70] sm:$0xf0]  ;;  %v8535_v59 = vor.u32 %v10597_v24, %v8532_v30  ;;  %v10625_v18 = vld [vmem:[%s16572_s1 + $0xe44] sm:$0xf]  ;;  %v8391_v30 = vor.u32 %v10561_v19, %v8388_v8 }
 0x136   :  { %5489 = vmatpush.bf16.msrb.mxu0 %v8295_v7  ;;  %v8663_v6 = vor.u32 %v10629_v37, %v8660_v50  ;;  %v5243_v7 = vpop.f32.mrf.mxu2  ;;  %v8244_v50 = vld [vmem:[%s16572_s1 + $0xb30] sm:$0xf0]  ;;  %v10621_v3 = vld [vmem:[%s16572_s1 + $0xe24] sm:$0xf] }
 0x137   :  { %5503 = vmatpush.bf16.msrb.mxu1 %v8423_v9  ;;  %v10593_v9 = vld [vmem:[%s16572_s1 + $0xd44] sm:$0xf]  ;;  %v5244_v15 = vadd.f32 %v5243_v7, %v5230_v27  ;;  %v5257_v16 = vpop.f32.mrf.mxu3  ;;  %v8500_v2 = vld [vmem:[%s16572_s1 + $0xd30] sm:$0xf0] }
 0x138   :  { %5517 = vmatpush.bf16.msrb.mxu2 %v8551_v11  ;;  %v8516_v11 = vld [vmem:[%s16572_s1 + $0xd50] sm:$0xf0]  ;;  %v10525_v27 = vld [vmem:[%s16572_s1 + $0xb24] sm:$0xf] }
 0x139   :  { %5531 = vmatpush.bf16.msrb.mxu3 %v8679_v62  ;;  %v8644_v62 = vld [vmem:[%s16572_s1 + $0xe50] sm:$0xf0]  ;;  %v13194_v24 = vadd.f32 %v5257_v16, %v5244_v15  ;;  %v8519_v37 = vor.u32 %v10593_v9, %v8516_v11  ;;  %v10557_v7 = vld [vmem:[%s16572_s1 + $0xc24] sm:$0xf] }
 0x13a   :  { %5490 = vmatpush.bf16.msrb.mxu0 %v8279_v53  ;;  %v8647_v53 = vor.u32 %v10625_v18, %v8644_v62  ;;  %v8628_v19 = vld [vmem:[%s16572_s1 + $0xe30] sm:$0xf0]  ;;  %v10521_v8 = vld [vmem:[%s16572_s1 + $0xb04] sm:$0xf] }
 0x13b   :  { %5504 = vmatpush.bf16.msrb.mxu1 %v8407_v57  ;;  %v8372_v57 = vld [vmem:[%s16572_s1 + $0xc30] sm:$0xf0]  ;;  %v10553_v16 = vld [vmem:[%s16572_s1 + $0xc04] sm:$0xf] }
 0x13c   :  { %5518 = vmatpush.bf16.msrb.mxu2 %v8535_v59  ;;  %v10589_v59 = vld [vmem:[%s16572_s1 + $0xd24] sm:$0xf]  ;;  %v8228_v9 = vld [vmem:[%s16572_s1 + $0xb10] sm:$0xf0]  ;;  %v8375_v11 = vor.u32 %v10557_v7, %v8372_v57 }
 0x13d   :  { %5532 = vmatpush.bf16.msrb.mxu3 %v8663_v6  ;;  %v8247_v6 = vor.u32 %v10525_v27, %v8244_v50  ;;  %v8503_v15 = vor.u32 %v10589_v59, %v8500_v2  ;;  %v8356_v18 = vld [vmem:[%s16572_s1 + $0xc10] sm:$0xf0]  ;;  %v10585_v62 = vld [vmem:[%s16572_s1 + $0xd04] sm:$0xf]  ;;  %v8231_v57 = vor.u32 %v10521_v8, %v8228_v9 }
 0x13e   :  { %5491 = vmatpush.bf16.msrb.mxu0 %v8263_v20  ;;  %v8631_v20 = vor.u32 %v10621_v3, %v8628_v19  ;;  %v8612_v27 = vld [vmem:[%s16572_s1 + $0xe10] sm:$0xf0]  ;;  %v10677_v50 = vld [vmem:[%s16572_s1 + $0xfe4] sm:$0xf]  ;;  %v8359_v19 = vor.u32 %v10553_v16, %v8356_v18 }
 0x13f   :  { %5505 = vmatpush.bf16.msrb.mxu1 %v8391_v30  ;;  %v8484_v30 = vld [vmem:[%s16572_s1 + $0xd10] sm:$0xf0]  ;;  %v10741_v2 = vld [vmem:[%s16572_s1 + $0x11e4] sm:$0xf] }
 0x140   :  { %5519 = vmatpush.bf16.msrb.mxu2 %v8519_v37  ;;  %v10617_v37 = vld [vmem:[%s16572_s1 + $0xe04] sm:$0xf]  ;;  %v8852_v7 = vld [vmem:[%s16572_s1 + $0xff0] sm:$0xf0]  ;;  %v8487_v13 = vor.u32 %v10585_v62, %v8484_v30 }
 0x141   :  { %5533 = vmatpush.bf16.msrb.mxu3 %v8647_v53  ;;  %v10709_v53 = vld [vmem:[%s16572_s1 + $0x10e4] sm:$0xf]  ;;  %v8980_v59 = vld [vmem:[%s16572_s1 + $0x10f0] sm:$0xf0]  ;;  %v8615_v9 = vor.u32 %v10617_v37, %v8612_v27  ;;  %v8855_v0 = vor.u32 %v10677_v50, %v8852_v7  ;;  %v13286_v37 = vpop.f32.mrf.mxu0  ;;  %v13294_v7 = vpop.f32.mrf.mxu1 }
 0x142   :  { %5492 = vmatpush.bf16.msrb.mxu0 %v8247_v6  ;;  %v9108_v3 = vld [vmem:[%s16572_s1 + $0x11f0] sm:$0xf0]  ;;  %v10773_v6 = vld [vmem:[%s16572_s1 + $0x12e4] sm:$0xf]  ;;  %v8983_v29 = vor.u32 %v10709_v53, %v8980_v59  ;;  %16590 = vst [vmem:[#allocation12_spill] sm:$0xff] %v13286_v37 }
 0x143   :  { %5506 = vmatpush.bf16.msrb.mxu1 %v8375_v11  ;;  %v9236_v8 = vld [vmem:[%s16572_s1 + $0x12f0] sm:$0xf0]  ;;  %v9111_v63 = vor.u32 %v10741_v2, %v9108_v3  ;;  %v10673_v11 = vld [vmem:[%s16572_s1 + $0xfc4] sm:$0xf]  ;;  %16591 = vst [vmem:[#allocation13_spill] sm:$0xff] %v13294_v7 }
 0x144   :  { %5520 = vmatpush.bf16.msrb.mxu2 %v8503_v15  ;;  %v8836_v15 = vld [vmem:[%s16572_s1 + $0xfd0] sm:$0xf0]  ;;  %v10705_v16 = vld [vmem:[%s16572_s1 + $0x10c4] sm:$0xf]  ;;  %v9239_v18 = vor.u32 %v10773_v6, %v9236_v8 }
 0x145   :  { %5534 = vmatpush.bf16.msrb.mxu3 %v8631_v20  ;;  %v8964_v62 = vld [vmem:[%s16572_s1 + $0x10d0] sm:$0xf0]  ;;  %v10737_v20 = vld [vmem:[%s16572_s1 + $0x11c4] sm:$0xf]  ;;  %v8839_v53 = vor.u32 %v10673_v11, %v8836_v15 }
 0x146   :  { %5493 = vmatpush.bf16.msrb.mxu0 %v8231_v57  ;;  %v9092_v30 = vld [vmem:[%s16572_s1 + $0x11d0] sm:$0xf0]  ;;  %v10769_v27 = vld [vmem:[%s16572_s1 + $0x12c4] sm:$0xf]  ;;  %v8967_v57 = vor.u32 %v10705_v16, %v8964_v62 }
 0x147   :  { %5507 = vmatpush.bf16.msrb.mxu1 %v8359_v19  ;;  %v9220_v50 = vld [vmem:[%s16572_s1 + $0x12d0] sm:$0xf0]  ;;  %v9095_v59 = vor.u32 %v10737_v20, %v9092_v30  ;;  %v10701_v3 = vld [vmem:[%s16572_s1 + $0x10a4] sm:$0xf]  ;;  %v13333_v20 = vpop.f32.mrf.mxu2 }
 0x148   :  { %5521 = vmatpush.bf16.msrb.mxu2 %v8487_v13  ;;  %v10669_v13 = vld [vmem:[%s16572_s1 + $0xfa4] sm:$0xf]  ;;  %v8820_v2 = vld [vmem:[%s16572_s1 + $0xfb0] sm:$0xf0]  ;;  %16592 = vst [vmem:[#allocation14_spill] sm:$0xff] %v13333_v20 }
 0x149   :  { %5535 = vmatpush.bf16.msrb.mxu3 %v8615_v9  ;;  %5494 = vmatmul.bf16.vlgmr.msrb.gmra.mxu0 %v11760_v40  ;;  %v9076_v19 = vld [vmem:[%s16572_s1 + $0x11b0] sm:$0xf0]  ;;  %v10765_v6 = vld [vmem:[%s16572_s1 + $0x12a4] sm:$0xf]  ;;  %v8823_v9 = vor.u32 %v10669_v13, %v8820_v2 }
 0x14a   :  { %5542 = vmatpush.bf16.msra.mxu0 %v8855_v0  ;;  %v9223_v0 = vor.u32 %v10769_v27, %v9220_v50  ;;  %5508 = vmatmul.bf16.vlgmr.msrb.gmra.mxu1 %v11967_v32  ;;  %v9204_v8 = vld [vmem:[%s16572_s1 + $0x12b0] sm:$0xf0]  ;;  %v10665_v16 = vld [vmem:[%s16572_s1 + $0xf84] sm:$0xf] }
 0x14b   :  { %5556 = vmatpush.bf16.msra.mxu1 %v8983_v29  ;;  %v10733_v29 = vld [vmem:[%s16572_s1 + $0x11a4] sm:$0xf]  ;;  %5522 = vmatmul.bf16.vlgmr.msrb.gmra.mxu2 %v11980_v41  ;;  %v9207_v30 = vor.u32 %v10765_v6, %v9204_v8  ;;  %v8932_v27 = vld [vmem:[%s16572_s1 + $0x1090] sm:$0xf0] }
 0x14c   :  { %5570 = vmatpush.bf16.msra.mxu2 %v9111_v63  ;;  %v8948_v63 = vld [vmem:[%s16572_s1 + $0x10b0] sm:$0xf0]  ;;  %5536 = vmatmul.bf16.vlgmr.msrb.gmra.mxu3 %v11978_v38  ;;  %v9079_v15 = vor.u32 %v10733_v29, %v9076_v19  ;;  %v10697_v62 = vld [vmem:[%s16572_s1 + $0x1084] sm:$0xf] }
 0x14d   :  { %5584 = vmatpush.bf16.msra.mxu3 %v9239_v18  ;;  %v8951_v11 = vor.u32 %v10701_v3, %v8948_v63  ;;  %v8804_v18 = vld [vmem:[%s16572_s1 + $0xf90] sm:$0xf0]  ;;  %v10729_v50 = vld [vmem:[%s16572_s1 + $0x1184] sm:$0xf]  ;;  %v5285_v63 = vpop.f32.mrf.mxu1  ;;  %v8935_v29 = vor.u32 %v10697_v62, %v8932_v27 }
 0x14e   :  { %5543 = vmatpush.bf16.msra.mxu0 %v8839_v53  ;;  %v9060_v53 = vld [vmem:[%s16572_s1 + $0x1190] sm:$0xf0]  ;;  %v10761_v13 = vld [vmem:[%s16572_s1 + $0x1284] sm:$0xf] }
 0x14f   :  { %5557 = vmatpush.bf16.msra.mxu1 %v8967_v57  ;;  %v13344_v57 = vpop.f32.mrf.mxu3  ;;  %v9188_v2 = vld [vmem:[%s16572_s1 + $0x1290] sm:$0xf0]  ;;  %v9063_v19 = vor.u32 %v10729_v50, %v9060_v53  ;;  %v10661_v6 = vld [vmem:[%s16572_s1 + $0xf64] sm:$0xf] }
 0x150   :  { %5571 = vmatpush.bf16.msra.mxu2 %v9095_v59  ;;  %16593 = vst [vmem:[#allocation15_spill] sm:$0xff] %v13344_v57  ;;  %v5271_v59 = vpop.f32.mrf.mxu0  ;;  %v8788_v8 = vld [vmem:[%s16572_s1 + $0xf70] sm:$0xf0]  ;;  %v10757_v62 = vld [vmem:[%s16572_s1 + $0x1264] sm:$0xf] }
 0x151   :  { %5585 = vmatpush.bf16.msra.mxu3 %v9223_v0  ;;  %v5272_v3 = vadd.f32 %v5271_v59, %v13194_v24  ;;  %v8807_v0 = vor.u32 %v10665_v16, %v8804_v18  ;;  %v9191_v24 = vor.u32 %v10761_v13, %v9188_v2  ;;  %v9044_v18 = vld [vmem:[%s16572_s1 + $0x1170] sm:$0xf0]  ;;  %v8791_v27 = vor.u32 %v10661_v6, %v8788_v8  ;;  %v10657_v59 = vld [vmem:[%s16572_s1 + $0xf44] sm:$0xf] }
 0x152   :  { %5544 = vmatpush.bf16.msra.mxu0 %v8823_v9  ;;  %v10693_v9 = vld [vmem:[%s16572_s1 + $0x1064] sm:$0xf]  ;;  %v8772_v13 = vld [vmem:[%s16572_s1 + $0xf50] sm:$0xf0] }
 0x153   :  { %5558 = vmatpush.bf16.msra.mxu1 %v8951_v11  ;;  %v5286_v16 = vadd.f32 %v5285_v63, %v5272_v3  ;;  %v8916_v11 = vld [vmem:[%s16572_s1 + $0x1070] sm:$0xf0]  ;;  %v10689_v2 = vld [vmem:[%s16572_s1 + $0x1044] sm:$0xf] }
 0x154   :  { %5572 = vmatpush.bf16.msra.mxu2 %v9079_v15  ;;  %v10725_v15 = vld [vmem:[%s16572_s1 + $0x1164] sm:$0xf]  ;;  %v8919_v50 = vor.u32 %v10693_v9, %v8916_v11  ;;  %v8900_v63 = vld [vmem:[%s16572_s1 + $0x1050] sm:$0xf0]  ;;  %v8775_v11 = vor.u32 %v10657_v59, %v8772_v13 }
 0x155   :  { %5586 = vmatpush.bf16.msra.mxu3 %v9207_v30  ;;  %v9172_v30 = vld [vmem:[%s16572_s1 + $0x1270] sm:$0xf0]  ;;  %v9047_v53 = vor.u32 %v10725_v15, %v9044_v18  ;;  %v10753_v9 = vld [vmem:[%s16572_s1 + $0x1244] sm:$0xf]  ;;  %v8903_v18 = vor.u32 %v10689_v2, %v8900_v63 }
 0x156   :  { %5545 = vmatpush.bf16.msra.mxu0 %v8807_v0  ;;  %v9175_v3 = vor.u32 %v10757_v62, %v9172_v30  ;;  %v5299_v0 = vpop.f32.mrf.mxu2  ;;  %v8756_v30 = vld [vmem:[%s16572_s1 + $0xf30] sm:$0xf0]  ;;  %v10749_v13 = vld [vmem:[%s16572_s1 + $0x1224] sm:$0xf] }
 0x157   :  { %5559 = vmatpush.bf16.msra.mxu1 %v8935_v29  ;;  %v10721_v29 = vld [vmem:[%s16572_s1 + $0x1144] sm:$0xf]  ;;  %v5300_v6 = vadd.f32 %v5299_v0, %v5286_v16  ;;  %v5313_v8 = vpop.f32.mrf.mxu3  ;;  %v9012_v59 = vld [vmem:[%s16572_s1 + $0x1130] sm:$0xf0] }
 0x158   :  { %5573 = vmatpush.bf16.msra.mxu2 %v9063_v19  ;;  %v9028_v19 = vld [vmem:[%s16572_s1 + $0x1150] sm:$0xf0]  ;;  %v10653_v16 = vld [vmem:[%s16572_s1 + $0xf24] sm:$0xf] }
 0x159   :  { %5587 = vmatpush.bf16.msra.mxu3 %v9191_v24  ;;  %v9156_v24 = vld [vmem:[%s16572_s1 + $0x1250] sm:$0xf0]  ;;  %v13401_v15 = vadd.f32 %v5313_v8, %v5300_v6  ;;  %v9031_v62 = vor.u32 %v10721_v29, %v9028_v19  ;;  %v10685_v0 = vld [vmem:[%s16572_s1 + $0x1024] sm:$0xf] }
 0x15a   :  { %5546 = vmatpush.bf16.msra.mxu0 %v8791_v27  ;;  %v9159_v27 = vor.u32 %v10753_v9, %v9156_v24  ;;  %v9140_v2 = vld [vmem:[%s16572_s1 + $0x1230] sm:$0xf0]  ;;  %v10649_v63 = vld [vmem:[%s16572_s1 + $0xf04] sm:$0xf] }
 0x15b   :  { %5560 = vmatpush.bf16.msra.mxu1 %v8919_v50  ;;  %v8884_v50 = vld [vmem:[%s16572_s1 + $0x1030] sm:$0xf0]  ;;  %v10681_v8 = vld [vmem:[%s16572_s1 + $0x1004] sm:$0xf] }
 0x15c   :  { %5574 = vmatpush.bf16.msra.mxu2 %v9047_v53  ;;  %v10717_v53 = vld [vmem:[%s16572_s1 + $0x1124] sm:$0xf]  ;;  %v8740_v29 = vld [vmem:[%s16572_s1 + $0xf10] sm:$0xf0]  ;;  %v8887_v19 = vor.u32 %v10685_v0, %v8884_v50 }
 0x15d   :  { %5588 = vmatpush.bf16.msra.mxu3 %v9175_v3  ;;  %v8759_v3 = vor.u32 %v10653_v16, %v8756_v30  ;;  %v9015_v6 = vor.u32 %v10717_v53, %v9012_v59  ;;  %v8868_v9 = vld [vmem:[%s16572_s1 + $0x1010] sm:$0xf0]  ;;  %v10713_v24 = vld [vmem:[%s16572_s1 + $0x1104] sm:$0xf]  ;;  %v8743_v50 = vor.u32 %v10649_v63, %v8740_v29 }
 0x15e   :  { %5547 = vmatpush.bf16.msra.mxu0 %v8775_v11  ;;  %v9143_v11 = vor.u32 %v10749_v13, %v9140_v2  ;;  %v9124_v16 = vld [vmem:[%s16572_s1 + $0x1210] sm:$0xf0]  ;;  %v10805_v30 = vld [vmem:[%s16572_s1 + $0x13e4] sm:$0xf]  ;;  %v8871_v2 = vor.u32 %v10681_v8, %v8868_v9 }
 0x15f   :  { %5561 = vmatpush.bf16.msra.mxu1 %v8903_v18  ;;  %v8996_v18 = vld [vmem:[%s16572_s1 + $0x1110] sm:$0xf0]  ;;  %v10869_v59 = vld [vmem:[%s16572_s1 + $0x15e4] sm:$0xf] }
 0x160   :  { %5575 = vmatpush.bf16.msra.mxu2 %v9031_v62  ;;  %v10745_v62 = vld [vmem:[%s16572_s1 + $0x1204] sm:$0xf]  ;;  %v9364_v0 = vld [vmem:[%s16572_s1 + $0x13f0] sm:$0xf0]  ;;  %v8999_v57 = vor.u32 %v10713_v24, %v8996_v18 }
 0x161   :  { %5589 = vmatpush.bf16.msra.mxu3 %v9159_v27  ;;  %v10837_v27 = vld [vmem:[%s16572_s1 + $0x14e4] sm:$0xf]  ;;  %v9492_v53 = vld [vmem:[%s16572_s1 + $0x14f0] sm:$0xf0]  ;;  %v9127_v29 = vor.u32 %v10745_v62, %v9124_v16  ;;  %v9367_v20 = vor.u32 %v10805_v30, %v9364_v0  ;;  %v13493_v62 = vpop.f32.mrf.mxu0 }
 0x162   :  { %5548 = vmatpush.bf16.msra.mxu0 %v8759_v3  ;;  %v9620_v13 = vld [vmem:[%s16572_s1 + $0x15f0] sm:$0xf0]  ;;  %v10901_v3 = vld [vmem:[%s16572_s1 + $0x16e4] sm:$0xf]  ;;  %v9495_v7 = vor.u32 %v10837_v27, %v9492_v53  ;;  %16594 = vst [vmem:[#allocation16_spill] sm:$0xff] %v13493_v62 }
 0x163   :  { %5562 = vmatpush.bf16.msra.mxu1 %v8887_v19  ;;  %v9748_v63 = vld [vmem:[%s16572_s1 + $0x16f0] sm:$0xf0]  ;;  %v9623_v37 = vor.u32 %v10869_v59, %v9620_v13  ;;  %v10801_v19 = vld [vmem:[%s16572_s1 + $0x13c4] sm:$0xf]  ;;  %v13510_v13 = vpop.f32.mrf.mxu1 }
 0x164   :  { %5576 = vmatpush.bf16.msra.mxu2 %v9015_v6  ;;  %v9348_v6 = vld [vmem:[%s16572_s1 + $0x13d0] sm:$0xf0]  ;;  %v10833_v8 = vld [vmem:[%s16572_s1 + $0x14c4] sm:$0xf]  ;;  %v9751_v9 = vor.u32 %v10901_v3, %v9748_v63  ;;  %16595 = vst [vmem:[#allocation17_spill] sm:$0xff] %v13510_v13 }
 0x165   :  { %5590 = vmatpush.bf16.msra.mxu3 %v9143_v11  ;;  %v9476_v24 = vld [vmem:[%s16572_s1 + $0x14d0] sm:$0xf0]  ;;  %v10865_v11 = vld [vmem:[%s16572_s1 + $0x15c4] sm:$0xf]  ;;  %v9351_v0 = vor.u32 %v10801_v19, %v9348_v6 }
 0x166   :  { %5549 = vmatpush.bf16.msra.mxu0 %v8743_v50  ;;  %v9604_v18 = vld [vmem:[%s16572_s1 + $0x15d0] sm:$0xf0]  ;;  %v10897_v16 = vld [vmem:[%s16572_s1 + $0x16c4] sm:$0xf]  ;;  %v9479_v27 = vor.u32 %v10833_v8, %v9476_v24 }
 0x167   :  { %5563 = vmatpush.bf16.msra.mxu1 %v8871_v2  ;;  %v9732_v30 = vld [vmem:[%s16572_s1 + $0x16d0] sm:$0xf0]  ;;  %v9607_v50 = vor.u32 %v10865_v11, %v9604_v18  ;;  %v10797_v53 = vld [vmem:[%s16572_s1 + $0x13a4] sm:$0xf]  ;;  %v13540_v11 = vpop.f32.mrf.mxu2 }
 0x168   :  { %5577 = vmatpush.bf16.msra.mxu2 %v8999_v57  ;;  %v9332_v57 = vld [vmem:[%s16572_s1 + $0x13b0] sm:$0xf0]  ;;  %v10829_v59 = vld [vmem:[%s16572_s1 + $0x14a4] sm:$0xf]  ;;  %16596 = vst [vmem:[#allocation18_spill] sm:$0xff] %v13540_v11 }
 0x169   :  { %5591 = vmatpush.bf16.msra.mxu3 %v9127_v29  ;;  %5550 = vmatmul.bf16.vlgmr.msra.gmra.mxu0 %v11988_v46  ;;  %v9588_v2 = vld [vmem:[%s16572_s1 + $0x15b0] sm:$0xf0]  ;;  %v10893_v3 = vld [vmem:[%s16572_s1 + $0x16a4] sm:$0xf]  ;;  %v9335_v29 = vor.u32 %v10797_v53, %v9332_v57  ;;  %v13560_v57 = vld [vmem:[%s16574_s2] sm:$0xf] }
 0x16a   :  { %5598 = vmatpush.bf16.msrb.mxu0 %v9367_v20  ;;  %v10861_v20 = vld [vmem:[%s16572_s1 + $0x15a4] sm:$0xf]  ;;  %5564 = vmatmul.bf16.vlgmr.msra.gmra.mxu1 %v12195_v51  ;;  %v9716_v63 = vld [vmem:[%s16572_s1 + $0x16b0] sm:$0xf0] }
 0x16b   :  { %5612 = vmatpush.bf16.msrb.mxu1 %v9495_v7  ;;  %v9460_v7 = vld [vmem:[%s16572_s1 + $0x14b0] sm:$0xf0]  ;;  %5578 = vmatmul.bf16.vlgmr.msra.gmra.mxu2 %v12208_v56  ;;  %v9591_v6 = vor.u32 %v10861_v20, %v9588_v2  ;;  %v10793_v8 = vld [vmem:[%s16572_s1 + $0x1384] sm:$0xf]  ;;  %v9719_v18 = vor.u32 %v10893_v3, %v9716_v63 }
 0x16c   :  { %5626 = vmatpush.bf16.msrb.mxu2 %v9623_v37  ;;  %v9735_v37 = vor.u32 %v10897_v16, %v9732_v30  ;;  %5592 = vmatmul.bf16.vlgmr.msra.gmra.mxu3 %v12206_v55  ;;  %v9463_v19 = vor.u32 %v10829_v59, %v9460_v7  ;;  %v10825_v24 = vld [vmem:[%s16572_s1 + $0x1484] sm:$0xf]  ;;  %v9444_v16 = vld [vmem:[%s16572_s1 + $0x1490] sm:$0xf0]  ;;  %v16579_v59 = vperm.slane %v13560_v57, 1 }
 0x16d   :  { %5640 = vmatpush.bf16.msrb.mxu3 %v9751_v9  ;;  %v9316_v9 = vld [vmem:[%s16572_s1 + $0x1390] sm:$0xf0]  ;;  %v10857_v30 = vld [vmem:[%s16572_s1 + $0x1584] sm:$0xf]  ;;  %v9447_v2 = vor.u32 %v10825_v24, %v9444_v16 }
 0x16e   :  { %5599 = vmatpush.bf16.msrb.mxu0 %v9351_v0  ;;  %v9572_v0 = vld [vmem:[%s16572_s1 + $0x1590] sm:$0xf0]  ;;  %v9319_v20 = vor.u32 %v10793_v8, %v9316_v9  ;;  %v10789_v63 = vld [vmem:[%s16572_s1 + $0x1364] sm:$0xf]  ;;  %v5341_v9 = vpop.f32.mrf.mxu1 }
 0x16f   :  { %5613 = vmatpush.bf16.msrb.mxu1 %v9479_v27  ;;  %v5327_v27 = vpop.f32.mrf.mxu0  ;;  %v9700_v53 = vld [vmem:[%s16572_s1 + $0x1690] sm:$0xf0]  ;;  %v9575_v3 = vor.u32 %v10857_v30, %v9572_v0  ;;  %v10885_v24 = vld [vmem:[%s16572_s1 + $0x1664] sm:$0xf]  ;;  %v5342_v16 = vadd.f32 %v5341_v9, %v16579_v59 }
 0x170   :  { %5627 = vmatpush.bf16.msrb.mxu2 %v9607_v50  ;;  %v10889_v50 = vld [vmem:[%s16572_s1 + $0x1684] sm:$0xf]  ;;  %v13566_v7 = vadd.f32 %v5327_v27, %v13401_v15  ;;  %v9300_v11 = vld [vmem:[%s16572_s1 + $0x1370] sm:$0xf0] }
 0x171   :  { %5641 = vmatpush.bf16.msrb.mxu3 %v9735_v37  ;;  %v13563_v37 = vpop.f32.mrf.mxu3  ;;  %v9703_v15 = vor.u32 %v10889_v50, %v9700_v53  ;;  %v9556_v8 = vld [vmem:[%s16572_s1 + $0x1570] sm:$0xf0]  ;;  %v9303_v30 = vor.u32 %v10789_v63, %v9300_v11  ;;  %v10785_v50 = vld [vmem:[%s16572_s1 + $0x1344] sm:$0xf] }
 0x172   :  { %16597 = vst [vmem:[#allocation19_spill] sm:$0xff] %v13563_v37  ;;  %5600 = vmatpush.bf16.msrb.mxu0 %v9335_v29  ;;  %v10821_v29 = vld [vmem:[%s16572_s1 + $0x1464] sm:$0xf]  ;;  %v9284_v53 = vld [vmem:[%s16572_s1 + $0x1350] sm:$0xf0] }
 0x173   :  { %16598 = vst [vmem:[#allocation20_spill] sm:$0xff] %v13566_v7  ;;  %5614 = vmatpush.bf16.msrb.mxu1 %v9463_v19  ;;  %v9428_v19 = vld [vmem:[%s16572_s1 + $0x1470] sm:$0xf0]  ;;  %v10817_v7 = vld [vmem:[%s16572_s1 + $0x1444] sm:$0xf] }
 0x174   :  { %5628 = vmatpush.bf16.msrb.mxu2 %v9591_v6  ;;  %v10853_v6 = vld [vmem:[%s16572_s1 + $0x1564] sm:$0xf]  ;;  %v9431_v0 = vor.u32 %v10821_v29, %v9428_v19  ;;  %v9412_v11 = vld [vmem:[%s16572_s1 + $0x1450] sm:$0xf0]  ;;  %v9287_v19 = vor.u32 %v10785_v50, %v9284_v53 }
 0x175   :  { %5642 = vmatpush.bf16.msrb.mxu3 %v9719_v18  ;;  %v9684_v18 = vld [vmem:[%s16572_s1 + $0x1670] sm:$0xf0]  ;;  %v9559_v27 = vor.u32 %v10853_v6, %v9556_v8  ;;  %v10881_v63 = vld [vmem:[%s16572_s1 + $0x1644] sm:$0xf]  ;;  %v9415_v8 = vor.u32 %v10817_v7, %v9412_v11 }
 0x176   :  { %5601 = vmatpush.bf16.msrb.mxu0 %v9319_v20  ;;  %v9687_v9 = vor.u32 %v10885_v24, %v9684_v18  ;;  %v10849_v20 = vld [vmem:[%s16572_s1 + $0x1544] sm:$0xf]  ;;  %v9668_v29 = vld [vmem:[%s16572_s1 + $0x1650] sm:$0xf0] }
 0x177   :  { %5615 = vmatpush.bf16.msrb.mxu1 %v9447_v2  ;;  %v9540_v2 = vld [vmem:[%s16572_s1 + $0x1550] sm:$0xf0]  ;;  %v10781_v18 = vld [vmem:[%s16572_s1 + $0x1324] sm:$0xf] }
 0x178   :  { %5629 = vmatpush.bf16.msrb.mxu2 %v9575_v3  ;;  %v5355_v3 = vpop.f32.mrf.mxu2  ;;  %v9543_v24 = vor.u32 %v10849_v20, %v9540_v2  ;;  %v9268_v59 = vld [vmem:[%s16572_s1 + $0x1330] sm:$0xf0]  ;;  %v10813_v37 = vld [vmem:[%s16572_s1 + $0x1424] sm:$0xf] }
 0x179   :  { %5643 = vmatpush.bf16.msrb.mxu3 %v9703_v15  ;;  %v5356_v15 = vadd.f32 %v5355_v3, %v5342_v16  ;;  %v5369_v6 = vpop.f32.mrf.mxu3  ;;  %v9396_v7 = vld [vmem:[%s16572_s1 + $0x1430] sm:$0xf0]  ;;  %v10877_v50 = vld [vmem:[%s16572_s1 + $0x1624] sm:$0xf] }
 0x17a   :  { %5602 = vmatpush.bf16.msrb.mxu0 %v9303_v30  ;;  %v9671_v30 = vor.u32 %v10881_v63, %v9668_v29  ;;  %v9652_v53 = vld [vmem:[%s16572_s1 + $0x1630] sm:$0xf0]  ;;  %v10777_v11 = vld [vmem:[%s16572_s1 + $0x1304] sm:$0xf]  ;;  %v9399_v2 = vor.u32 %v10813_v37, %v9396_v7 }
 0x17b   :  { %5616 = vmatpush.bf16.msrb.mxu1 %v9431_v0  ;;  %v13627_v16 = vadd.f32 %v5369_v6, %v5356_v15  ;;  %v10845_v0 = vld [vmem:[%s16572_s1 + $0x1524] sm:$0xf]  ;;  %v9252_v20 = vld [vmem:[%s16572_s1 + $0x1310] sm:$0xf0]  ;;  %v9655_v15 = vor.u32 %v10877_v50, %v9652_v53 }
 0x17c   :  { %5630 = vmatpush.bf16.msrb.mxu2 %v9559_v27  ;;  %v9524_v27 = vld [vmem:[%s16572_s1 + $0x1530] sm:$0xf0]  ;;  %v10809_v63 = vld [vmem:[%s16572_s1 + $0x1404] sm:$0xf] }
 0x17d   :  { %5644 = vmatpush.bf16.msrb.mxu3 %v9687_v9  ;;  %v9271_v9 = vor.u32 %v10781_v18, %v9268_v59  ;;  %v9527_v3 = vor.u32 %v10845_v0, %v9524_v27  ;;  %v9380_v59 = vld [vmem:[%s16572_s1 + $0x1410] sm:$0xf0]  ;;  %v10841_v29 = vld [vmem:[%s16572_s1 + $0x1504] sm:$0xf]  ;;  %v6938_v0 = vld [vmem:[%s16572_s1 + $0xe8] sm:$0xf] }
 0x17e   :  { %5603 = vmatpush.bf16.msrb.mxu0 %v9287_v19  ;;  %v9508_v19 = vld [vmem:[%s16572_s1 + $0x1510] sm:$0xf0]  ;;  %v10873_v37 = vld [vmem:[%s16572_s1 + $0x1604] sm:$0xf]  ;;  %v10200_v27 = vld [vmem:[%s16572_s1 + $0xf4] sm:$0xf0]  ;;  %v9383_v50 = vor.u32 %v10809_v63, %v9380_v59 }
 0x17f   :  { %5617 = vmatpush.bf16.msrb.mxu1 %v9415_v8  ;;  %v9636_v6 = vld [vmem:[%s16572_s1 + $0x1610] sm:$0xf0]  ;;  %v10933_v8 = vld [vmem:[%s16572_s1 + $0x17e4] sm:$0xf]  ;;  %v9511_v53 = vor.u32 %v10841_v29, %v9508_v19  ;;  %v6939_v52 = vor.u32 %v10200_v27, %v6938_v0  ;;  %v10196_v19 = vld [vmem:[%s16572_s1 + $0xd4] sm:$0xf0] }
 0x180   :  { %5631 = vmatpush.bf16.msrb.mxu2 %v9543_v24  ;;  %v9876_v24 = vld [vmem:[%s16572_s1 + $0x17f0] sm:$0xf0]  ;;  %v10965_v18 = vld [vmem:[%s16572_s1 + $0x18e4] sm:$0xf] }
 0x181   :  { %5645 = vmatpush.bf16.msrb.mxu3 %v9671_v30  ;;  %v9255_v30 = vor.u32 %v10777_v11, %v9252_v20  ;;  %v10004_v7 = vld [vmem:[%s16572_s1 + $0x18f0] sm:$0xf0]  ;;  %v10232_v11 = vld [vmem:[%s16572_s1 + $0x1f4] sm:$0xf0]  ;;  %v9639_v20 = vor.u32 %v10873_v37, %v9636_v6  ;;  %v9879_v13 = vor.u32 %v10933_v8, %v9876_v24  ;;  %v10961_v63 = vld [vmem:[%s16572_s1 + $0x18c4] sm:$0xf]  ;;  %v13710_v37 = vpop.f32.mrf.mxu0  ;;  %v13718_v24 = vpop.f32.mrf.mxu1 }
 0x182   :  { %5604 = vmatpush.bf16.msrb.mxu0 %v9271_v9  ;;  %v7066_v9 = vld [vmem:[%s16572_s1 + $0x1e8] sm:$0xf]  ;;  %v10007_v62 = vor.u32 %v10965_v18, %v10004_v7  ;;  %v9988_v29 = vld [vmem:[%s16572_s1 + $0x18d0] sm:$0xf0]  ;;  %16599 = vst [vmem:[#allocation21_spill] sm:$0xff] %v13710_v37 }
 0x183   :  { %5618 = vmatpush.bf16.msrb.mxu1 %v9399_v2  ;;  %v10929_v2 = vld [vmem:[%s16572_s1 + $0x17c4] sm:$0xf]  ;;  %v7067_v59 = vor.u32 %v10232_v11, %v7066_v9  ;;  %v7050_v6 = vld [vmem:[%s16572_s1 + $0x1c8] sm:$0xf]  ;;  %v10228_v8 = vld [vmem:[%s16572_s1 + $0x1d4] sm:$0xf0] }
 0x184   :  { %5632 = vmatpush.bf16.msrb.mxu2 %v9527_v3  ;;  %v9860_v3 = vld [vmem:[%s16572_s1 + $0x17d0] sm:$0xf0]  ;;  %v10925_v0 = vld [vmem:[%s16572_s1 + $0x17a4] sm:$0xf]  ;;  %v7034_v9 = vld [vmem:[%s16572_s1 + $0x1a8] sm:$0xf] }
 0x185   :  { %5646 = vmatpush.bf16.msrb.mxu3 %v9655_v15  ;;  %v6922_v15 = vld [vmem:[%s16572_s1 + $0xc8] sm:$0xf]  ;;  %v9863_v18 = vor.u32 %v10929_v2, %v9860_v3  ;;  %v9844_v27 = vld [vmem:[%s16572_s1 + $0x17b0] sm:$0xf0]  ;;  %v10224_v11 = vld [vmem:[%s16572_s1 + $0x1b4] sm:$0xf0]  ;;  %v13748_v2 = vpop.f32.mrf.mxu2 }
 0x186   :  { %5605 = vmatpush.bf16.msrb.mxu0 %v9255_v30  ;;  %v9991_v30 = vor.u32 %v10961_v63, %v9988_v29  ;;  %v6923_v7 = vor.u32 %v10196_v19, %v6922_v15  ;;  %v9828_v29 = vld [vmem:[%s16572_s1 + $0x1790] sm:$0xf0]  ;;  %v10953_v15 = vld [vmem:[%s16572_s1 + $0x1884] sm:$0xf]  ;;  %v7035_v19 = vor.u32 %v10224_v11, %v7034_v9 }
 0x187   :  { %5619 = vmatpush.bf16.msrb.mxu1 %v9383_v50  ;;  %v10957_v50 = vld [vmem:[%s16572_s1 + $0x18a4] sm:$0xf]  ;;  %v9812_v11 = vld [vmem:[%s16572_s1 + $0x1770] sm:$0xf0] }
 0x188   :  { %5633 = vmatpush.bf16.msrb.mxu2 %v9511_v53  ;;  %v10192_v53 = vld [vmem:[%s16572_s1 + $0xb4] sm:$0xf0]  ;;  %v10917_v9 = vld [vmem:[%s16572_s1 + $0x1764] sm:$0xf] }
 0x189   :  { %5647 = vmatpush.bf16.msrb.mxu3 %v9639_v20  ;;  %5606 = vmatmul.bf16.vlgmr.msrb.gmra.mxu0 %v12216_v60  ;;  %v9847_v20 = vor.u32 %v10925_v0, %v9844_v27  ;;  %v7018_v0 = vld [vmem:[%s16572_s1 + $0x188] sm:$0xf]  ;;  %v10220_v27 = vld [vmem:[%s16572_s1 + $0x194] sm:$0xf0] }
 0x18a   :  { %5654 = vmatpush.bf16.msra.mxu0 %v9879_v13  ;;  %v7051_v13 = vor.u32 %v10228_v8, %v7050_v6  ;;  %5620 = vmatmul.bf16.vlgmr.msrb.gmra.mxu1 %v12435_v26  ;;  %v13759_v6 = vpop.f32.mrf.mxu3  ;;  %v9956_v8 = vld [vmem:[%s16572_s1 + $0x1890] sm:$0xf0] }
 0x18b   :  { %5668 = vmatpush.bf16.msra.mxu1 %v10007_v62  ;;  %v6906_v62 = vld [vmem:[%s16572_s1 + $0xa8] sm:$0xf]  ;;  %5634 = vmatmul.bf16.vlgmr.msrb.gmra.mxu2 %v12448_v34 }
 0x18c   :  { %5682 = vmatpush.bf16.msra.mxu2 %v6939_v52  ;;  %v9972_v52 = vld [vmem:[%s16572_s1 + $0x18b0] sm:$0xf0]  ;;  %5648 = vmatmul.bf16.vlgmr.msrb.gmra.mxu3 %v12446_v33  ;;  %v6907_v63 = vor.u32 %v10192_v53, %v6906_v62  ;;  %v5397_v53 = vpop.f32.mrf.mxu1 }
 0x18d   :  { %5696 = vmatpush.bf16.msra.mxu3 %v7067_v59  ;;  %v9975_v3 = vor.u32 %v10957_v50, %v9972_v52  ;;  %v10921_v59 = vld [vmem:[%s16572_s1 + $0x1784] sm:$0xf]  ;;  %v9959_v52 = vor.u32 %v10953_v15, %v9956_v8  ;;  %v7002_v15 = vld [vmem:[%s16572_s1 + $0x168] sm:$0xf]  ;;  %v9815_v8 = vor.u32 %v10917_v9, %v9812_v11 }
 0x18e   :  { %5655 = vmatpush.bf16.msra.mxu0 %v9863_v18  ;;  %v6890_v18 = vld [vmem:[%s16572_s1 + $0x88] sm:$0xf] }
 0x18f   :  { %5669 = vmatpush.bf16.msra.mxu1 %v9991_v30  ;;  %v10188_v30 = vld [vmem:[%s16572_s1 + $0x94] sm:$0xf0]  ;;  %v6986_v11 = vld [vmem:[%s16572_s1 + $0x148] sm:$0xf] }
 0x190   :  { %5683 = vmatpush.bf16.msra.mxu2 %v6923_v7  ;;  %v5383_v7 = vpop.f32.mrf.mxu0  ;;  %v6891_v62 = vor.u32 %v10188_v30, %v6890_v18 }
 0x191   :  { %5697 = vmatpush.bf16.msra.mxu3 %v7051_v13  ;;  %v5384_v50 = vadd.f32 %v5383_v7, %v13627_v16  ;;  %v9831_v13 = vor.u32 %v10921_v59, %v9828_v29  ;;  %v7019_v16 = vor.u32 %v10220_v27, %v7018_v0  ;;  %v10184_v29 = vld [vmem:[%s16572_s1 + $0x74] sm:$0xf0]  ;;  %v10913_v7 = vld [vmem:[%s16572_s1 + $0x1744] sm:$0xf]  ;;  %v9796_v0 = vld [vmem:[%s16572_s1 + $0x1750] sm:$0xf0] }
 0x192   :  { %5656 = vmatpush.bf16.msra.mxu0 %v9847_v20  ;;  %v10949_v20 = vld [vmem:[%s16572_s1 + $0x1864] sm:$0xf] }
 0x193   :  { %5670 = vmatpush.bf16.msra.mxu1 %v9975_v3  ;;  %v5398_v59 = vadd.f32 %v5397_v53, %v5384_v50  ;;  %v9940_v3 = vld [vmem:[%s16572_s1 + $0x1870] sm:$0xf0]  ;;  %v10945_v27 = vld [vmem:[%s16572_s1 + $0x1844] sm:$0xf]  ;;  %v10180_v53 = vld [vmem:[%s16572_s1 + $0x54] sm:$0xf0] }
 0x194   :  { %5684 = vmatpush.bf16.msra.mxu2 %v6907_v63  ;;  %v6874_v63 = vld [vmem:[%s16572_s1 + $0x68] sm:$0xf]  ;;  %v9943_v18 = vor.u32 %v10949_v20, %v9940_v3  ;;  %v10212_v20 = vld [vmem:[%s16572_s1 + $0x154] sm:$0xf0]  ;;  %v9799_v3 = vor.u32 %v10913_v7, %v9796_v0 }
 0x195   :  { %5698 = vmatpush.bf16.msra.mxu3 %v7035_v19  ;;  %v10216_v19 = vld [vmem:[%s16572_s1 + $0x174] sm:$0xf0]  ;;  %v6875_v30 = vor.u32 %v10184_v29, %v6874_v63  ;;  %v6987_v7 = vor.u32 %v10212_v20, %v6986_v11  ;;  %v10937_v11 = vld [vmem:[%s16572_s1 + $0x1804] sm:$0xf]  ;;  %v9892_v20 = vld [vmem:[%s16572_s1 + $0x1810] sm:$0xf0] }
 0x196   :  { %5657 = vmatpush.bf16.msra.mxu0 %v9831_v13  ;;  %v7003_v50 = vor.u32 %v10216_v19, %v7002_v15  ;;  %v5411_v13 = vpop.f32.mrf.mxu2  ;;  %v9780_v19 = vld [vmem:[%s16572_s1 + $0x1730] sm:$0xf0]  ;;  %v10176_v0 = vld [vmem:[%s16572_s1 + $0x34] sm:$0xf0] }
 0x197   :  { %5671 = vmatpush.bf16.msra.mxu1 %v9959_v52  ;;  %v9924_v52 = vld [vmem:[%s16572_s1 + $0x1850] sm:$0xf0]  ;;  %v5412_v9 = vadd.f32 %v5411_v13, %v5398_v59  ;;  %v10909_v59 = vld [vmem:[%s16572_s1 + $0x1724] sm:$0xf] }
 0x198   :  { %5685 = vmatpush.bf16.msra.mxu2 %v6891_v62  ;;  %v6858_v62 = vld [vmem:[%s16572_s1 + $0x48] sm:$0xf]  ;;  %v9927_v29 = vor.u32 %v10945_v27, %v9924_v52  ;;  %v9783_v13 = vor.u32 %v10909_v59, %v9780_v19  ;;  %v10905_v52 = vld [vmem:[%s16572_s1 + $0x1704] sm:$0xf]  ;;  %v10204_v59 = vld [vmem:[%s16572_s1 + $0x114] sm:$0xf0] }
 0x199   :  { %5699 = vmatpush.bf16.msra.mxu3 %v7019_v16  ;;  %v5425_v16 = vpop.f32.mrf.mxu3  ;;  %v6859_v15 = vor.u32 %v10180_v53, %v6858_v62  ;;  %v6970_v27 = vld [vmem:[%s16572_s1 + $0x128] sm:$0xf]  ;;  %v9764_v62 = vld [vmem:[%s16572_s1 + $0x1710] sm:$0xf0] }
 0x19a   :  { %5658 = vmatpush.bf16.msra.mxu0 %v9815_v8  ;;  %v13825_v63 = vadd.f32 %v5425_v16, %v5412_v9  ;;  %v10941_v8 = vld [vmem:[%s16572_s1 + $0x1824] sm:$0xf]  ;;  %v6826_v16 = vld [vmem:[%s16572_s1 + $0x8] sm:$0xf] }
 0x19b   :  { %5672 = vmatpush.bf16.msra.mxu1 %v9943_v18  ;;  %v9908_v18 = vld [vmem:[%s16572_s1 + $0x1830] sm:$0xf0]  ;;  %v7194_v19 = vld [vmem:[%s16572_s1 + $0x2e8] sm:$0xf] }
 0x19c   :  { %5686 = vmatpush.bf16.msra.mxu2 %v6875_v30  ;;  %v6842_v30 = vld [vmem:[%s16572_s1 + $0x28] sm:$0xf]  ;;  %v9911_v53 = vor.u32 %v10941_v8, %v9908_v18  ;;  %v10264_v8 = vld [vmem:[%s16572_s1 + $0x2f4] sm:$0xf0]  ;;  %v9767_v18 = vor.u32 %v10905_v52, %v9764_v62 }
 0x19d   :  { %5700 = vmatpush.bf16.msra.mxu3 %v7003_v50  ;;  %v10208_v50 = vld [vmem:[%s16572_s1 + $0x134] sm:$0xf0]  ;;  %v6843_v9 = vor.u32 %v10176_v0, %v6842_v30  ;;  %v7450_v0 = vld [vmem:[%s16572_s1 + $0x4e8] sm:$0xf]  ;;  %v7195_v22 = vor.u32 %v10264_v8, %v7194_v19  ;;  %v13925_v8 = vpop.f32.mrf.mxu1 }
 0x19e   :  { %5659 = vmatpush.bf16.msra.mxu0 %v9799_v3  ;;  %v6971_v3 = vor.u32 %v10208_v50, %v6970_v27  ;;  %v10296_v30 = vld [vmem:[%s16572_s1 + $0x3f4] sm:$0xf0]  ;;  %v9895_v50 = vor.u32 %v10937_v11, %v9892_v20  ;;  %v7306_v11 = vld [vmem:[%s16572_s1 + $0x3c8] sm:$0xf] }
 0x19f   :  { %5673 = vmatpush.bf16.msra.mxu1 %v9927_v29  ;;  %v10172_v29 = vld [vmem:[%s16572_s1 + $0x14] sm:$0xf0] }
 0x1a0   :  { %5687 = vmatpush.bf16.msra.mxu2 %v6859_v15  ;;  %v6954_v15 = vld [vmem:[%s16572_s1 + $0x108] sm:$0xf]  ;;  %v10328_v27 = vld [vmem:[%s16572_s1 + $0x4f4] sm:$0xf0]  ;;  %v6827_v37 = vor.u32 %v10172_v29, %v6826_v16 }
 0x1a1   :  { %5701 = vmatpush.bf16.msra.mxu3 %v6987_v7  ;;  %v7322_v7 = vld [vmem:[%s16572_s1 + $0x3e8] sm:$0xf]  ;;  %v10360_v52 = vld [vmem:[%s16572_s1 + $0x5f4] sm:$0xf0]  ;;  %v6955_v62 = vor.u32 %v10204_v59, %v6954_v15  ;;  %v7451_v28 = vor.u32 %v10328_v27, %v7450_v0  ;;  %v13917_v15 = vpop.f32.mrf.mxu0 }
 0x1a2   :  { %5660 = vmatpush.bf16.msra.mxu0 %v9783_v13  ;;  %v7578_v13 = vld [vmem:[%s16572_s1 + $0x5e8] sm:$0xf]  ;;  %v7323_v12 = vor.u32 %v10296_v30, %v7322_v7  ;;  %v10292_v16 = vld [vmem:[%s16572_s1 + $0x3d4] sm:$0xf0] }
 0x1a3   :  { %5674 = vmatpush.bf16.msra.mxu1 %v9911_v53  ;;  %v7178_v53 = vld [vmem:[%s16572_s1 + $0x2c8] sm:$0xf]  ;;  %v7579_v20 = vor.u32 %v10360_v52, %v7578_v13  ;;  %v10324_v29 = vld [vmem:[%s16572_s1 + $0x4d4] sm:$0xf0] }
 0x1a4   :  { %5688 = vmatpush.bf16.msra.mxu2 %v6843_v9  ;;  %v10260_v9 = vld [vmem:[%s16572_s1 + $0x2d4] sm:$0xf0]  ;;  %v7562_v59 = vld [vmem:[%s16572_s1 + $0x5c8] sm:$0xf] }
 0x1a5   :  { %5702 = vmatpush.bf16.msra.mxu3 %v6971_v3  ;;  %v7434_v3 = vld [vmem:[%s16572_s1 + $0x4c8] sm:$0xf]  ;;  %v10356_v19 = vld [vmem:[%s16572_s1 + $0x5d4] sm:$0xf0]  ;;  %v7179_v7 = vor.u32 %v10260_v9, %v7178_v53 }
 0x1a6   :  { %5661 = vmatpush.bf16.msra.mxu0 %v9767_v18  ;;  %v7307_v18 = vor.u32 %v10292_v16, %v7306_v11  ;;  %v7435_v30 = vor.u32 %v10324_v29, %v7434_v3  ;;  %v10256_v0 = vld [vmem:[%s16572_s1 + $0x2b4] sm:$0xf0]  ;;  %v7290_v27 = vld [vmem:[%s16572_s1 + $0x3a8] sm:$0xf]  ;;  %v13964_v3 = vpop.f32.mrf.mxu2 }
 0x1a7   :  { %5675 = vmatpush.bf16.msra.mxu1 %v9895_v50  ;;  %v10320_v50 = vld [vmem:[%s16572_s1 + $0x4b4] sm:$0xf0]  ;;  %v7546_v13 = vld [vmem:[%s16572_s1 + $0x5a8] sm:$0xf] }
 0x1a8   :  { %5689 = vmatpush.bf16.msra.mxu2 %v6827_v37  ;;  %v7162_v37 = vld [vmem:[%s16572_s1 + $0x2a8] sm:$0xf]  ;;  %v10352_v52 = vld [vmem:[%s16572_s1 + $0x5b4] sm:$0xf0] }
 0x1a9   :  { %5703 = vmatpush.bf16.msra.mxu3 %v6955_v62  ;;  %5662 = vmatmul.bf16.vlgmr.msra.gmra.mxu0 %v12458_v48  ;;  %v7163_v62 = vor.u32 %v10256_v0, %v7162_v37  ;;  %v7146_v11 = vld [vmem:[%s16572_s1 + $0x288] sm:$0xf]  ;;  %v7547_v29 = vor.u32 %v10352_v52, %v7546_v13  ;;  %v10348_v0 = vld [vmem:[%s16572_s1 + $0x594] sm:$0xf0] }
 0x1aa   :  { %5710 = vmatpush.bf16.msrb.mxu0 %v7195_v22  ;;  %v7563_v22 = vor.u32 %v10356_v19, %v7562_v59  ;;  %5676 = vmatmul.bf16.vlgmr.msra.gmra.mxu1 %v12654_v49  ;;  %v7274_v16 = vld [vmem:[%s16572_s1 + $0x388] sm:$0xf]  ;;  %v10284_v59 = vld [vmem:[%s16572_s1 + $0x394] sm:$0xf0] }
 0x1ab   :  { %5724 = vmatpush.bf16.msrb.mxu1 %v7323_v12  ;;  %v7418_v12 = vld [vmem:[%s16572_s1 + $0x4a8] sm:$0xf]  ;;  %5690 = vmatmul.bf16.vlgmr.msra.gmra.mxu2 %v11289_v58  ;;  %v10248_v52 = vld [vmem:[%s16572_s1 + $0x274] sm:$0xf0] }
 0x1ac   :  { %5738 = vmatpush.bf16.msrb.mxu2 %v7451_v28  ;;  %v10288_v28 = vld [vmem:[%s16572_s1 + $0x3b4] sm:$0xf0]  ;;  %5704 = vmatmul.bf16.vlgmr.msra.gmra.mxu3 %v11325_v10  ;;  %v7419_v9 = vor.u32 %v10320_v50, %v7418_v12  ;;  %v7402_v19 = vld [vmem:[%s16572_s1 + $0x488] sm:$0xf]  ;;  %v7275_v12 = vor.u32 %v10284_v59, %v7274_v16 }
 0x1ad   :  { %5752 = vmatpush.bf16.msrb.mxu3 %v7579_v20  ;;  %v7291_v53 = vor.u32 %v10288_v28, %v7290_v27  ;;  %v10252_v20 = vld [vmem:[%s16572_s1 + $0x294] sm:$0xf0]  ;;  %v7530_v37 = vld [vmem:[%s16572_s1 + $0x588] sm:$0xf]  ;;  %v5453_v28 = vpop.f32.mrf.mxu1 }
 0x1ae   :  { %5711 = vmatpush.bf16.msrb.mxu0 %v7179_v7  ;;  %v10316_v7 = vld [vmem:[%s16572_s1 + $0x494] sm:$0xf0]  ;;  %v7130_v13 = vld [vmem:[%s16572_s1 + $0x268] sm:$0xf] }
 0x1af   :  { %5725 = vmatpush.bf16.msrb.mxu1 %v7307_v18  ;;  %v13975_v18 = vpop.f32.mrf.mxu3  ;;  %v7403_v50 = vor.u32 %v10316_v7, %v7402_v19  ;;  %v7514_v16 = vld [vmem:[%s16572_s1 + $0x568] sm:$0xf]  ;;  %v7131_v59 = vor.u32 %v10248_v52, %v7130_v13 }
 0x1b0   :  { %5739 = vmatpush.bf16.msrb.mxu2 %v7435_v30  ;;  %16600 = vst [vmem:[#allocation22_spill] sm:$0xff] %v13975_v18  ;;  %v5439_v30 = vpop.f32.mrf.mxu0 }
 0x1b1   :  { %5753 = vmatpush.bf16.msrb.mxu3 %v7563_v22  ;;  %v5440_v27 = vadd.f32 %v5439_v30, %v13825_v63  ;;  %v7147_v22 = vor.u32 %v10252_v20, %v7146_v11  ;;  %v7531_v63 = vor.u32 %v10348_v0, %v7530_v37  ;;  %v10312_v20 = vld [vmem:[%s16572_s1 + $0x474] sm:$0xf0]  ;;  %v7114_v30 = vld [vmem:[%s16572_s1 + $0x248] sm:$0xf] }
 0x1b2   :  { %5712 = vmatpush.bf16.msrb.mxu0 %v7163_v62  ;;  %v7258_v62 = vld [vmem:[%s16572_s1 + $0x368] sm:$0xf]  ;;  %v10244_v37 = vld [vmem:[%s16572_s1 + $0x254] sm:$0xf0] }
 0x1b3   :  { %5726 = vmatpush.bf16.msrb.mxu1 %v7291_v53  ;;  %v5454_v11 = vadd.f32 %v5453_v28, %v5440_v27  ;;  %v10280_v53 = vld [vmem:[%s16572_s1 + $0x374] sm:$0xf0]  ;;  %v7242_v0 = vld [vmem:[%s16572_s1 + $0x348] sm:$0xf] }
 0x1b4   :  { %5740 = vmatpush.bf16.msrb.mxu2 %v7419_v9  ;;  %v7386_v9 = vld [vmem:[%s16572_s1 + $0x468] sm:$0xf]  ;;  %v7259_v19 = vor.u32 %v10280_v53, %v7258_v62  ;;  %v10276_v28 = vld [vmem:[%s16572_s1 + $0x354] sm:$0xf0]  ;;  %v7115_v53 = vor.u32 %v10244_v37, %v7114_v30 }
 0x1b5   :  { %5754 = vmatpush.bf16.msrb.mxu3 %v7547_v29  ;;  %v10344_v29 = vld [vmem:[%s16572_s1 + $0x574] sm:$0xf0]  ;;  %v7387_v7 = vor.u32 %v10312_v20, %v7386_v9  ;;  %v7498_v62 = vld [vmem:[%s16572_s1 + $0x548] sm:$0xf]  ;;  %v7243_v20 = vor.u32 %v10276_v28, %v7242_v0 }
 0x1b6   :  { %5713 = vmatpush.bf16.msrb.mxu0 %v7147_v22  ;;  %v7515_v27 = vor.u32 %v10344_v29, %v7514_v16  ;;  %v5467_v22 = vpop.f32.mrf.mxu2  ;;  %v10240_v29 = vld [vmem:[%s16572_s1 + $0x234] sm:$0xf0]  ;;  %v7482_v37 = vld [vmem:[%s16572_s1 + $0x528] sm:$0xf] }
 0x1b7   :  { %5727 = vmatpush.bf16.msrb.mxu1 %v7275_v12  ;;  %v7370_v12 = vld [vmem:[%s16572_s1 + $0x448] sm:$0xf]  ;;  %v5468_v13 = vadd.f32 %v5467_v22, %v5454_v11  ;;  %v5481_v52 = vpop.f32.mrf.mxu3  ;;  %v10304_v30 = vld [vmem:[%s16572_s1 + $0x434] sm:$0xf0] }
 0x1b8   :  { %5741 = vmatpush.bf16.msrb.mxu2 %v7403_v50  ;;  %v10308_v50 = vld [vmem:[%s16572_s1 + $0x454] sm:$0xf0]  ;;  %v7098_v11 = vld [vmem:[%s16572_s1 + $0x228] sm:$0xf] }
 0x1b9   :  { %5755 = vmatpush.bf16.msrb.mxu3 %v7531_v63  ;;  %v10340_v63 = vld [vmem:[%s16572_s1 + $0x554] sm:$0xf0]  ;;  %v14032_v9 = vadd.f32 %v5481_v52, %v5468_v13  ;;  %v7371_v16 = vor.u32 %v10308_v50, %v7370_v12  ;;  %v7226_v22 = vld [vmem:[%s16572_s1 + $0x328] sm:$0xf] }
 0x1ba   :  { %5714 = vmatpush.bf16.msrb.mxu0 %v7131_v59  ;;  %v7499_v59 = vor.u32 %v10340_v63, %v7498_v62  ;;  %v10336_v0 = vld [vmem:[%s16572_s1 + $0x534] sm:$0xf0]  ;;  %v7082_v28 = vld [vmem:[%s16572_s1 + $0x208] sm:$0xf] }
 0x1bb   :  { %5728 = vmatpush.bf16.msrb.mxu1 %v7259_v19  ;;  %v10272_v19 = vld [vmem:[%s16572_s1 + $0x334] sm:$0xf0]  ;;  %v7210_v52 = vld [vmem:[%s16572_s1 + $0x308] sm:$0xf] }
 0x1bc   :  { %5742 = vmatpush.bf16.msrb.mxu2 %v7387_v7  ;;  %v7354_v7 = vld [vmem:[%s16572_s1 + $0x428] sm:$0xf]  ;;  %v10236_v12 = vld [vmem:[%s16572_s1 + $0x214] sm:$0xf0]  ;;  %v7227_v50 = vor.u32 %v10272_v19, %v7226_v22 }
 0x1bd   :  { %5756 = vmatpush.bf16.msrb.mxu3 %v7515_v27  ;;  %v7099_v27 = vor.u32 %v10240_v29, %v7098_v11  ;;  %v7355_v13 = vor.u32 %v10304_v30, %v7354_v7  ;;  %v10268_v62 = vld [vmem:[%s16572_s1 + $0x314] sm:$0xf0]  ;;  %v7338_v63 = vld [vmem:[%s16572_s1 + $0x408] sm:$0xf]  ;;  %v7083_v19 = vor.u32 %v10236_v12, %v7082_v28 }
 0x1be   :  { %5715 = vmatpush.bf16.msrb.mxu0 %v7115_v53  ;;  %v7483_v53 = vor.u32 %v10336_v0, %v7482_v37  ;;  %v10332_v11 = vld [vmem:[%s16572_s1 + $0x514] sm:$0xf0]  ;;  %v7706_v29 = vld [vmem:[%s16572_s1 + $0x6e8] sm:$0xf]  ;;  %v7211_v0 = vor.u32 %v10268_v62, %v7210_v52 }
 0x1bf   :  { %5729 = vmatpush.bf16.msrb.mxu1 %v7243_v20  ;;  %v10300_v20 = vld [vmem:[%s16572_s1 + $0x414] sm:$0xf0]  ;;  %v7962_v30 = vld [vmem:[%s16572_s1 + $0x8e8] sm:$0xf] }
 0x1c0   :  { %5743 = vmatpush.bf16.msrb.mxu2 %v7371_v16  ;;  %v7466_v16 = vld [vmem:[%s16572_s1 + $0x508] sm:$0xf]  ;;  %v10392_v22 = vld [vmem:[%s16572_s1 + $0x6f4] sm:$0xf0]  ;;  %v7339_v23 = vor.u32 %v10300_v20, %v7338_v63 }
 0x1c1   :  { %5757 = vmatpush.bf16.msrb.mxu3 %v7499_v59  ;;  %v7834_v59 = vld [vmem:[%s16572_s1 + $0x7e8] sm:$0xf]  ;;  %v10424_v7 = vld [vmem:[%s16572_s1 + $0x7f4] sm:$0xf0]  ;;  %v7467_v12 = vor.u32 %v10332_v11, %v7466_v16  ;;  %v7707_v42 = vor.u32 %v10392_v22, %v7706_v29  ;;  %v14124_v16 = vpop.f32.mrf.mxu0  ;;  %v14132_v22 = vpop.f32.mrf.mxu1 }
 0x1c2   :  { %5716 = vmatpush.bf16.msrb.mxu0 %v7099_v27  ;;  %v10456_v37 = vld [vmem:[%s16572_s1 + $0x8f4] sm:$0xf0]  ;;  %v8090_v27 = vld [vmem:[%s16572_s1 + $0x9e8] sm:$0xf]  ;;  %v7835_v18 = vor.u32 %v10424_v7, %v7834_v59  ;;  %16601 = vst [vmem:[#allocation23_spill] sm:$0xff] %v14124_v16 }
 0x1c3   :  { %5730 = vmatpush.bf16.msrb.mxu1 %v7227_v50  ;;  %v10488_v28 = vld [vmem:[%s16572_s1 + $0x9f4] sm:$0xf0]  ;;  %v7963_v25 = vor.u32 %v10456_v37, %v7962_v30  ;;  %v7690_v50 = vld [vmem:[%s16572_s1 + $0x6c8] sm:$0xf]  ;;  %16602 = vst [vmem:[#allocation24_spill] sm:$0xff] %v14132_v22 }
 0x1c4   :  { %5744 = vmatpush.bf16.msrb.mxu2 %v7355_v13  ;;  %v10388_v13 = vld [vmem:[%s16572_s1 + $0x6d4] sm:$0xf0]  ;;  %v7818_v52 = vld [vmem:[%s16572_s1 + $0x7c8] sm:$0xf]  ;;  %v8091_v62 = vor.u32 %v10488_v28, %v8090_v27 }
 0x1c5   :  { %5758 = vmatpush.bf16.msrb.mxu3 %v7483_v53  ;;  %v10420_v63 = vld [vmem:[%s16572_s1 + $0x7d4] sm:$0xf0]  ;;  %v7946_v53 = vld [vmem:[%s16572_s1 + $0x8c8] sm:$0xf]  ;;  %v7691_v59 = vor.u32 %v10388_v13, %v7690_v50 }
 0x1c6   :  { %5717 = vmatpush.bf16.msrb.mxu0 %v7083_v19  ;;  %v10452_v20 = vld [vmem:[%s16572_s1 + $0x8d4] sm:$0xf0]  ;;  %v8074_v11 = vld [vmem:[%s16572_s1 + $0x9c8] sm:$0xf]  ;;  %v7819_v19 = vor.u32 %v10420_v63, %v7818_v52 }
 0x1c7   :  { %5731 = vmatpush.bf16.msrb.mxu1 %v7211_v0  ;;  %v10484_v29 = vld [vmem:[%s16572_s1 + $0x9d4] sm:$0xf0]  ;;  %v7947_v7 = vor.u32 %v10452_v20, %v7946_v53  ;;  %v7802_v37 = vld [vmem:[%s16572_s1 + $0x7a8] sm:$0xf]  ;;  %v14171_v53 = vpop.f32.mrf.mxu2 }
 0x1c8   :  { %5745 = vmatpush.bf16.msrb.mxu2 %v7339_v23  ;;  %v7674_v23 = vld [vmem:[%s16572_s1 + $0x6a8] sm:$0xf]  ;;  %v10384_v30 = vld [vmem:[%s16572_s1 + $0x6b4] sm:$0xf0]  ;;  %16603 = vst [vmem:[#allocation25_spill] sm:$0xff] %v14171_v53 }
 0x1c9   :  { %5759 = vmatpush.bf16.msrb.mxu3 %v7467_v12  ;;  %5718 = vmatmul.bf16.vlgmr.msrb.gmra.mxu0 %v11303_v1  ;;  %v10448_v0 = vld [vmem:[%s16572_s1 + $0x8b4] sm:$0xf0]  ;;  %v8058_v27 = vld [vmem:[%s16572_s1 + $0x9a8] sm:$0xf]  ;;  %v7675_v12 = vor.u32 %v10384_v30, %v7674_v23 }
 0x1ca   :  { %5766 = vmatpush.bf16.msra.mxu0 %v7707_v42  ;;  %v8075_v42 = vor.u32 %v10484_v29, %v8074_v11  ;;  %5732 = vmatmul.bf16.vlgmr.msrb.gmra.mxu1 %v11339_v17  ;;  %v10480_v28 = vld [vmem:[%s16572_s1 + $0x9b4] sm:$0xf0]  ;;  %v7658_v52 = vld [vmem:[%s16572_s1 + $0x688] sm:$0xf] }
 0x1cb   :  { %5780 = vmatpush.bf16.msra.mxu1 %v7835_v18  ;;  %v7930_v18 = vld [vmem:[%s16572_s1 + $0x8a8] sm:$0xf]  ;;  %5746 = vmatmul.bf16.vlgmr.msrb.gmra.mxu2 %v11511_v39  ;;  %v8059_v20 = vor.u32 %v10480_v28, %v8058_v27  ;;  %v10412_v11 = vld [vmem:[%s16572_s1 + $0x794] sm:$0xf0] }
 0x1cc   :  { %5794 = vmatpush.bf16.msra.mxu2 %v7963_v25  ;;  %v10416_v25 = vld [vmem:[%s16572_s1 + $0x7b4] sm:$0xf0]  ;;  %5760 = vmatmul.bf16.vlgmr.msrb.gmra.mxu3 %v11524_v44  ;;  %v7931_v13 = vor.u32 %v10448_v0, %v7930_v18  ;;  %v7786_v63 = vld [vmem:[%s16572_s1 + $0x788] sm:$0xf] }
 0x1cd   :  { %5808 = vmatpush.bf16.msra.mxu3 %v8091_v62  ;;  %v7803_v50 = vor.u32 %v10416_v25, %v7802_v37  ;;  %v10380_v62 = vld [vmem:[%s16572_s1 + $0x694] sm:$0xf0]  ;;  %v7914_v29 = vld [vmem:[%s16572_s1 + $0x888] sm:$0xf]  ;;  %v5509_v25 = vpop.f32.mrf.mxu1  ;;  %v7787_v18 = vor.u32 %v10412_v11, %v7786_v63 }
 0x1ce   :  { %5767 = vmatpush.bf16.msra.mxu0 %v7691_v59  ;;  %v10444_v59 = vld [vmem:[%s16572_s1 + $0x894] sm:$0xf0]  ;;  %v8042_v23 = vld [vmem:[%s16572_s1 + $0x988] sm:$0xf] }
 0x1cf   :  { %5781 = vmatpush.bf16.msra.mxu1 %v7819_v19  ;;  %v14182_v19 = vpop.f32.mrf.mxu3  ;;  %v10476_v30 = vld [vmem:[%s16572_s1 + $0x994] sm:$0xf0]  ;;  %v7915_v0 = vor.u32 %v10444_v59, %v7914_v29  ;;  %v7642_v27 = vld [vmem:[%s16572_s1 + $0x668] sm:$0xf] }
 0x1d0   :  { %5795 = vmatpush.bf16.msra.mxu2 %v7947_v7  ;;  %16604 = vst [vmem:[#allocation26_spill] sm:$0xff] %v14182_v19  ;;  %v5495_v7 = vpop.f32.mrf.mxu0  ;;  %v10376_v28 = vld [vmem:[%s16572_s1 + $0x674] sm:$0xf0]  ;;  %v8026_v63 = vld [vmem:[%s16572_s1 + $0x968] sm:$0xf] }
 0x1d1   :  { %5809 = vmatpush.bf16.msra.mxu3 %v8075_v42  ;;  %v5496_v37 = vadd.f32 %v5495_v7, %v14032_v9  ;;  %v7659_v42 = vor.u32 %v10380_v62, %v7658_v52  ;;  %v8043_v9 = vor.u32 %v10476_v30, %v8042_v23  ;;  %v10440_v62 = vld [vmem:[%s16572_s1 + $0x874] sm:$0xf0]  ;;  %v7643_v11 = vor.u32 %v10376_v28, %v7642_v27  ;;  %v7626_v7 = vld [vmem:[%s16572_s1 + $0x648] sm:$0xf] }
 0x1d2   :  { %5768 = vmatpush.bf16.msra.mxu0 %v7675_v12  ;;  %v7770_v12 = vld [vmem:[%s16572_s1 + $0x768] sm:$0xf]  ;;  %v10372_v23 = vld [vmem:[%s16572_s1 + $0x654] sm:$0xf0] }
 0x1d3   :  { %5782 = vmatpush.bf16.msra.mxu1 %v7803_v50  ;;  %v5510_v52 = vadd.f32 %v5509_v25, %v5496_v37  ;;  %v10408_v50 = vld [vmem:[%s16572_s1 + $0x774] sm:$0xf0]  ;;  %v7754_v30 = vld [vmem:[%s16572_s1 + $0x748] sm:$0xf] }
 0x1d4   :  { %5796 = vmatpush.bf16.msra.mxu2 %v7931_v13  ;;  %v7898_v13 = vld [vmem:[%s16572_s1 + $0x868] sm:$0xf]  ;;  %v7771_v29 = vor.u32 %v10408_v50, %v7770_v12  ;;  %v10404_v25 = vld [vmem:[%s16572_s1 + $0x754] sm:$0xf0]  ;;  %v7627_v50 = vor.u32 %v10372_v23, %v7626_v7 }
 0x1d5   :  { %5810 = vmatpush.bf16.msra.mxu3 %v8059_v20  ;;  %v10472_v20 = vld [vmem:[%s16572_s1 + $0x974] sm:$0xf0]  ;;  %v7899_v59 = vor.u32 %v10440_v62, %v7898_v13  ;;  %v8010_v12 = vld [vmem:[%s16572_s1 + $0x948] sm:$0xf]  ;;  %v7755_v62 = vor.u32 %v10404_v25, %v7754_v30 }
 0x1d6   :  { %5769 = vmatpush.bf16.msra.mxu0 %v7659_v42  ;;  %v8027_v37 = vor.u32 %v10472_v20, %v8026_v63  ;;  %v5523_v42 = vpop.f32.mrf.mxu2  ;;  %v10368_v20 = vld [vmem:[%s16572_s1 + $0x634] sm:$0xf0]  ;;  %v7994_v23 = vld [vmem:[%s16572_s1 + $0x928] sm:$0xf] }
 0x1d7   :  { %5783 = vmatpush.bf16.msra.mxu1 %v7787_v18  ;;  %v7882_v18 = vld [vmem:[%s16572_s1 + $0x848] sm:$0xf]  ;;  %v5524_v27 = vadd.f32 %v5523_v42, %v5510_v52  ;;  %v5537_v28 = vpop.f32.mrf.mxu3  ;;  %v10432_v7 = vld [vmem:[%s16572_s1 + $0x834] sm:$0xf0] }
 0x1d8   :  { %5797 = vmatpush.bf16.msra.mxu2 %v7915_v0  ;;  %v10436_v0 = vld [vmem:[%s16572_s1 + $0x854] sm:$0xf0]  ;;  %v7610_v52 = vld [vmem:[%s16572_s1 + $0x628] sm:$0xf] }
 0x1d9   :  { %5811 = vmatpush.bf16.msra.mxu3 %v8043_v9  ;;  %v10468_v9 = vld [vmem:[%s16572_s1 + $0x954] sm:$0xf0]  ;;  %v14239_v13 = vadd.f32 %v5537_v28, %v5524_v27  ;;  %v7883_v63 = vor.u32 %v10436_v0, %v7882_v18  ;;  %v7738_v42 = vld [vmem:[%s16572_s1 + $0x728] sm:$0xf] }
 0x1da   :  { %5770 = vmatpush.bf16.msra.mxu0 %v7643_v11  ;;  %v8011_v11 = vor.u32 %v10468_v9, %v8010_v12  ;;  %v10464_v30 = vld [vmem:[%s16572_s1 + $0x934] sm:$0xf0]  ;;  %v7594_v25 = vld [vmem:[%s16572_s1 + $0x608] sm:$0xf] }
 0x1db   :  { %5784 = vmatpush.bf16.msra.mxu1 %v7771_v29  ;;  %v10400_v29 = vld [vmem:[%s16572_s1 + $0x734] sm:$0xf0]  ;;  %v7722_v28 = vld [vmem:[%s16572_s1 + $0x708] sm:$0xf] }
 0x1dc   :  { %5798 = vmatpush.bf16.msra.mxu2 %v7899_v59  ;;  %v7866_v59 = vld [vmem:[%s16572_s1 + $0x828] sm:$0xf]  ;;  %v10364_v18 = vld [vmem:[%s16572_s1 + $0x614] sm:$0xf0]  ;;  %v7739_v0 = vor.u32 %v10400_v29, %v7738_v42 }
 0x1dd   :  { %5812 = vmatpush.bf16.msra.mxu3 %v8027_v37  ;;  %v7611_v37 = vor.u32 %v10368_v20, %v7610_v52  ;;  %v7867_v27 = vor.u32 %v10432_v7, %v7866_v59  ;;  %v10396_v12 = vld [vmem:[%s16572_s1 + $0x714] sm:$0xf0]  ;;  %v7850_v9 = vld [vmem:[%s16572_s1 + $0x808] sm:$0xf]  ;;  %v7595_v29 = vor.u32 %v10364_v18, %v7594_v25 }
 0x1de   :  { %5771 = vmatpush.bf16.msra.mxu0 %v7627_v50  ;;  %v7995_v50 = vor.u32 %v10464_v30, %v7994_v23  ;;  %v10460_v52 = vld [vmem:[%s16572_s1 + $0x914] sm:$0xf0]  ;;  %v8218_v20 = vld [vmem:[%s16572_s1 + $0xae8] sm:$0xf]  ;;  %v7723_v30 = vor.u32 %v10396_v12, %v7722_v28 }
 0x1df   :  { %5785 = vmatpush.bf16.msra.mxu1 %v7755_v62  ;;  %v10428_v62 = vld [vmem:[%s16572_s1 + $0x814] sm:$0xf0]  ;;  %v8474_v7 = vld [vmem:[%s16572_s1 + $0xce8] sm:$0xf] }
 0x1e0   :  { %5799 = vmatpush.bf16.msra.mxu2 %v7883_v63  ;;  %v7978_v63 = vld [vmem:[%s16572_s1 + $0x908] sm:$0xf]  ;;  %v10520_v42 = vld [vmem:[%s16572_s1 + $0xaf4] sm:$0xf0]  ;;  %v7851_v19 = vor.u32 %v10428_v62, %v7850_v9 }
 0x1e1   :  { %5813 = vmatpush.bf16.msra.mxu3 %v8011_v11  ;;  %v8346_v11 = vld [vmem:[%s16572_s1 + $0xbe8] sm:$0xf]  ;;  %v10552_v59 = vld [vmem:[%s16572_s1 + $0xbf4] sm:$0xf0]  ;;  %v7979_v18 = vor.u32 %v10460_v52, %v7978_v63  ;;  %v8219_v53 = vor.u32 %v10520_v42, %v8218_v20  ;;  %v14331_v63 = vpop.f32.mrf.mxu0  ;;  %v14339_v42 = vpop.f32.mrf.mxu1 }
 0x1e2   :  { %5772 = vmatpush.bf16.msra.mxu0 %v7611_v37  ;;  %v10584_v23 = vld [vmem:[%s16572_s1 + $0xcf4] sm:$0xf0]  ;;  %v8602_v37 = vld [vmem:[%s16572_s1 + $0xde8] sm:$0xf]  ;;  %v8347_v22 = vor.u32 %v10552_v59, %v8346_v11  ;;  %16605 = vst [vmem:[#allocation27_spill] sm:$0xff] %v14331_v63 }
 0x1e3   :  { %5786 = vmatpush.bf16.msra.mxu1 %v7739_v0  ;;  %v10616_v25 = vld [vmem:[%s16572_s1 + $0xdf4] sm:$0xf0]  ;;  %v8475_v16 = vor.u32 %v10584_v23, %v8474_v7  ;;  %v8202_v0 = vld [vmem:[%s16572_s1 + $0xac8] sm:$0xf]  ;;  %16606 = vst [vmem:[#allocation28_spill] sm:$0xff] %v14339_v42 }
 0x1e4   :  { %5800 = vmatpush.bf16.msra.mxu2 %v7867_v27  ;;  %v10516_v27 = vld [vmem:[%s16572_s1 + $0xad4] sm:$0xf0]  ;;  %v8330_v28 = vld [vmem:[%s16572_s1 + $0xbc8] sm:$0xf]  ;;  %v8603_v12 = vor.u32 %v10616_v25, %v8602_v37 }
 0x1e5   :  { %5814 = vmatpush.bf16.msra.mxu3 %v7995_v50  ;;  %v10548_v9 = vld [vmem:[%s16572_s1 + $0xbd4] sm:$0xf0]  ;;  %v8458_v50 = vld [vmem:[%s16572_s1 + $0xcc8] sm:$0xf]  ;;  %v8203_v11 = vor.u32 %v10516_v27, %v8202_v0 }
 0x1e6   :  { %5773 = vmatpush.bf16.msra.mxu0 %v7595_v29  ;;  %v10580_v62 = vld [vmem:[%s16572_s1 + $0xcd4] sm:$0xf0]  ;;  %v8586_v52 = vld [vmem:[%s16572_s1 + $0xdc8] sm:$0xf]  ;;  %v8331_v29 = vor.u32 %v10548_v9, %v8330_v28 }
 0x1e7   :  { %5787 = vmatpush.bf16.msra.mxu1 %v7723_v30  ;;  %v10612_v20 = vld [vmem:[%s16572_s1 + $0xdd4] sm:$0xf0]  ;;  %v8459_v59 = vor.u32 %v10580_v62, %v8458_v50  ;;  %v8314_v23 = vld [vmem:[%s16572_s1 + $0xba8] sm:$0xf]  ;;  %v14378_v50 = vpop.f32.mrf.mxu2 }
 0x1e8   :  { %5801 = vmatpush.bf16.msra.mxu2 %v7851_v19  ;;  %v8186_v19 = vld [vmem:[%s16572_s1 + $0xaa8] sm:$0xf]  ;;  %v10512_v7 = vld [vmem:[%s16572_s1 + $0xab4] sm:$0xf0]  ;;  %16607 = vst [vmem:[#allocation29_spill] sm:$0xff] %v14378_v50 }
 0x1e9   :  { %5815 = vmatpush.bf16.msra.mxu3 %v7979_v18  ;;  %5774 = vmatmul.bf16.vlgmr.msra.gmra.mxu0 %v11522_v43  ;;  %v10576_v30 = vld [vmem:[%s16572_s1 + $0xcb4] sm:$0xf0]  ;;  %v8570_v37 = vld [vmem:[%s16572_s1 + $0xda8] sm:$0xf]  ;;  %v8187_v18 = vor.u32 %v10512_v7, %v8186_v19 }
 0x1ea   :  { %5822 = vmatpush.bf16.msrb.mxu0 %v8219_v53  ;;  %v8587_v53 = vor.u32 %v10612_v20, %v8586_v52  ;;  %5788 = vmatmul.bf16.vlgmr.msra.gmra.mxu1 %v11532_v47  ;;  %v10608_v25 = vld [vmem:[%s16572_s1 + $0xdb4] sm:$0xf0]  ;;  %v8170_v28 = vld [vmem:[%s16572_s1 + $0xa88] sm:$0xf] }
 0x1eb   :  { %5836 = vmatpush.bf16.msrb.mxu1 %v8347_v22  ;;  %v8442_v22 = vld [vmem:[%s16572_s1 + $0xca8] sm:$0xf]  ;;  %5802 = vmatmul.bf16.vlgmr.msra.gmra.mxu2 %v11739_v31  ;;  %v8571_v62 = vor.u32 %v10608_v25, %v8570_v37  ;;  %v10540_v52 = vld [vmem:[%s16572_s1 + $0xb94] sm:$0xf0] }
 0x1ec   :  { %5850 = vmatpush.bf16.msrb.mxu2 %v8475_v16  ;;  %v10544_v16 = vld [vmem:[%s16572_s1 + $0xbb4] sm:$0xf0]  ;;  %5816 = vmatmul.bf16.vlgmr.msra.gmra.mxu3 %v11752_v36  ;;  %v8443_v27 = vor.u32 %v10576_v30, %v8442_v22  ;;  %v8298_v9 = vld [vmem:[%s16572_s1 + $0xb88] sm:$0xf] }
 0x1ed   :  { %5864 = vmatpush.bf16.msrb.mxu3 %v8603_v12  ;;  %v8315_v0 = vor.u32 %v10544_v16, %v8314_v23  ;;  %v10508_v12 = vld [vmem:[%s16572_s1 + $0xa94] sm:$0xf0]  ;;  %v8426_v20 = vld [vmem:[%s16572_s1 + $0xc88] sm:$0xf]  ;;  %v5565_v16 = vpop.f32.mrf.mxu1  ;;  %v8299_v22 = vor.u32 %v10540_v52, %v8298_v9 }
 0x1ee   :  { %5823 = vmatpush.bf16.msrb.mxu0 %v8203_v11  ;;  %v10572_v11 = vld [vmem:[%s16572_s1 + $0xc94] sm:$0xf0]  ;;  %v8554_v19 = vld [vmem:[%s16572_s1 + $0xd88] sm:$0xf] }
 0x1ef   :  { %5837 = vmatpush.bf16.msrb.mxu1 %v8331_v29  ;;  %v14389_v29 = vpop.f32.mrf.mxu3  ;;  %v10604_v7 = vld [vmem:[%s16572_s1 + $0xd94] sm:$0xf0]  ;;  %v8427_v30 = vor.u32 %v10572_v11, %v8426_v20  ;;  %v8154_v37 = vld [vmem:[%s16572_s1 + $0xa68] sm:$0xf] }
 0x1f0   :  { %5851 = vmatpush.bf16.msrb.mxu2 %v8459_v59  ;;  %16608 = vst [vmem:[#allocation30_spill] sm:$0xff] %v14389_v29  ;;  %v5551_v59 = vpop.f32.mrf.mxu0  ;;  %v10504_v25 = vld [vmem:[%s16572_s1 + $0xa74] sm:$0xf0]  ;;  %v8538_v9 = vld [vmem:[%s16572_s1 + $0xd68] sm:$0xf] }
 0x1f1   :  { %5865 = vmatpush.bf16.msrb.mxu3 %v8587_v53  ;;  %v5552_v23 = vadd.f32 %v5551_v59, %v14239_v13  ;;  %v8171_v53 = vor.u32 %v10508_v12, %v8170_v28  ;;  %v8555_v13 = vor.u32 %v10604_v7, %v8554_v19  ;;  %v10568_v12 = vld [vmem:[%s16572_s1 + $0xc74] sm:$0xf0]  ;;  %v8155_v52 = vor.u32 %v10504_v25, %v8154_v37  ;;  %v8138_v59 = vld [vmem:[%s16572_s1 + $0xa48] sm:$0xf] }
 0x1f2   :  { %5824 = vmatpush.bf16.msrb.mxu0 %v8187_v18  ;;  %v8282_v18 = vld [vmem:[%s16572_s1 + $0xb68] sm:$0xf]  ;;  %v10500_v19 = vld [vmem:[%s16572_s1 + $0xa54] sm:$0xf0] }
 0x1f3   :  { %5838 = vmatpush.bf16.msrb.mxu1 %v8315_v0  ;;  %v5566_v28 = vadd.f32 %v5565_v16, %v5552_v23  ;;  %v10536_v0 = vld [vmem:[%s16572_s1 + $0xb74] sm:$0xf0]  ;;  %v8266_v7 = vld [vmem:[%s16572_s1 + $0xb48] sm:$0xf] }
 0x1f4   :  { %5852 = vmatpush.bf16.msrb.mxu2 %v8443_v27  ;;  %v8410_v27 = vld [vmem:[%s16572_s1 + $0xc68] sm:$0xf]  ;;  %v8283_v20 = vor.u32 %v10536_v0, %v8282_v18  ;;  %v10532_v16 = vld [vmem:[%s16572_s1 + $0xb54] sm:$0xf0]  ;;  %v8139_v0 = vor.u32 %v10500_v19, %v8138_v59 }
 0x1f5   :  { %5866 = vmatpush.bf16.msrb.mxu3 %v8571_v62  ;;  %v10600_v62 = vld [vmem:[%s16572_s1 + $0xd74] sm:$0xf0]  ;;  %v8411_v11 = vor.u32 %v10568_v12, %v8410_v27  ;;  %v8522_v18 = vld [vmem:[%s16572_s1 + $0xd48] sm:$0xf]  ;;  %v8267_v12 = vor.u32 %v10532_v16, %v8266_v7 }
 0x1f6   :  { %5825 = vmatpush.bf16.msrb.mxu0 %v8171_v53  ;;  %v8539_v23 = vor.u32 %v10600_v62, %v8538_v9  ;;  %v5579_v53 = vpop.f32.mrf.mxu2  ;;  %v10496_v62 = vld [vmem:[%s16572_s1 + $0xa34] sm:$0xf0]  ;;  %v8506_v19 = vld [vmem:[%s16572_s1 + $0xd28] sm:$0xf] }
 0x1f7   :  { %5839 = vmatpush.bf16.msrb.mxu1 %v8299_v22  ;;  %v8394_v22 = vld [vmem:[%s16572_s1 + $0xc48] sm:$0xf]  ;;  %v5580_v37 = vadd.f32 %v5579_v53, %v5566_v28  ;;  %v5593_v25 = vpop.f32.mrf.mxu3  ;;  %v10560_v59 = vld [vmem:[%s16572_s1 + $0xc34] sm:$0xf0] }
 0x1f8   :  { %5853 = vmatpush.bf16.msrb.mxu2 %v8427_v30  ;;  %v10564_v30 = vld [vmem:[%s16572_s1 + $0xc54] sm:$0xf0]  ;;  %v8122_v28 = vld [vmem:[%s16572_s1 + $0xa28] sm:$0xf] }
 0x1f9   :  { %5867 = vmatpush.bf16.msrb.mxu3 %v8555_v13  ;;  %v10596_v13 = vld [vmem:[%s16572_s1 + $0xd54] sm:$0xf0]  ;;  %v14446_v27 = vadd.f32 %v5593_v25, %v5580_v37  ;;  %v8395_v9 = vor.u32 %v10564_v30, %v8394_v22  ;;  %v8250_v53 = vld [vmem:[%s16572_s1 + $0xb28] sm:$0xf] }
 0x1fa   :  { %5826 = vmatpush.bf16.msrb.mxu0 %v8155_v52  ;;  %v8523_v52 = vor.u32 %v10596_v13, %v8522_v18  ;;  %v10592_v7 = vld [vmem:[%s16572_s1 + $0xd34] sm:$0xf0]  ;;  %v8106_v16 = vld [vmem:[%s16572_s1 + $0xa08] sm:$0xf] }
 0x1fb   :  { %5840 = vmatpush.bf16.msrb.mxu1 %v8283_v20  ;;  %v10528_v20 = vld [vmem:[%s16572_s1 + $0xb34] sm:$0xf0]  ;;  %v8234_v25 = vld [vmem:[%s16572_s1 + $0xb08] sm:$0xf] }
 0x1fc   :  { %5854 = vmatpush.bf16.msrb.mxu2 %v8411_v11  ;;  %v8378_v11 = vld [vmem:[%s16572_s1 + $0xc28] sm:$0xf]  ;;  %v10492_v22 = vld [vmem:[%s16572_s1 + $0xa14] sm:$0xf0]  ;;  %v8251_v30 = vor.u32 %v10528_v20, %v8250_v53 }
 0x1fd   :  { %5868 = vmatpush.bf16.msrb.mxu3 %v8539_v23  ;;  %v8123_v23 = vor.u32 %v10496_v62, %v8122_v28  ;;  %v8379_v37 = vor.u32 %v10560_v59, %v8378_v11  ;;  %v10524_v18 = vld [vmem:[%s16572_s1 + $0xb14] sm:$0xf0]  ;;  %v8362_v13 = vld [vmem:[%s16572_s1 + $0xc08] sm:$0xf]  ;;  %v8107_v20 = vor.u32 %v10492_v22, %v8106_v16 }
 0x1fe   :  { %5827 = vmatpush.bf16.msrb.mxu0 %v8139_v0  ;;  %v8507_v0 = vor.u32 %v10592_v7, %v8506_v19  ;;  %v10588_v28 = vld [vmem:[%s16572_s1 + $0xd14] sm:$0xf0]  ;;  %v8730_v62 = vld [vmem:[%s16572_s1 + $0xee8] sm:$0xf]  ;;  %v8235_v7 = vor.u32 %v10524_v18, %v8234_v25 }
 0x1ff   :  { %5841 = vmatpush.bf16.msrb.mxu1 %v8267_v12  ;;  %v10556_v12 = vld [vmem:[%s16572_s1 + $0xc14] sm:$0xf0]  ;;  %v8986_v59 = vld [vmem:[%s16572_s1 + $0x10e8] sm:$0xf] }
 0x200   :  { %5855 = vmatpush.bf16.msrb.mxu2 %v8395_v9  ;;  %v8490_v9 = vld [vmem:[%s16572_s1 + $0xd08] sm:$0xf]  ;;  %v10648_v53 = vld [vmem:[%s16572_s1 + $0xef4] sm:$0xf0]  ;;  %v8363_v29 = vor.u32 %v10556_v12, %v8362_v13 }
 0x201   :  { %5869 = vmatpush.bf16.msrb.mxu3 %v8523_v52  ;;  %v8858_v52 = vld [vmem:[%s16572_s1 + $0xfe8] sm:$0xf]  ;;  %v10680_v11 = vld [vmem:[%s16572_s1 + $0xff4] sm:$0xf0]  ;;  %v8491_v22 = vor.u32 %v10588_v28, %v8490_v9  ;;  %v8731_v50 = vor.u32 %v10648_v53, %v8730_v62  ;;  %v14538_v9 = vpop.f32.mrf.mxu0  ;;  %v14546_v53 = vpop.f32.mrf.mxu1 }
 0x202   :  { %5828 = vmatpush.bf16.msrb.mxu0 %v8123_v23  ;;  %v10712_v19 = vld [vmem:[%s16572_s1 + $0x10f4] sm:$0xf0]  ;;  %v9114_v23 = vld [vmem:[%s16572_s1 + $0x11e8] sm:$0xf]  ;;  %v8859_v42 = vor.u32 %v10680_v11, %v8858_v52  ;;  %16609 = vst [vmem:[#allocation31_spill] sm:$0xff] %v14538_v9 }
 0x203   :  { %5842 = vmatpush.bf16.msrb.mxu1 %v8251_v30  ;;  %v10744_v16 = vld [vmem:[%s16572_s1 + $0x11f4] sm:$0xf0]  ;;  %v8987_v63 = vor.u32 %v10712_v19, %v8986_v59  ;;  %v8714_v30 = vld [vmem:[%s16572_s1 + $0xec8] sm:$0xf]  ;;  %16610 = vst [vmem:[#allocation32_spill] sm:$0xff] %v14546_v53 }
 0x204   :  { %5856 = vmatpush.bf16.msrb.mxu2 %v8379_v37  ;;  %v10644_v37 = vld [vmem:[%s16572_s1 + $0xed4] sm:$0xf0]  ;;  %v8842_v25 = vld [vmem:[%s16572_s1 + $0xfc8] sm:$0xf]  ;;  %v9115_v18 = vor.u32 %v10744_v16, %v9114_v23 }
 0x205   :  { %5870 = vmatpush.bf16.msrb.mxu3 %v8507_v0  ;;  %v10676_v13 = vld [vmem:[%s16572_s1 + $0xfd4] sm:$0xf0]  ;;  %v8970_v0 = vld [vmem:[%s16572_s1 + $0x10c8] sm:$0xf]  ;;  %v8715_v52 = vor.u32 %v10644_v37, %v8714_v30 }
 0x206   :  { %5829 = vmatpush.bf16.msrb.mxu0 %v8107_v20  ;;  %v10708_v12 = vld [vmem:[%s16572_s1 + $0x10d4] sm:$0xf0]  ;;  %v9098_v28 = vld [vmem:[%s16572_s1 + $0x11c8] sm:$0xf]  ;;  %v8843_v20 = vor.u32 %v10676_v13, %v8842_v25 }
 0x207   :  { %5843 = vmatpush.bf16.msrb.mxu1 %v8235_v7  ;;  %v10740_v62 = vld [vmem:[%s16572_s1 + $0x11d4] sm:$0xf0]  ;;  %v8971_v11 = vor.u32 %v10708_v12, %v8970_v0  ;;  %v8826_v19 = vld [vmem:[%s16572_s1 + $0xfa8] sm:$0xf]  ;;  %v14585_v0 = vpop.f32.mrf.mxu2 }
 0x208   :  { %5857 = vmatpush.bf16.msrb.mxu2 %v8363_v29  ;;  %v8698_v29 = vld [vmem:[%s16572_s1 + $0xea8] sm:$0xf]  ;;  %v10640_v59 = vld [vmem:[%s16572_s1 + $0xeb4] sm:$0xf0]  ;;  %16611 = vst [vmem:[#allocation33_spill] sm:$0xff] %v14585_v0 }
 0x209   :  { %5871 = vmatpush.bf16.msrb.mxu3 %v8491_v22  ;;  %5830 = vmatmul.bf16.vlgmr.msrb.gmra.mxu0 %v11750_v35  ;;  %v10704_v7 = vld [vmem:[%s16572_s1 + $0x10b4] sm:$0xf0]  ;;  %v9082_v23 = vld [vmem:[%s16572_s1 + $0x11a8] sm:$0xf]  ;;  %v8699_v22 = vor.u32 %v10640_v59, %v8698_v29 }
 0x20a   :  { %5878 = vmatpush.bf16.msra.mxu0 %v8731_v50  ;;  %v9099_v50 = vor.u32 %v10740_v62, %v9098_v28  ;;  %5844 = vmatmul.bf16.vlgmr.msrb.gmra.mxu1 %v11760_v40  ;;  %v10736_v16 = vld [vmem:[%s16572_s1 + $0x11b4] sm:$0xf0]  ;;  %v8682_v25 = vld [vmem:[%s16572_s1 + $0xe88] sm:$0xf] }
 0x20b   :  { %5892 = vmatpush.bf16.msra.mxu1 %v8859_v42  ;;  %v8954_v42 = vld [vmem:[%s16572_s1 + $0x10a8] sm:$0xf]  ;;  %5858 = vmatmul.bf16.vlgmr.msrb.gmra.mxu2 %v11967_v32  ;;  %v9083_v12 = vor.u32 %v10736_v16, %v9082_v23  ;;  %v10668_v28 = vld [vmem:[%s16572_s1 + $0xf94] sm:$0xf0] }
 0x20c   :  { %5906 = vmatpush.bf16.msra.mxu2 %v8987_v63  ;;  %v10672_v63 = vld [vmem:[%s16572_s1 + $0xfb4] sm:$0xf0]  ;;  %5872 = vmatmul.bf16.vlgmr.msrb.gmra.mxu3 %v11980_v41  ;;  %v8955_v37 = vor.u32 %v10704_v7, %v8954_v42  ;;  %v8810_v13 = vld [vmem:[%s16572_s1 + $0xf88] sm:$0xf] }
 0x20d   :  { %5920 = vmatpush.bf16.msra.mxu3 %v9115_v18  ;;  %v8827_v30 = vor.u32 %v10672_v63, %v8826_v19  ;;  %v10636_v18 = vld [vmem:[%s16572_s1 + $0xe94] sm:$0xf0]  ;;  %v8938_v62 = vld [vmem:[%s16572_s1 + $0x1088] sm:$0xf]  ;;  %v5621_v63 = vpop.f32.mrf.mxu1  ;;  %v8811_v42 = vor.u32 %v10668_v28, %v8810_v13 }
 0x20e   :  { %5879 = vmatpush.bf16.msra.mxu0 %v8715_v52  ;;  %v10700_v52 = vld [vmem:[%s16572_s1 + $0x1094] sm:$0xf0]  ;;  %v9066_v29 = vld [vmem:[%s16572_s1 + $0x1188] sm:$0xf] }
 0x20f   :  { %5893 = vmatpush.bf16.msra.mxu1 %v8843_v20  ;;  %v14596_v20 = vpop.f32.mrf.mxu3  ;;  %v10732_v59 = vld [vmem:[%s16572_s1 + $0x1194] sm:$0xf0]  ;;  %v8939_v7 = vor.u32 %v10700_v52, %v8938_v62  ;;  %v8666_v23 = vld [vmem:[%s16572_s1 + $0xe68] sm:$0xf] }
 0x210   :  { %5907 = vmatpush.bf16.msra.mxu2 %v8971_v11  ;;  %16612 = vst [vmem:[#allocation34_spill] sm:$0xff] %v14596_v20  ;;  %v5607_v11 = vpop.f32.mrf.mxu0  ;;  %v10632_v16 = vld [vmem:[%s16572_s1 + $0xe74] sm:$0xf0]  ;;  %v9050_v13 = vld [vmem:[%s16572_s1 + $0x1168] sm:$0xf] }
 0x211   :  { %5921 = vmatpush.bf16.msra.mxu3 %v9099_v50  ;;  %v5608_v19 = vadd.f32 %v5607_v11, %v14446_v27  ;;  %v8683_v50 = vor.u32 %v10636_v18, %v8682_v25  ;;  %v9067_v27 = vor.u32 %v10732_v59, %v9066_v29  ;;  %v10696_v18 = vld [vmem:[%s16572_s1 + $0x1074] sm:$0xf0]  ;;  %v8667_v28 = vor.u32 %v10632_v16, %v8666_v23  ;;  %v8650_v11 = vld [vmem:[%s16572_s1 + $0xe48] sm:$0xf] }
 0x212   :  { %5880 = vmatpush.bf16.msra.mxu0 %v8699_v22  ;;  %v8794_v22 = vld [vmem:[%s16572_s1 + $0xf68] sm:$0xf]  ;;  %v10628_v29 = vld [vmem:[%s16572_s1 + $0xe54] sm:$0xf0] }
 0x213   :  { %5894 = vmatpush.bf16.msra.mxu1 %v8827_v30  ;;  %v5622_v25 = vadd.f32 %v5621_v63, %v5608_v19  ;;  %v10664_v30 = vld [vmem:[%s16572_s1 + $0xf74] sm:$0xf0]  ;;  %v8778_v59 = vld [vmem:[%s16572_s1 + $0xf48] sm:$0xf] }
 0x214   :  { %5908 = vmatpush.bf16.msra.mxu2 %v8955_v37  ;;  %v8922_v37 = vld [vmem:[%s16572_s1 + $0x1068] sm:$0xf]  ;;  %v8795_v62 = vor.u32 %v10664_v30, %v8794_v22  ;;  %v10660_v63 = vld [vmem:[%s16572_s1 + $0xf54] sm:$0xf0]  ;;  %v8651_v30 = vor.u32 %v10628_v29, %v8650_v11 }
 0x215   :  { %5922 = vmatpush.bf16.msra.mxu3 %v9083_v12  ;;  %v10728_v12 = vld [vmem:[%s16572_s1 + $0x1174] sm:$0xf0]  ;;  %v8923_v52 = vor.u32 %v10696_v18, %v8922_v37  ;;  %v9034_v22 = vld [vmem:[%s16572_s1 + $0x1148] sm:$0xf]  ;;  %v8779_v18 = vor.u32 %v10660_v63, %v8778_v59 }
 0x216   :  { %5881 = vmatpush.bf16.msra.mxu0 %v8683_v50  ;;  %v9051_v19 = vor.u32 %v10728_v12, %v9050_v13  ;;  %v5635_v50 = vpop.f32.mrf.mxu2  ;;  %v10624_v12 = vld [vmem:[%s16572_s1 + $0xe34] sm:$0xf0]  ;;  %v9018_v29 = vld [vmem:[%s16572_s1 + $0x1128] sm:$0xf] }
 0x217   :  { %5895 = vmatpush.bf16.msra.mxu1 %v8811_v42  ;;  %v8906_v42 = vld [vmem:[%s16572_s1 + $0x1048] sm:$0xf]  ;;  %v5636_v23 = vadd.f32 %v5635_v50, %v5622_v25  ;;  %v5649_v16 = vpop.f32.mrf.mxu3  ;;  %v10688_v11 = vld [vmem:[%s16572_s1 + $0x1034] sm:$0xf0] }
 0x218   :  { %5909 = vmatpush.bf16.msra.mxu2 %v8939_v7  ;;  %v10692_v7 = vld [vmem:[%s16572_s1 + $0x1054] sm:$0xf0]  ;;  %v8634_v25 = vld [vmem:[%s16572_s1 + $0xe28] sm:$0xf] }
 0x219   :  { %5923 = vmatpush.bf16.msra.mxu3 %v9067_v27  ;;  %v10724_v27 = vld [vmem:[%s16572_s1 + $0x1154] sm:$0xf0]  ;;  %v14653_v37 = vadd.f32 %v5649_v16, %v5636_v23  ;;  %v8907_v13 = vor.u32 %v10692_v7, %v8906_v42  ;;  %v8762_v50 = vld [vmem:[%s16572_s1 + $0xf28] sm:$0xf] }
 0x21a   :  { %5882 = vmatpush.bf16.msra.mxu0 %v8667_v28  ;;  %v9035_v28 = vor.u32 %v10724_v27, %v9034_v22  ;;  %v10720_v59 = vld [vmem:[%s16572_s1 + $0x1134] sm:$0xf0]  ;;  %v8618_v63 = vld [vmem:[%s16572_s1 + $0xe08] sm:$0xf] }
 0x21b   :  { %5896 = vmatpush.bf16.msra.mxu1 %v8795_v62  ;;  %v10656_v62 = vld [vmem:[%s16572_s1 + $0xf34] sm:$0xf0]  ;;  %v8746_v16 = vld [vmem:[%s16572_s1 + $0xf08] sm:$0xf] }
 0x21c   :  { %5910 = vmatpush.bf16.msra.mxu2 %v8923_v52  ;;  %v8890_v52 = vld [vmem:[%s16572_s1 + $0x1028] sm:$0xf]  ;;  %v10620_v42 = vld [vmem:[%s16572_s1 + $0xe14] sm:$0xf0]  ;;  %v8763_v7 = vor.u32 %v10656_v62, %v8762_v50 }
 0x21d   :  { %5924 = vmatpush.bf16.msra.mxu3 %v9051_v19  ;;  %v8635_v19 = vor.u32 %v10624_v12, %v8634_v25  ;;  %v8891_v23 = vor.u32 %v10688_v11, %v8890_v52  ;;  %v10652_v22 = vld [vmem:[%s16572_s1 + $0xf14] sm:$0xf0]  ;;  %v8874_v27 = vld [vmem:[%s16572_s1 + $0x1008] sm:$0xf]  ;;  %v8619_v62 = vor.u32 %v10620_v42, %v8618_v63 }
 0x21e   :  { %5883 = vmatpush.bf16.msra.mxu0 %v8651_v30  ;;  %v9019_v30 = vor.u32 %v10720_v59, %v9018_v29  ;;  %v10716_v25 = vld [vmem:[%s16572_s1 + $0x1114] sm:$0xf0]  ;;  %v9242_v12 = vld [vmem:[%s16572_s1 + $0x12e8] sm:$0xf]  ;;  %v8747_v59 = vor.u32 %v10652_v22, %v8746_v16 }
 0x21f   :  { %5897 = vmatpush.bf16.msra.mxu1 %v8779_v18  ;;  %v10684_v18 = vld [vmem:[%s16572_s1 + $0x1014] sm:$0xf0]  ;;  %v9498_v11 = vld [vmem:[%s16572_s1 + $0x14e8] sm:$0xf] }
 0x220   :  { %5911 = vmatpush.bf16.msra.mxu2 %v8907_v13  ;;  %v9002_v13 = vld [vmem:[%s16572_s1 + $0x1108] sm:$0xf]  ;;  %v10776_v50 = vld [vmem:[%s16572_s1 + $0x12f4] sm:$0xf0]  ;;  %v8875_v20 = vor.u32 %v10684_v18, %v8874_v27 }
 0x221   :  { %5925 = vmatpush.bf16.msra.mxu3 %v9035_v28  ;;  %v9370_v28 = vld [vmem:[%s16572_s1 + $0x13e8] sm:$0xf]  ;;  %v10808_v52 = vld [vmem:[%s16572_s1 + $0x13f4] sm:$0xf0]  ;;  %v9003_v42 = vor.u32 %v10716_v25, %v9002_v13  ;;  %v9243_v0 = vor.u32 %v10776_v50, %v9242_v12  ;;  %v14745_v13 = vpop.f32.mrf.mxu0  ;;  %v14753_v50 = vpop.f32.mrf.mxu1 }
 0x222   :  { %5884 = vmatpush.bf16.msra.mxu0 %v8635_v19  ;;  %v10840_v29 = vld [vmem:[%s16572_s1 + $0x14f4] sm:$0xf0]  ;;  %v9626_v19 = vld [vmem:[%s16572_s1 + $0x15e8] sm:$0xf]  ;;  %v9371_v53 = vor.u32 %v10808_v52, %v9370_v28  ;;  %16613 = vst [vmem:[#allocation35_spill] sm:$0xff] %v14745_v13 }
 0x223   :  { %5898 = vmatpush.bf16.msra.mxu1 %v8763_v7  ;;  %v10872_v63 = vld [vmem:[%s16572_s1 + $0x15f4] sm:$0xf0]  ;;  %v9499_v9 = vor.u32 %v10840_v29, %v9498_v11  ;;  %v9226_v7 = vld [vmem:[%s16572_s1 + $0x12c8] sm:$0xf]  ;;  %16614 = vst [vmem:[#allocation36_spill] sm:$0xff] %v14753_v50 }
 0x224   :  { %5912 = vmatpush.bf16.msra.mxu2 %v8891_v23  ;;  %v10772_v23 = vld [vmem:[%s16572_s1 + $0x12d4] sm:$0xf0]  ;;  %v9354_v16 = vld [vmem:[%s16572_s1 + $0x13c8] sm:$0xf]  ;;  %v9627_v22 = vor.u32 %v10872_v63, %v9626_v19 }
 0x225   :  { %5926 = vmatpush.bf16.msra.mxu3 %v9019_v30  ;;  %v10804_v27 = vld [vmem:[%s16572_s1 + $0x13d4] sm:$0xf0]  ;;  %v9482_v30 = vld [vmem:[%s16572_s1 + $0x14c8] sm:$0xf]  ;;  %v9227_v28 = vor.u32 %v10772_v23, %v9226_v7 }
 0x226   :  { %5885 = vmatpush.bf16.msra.mxu0 %v8619_v62  ;;  %v10836_v18 = vld [vmem:[%s16572_s1 + $0x14d4] sm:$0xf0]  ;;  %v9610_v25 = vld [vmem:[%s16572_s1 + $0x15c8] sm:$0xf]  ;;  %v9355_v62 = vor.u32 %v10804_v27, %v9354_v16 }
 0x227   :  { %5899 = vmatpush.bf16.msra.mxu1 %v8747_v59  ;;  %v10868_v12 = vld [vmem:[%s16572_s1 + $0x15d4] sm:$0xf0]  ;;  %v9483_v52 = vor.u32 %v10836_v18, %v9482_v30  ;;  %v9338_v29 = vld [vmem:[%s16572_s1 + $0x13a8] sm:$0xf] }
 0x228   :  { %5913 = vmatpush.bf16.msra.mxu2 %v8875_v20  ;;  %v9210_v20 = vld [vmem:[%s16572_s1 + $0x12a8] sm:$0xf]  ;;  %v10768_v11 = vld [vmem:[%s16572_s1 + $0x12b4] sm:$0xf0] }
 0x229   :  { %5927 = vmatpush.bf16.msra.mxu3 %v9003_v42  ;;  %5886 = vmatmul.bf16.vlgmr.msra.gmra.mxu0 %v11978_v38  ;;  %v10832_v59 = vld [vmem:[%s16572_s1 + $0x14b4] sm:$0xf0]  ;;  %v9594_v19 = vld [vmem:[%s16572_s1 + $0x15a8] sm:$0xf]  ;;  %v9211_v42 = vor.u32 %v10768_v11, %v9210_v20 }
 0x22a   :  { %5934 = vmatpush.bf16.msrb.mxu0 %v9243_v0  ;;  %v9611_v0 = vor.u32 %v10868_v12, %v9610_v25  ;;  %5900 = vmatmul.bf16.vlgmr.msra.gmra.mxu1 %v11988_v46  ;;  %v10864_v63 = vld [vmem:[%s16572_s1 + $0x15b4] sm:$0xf0]  ;;  %v9194_v16 = vld [vmem:[%s16572_s1 + $0x1288] sm:$0xf] }
 0x22b   :  { %5948 = vmatpush.bf16.msrb.mxu1 %v9371_v53  ;;  %v9466_v53 = vld [vmem:[%s16572_s1 + $0x14a8] sm:$0xf]  ;;  %5914 = vmatmul.bf16.vlgmr.msra.gmra.mxu2 %v12195_v51  ;;  %v9595_v30 = vor.u32 %v10864_v63, %v9594_v19  ;;  %v10796_v18 = vld [vmem:[%s16572_s1 + $0x1394] sm:$0xf0] }
 0x22c   :  { %5962 = vmatpush.bf16.msrb.mxu2 %v9499_v9  ;;  %v10800_v9 = vld [vmem:[%s16572_s1 + $0x13b4] sm:$0xf0]  ;;  %5928 = vmatmul.bf16.vlgmr.msra.gmra.mxu3 %v12208_v56  ;;  %v9467_v23 = vor.u32 %v10832_v59, %v9466_v53  ;;  %v9322_v27 = vld [vmem:[%s16572_s1 + $0x1388] sm:$0xf] }
 0x22d   :  { %5976 = vmatpush.bf16.msrb.mxu3 %v9627_v22  ;;  %v9339_v7 = vor.u32 %v10800_v9, %v9338_v29  ;;  %v10764_v22 = vld [vmem:[%s16572_s1 + $0x1294] sm:$0xf0]  ;;  %v9450_v25 = vld [vmem:[%s16572_s1 + $0x1488] sm:$0xf]  ;;  %v5677_v29 = vpop.f32.mrf.mxu1 }
 0x22e   :  { %5935 = vmatpush.bf16.msrb.mxu0 %v9227_v28  ;;  %v10828_v12 = vld [vmem:[%s16572_s1 + $0x1494] sm:$0xf0]  ;;  %v5663_v28 = vpop.f32.mrf.mxu0  ;;  %v9195_v11 = vor.u32 %v10764_v22, %v9194_v16  ;;  %v9178_v53 = vld [vmem:[%s16572_s1 + $0x1268] sm:$0xf] }
 0x22f   :  { %5949 = vmatpush.bf16.msrb.mxu1 %v9355_v62  ;;  %v9578_v62 = vld [vmem:[%s16572_s1 + $0x1588] sm:$0xf]  ;;  %v5664_v20 = vadd.f32 %v5663_v28, %v14653_v37  ;;  %v9451_v9 = vor.u32 %v10828_v12, %v9450_v25  ;;  %v10760_v59 = vld [vmem:[%s16572_s1 + $0x1274] sm:$0xf0] }
 0x230   :  { %5963 = vmatpush.bf16.msrb.mxu2 %v9483_v52  ;;  %v10860_v52 = vld [vmem:[%s16572_s1 + $0x1594] sm:$0xf0]  ;;  %v9306_v19 = vld [vmem:[%s16572_s1 + $0x1368] sm:$0xf] }
 0x231   :  { %5977 = vmatpush.bf16.msrb.mxu3 %v9611_v0  ;;  %v9323_v0 = vor.u32 %v10796_v18, %v9322_v27  ;;  %v9579_v37 = vor.u32 %v10860_v52, %v9578_v62  ;;  %v14817_v63 = vadd.f32 %v5677_v29, %v5664_v20  ;;  %v9562_v16 = vld [vmem:[%s16572_s1 + $0x1568] sm:$0xf]  ;;  %v10856_v22 = vld [vmem:[%s16572_s1 + $0x1574] sm:$0xf0]  ;;  %v9179_v27 = vor.u32 %v10760_v59, %v9178_v53 }
 0x232   :  { %5936 = vmatpush.bf16.msrb.mxu0 %v9211_v42  ;;  %v10792_v42 = vld [vmem:[%s16572_s1 + $0x1374] sm:$0xf0]  ;;  %v9162_v25 = vld [vmem:[%s16572_s1 + $0x1248] sm:$0xf]  ;;  %v9563_v62 = vor.u32 %v10856_v22, %v9562_v16 }
 0x233   :  { %5950 = vmatpush.bf16.msrb.mxu1 %v9339_v7  ;;  %16615 = vst [vmem:[#allocation37_spill] sm:$0xff] %v14817_v63  ;;  %v9434_v7 = vld [vmem:[%s16572_s1 + $0x1468] sm:$0xf]  ;;  %v10756_v12 = vld [vmem:[%s16572_s1 + $0x1254] sm:$0xf0] }
 0x234   :  { %5964 = vmatpush.bf16.msrb.mxu2 %v9467_v23  ;;  %v10824_v23 = vld [vmem:[%s16572_s1 + $0x1474] sm:$0xf0]  ;;  %v9290_v28 = vld [vmem:[%s16572_s1 + $0x1348] sm:$0xf] }
 0x235   :  { %5978 = vmatpush.bf16.msrb.mxu3 %v9595_v30  ;;  %v9307_v30 = vor.u32 %v10792_v42, %v9306_v19  ;;  %v9435_v18 = vor.u32 %v10824_v23, %v9434_v7  ;;  %v10788_v52 = vld [vmem:[%s16572_s1 + $0x1354] sm:$0xf0]  ;;  %v9418_v20 = vld [vmem:[%s16572_s1 + $0x1448] sm:$0xf] }
 0x236   :  { %5937 = vmatpush.bf16.msrb.mxu0 %v9195_v11  ;;  %v10820_v11 = vld [vmem:[%s16572_s1 + $0x1454] sm:$0xf0]  ;;  %v9546_v29 = vld [vmem:[%s16572_s1 + $0x1548] sm:$0xf]  ;;  %v9291_v53 = vor.u32 %v10788_v52, %v9290_v28 }
 0x237   :  { %5951 = vmatpush.bf16.msrb.mxu1 %v9323_v0  ;;  %v10852_v0 = vld [vmem:[%s16572_s1 + $0x1554] sm:$0xf0]  ;;  %v9419_v59 = vor.u32 %v10820_v11, %v9418_v20  ;;  %v9146_v19 = vld [vmem:[%s16572_s1 + $0x1228] sm:$0xf] }
 0x238   :  { %5965 = vmatpush.bf16.msrb.mxu2 %v9451_v9  ;;  %v9163_v9 = vor.u32 %v10756_v12, %v9162_v25  ;;  %v9274_v42 = vld [vmem:[%s16572_s1 + $0x1328] sm:$0xf]  ;;  %v9547_v7 = vor.u32 %v10852_v0, %v9546_v29  ;;  %v10784_v23 = vld [vmem:[%s16572_s1 + $0x1334] sm:$0xf0] }
 0x239   :  { %5979 = vmatpush.bf16.msrb.mxu3 %v9579_v37  ;;  %v10752_v37 = vld [vmem:[%s16572_s1 + $0x1234] sm:$0xf0]  ;;  %v9402_v16 = vld [vmem:[%s16572_s1 + $0x1428] sm:$0xf]  ;;  %v9275_v28 = vor.u32 %v10784_v23, %v9274_v42 }
 0x23a   :  { %5938 = vmatpush.bf16.msrb.mxu0 %v9179_v27  ;;  %v10816_v22 = vld [vmem:[%s16572_s1 + $0x1434] sm:$0xf0]  ;;  %v9530_v27 = vld [vmem:[%s16572_s1 + $0x1528] sm:$0xf] }
 0x23b   :  { %5952 = vmatpush.bf16.msrb.mxu1 %v9307_v30  ;;  %v10848_v30 = vld [vmem:[%s16572_s1 + $0x1534] sm:$0xf0]  ;;  %v9130_v25 = vld [vmem:[%s16572_s1 + $0x1208] sm:$0xf] }
 0x23c   :  { %5966 = vmatpush.bf16.msrb.mxu2 %v9435_v18  ;;  %v9147_v18 = vor.u32 %v10752_v37, %v9146_v19  ;;  %v10748_v12 = vld [vmem:[%s16572_s1 + $0x1214] sm:$0xf0]  ;;  %v9258_v52 = vld [vmem:[%s16572_s1 + $0x1308] sm:$0xf]  ;;  %v9531_v29 = vor.u32 %v10848_v30, %v9530_v27  ;;  %v10198_v30 = vld [vmem:[%s16572_s1 + $0xec] sm:$0xf] }
 0x23d   :  { %5980 = vmatpush.bf16.msrb.mxu3 %v9563_v62  ;;  %v9403_v62 = vor.u32 %v10816_v22, %v9402_v16  ;;  %v10780_v20 = vld [vmem:[%s16572_s1 + $0x1314] sm:$0xf0]  ;;  %v9386_v11 = vld [vmem:[%s16572_s1 + $0x1408] sm:$0xf]  ;;  %v9131_v42 = vor.u32 %v10748_v12, %v9130_v25 }
 0x23e   :  { %5939 = vmatpush.bf16.msrb.mxu0 %v9163_v9  ;;  %v10812_v0 = vld [vmem:[%s16572_s1 + $0x1414] sm:$0xf0]  ;;  %v9514_v9 = vld [vmem:[%s16572_s1 + $0x1508] sm:$0xf]  ;;  %v9259_v22 = vor.u32 %v10780_v20, %v9258_v52 }
 0x23f   :  { %5953 = vmatpush.bf16.msrb.mxu1 %v9291_v53  ;;  %v10844_v53 = vld [vmem:[%s16572_s1 + $0x1514] sm:$0xf0]  ;;  %v9882_v37 = vld [vmem:[%s16572_s1 + $0x17e8] sm:$0xf]  ;;  %v9387_v27 = vor.u32 %v10812_v0, %v9386_v11 }
 0x240   :  { %5967 = vmatpush.bf16.msrb.mxu2 %v9419_v59  ;;  %v9754_v59 = vld [vmem:[%s16572_s1 + $0x16e8] sm:$0xf]  ;;  %v10904_v19 = vld [vmem:[%s16572_s1 + $0x16f4] sm:$0xf0]  ;;  %v9515_v25 = vor.u32 %v10844_v53, %v9514_v9  ;;  %v10194_v9 = vld [vmem:[%s16572_s1 + $0xcc] sm:$0xf] }
 0x241   :  { %5981 = vmatpush.bf16.msrb.mxu3 %v9547_v7  ;;  %v10936_v7 = vld [vmem:[%s16572_s1 + $0x17f4] sm:$0xf0]  ;;  %v10010_v23 = vld [vmem:[%s16572_s1 + $0x18e8] sm:$0xf]  ;;  %v9755_v12 = vor.u32 %v10904_v19, %v9754_v59  ;;  %v6924_v53 = vld [vmem:[%s16572_s1 + $0xd8] sm:$0xf0] }
 0x242   :  { %5940 = vmatpush.bf16.msrb.mxu0 %v9147_v18  ;;  %v10968_v16 = vld [vmem:[%s16572_s1 + $0x18f4] sm:$0xf0]  ;;  %v6940_v18 = vld [vmem:[%s16572_s1 + $0xf8] sm:$0xf0]  ;;  %v9883_v63 = vor.u32 %v10936_v7, %v9882_v37  ;;  %v9866_v52 = vld [vmem:[%s16572_s1 + $0x17c8] sm:$0xf] }
 0x243   :  { %5954 = vmatpush.bf16.msrb.mxu1 %v9275_v28  ;;  %v10011_v50 = vor.u32 %v10968_v16, %v10010_v23  ;;  %v9738_v28 = vld [vmem:[%s16572_s1 + $0x16c8] sm:$0xf]  ;;  %v6943_v20 = vor.u32 %v10198_v30, %v6940_v18  ;;  %v10932_v11 = vld [vmem:[%s16572_s1 + $0x17d4] sm:$0xf0]  ;;  %v6927_v16 = vor.u32 %v10194_v9, %v6924_v53  ;;  %v6908_v30 = vld [vmem:[%s16572_s1 + $0xb8] sm:$0xf0] }
 0x244   :  { %5968 = vmatpush.bf16.msrb.mxu2 %v9403_v62  ;;  %v10900_v62 = vld [vmem:[%s16572_s1 + $0x16d4] sm:$0xf0]  ;;  %v9867_v19 = vor.u32 %v10932_v11, %v9866_v52  ;;  %v9850_v23 = vld [vmem:[%s16572_s1 + $0x17a8] sm:$0xf]  ;;  %v10186_v9 = vld [vmem:[%s16572_s1 + $0x8c] sm:$0xf] }
 0x245   :  { %5982 = vmatpush.bf16.msrb.mxu3 %v9531_v29  ;;  %v9994_v29 = vld [vmem:[%s16572_s1 + $0x18c8] sm:$0xf]  ;;  %v10964_v0 = vld [vmem:[%s16572_s1 + $0x18d4] sm:$0xf0]  ;;  %v9739_v59 = vor.u32 %v10900_v62, %v9738_v28  ;;  %v6892_v53 = vld [vmem:[%s16572_s1 + $0x98] sm:$0xf0] }
 0x246   :  { %5941 = vmatpush.bf16.msrb.mxu0 %v9131_v42  ;;  %v9995_v37 = vor.u32 %v10964_v0, %v9994_v29  ;;  %v9722_v42 = vld [vmem:[%s16572_s1 + $0x16a8] sm:$0xf]  ;;  %v10896_v7 = vld [vmem:[%s16572_s1 + $0x16b4] sm:$0xf0] }
 0x247   :  { %5955 = vmatpush.bf16.msrb.mxu1 %v9259_v22  ;;  %v10960_v22 = vld [vmem:[%s16572_s1 + $0x18b4] sm:$0xf0]  ;;  %v9723_v18 = vor.u32 %v10896_v7, %v9722_v42  ;;  %v9706_v28 = vld [vmem:[%s16572_s1 + $0x1688] sm:$0xf] }
 0x248   :  { %5969 = vmatpush.bf16.msrb.mxu2 %v9387_v27  ;;  %v10190_v27 = vld [vmem:[%s16572_s1 + $0xac] sm:$0xf]  ;;  %v10892_v62 = vld [vmem:[%s16572_s1 + $0x1694] sm:$0xf0]  ;;  %v9834_v52 = vld [vmem:[%s16572_s1 + $0x1788] sm:$0xf] }
 0x249   :  { %5983 = vmatpush.bf16.msrb.mxu3 %v9515_v25  ;;  %5942 = vmatmul.bf16.vlgmr.msrb.gmra.mxu0 %v12206_v55  ;;  %v10924_v11 = vld [vmem:[%s16572_s1 + $0x1794] sm:$0xf0]  ;;  %v9962_v29 = vld [vmem:[%s16572_s1 + $0x1888] sm:$0xf] }
 0x24a   :  { %5990 = vmatpush.bf16.msra.mxu0 %v9755_v12  ;;  %5956 = vmatmul.bf16.vlgmr.msrb.gmra.mxu1 %v12216_v60  ;;  %v10956_v0 = vld [vmem:[%s16572_s1 + $0x1894] sm:$0xf0]  ;;  %v9690_v42 = vld [vmem:[%s16572_s1 + $0x1668] sm:$0xf] }
 0x24b   :  { %6004 = vmatpush.bf16.msra.mxu1 %v9883_v63  ;;  %v9978_v63 = vld [vmem:[%s16572_s1 + $0x18a8] sm:$0xf]  ;;  %5970 = vmatmul.bf16.vlgmr.msrb.gmra.mxu2 %v12435_v26  ;;  %v10888_v7 = vld [vmem:[%s16572_s1 + $0x1674] sm:$0xf0] }
 0x24c   :  { %6018 = vmatpush.bf16.msra.mxu2 %v10011_v50  ;;  %v10928_v50 = vld [vmem:[%s16572_s1 + $0x17b4] sm:$0xf0]  ;;  %5984 = vmatmul.bf16.vlgmr.msrb.gmra.mxu3 %v12448_v34  ;;  %v9979_v12 = vor.u32 %v10960_v22, %v9978_v63  ;;  %v9946_v63 = vld [vmem:[%s16572_s1 + $0x1868] sm:$0xf] }
 0x24d   :  { %6032 = vmatpush.bf16.msra.mxu3 %v6943_v20  ;;  %v9851_v25 = vor.u32 %v10928_v50, %v9850_v23  ;;  %v6911_v20 = vor.u32 %v10190_v27, %v6908_v30  ;;  %v9818_v23 = vld [vmem:[%s16572_s1 + $0x1768] sm:$0xf]  ;;  %v10920_v50 = vld [vmem:[%s16572_s1 + $0x1774] sm:$0xf0]  ;;  %v10182_v27 = vld [vmem:[%s16572_s1 + $0x6c] sm:$0xf] }
 0x24e   :  { %5991 = vmatpush.bf16.msra.mxu0 %v9739_v59  ;;  %v9707_v59 = vor.u32 %v10892_v62, %v9706_v28  ;;  %v10952_v22 = vld [vmem:[%s16572_s1 + $0x1874] sm:$0xf0]  ;;  %v6876_v30 = vld [vmem:[%s16572_s1 + $0x78] sm:$0xf0]  ;;  %v9674_v28 = vld [vmem:[%s16572_s1 + $0x1648] sm:$0xf] }
 0x24f   :  { %6005 = vmatpush.bf16.msra.mxu1 %v9867_v19  ;;  %v9835_v19 = vor.u32 %v10924_v11, %v9834_v52  ;;  %v10884_v62 = vld [vmem:[%s16572_s1 + $0x1654] sm:$0xf0]  ;;  %v9802_v52 = vld [vmem:[%s16572_s1 + $0x1748] sm:$0xf] }
 0x250   :  { %6019 = vmatpush.bf16.msra.mxu2 %v9995_v37  ;;  %v9963_v37 = vor.u32 %v10956_v0, %v9962_v29  ;;  %v10916_v11 = vld [vmem:[%s16572_s1 + $0x1754] sm:$0xf0]  ;;  %v9930_v29 = vld [vmem:[%s16572_s1 + $0x1848] sm:$0xf] }
 0x251   :  { %6033 = vmatpush.bf16.msra.mxu3 %v6927_v16  ;;  %v6895_v16 = vor.u32 %v10186_v9, %v6892_v53  ;;  %v10948_v0 = vld [vmem:[%s16572_s1 + $0x1854] sm:$0xf0]  ;;  %v10178_v9 = vld [vmem:[%s16572_s1 + $0x4c] sm:$0xf]  ;;  %v6860_v53 = vld [vmem:[%s16572_s1 + $0x58] sm:$0xf0] }
 0x252   :  { %5992 = vmatpush.bf16.msra.mxu0 %v9723_v18  ;;  %v9691_v18 = vor.u32 %v10888_v7, %v9690_v42  ;;  %v9658_v42 = vld [vmem:[%s16572_s1 + $0x1628] sm:$0xf]  ;;  %v10880_v7 = vld [vmem:[%s16572_s1 + $0x1634] sm:$0xf0] }
 0x253   :  { %6006 = vmatpush.bf16.msra.mxu1 %v9851_v25  ;;  %v9819_v25 = vor.u32 %v10920_v50, %v9818_v23  ;;  %v9786_v23 = vld [vmem:[%s16572_s1 + $0x1728] sm:$0xf]  ;;  %v10912_v50 = vld [vmem:[%s16572_s1 + $0x1734] sm:$0xf0] }
 0x254   :  { %6020 = vmatpush.bf16.msra.mxu2 %v9979_v12  ;;  %v9947_v12 = vor.u32 %v10952_v22, %v9946_v63  ;;  %v9914_v63 = vld [vmem:[%s16572_s1 + $0x1828] sm:$0xf]  ;;  %v10944_v22 = vld [vmem:[%s16572_s1 + $0x1834] sm:$0xf0] }
 0x255   :  { %6034 = vmatpush.bf16.msra.mxu3 %v6911_v20  ;;  %v6879_v20 = vor.u32 %v10182_v27, %v6876_v30  ;;  %v10174_v27 = vld [vmem:[%s16572_s1 + $0x2c] sm:$0xf]  ;;  %v6844_v30 = vld [vmem:[%s16572_s1 + $0x38] sm:$0xf0] }
 0x256   :  { %5993 = vmatpush.bf16.msra.mxu0 %v9707_v59  ;;  %v9675_v59 = vor.u32 %v10884_v62, %v9674_v28  ;;  %v9787_v28 = vor.u32 %v10912_v50, %v9786_v23  ;;  %v9915_v62 = vor.u32 %v10944_v22, %v9914_v63  ;;  %v10294_v23 = vld [vmem:[%s16572_s1 + $0x3ec] sm:$0xf] }
 0x257   :  { %6007 = vmatpush.bf16.msra.mxu1 %v9835_v19  ;;  %v9803_v19 = vor.u32 %v10916_v11, %v9802_v52  ;;  %v9770_v52 = vld [vmem:[%s16572_s1 + $0x1708] sm:$0xf]  ;;  %v10326_v22 = vld [vmem:[%s16572_s1 + $0x4ec] sm:$0xf] }
 0x258   :  { %6021 = vmatpush.bf16.msra.mxu2 %v9963_v37  ;;  %v9931_v37 = vor.u32 %v10948_v0, %v9930_v29  ;;  %v9898_v11 = vld [vmem:[%s16572_s1 + $0x1808] sm:$0xf]  ;;  %v6847_v29 = vor.u32 %v10174_v27, %v6844_v30  ;;  %v10940_v0 = vld [vmem:[%s16572_s1 + $0x1814] sm:$0xf0]  ;;  %v7452_v27 = vld [vmem:[%s16572_s1 + $0x4f8] sm:$0xf0] }
 0x259   :  { %6035 = vmatpush.bf16.msra.mxu3 %v6895_v16  ;;  %v6863_v16 = vor.u32 %v10178_v9, %v6860_v53  ;;  %v10170_v9 = vld [vmem:[%s16572_s1 + $0xc] sm:$0xf]  ;;  %v6828_v53 = vld [vmem:[%s16572_s1 + $0x18] sm:$0xf0]  ;;  %v9899_v63 = vor.u32 %v10940_v0, %v9898_v11 }
 0x25a   :  { %5994 = vmatpush.bf16.msra.mxu0 %v9691_v18  ;;  %v9659_v18 = vor.u32 %v10880_v7, %v9658_v42  ;;  %v7196_v7 = vld [vmem:[%s16572_s1 + $0x2f8] sm:$0xf0]  ;;  %v6831_v30 = vor.u32 %v10170_v9, %v6828_v53  ;;  %v10322_v9 = vld [vmem:[%s16572_s1 + $0x4cc] sm:$0xf] }
 0x25b   :  { %6008 = vmatpush.bf16.msra.mxu1 %v9819_v25  ;;  %v9642_v25 = vld [vmem:[%s16572_s1 + $0x1608] sm:$0xf]  ;;  %v7180_v11 = vld [vmem:[%s16572_s1 + $0x2d8] sm:$0xf0] }
 0x25c   :  { %6022 = vmatpush.bf16.msra.mxu2 %v9947_v12  ;;  %v10876_v12 = vld [vmem:[%s16572_s1 + $0x1614] sm:$0xf0]  ;;  %v7308_v0 = vld [vmem:[%s16572_s1 + $0x3d8] sm:$0xf0] }
 0x25d   :  { %6036 = vmatpush.bf16.msra.mxu3 %v6879_v20  ;;  %v10908_v20 = vld [vmem:[%s16572_s1 + $0x1714] sm:$0xf0]  ;;  %v9643_v42 = vor.u32 %v10876_v12, %v9642_v25  ;;  %v7436_v53 = vld [vmem:[%s16572_s1 + $0x4d8] sm:$0xf0] }
 0x25e   :  { %5995 = vmatpush.bf16.msra.mxu0 %v9675_v59  ;;  %v10230_v59 = vld [vmem:[%s16572_s1 + $0x1ec] sm:$0xf]  ;;  %v9771_v50 = vor.u32 %v10908_v20, %v9770_v52  ;;  %v7455_v20 = vor.u32 %v10326_v22, %v7452_v27  ;;  %v7292_v22 = vld [vmem:[%s16572_s1 + $0x3b8] sm:$0xf0] }
 0x25f   :  { %6009 = vmatpush.bf16.msra.mxu1 %v9803_v19  ;;  %v7068_v19 = vld [vmem:[%s16572_s1 + $0x1f8] sm:$0xf0]  ;;  %v10258_v52 = vld [vmem:[%s16572_s1 + $0x2cc] sm:$0xf] }
 0x260   :  { %6023 = vmatpush.bf16.msra.mxu2 %v9931_v37  ;;  %v10262_v37 = vld [vmem:[%s16572_s1 + $0x2ec] sm:$0xf] }
 0x261   :  { %6037 = vmatpush.bf16.msra.mxu3 %v6863_v16  ;;  %v7324_v16 = vld [vmem:[%s16572_s1 + $0x3f8] sm:$0xf0]  ;;  %v7199_v25 = vor.u32 %v10262_v37, %v7196_v7  ;;  %v10318_v27 = vld [vmem:[%s16572_s1 + $0x4ac] sm:$0xf] }
 0x262   :  { %5996 = vmatpush.bf16.msra.mxu0 %v9659_v18  ;;  %v7071_v18 = vor.u32 %v10230_v59, %v7068_v19  ;;  %v7327_v12 = vor.u32 %v10294_v23, %v7324_v16  ;;  %v7183_v19 = vor.u32 %v10258_v52, %v7180_v11  ;;  %v7036_v7 = vld [vmem:[%s16572_s1 + $0x1b8] sm:$0xf0]  ;;  %v10254_v23 = vld [vmem:[%s16572_s1 + $0x2ac] sm:$0xf]  ;;  %v7439_v16 = vor.u32 %v10322_v9, %v7436_v53 }
 0x263   :  { %6010 = vmatpush.bf16.msra.mxu1 %v9787_v28  ;;  %v10226_v28 = vld [vmem:[%s16572_s1 + $0x1cc] sm:$0xf]  ;;  %v7404_v9 = vld [vmem:[%s16572_s1 + $0x498] sm:$0xf0] }
 0x264   :  { %6024 = vmatpush.bf16.msra.mxu2 %v9915_v62  ;;  %v7052_v62 = vld [vmem:[%s16572_s1 + $0x1d8] sm:$0xf0]  ;;  %v10250_v52 = vld [vmem:[%s16572_s1 + $0x28c] sm:$0xf] }
 0x265   :  { %6038 = vmatpush.bf16.msra.mxu3 %v6847_v29  ;;  %v10290_v29 = vld [vmem:[%s16572_s1 + $0x3cc] sm:$0xf]  ;;  %v7055_v59 = vor.u32 %v10226_v28, %v7052_v62  ;;  %v7020_v62 = vld [vmem:[%s16572_s1 + $0x198] sm:$0xf0] }
 0x266   :  { %5997 = vmatpush.bf16.msra.mxu0 %v9643_v42  ;;  %v7311_v37 = vor.u32 %v10290_v29, %v7308_v0  ;;  %v10222_v42 = vld [vmem:[%s16572_s1 + $0x1ac] sm:$0xf]  ;;  %v7276_v29 = vld [vmem:[%s16572_s1 + $0x398] sm:$0xf0] }
 0x267   :  { %6011 = vmatpush.bf16.msra.mxu1 %v9771_v50  ;;  %v7164_v50 = vld [vmem:[%s16572_s1 + $0x2b8] sm:$0xf0]  ;;  %v10218_v28 = vld [vmem:[%s16572_s1 + $0x18c] sm:$0xf] }
 0x268   :  { %6025 = vmatpush.bf16.msra.mxu2 %v9899_v63  ;;  %v10286_v63 = vld [vmem:[%s16572_s1 + $0x3ac] sm:$0xf]  ;;  %v7023_v53 = vor.u32 %v10218_v28, %v7020_v62  ;;  %v6988_v28 = vld [vmem:[%s16572_s1 + $0x158] sm:$0xf0] }
 0x269   :  { %6039 = vmatpush.bf16.msra.mxu3 %v6831_v30  ;;  %5998 = vmatmul.bf16.vlgmr.msra.gmra.mxu0 %v12446_v33  ;;  %v7420_v30 = vld [vmem:[%s16572_s1 + $0x4b8] sm:$0xf0]  ;;  %v10282_v11 = vld [vmem:[%s16572_s1 + $0x38c] sm:$0xf] }
 0x26a   :  { %6046 = vmatpush.bf16.msrb.mxu0 %v7071_v18  ;;  %6012 = vmatmul.bf16.vlgmr.msra.gmra.mxu1 %v12458_v48  ;;  %v7039_v18 = vor.u32 %v10222_v42, %v7036_v7  ;;  %v10314_v0 = vld [vmem:[%s16572_s1 + $0x48c] sm:$0xf]  ;;  %v7004_v42 = vld [vmem:[%s16572_s1 + $0x178] sm:$0xf0] }
 0x26b   :  { %6060 = vmatpush.bf16.msrb.mxu1 %v7199_v25  ;;  %6026 = vmatmul.bf16.vlgmr.msra.gmra.mxu2 %v12654_v49  ;;  %v7167_v25 = vor.u32 %v10254_v23, %v7164_v50  ;;  %v10246_v7 = vld [vmem:[%s16572_s1 + $0x26c] sm:$0xf]  ;;  %v7407_v23 = vor.u32 %v10314_v0, %v7404_v9  ;;  %v7372_v0 = vld [vmem:[%s16572_s1 + $0x458] sm:$0xf0] }
 0x26c   :  { %6074 = vmatpush.bf16.msrb.mxu2 %v7327_v12  ;;  %6040 = vmatmul.bf16.vlgmr.msra.gmra.mxu3 %v11289_v58  ;;  %v7295_v12 = vor.u32 %v10286_v63, %v7292_v22  ;;  %v7148_v58 = vld [vmem:[%s16572_s1 + $0x298] sm:$0xf0]  ;;  %v10278_v50 = vld [vmem:[%s16572_s1 + $0x36c] sm:$0xf] }
 0x26d   :  { %6088 = vmatpush.bf16.msrb.mxu3 %v7455_v20  ;;  %v7423_v20 = vor.u32 %v10318_v27, %v7420_v30  ;;  %v7260_v63 = vld [vmem:[%s16572_s1 + $0x378] sm:$0xf0]  ;;  %v10310_v22 = vld [vmem:[%s16572_s1 + $0x46c] sm:$0xf] }
 0x26e   :  { %6047 = vmatpush.bf16.msrb.mxu0 %v7055_v59  ;;  %v7151_v59 = vor.u32 %v10250_v52, %v7148_v58  ;;  %v7388_v27 = vld [vmem:[%s16572_s1 + $0x478] sm:$0xf0]  ;;  %v10242_v62 = vld [vmem:[%s16572_s1 + $0x24c] sm:$0xf] }
 0x26f   :  { %6061 = vmatpush.bf16.msrb.mxu1 %v7183_v19  ;;  %v7279_v19 = vor.u32 %v10282_v11, %v7276_v29  ;;  %v7391_v52 = vor.u32 %v10310_v22, %v7388_v27  ;;  %v10274_v58 = vld [vmem:[%s16572_s1 + $0x34c] sm:$0xf]  ;;  %v7244_v11 = vld [vmem:[%s16572_s1 + $0x358] sm:$0xf0] }
 0x270   :  { %6075 = vmatpush.bf16.msrb.mxu2 %v7311_v37  ;;  %v10214_v37 = vld [vmem:[%s16572_s1 + $0x16c] sm:$0xf]  ;;  %v7356_v22 = vld [vmem:[%s16572_s1 + $0x438] sm:$0xf0] }
 0x271   :  { %6089 = vmatpush.bf16.msrb.mxu3 %v7439_v16  ;;  %v7132_v16 = vld [vmem:[%s16572_s1 + $0x278] sm:$0xf0]  ;;  %v7007_v30 = vor.u32 %v10214_v37, %v7004_v42  ;;  %v10306_v29 = vld [vmem:[%s16572_s1 + $0x44c] sm:$0xf] }
 0x272   :  { %6048 = vmatpush.bf16.msrb.mxu0 %v7039_v18  ;;  %v7135_v18 = vor.u32 %v10246_v7, %v7132_v16  ;;  %v6972_v37 = vld [vmem:[%s16572_s1 + $0x138] sm:$0xf0]  ;;  %v10238_v42 = vld [vmem:[%s16572_s1 + $0x22c] sm:$0xf]  ;;  %v7375_v7 = vor.u32 %v10306_v29, %v7372_v0 }
 0x273   :  { %6062 = vmatpush.bf16.msrb.mxu1 %v7167_v25  ;;  %v7263_v25 = vor.u32 %v10278_v50, %v7260_v63  ;;  %v10270_v16 = vld [vmem:[%s16572_s1 + $0x32c] sm:$0xf]  ;;  %v7228_v50 = vld [vmem:[%s16572_s1 + $0x338] sm:$0xf0] }
 0x274   :  { %6076 = vmatpush.bf16.msrb.mxu2 %v7295_v12  ;;  %v10210_v12 = vld [vmem:[%s16572_s1 + $0x14c] sm:$0xf]  ;;  %v7340_v29 = vld [vmem:[%s16572_s1 + $0x418] sm:$0xf0] }
 0x275   :  { %6090 = vmatpush.bf16.msrb.mxu3 %v7423_v20  ;;  %v7116_v20 = vld [vmem:[%s16572_s1 + $0x258] sm:$0xf0]  ;;  %v6991_v9 = vor.u32 %v10210_v12, %v6988_v28  ;;  %v10302_v63 = vld [vmem:[%s16572_s1 + $0x42c] sm:$0xf]  ;;  %v7231_v12 = vor.u32 %v10270_v16, %v7228_v50 }
 0x276   :  { %6049 = vmatpush.bf16.msrb.mxu0 %v7023_v53  ;;  %v7119_v53 = vor.u32 %v10242_v62, %v7116_v20  ;;  %v10234_v28 = vld [vmem:[%s16572_s1 + $0x20c] sm:$0xf]  ;;  %v7084_v62 = vld [vmem:[%s16572_s1 + $0x218] sm:$0xf0]  ;;  %v7359_v20 = vor.u32 %v10302_v63, %v7356_v22 }
 0x277   :  { %6063 = vmatpush.bf16.msrb.mxu1 %v7151_v59  ;;  %v7247_v59 = vor.u32 %v10274_v58, %v7244_v11  ;;  %v7212_v58 = vld [vmem:[%s16572_s1 + $0x318] sm:$0xf0]  ;;  %v10298_v11 = vld [vmem:[%s16572_s1 + $0x40c] sm:$0xf] }
 0x278   :  { %6077 = vmatpush.bf16.msrb.mxu2 %v7279_v19  ;;  %v10206_v19 = vld [vmem:[%s16572_s1 + $0x12c] sm:$0xf]  ;;  %v7964_v50 = vld [vmem:[%s16572_s1 + $0x8f8] sm:$0xf0]  ;;  %v7343_v63 = vor.u32 %v10298_v11, %v7340_v29 }
 0x279   :  { %6091 = vmatpush.bf16.msrb.mxu3 %v7407_v23  ;;  %v7100_v23 = vld [vmem:[%s16572_s1 + $0x238] sm:$0xf0]  ;;  %v6975_v27 = vor.u32 %v10206_v19, %v6972_v37  ;;  %v10358_v0 = vld [vmem:[%s16572_s1 + $0x5ec] sm:$0xf] }
 0x27a   :  { %6050 = vmatpush.bf16.msrb.mxu0 %v7007_v30  ;;  %v10202_v30 = vld [vmem:[%s16572_s1 + $0x10c] sm:$0xf]  ;;  %v7708_v19 = vld [vmem:[%s16572_s1 + $0x6f8] sm:$0xf0] }
 0x27b   :  { %6064 = vmatpush.bf16.msrb.mxu1 %v7135_v18  ;;  %v6956_v18 = vld [vmem:[%s16572_s1 + $0x118] sm:$0xf0]  ;;  %v10422_v37 = vld [vmem:[%s16572_s1 + $0x7ec] sm:$0xf] }
 0x27c   :  { %6078 = vmatpush.bf16.msrb.mxu2 %v7263_v25  ;;  %v7103_v25 = vor.u32 %v10238_v42, %v7100_v23  ;;  %v7836_v42 = vld [vmem:[%s16572_s1 + $0x7f8] sm:$0xf0]  ;;  %v10454_v16 = vld [vmem:[%s16572_s1 + $0x8ec] sm:$0xf] }
 0x27d   :  { %6092 = vmatpush.bf16.msrb.mxu3 %v7391_v52  ;;  %v10266_v52 = vld [vmem:[%s16572_s1 + $0x30c] sm:$0xf]  ;;  %v7948_v11 = vld [vmem:[%s16572_s1 + $0x8d8] sm:$0xf0] }
 0x27e   :  { %6051 = vmatpush.bf16.msrb.mxu0 %v6991_v9  ;;  %v7580_v9 = vld [vmem:[%s16572_s1 + $0x5f8] sm:$0xf0]  ;;  %v7215_v23 = vor.u32 %v10266_v52, %v7212_v58  ;;  %v10418_v52 = vld [vmem:[%s16572_s1 + $0x7cc] sm:$0xf] }
 0x27f   :  { %6065 = vmatpush.bf16.msrb.mxu1 %v7119_v53  ;;  %v10390_v53 = vld [vmem:[%s16572_s1 + $0x6ec] sm:$0xf]  ;;  %v7583_v22 = vor.u32 %v10358_v0, %v7580_v9 }
 0x280   :  { %6079 = vmatpush.bf16.msrb.mxu2 %v7247_v59  ;;  %v6959_v59 = vor.u32 %v10202_v30, %v6956_v18  ;;  %v7839_v30 = vor.u32 %v10422_v37, %v7836_v42  ;;  %v10354_v18 = vld [vmem:[%s16572_s1 + $0x5cc] sm:$0xf]  ;;  %v7676_v42 = vld [vmem:[%s16572_s1 + $0x6b8] sm:$0xf0] }
 0x281   :  { %6093 = vmatpush.bf16.msrb.mxu3 %v7375_v7  ;;  %v7087_v7 = vor.u32 %v10234_v28, %v7084_v62  ;;  %v7967_v28 = vor.u32 %v10454_v16, %v7964_v50  ;;  %v7692_v62 = vld [vmem:[%s16572_s1 + $0x6d8] sm:$0xf0]  ;;  %v10450_v58 = vld [vmem:[%s16572_s1 + $0x8cc] sm:$0xf] }
 0x282   :  { %6052 = vmatpush.bf16.msrb.mxu0 %v6975_v27  ;;  %v7711_v27 = vor.u32 %v10390_v53, %v7708_v19  ;;  %v10350_v53 = vld [vmem:[%s16572_s1 + $0x5ac] sm:$0xf]  ;;  %v7951_v37 = vor.u32 %v10450_v58, %v7948_v11  ;;  %v7932_v16 = vld [vmem:[%s16572_s1 + $0x8b8] sm:$0xf0] }
 0x283   :  { %6066 = vmatpush.bf16.msrb.mxu1 %v7103_v25  ;;  %v7564_v25 = vld [vmem:[%s16572_s1 + $0x5d8] sm:$0xf0]  ;;  %v10382_v19 = vld [vmem:[%s16572_s1 + $0x6ac] sm:$0xf] }
 0x284   :  { %6080 = vmatpush.bf16.msrb.mxu2 %v7231_v12  ;;  %v10386_v12 = vld [vmem:[%s16572_s1 + $0x6cc] sm:$0xf]  ;;  %v7567_v29 = vor.u32 %v10354_v18, %v7564_v25  ;;  %v7788_v25 = vld [vmem:[%s16572_s1 + $0x798] sm:$0xf0] }
 0x285   :  { %6094 = vmatpush.bf16.msrb.mxu3 %v7359_v20  ;;  %v7820_v20 = vld [vmem:[%s16572_s1 + $0x7d8] sm:$0xf0]  ;;  %v7695_v0 = vor.u32 %v10386_v12, %v7692_v62  ;;  %v10410_v18 = vld [vmem:[%s16572_s1 + $0x78c] sm:$0xf] }
 0x286   :  { %6053 = vmatpush.bf16.msrb.mxu0 %v6959_v59  ;;  %v7823_v9 = vor.u32 %v10418_v52, %v7820_v20  ;;  %v7548_v59 = vld [vmem:[%s16572_s1 + $0x5b8] sm:$0xf0]  ;;  %v10442_v12 = vld [vmem:[%s16572_s1 + $0x88c] sm:$0xf]  ;;  %v7791_v20 = vor.u32 %v10410_v18, %v7788_v25 }
 0x287   :  { %6067 = vmatpush.bf16.msrb.mxu1 %v7087_v7  ;;  %v10414_v7 = vld [vmem:[%s16572_s1 + $0x7ac] sm:$0xf]  ;;  %v7551_v50 = vor.u32 %v10350_v53, %v7548_v59  ;;  %v7516_v11 = vld [vmem:[%s16572_s1 + $0x578] sm:$0xf0] }
 0x288   :  { %6081 = vmatpush.bf16.msrb.mxu2 %v7215_v23  ;;  %v7804_v23 = vld [vmem:[%s16572_s1 + $0x7b8] sm:$0xf0]  ;;  %v10342_v58 = vld [vmem:[%s16572_s1 + $0x56c] sm:$0xf] }
 0x289   :  { %6095 = vmatpush.bf16.msrb.mxu3 %v7343_v63  ;;  %6054 = vmatmul.bf16.vlgmr.msrb.gmra.mxu0 %v11325_v10  ;;  %v10446_v10 = vld [vmem:[%s16572_s1 + $0x8ac] sm:$0xf]  ;;  %v7679_v63 = vor.u32 %v10382_v19, %v7676_v42  ;;  %v7772_v59 = vld [vmem:[%s16572_s1 + $0x778] sm:$0xf0]  ;;  %v7519_v42 = vor.u32 %v10342_v58, %v7516_v11 }
 0x28a   :  { %6102 = vmatpush.bf16.msra.mxu0 %v7583_v22  ;;  %6068 = vmatmul.bf16.vlgmr.msrb.gmra.mxu1 %v11303_v1  ;;  %v7807_v22 = vor.u32 %v10414_v7, %v7804_v23  ;;  %v10346_v1 = vld [vmem:[%s16572_s1 + $0x58c] sm:$0xf]  ;;  %v7740_v11 = vld [vmem:[%s16572_s1 + $0x738] sm:$0xf0] }
 0x28b   :  { %6116 = vmatpush.bf16.msra.mxu1 %v7711_v27  ;;  %6082 = vmatmul.bf16.vlgmr.msrb.gmra.mxu2 %v11339_v17  ;;  %v7532_v17 = vld [vmem:[%s16572_s1 + $0x598] sm:$0xf0]  ;;  %v10378_v27 = vld [vmem:[%s16572_s1 + $0x68c] sm:$0xf] }
 0x28c   :  { %6130 = vmatpush.bf16.msra.mxu2 %v7839_v30  ;;  %6096 = vmatmul.bf16.vlgmr.msrb.gmra.mxu3 %v11511_v39  ;;  %v7935_v39 = vor.u32 %v10446_v10, %v7932_v16  ;;  %v7660_v30 = vld [vmem:[%s16572_s1 + $0x698] sm:$0xf0]  ;;  %v7535_v62 = vor.u32 %v10346_v1, %v7532_v17  ;;  %v10406_v53 = vld [vmem:[%s16572_s1 + $0x76c] sm:$0xf] }
 0x28d   :  { %6144 = vmatpush.bf16.msra.mxu3 %v7967_v28  ;;  %v7916_v28 = vld [vmem:[%s16572_s1 + $0x898] sm:$0xf0]  ;;  %v7663_v52 = vor.u32 %v10378_v27, %v7660_v30  ;;  %v10438_v19 = vld [vmem:[%s16572_s1 + $0x86c] sm:$0xf]  ;;  %v7775_v23 = vor.u32 %v10406_v53, %v7772_v59 }
 0x28e   :  { %6103 = vmatpush.bf16.msra.mxu0 %v7567_v29  ;;  %v10374_v29 = vld [vmem:[%s16572_s1 + $0x66c] sm:$0xf]  ;;  %v7500_v16 = vld [vmem:[%s16572_s1 + $0x558] sm:$0xf0] }
 0x28f   :  { %6117 = vmatpush.bf16.msra.mxu1 %v7695_v0  ;;  %v7919_v0 = vor.u32 %v10442_v12, %v7916_v28  ;;  %v10338_v10 = vld [vmem:[%s16572_s1 + $0x54c] sm:$0xf]  ;;  %v7756_v17 = vld [vmem:[%s16572_s1 + $0x758] sm:$0xf0] }
 0x290   :  { %6131 = vmatpush.bf16.msra.mxu2 %v7823_v9  ;;  %v7644_v9 = vld [vmem:[%s16572_s1 + $0x678] sm:$0xf0]  ;;  %v10402_v1 = vld [vmem:[%s16572_s1 + $0x74c] sm:$0xf]  ;;  %v7503_v30 = vor.u32 %v10338_v10, %v7500_v16 }
 0x291   :  { %6145 = vmatpush.bf16.msra.mxu3 %v7951_v37  ;;  %v7900_v37 = vld [vmem:[%s16572_s1 + $0x878] sm:$0xf0]  ;;  %v7647_v7 = vor.u32 %v10374_v29, %v7644_v9  ;;  %v10434_v27 = vld [vmem:[%s16572_s1 + $0x84c] sm:$0xf]  ;;  %v7759_v25 = vor.u32 %v10402_v1, %v7756_v17 }
 0x292   :  { %6104 = vmatpush.bf16.msra.mxu0 %v7551_v50  ;;  %v10370_v50 = vld [vmem:[%s16572_s1 + $0x64c] sm:$0xf]  ;;  %v7484_v28 = vld [vmem:[%s16572_s1 + $0x538] sm:$0xf0] }
 0x293   :  { %6118 = vmatpush.bf16.msra.mxu1 %v7679_v63  ;;  %v7903_v63 = vor.u32 %v10438_v19, %v7900_v37  ;;  %v10334_v12 = vld [vmem:[%s16572_s1 + $0x52c] sm:$0xf]  ;;  %v7468_v59 = vld [vmem:[%s16572_s1 + $0x518] sm:$0xf0] }
 0x294   :  { %6132 = vmatpush.bf16.msra.mxu2 %v7807_v22  ;;  %v7628_v22 = vld [vmem:[%s16572_s1 + $0x658] sm:$0xf0]  ;;  %v10398_v58 = vld [vmem:[%s16572_s1 + $0x72c] sm:$0xf]  ;;  %v7487_v9 = vor.u32 %v10334_v12, %v7484_v28 }
 0x295   :  { %6146 = vmatpush.bf16.msra.mxu3 %v7935_v39  ;;  %v7884_v39 = vld [vmem:[%s16572_s1 + $0x858] sm:$0xf0]  ;;  %v7631_v18 = vor.u32 %v10370_v50, %v7628_v22  ;;  %v10430_v29 = vld [vmem:[%s16572_s1 + $0x82c] sm:$0xf]  ;;  %v7743_v37 = vor.u32 %v10398_v58, %v7740_v11 }
 0x296   :  { %6105 = vmatpush.bf16.msra.mxu0 %v7535_v62  ;;  %v10366_v62 = vld [vmem:[%s16572_s1 + $0x62c] sm:$0xf]  ;;  %v7724_v16 = vld [vmem:[%s16572_s1 + $0x718] sm:$0xf0] }
 0x297   :  { %6119 = vmatpush.bf16.msra.mxu1 %v7663_v52  ;;  %v7887_v52 = vor.u32 %v10434_v27, %v7884_v39  ;;  %v10330_v53 = vld [vmem:[%s16572_s1 + $0x50c] sm:$0xf]  ;;  %v8092_v1 = vld [vmem:[%s16572_s1 + $0x9f8] sm:$0xf0] }
 0x298   :  { %6133 = vmatpush.bf16.msra.mxu2 %v7791_v20  ;;  %v7612_v20 = vld [vmem:[%s16572_s1 + $0x638] sm:$0xf0]  ;;  %v10426_v50 = vld [vmem:[%s16572_s1 + $0x80c] sm:$0xf]  ;;  %v7471_v27 = vor.u32 %v10330_v53, %v7468_v59 }
 0x299   :  { %6147 = vmatpush.bf16.msra.mxu3 %v7919_v0  ;;  %v7868_v0 = vld [vmem:[%s16572_s1 + $0x838] sm:$0xf0]  ;;  %v7615_v19 = vor.u32 %v10366_v62, %v7612_v20  ;;  %v10486_v22 = vld [vmem:[%s16572_s1 + $0x9ec] sm:$0xf] }
 0x29a   :  { %6106 = vmatpush.bf16.msra.mxu0 %v7519_v42  ;;  %v10362_v42 = vld [vmem:[%s16572_s1 + $0x60c] sm:$0xf]  ;;  %v7871_v10 = vor.u32 %v10430_v29, %v7868_v0  ;;  %v8220_v39 = vld [vmem:[%s16572_s1 + $0xaf8] sm:$0xf0]  ;;  %v8095_v20 = vor.u32 %v10486_v22, %v8092_v1 }
 0x29b   :  { %6120 = vmatpush.bf16.msra.mxu1 %v7647_v7  ;;  %v7596_v7 = vld [vmem:[%s16572_s1 + $0x618] sm:$0xf0]  ;;  %v10518_v17 = vld [vmem:[%s16572_s1 + $0xaec] sm:$0xf] }
 0x29c   :  { %6134 = vmatpush.bf16.msra.mxu2 %v7775_v23  ;;  %v10394_v23 = vld [vmem:[%s16572_s1 + $0x70c] sm:$0xf]  ;;  %v8476_v62 = vld [vmem:[%s16572_s1 + $0xcf8] sm:$0xf0]  ;;  %v8223_v58 = vor.u32 %v10518_v17, %v8220_v39 }
 0x29d   :  { %6148 = vmatpush.bf16.msra.mxu3 %v7903_v63  ;;  %v7852_v63 = vld [vmem:[%s16572_s1 + $0x818] sm:$0xf0]  ;;  %v7727_v12 = vor.u32 %v10394_v23, %v7724_v16  ;;  %v10582_v28 = vld [vmem:[%s16572_s1 + $0xcec] sm:$0xf] }
 0x29e   :  { %6107 = vmatpush.bf16.msra.mxu0 %v7503_v30  ;;  %v10550_v30 = vld [vmem:[%s16572_s1 + $0xbec] sm:$0xf]  ;;  %v8076_v0 = vld [vmem:[%s16572_s1 + $0x9d8] sm:$0xf0]  ;;  %v8479_v53 = vor.u32 %v10582_v28, %v8476_v62 }
 0x29f   :  { %6121 = vmatpush.bf16.msra.mxu1 %v7631_v18  ;;  %v8348_v18 = vld [vmem:[%s16572_s1 + $0xbf8] sm:$0xf0]  ;;  %v10482_v29 = vld [vmem:[%s16572_s1 + $0x9cc] sm:$0xf] }
 0x2a0   :  { %6135 = vmatpush.bf16.msra.mxu2 %v7759_v25  ;;  %v7599_v25 = vor.u32 %v10362_v42, %v7596_v7  ;;  %v8351_v11 = vor.u32 %v10550_v30, %v8348_v18  ;;  %v8204_v59 = vld [vmem:[%s16572_s1 + $0xad8] sm:$0xf0]  ;;  %v10578_v42 = vld [vmem:[%s16572_s1 + $0xccc] sm:$0xf]  ;;  %v8079_v23 = vor.u32 %v10482_v29, %v8076_v0 }
 0x2a1   :  { %6149 = vmatpush.bf16.msra.mxu3 %v7887_v52  ;;  %v7855_v52 = vor.u32 %v10426_v50, %v7852_v63  ;;  %v8460_v7 = vld [vmem:[%s16572_s1 + $0xcd8] sm:$0xf0]  ;;  %v10478_v50 = vld [vmem:[%s16572_s1 + $0x9ac] sm:$0xf] }
 0x2a2   :  { %6108 = vmatpush.bf16.msra.mxu0 %v7487_v9  ;;  %v10514_v9 = vld [vmem:[%s16572_s1 + $0xacc] sm:$0xf]  ;;  %v8060_v63 = vld [vmem:[%s16572_s1 + $0x9b8] sm:$0xf0]  ;;  %v8463_v1 = vor.u32 %v10578_v42, %v8460_v7 }
 0x2a3   :  { %6122 = vmatpush.bf16.msra.mxu1 %v7615_v19  ;;  %v10546_v19 = vld [vmem:[%s16572_s1 + $0xbcc] sm:$0xf]  ;;  %v8188_v17 = vld [vmem:[%s16572_s1 + $0xab8] sm:$0xf0]  ;;  %v8063_v18 = vor.u32 %v10478_v50, %v8060_v63 }
 0x2a4   :  { %6136 = vmatpush.bf16.msra.mxu2 %v7743_v37  ;;  %v8332_v37 = vld [vmem:[%s16572_s1 + $0xbd8] sm:$0xf0]  ;;  %v10510_v22 = vld [vmem:[%s16572_s1 + $0xaac] sm:$0xf] }
 0x2a5   :  { %6150 = vmatpush.bf16.msra.mxu3 %v7871_v10  ;;  %v8207_v10 = vor.u32 %v10514_v9, %v8204_v59  ;;  %v8335_v16 = vor.u32 %v10546_v19, %v8332_v37  ;;  %v8316_v39 = vld [vmem:[%s16572_s1 + $0xbb8] sm:$0xf0]  ;;  %v10506_v28 = vld [vmem:[%s16572_s1 + $0xa8c] sm:$0xf] }
 0x2a6   :  { %6109 = vmatpush.bf16.msra.mxu0 %v7471_v27  ;;  %v10542_v27 = vld [vmem:[%s16572_s1 + $0xbac] sm:$0xf]  ;;  %v8444_v30 = vld [vmem:[%s16572_s1 + $0xcb8] sm:$0xf0] }
 0x2a7   :  { %6123 = vmatpush.bf16.msra.mxu1 %v7599_v25  ;;  %v8191_v25 = vor.u32 %v10510_v22, %v8188_v17  ;;  %v8172_v62 = vld [vmem:[%s16572_s1 + $0xa98] sm:$0xf0]  ;;  %v10502_v19 = vld [vmem:[%s16572_s1 + $0xa6c] sm:$0xf] }
 0x2a8   :  { %6137 = vmatpush.bf16.msra.mxu2 %v7727_v12  ;;  %v8319_v12 = vor.u32 %v10542_v27, %v8316_v39  ;;  %v8175_v0 = vor.u32 %v10506_v28, %v8172_v62  ;;  %v8028_v59 = vld [vmem:[%s16572_s1 + $0x978] sm:$0xf0]  ;;  %v10534_v7 = vld [vmem:[%s16572_s1 + $0xb6c] sm:$0xf] }
 0x2a9   :  { %6151 = vmatpush.bf16.msra.mxu3 %v7855_v52  ;;  %6110 = vmatmul.bf16.vlgmr.msra.gmra.mxu0 %v11524_v44  ;;  %v10574_v44 = vld [vmem:[%s16572_s1 + $0xcac] sm:$0xf]  ;;  %v8156_v42 = vld [vmem:[%s16572_s1 + $0xa78] sm:$0xf0] }
 0x2aa   :  { %6158 = vmatpush.bf16.msrb.mxu0 %v8095_v20  ;;  %6124 = vmatmul.bf16.vlgmr.msra.gmra.mxu1 %v11522_v43  ;;  %v10474_v43 = vld [vmem:[%s16572_s1 + $0x98c] sm:$0xf]  ;;  %v8300_v20 = vld [vmem:[%s16572_s1 + $0xb98] sm:$0xf0]  ;;  %v8159_v22 = vor.u32 %v10502_v19, %v8156_v42  ;;  %v15670_v19 = vpop.f32.mrf.mxu3 }
 0x2ab   :  { %6172 = vmatpush.bf16.msrb.mxu1 %v8223_v58  ;;  %6138 = vmatmul.bf16.vlgmr.msra.gmra.mxu2 %v11532_v47  ;;  %v8044_v47 = vld [vmem:[%s16572_s1 + $0x998] sm:$0xf0]  ;;  %v10538_v52 = vld [vmem:[%s16572_s1 + $0xb8c] sm:$0xf]  ;;  %16617 = vst [vmem:[#allocation39_spill] sm:$0xff] %v15670_v19 }
 0x2ac   :  { %6186 = vmatpush.bf16.msrb.mxu2 %v8351_v11  ;;  %6152 = vmatmul.bf16.vlgmr.msra.gmra.mxu3 %v11739_v31  ;;  %v8447_v31 = vor.u32 %v10574_v44, %v8444_v30  ;;  %v10570_v58 = vld [vmem:[%s16572_s1 + $0xc8c] sm:$0xf]  ;;  %v8428_v11 = vld [vmem:[%s16572_s1 + $0xc98] sm:$0xf0]  ;;  %v8047_v29 = vor.u32 %v10474_v43, %v8044_v47  ;;  %v8303_v9 = vor.u32 %v10538_v52, %v8300_v20 }
 0x2ad   :  { %6200 = vmatpush.bf16.msrb.mxu3 %v8479_v53  ;;  %v10470_v53 = vld [vmem:[%s16572_s1 + $0x96c] sm:$0xf]  ;;  %v8431_v37 = vor.u32 %v10570_v58, %v8428_v11  ;;  %v8412_v50 = vld [vmem:[%s16572_s1 + $0xc78] sm:$0xf0] }
 0x2ae   :  { %6159 = vmatpush.bf16.msrb.mxu0 %v8079_v23  ;;  %v8284_v23 = vld [vmem:[%s16572_s1 + $0xb78] sm:$0xf0]  ;;  %v8031_v63 = vor.u32 %v10470_v53, %v8028_v59  ;;  %v10466_v17 = vld [vmem:[%s16572_s1 + $0x94c] sm:$0xf] }
 0x2af   :  { %6173 = vmatpush.bf16.msrb.mxu1 %v8207_v10  ;;  %v15612_v10 = vpop.f32.mrf.mxu2  ;;  %v8012_v27 = vld [vmem:[%s16572_s1 + $0x958] sm:$0xf0]  ;;  %v10498_v39 = vld [vmem:[%s16572_s1 + $0xa4c] sm:$0xf] }
 0x2b0   :  { %6187 = vmatpush.bf16.msrb.mxu2 %v8335_v16  ;;  %16616 = vst [vmem:[#allocation38_spill] sm:$0xff] %v15612_v10  ;;  %v10566_v16 = vld [vmem:[%s16572_s1 + $0xc6c] sm:$0xf]  ;;  %v8140_v30 = vld [vmem:[%s16572_s1 + $0xa58] sm:$0xf0]  ;;  %v8015_v47 = vor.u32 %v10466_v17, %v8012_v27 }
 0x2b1   :  { %6201 = vmatpush.bf16.msrb.mxu3 %v8463_v1  ;;  %v8287_v1 = vor.u32 %v10534_v7, %v8284_v23  ;;  %v8415_v44 = vor.u32 %v10566_v16, %v8412_v50  ;;  %v8396_v43 = vld [vmem:[%s16572_s1 + $0xc58] sm:$0xf0]  ;;  %v8143_v28 = vor.u32 %v10498_v39, %v8140_v30  ;;  %v10462_v62 = vld [vmem:[%s16572_s1 + $0x92c] sm:$0xf] }
 0x2b2   :  { %6160 = vmatpush.bf16.msrb.mxu0 %v8063_v18  ;;  %v10530_v18 = vld [vmem:[%s16572_s1 + $0xb4c] sm:$0xf]  ;;  %v7996_v52 = vld [vmem:[%s16572_s1 + $0x938] sm:$0xf0] }
 0x2b3   :  { %6174 = vmatpush.bf16.msrb.mxu1 %v8191_v25  ;;  %v8268_v25 = vld [vmem:[%s16572_s1 + $0xb58] sm:$0xf0]  ;;  %v10494_v20 = vld [vmem:[%s16572_s1 + $0xa2c] sm:$0xf] }
 0x2b4   :  { %6188 = vmatpush.bf16.msrb.mxu2 %v8319_v12  ;;  %v10562_v12 = vld [vmem:[%s16572_s1 + $0xc4c] sm:$0xf]  ;;  %v8124_v11 = vld [vmem:[%s16572_s1 + $0xa38] sm:$0xf0] }
 0x2b5   :  { %6202 = vmatpush.bf16.msrb.mxu3 %v8447_v31  ;;  %v8271_v31 = vor.u32 %v10530_v18, %v8268_v25  ;;  %v8399_v58 = vor.u32 %v10562_v12, %v8396_v43  ;;  %v10558_v53 = vld [vmem:[%s16572_s1 + $0xc2c] sm:$0xf]  ;;  %v8380_v59 = vld [vmem:[%s16572_s1 + $0xc38] sm:$0xf0]  ;;  %v8127_v23 = vor.u32 %v10494_v20, %v8124_v11 }
 0x2b6   :  { %6161 = vmatpush.bf16.msrb.mxu0 %v8047_v29  ;;  %v10526_v29 = vld [vmem:[%s16572_s1 + $0xb2c] sm:$0xf]  ;;  %v7980_v7 = vld [vmem:[%s16572_s1 + $0x918] sm:$0xf0] }
 0x2b7   :  { %6175 = vmatpush.bf16.msrb.mxu1 %v8175_v0  ;;  %v8252_v0 = vld [vmem:[%s16572_s1 + $0xb38] sm:$0xf0]  ;;  %v10458_v42 = vld [vmem:[%s16572_s1 + $0x90c] sm:$0xf] }
 0x2b8   :  { %6189 = vmatpush.bf16.msrb.mxu2 %v8303_v9  ;;  %v15662_v9 = vpop.f32.mrf.mxu2  ;;  %v8255_v16 = vor.u32 %v10526_v29, %v8252_v0  ;;  %v10490_v50 = vld [vmem:[%s16572_s1 + $0xa0c] sm:$0xf]  ;;  %v8236_v17 = vld [vmem:[%s16572_s1 + $0xb18] sm:$0xf0]  ;;  %v7983_v25 = vor.u32 %v10458_v42, %v7980_v7  ;;  %v15731_v42 = vpop.f32.mrf.mxu3 }
 0x2b9   :  { %6203 = vmatpush.bf16.msrb.mxu3 %v8431_v37  ;;  %v7999_v37 = vor.u32 %v10462_v62, %v7996_v52  ;;  %v10554_v27 = vld [vmem:[%s16572_s1 + $0xc0c] sm:$0xf]  ;;  %v8364_v39 = vld [vmem:[%s16572_s1 + $0xc18] sm:$0xf0] }
 0x2ba   :  { %6162 = vmatpush.bf16.msrb.mxu0 %v8031_v63  ;;  %v8108_v63 = vld [vmem:[%s16572_s1 + $0xa18] sm:$0xf0]  ;;  %v10646_v18 = vld [vmem:[%s16572_s1 + $0xeec] sm:$0xf] }
 0x2bb   :  { %6176 = vmatpush.bf16.msrb.mxu1 %v8159_v22  ;;  %v10522_v22 = vld [vmem:[%s16572_s1 + $0xb0c] sm:$0xf]  ;;  %v8604_v30 = vld [vmem:[%s16572_s1 + $0xdf8] sm:$0xf0] }
 0x2bc   :  { %6190 = vmatpush.bf16.msrb.mxu2 %v8287_v1  ;;  %v8383_v1 = vor.u32 %v10558_v53, %v8380_v59  ;;  %v8732_v12 = vld [vmem:[%s16572_s1 + $0xef8] sm:$0xf0]  ;;  %v10678_v43 = vld [vmem:[%s16572_s1 + $0xfec] sm:$0xf]  ;;  %v8239_v62 = vor.u32 %v10522_v22, %v8236_v17 }
 0x2bd   :  { %6204 = vmatpush.bf16.msrb.mxu3 %v8415_v44  ;;  %v10614_v44 = vld [vmem:[%s16572_s1 + $0xdec] sm:$0xf]  ;;  %v8988_v20 = vld [vmem:[%s16572_s1 + $0x10f8] sm:$0xf0]  ;;  %v8735_v29 = vor.u32 %v10646_v18, %v8732_v12 }
 0x2be   :  { %6163 = vmatpush.bf16.msrb.mxu0 %v8015_v47  ;;  %v8860_v47 = vld [vmem:[%s16572_s1 + $0xff8] sm:$0xf0]  ;;  %v10710_v52 = vld [vmem:[%s16572_s1 + $0x10ec] sm:$0xf]  ;;  %v8607_v11 = vor.u32 %v10614_v44, %v8604_v30 }
 0x2bf   :  { %6177 = vmatpush.bf16.msrb.mxu1 %v8143_v28  ;;  %v15714_v28 = vpop.f32.mrf.mxu0  ;;  %v8863_v0 = vor.u32 %v10678_v43, %v8860_v47  ;;  %v10610_v53 = vld [vmem:[%s16572_s1 + $0xdcc] sm:$0xf]  ;;  %v8588_v59 = vld [vmem:[%s16572_s1 + $0xdd8] sm:$0xf0]  ;;  %v8991_v7 = vor.u32 %v10710_v52, %v8988_v20 }
 0x2c0   :  { %6191 = vmatpush.bf16.msrb.mxu2 %v8271_v31  ;;  %16618 = vst [vmem:[#allocation40_spill] sm:$0xff] %v15714_v28  ;;  %v8111_v31 = vor.u32 %v10490_v50, %v8108_v63  ;;  %v8844_v50 = vld [vmem:[%s16572_s1 + $0xfd8] sm:$0xf0]  ;;  %v15742_v63 = vpop.f32.mrf.mxu1  ;;  %v15744_v22 = vpop.f32.mrf.mxu2  ;;  %v10606_v30 = vld [vmem:[%s16572_s1 + $0xdac] sm:$0xf] }
 0x2c1   :  { %6205 = vmatpush.bf16.msrb.mxu3 %v8399_v58  ;;  %v8367_v58 = vor.u32 %v10554_v27, %v8364_v39  ;;  %16619 = vst [vmem:[#allocation41_spill] sm:$0xff] %v15742_v63  ;;  %v8972_v17 = vld [vmem:[%s16572_s1 + $0x10d8] sm:$0xf0]  ;;  %v8591_v27 = vor.u32 %v10610_v53, %v8588_v59  ;;  %v10670_v47 = vld [vmem:[%s16572_s1 + $0xfac] sm:$0xf] }
 0x2c2   :  { %6164 = vmatpush.bf16.msrb.mxu0 %v7999_v37  ;;  %v10642_v37 = vld [vmem:[%s16572_s1 + $0xecc] sm:$0xf]  ;;  %v8572_v18 = vld [vmem:[%s16572_s1 + $0xdb8] sm:$0xf0] }
 0x2c3   :  { %6178 = vmatpush.bf16.msrb.mxu1 %v8127_v23  ;;  %v8716_v23 = vld [vmem:[%s16572_s1 + $0xed8] sm:$0xf0]  ;;  %v8575_v20 = vor.u32 %v10606_v30, %v8572_v18  ;;  %v10666_v53 = vld [vmem:[%s16572_s1 + $0xf8c] sm:$0xf] }
 0x2c4   :  { %6192 = vmatpush.bf16.msrb.mxu2 %v8255_v16  ;;  %v10674_v16 = vld [vmem:[%s16572_s1 + $0xfcc] sm:$0xf]  ;;  %v8719_v39 = vor.u32 %v10642_v37, %v8716_v23  ;;  %v8700_v43 = vld [vmem:[%s16572_s1 + $0xeb8] sm:$0xf0] }
 0x2c5   :  { %6206 = vmatpush.bf16.msrb.mxu3 %v8383_v1  ;;  %v10706_v1 = vld [vmem:[%s16572_s1 + $0x10cc] sm:$0xf]  ;;  %v8847_v44 = vor.u32 %v10674_v16, %v8844_v50  ;;  %v8956_v52 = vld [vmem:[%s16572_s1 + $0x10b8] sm:$0xf0]  ;;  %v15808_v50 = vpop.f32.mrf.mxu3 }
 0x2c6   :  { %6165 = vmatpush.bf16.msrb.mxu0 %v7983_v25  ;;  %v10638_v25 = vld [vmem:[%s16572_s1 + $0xeac] sm:$0xf]  ;;  %v8975_v12 = vor.u32 %v10706_v1, %v8972_v17  ;;  %v8812_v59 = vld [vmem:[%s16572_s1 + $0xf98] sm:$0xf0] }
 0x2c7   :  { %6179 = vmatpush.bf16.msrb.mxu1 %v8111_v31  ;;  %v8828_v31 = vld [vmem:[%s16572_s1 + $0xfb8] sm:$0xf0]  ;;  %v10630_v30 = vld [vmem:[%s16572_s1 + $0xe6c] sm:$0xf] }
 0x2c8   :  { %6193 = vmatpush.bf16.msrb.mxu2 %v8239_v62  ;;  %v15771_v62 = vpop.f32.mrf.mxu0  ;;  %v15800_v37 = vpop.f32.mrf.mxu1  ;;  %v8940_v23 = vld [vmem:[%s16572_s1 + $0x1098] sm:$0xf0] }
 0x2c9   :  { %6207 = vmatpush.bf16.msrb.mxu3 %v8367_v58  ;;  %6166 = vmatmul.bf16.vlgmr.msrb.gmra.mxu0 %v11752_v36  ;;  %v10702_v36 = vld [vmem:[%s16572_s1 + $0x10ac] sm:$0xf]  ;;  %v8703_v58 = vor.u32 %v10638_v25, %v8700_v43  ;;  %v15810_v1 = vpop.f32.mrf.mxu2  ;;  %v8668_v25 = vld [vmem:[%s16572_s1 + $0xe78] sm:$0xf0] }
 0x2ca   :  { %6214 = vmatpush.bf16.msra.mxu0 %v8607_v11  ;;  %6180 = vmatmul.bf16.vlgmr.msrb.gmra.mxu1 %v11750_v35  ;;  %v8831_v11 = vor.u32 %v10670_v47, %v8828_v31  ;;  %v10602_v35 = vld [vmem:[%s16572_s1 + $0xd8c] sm:$0xf]  ;;  %v8796_v43 = vld [vmem:[%s16572_s1 + $0xf78] sm:$0xf0] }
 0x2cb   :  { %6228 = vmatpush.bf16.msra.mxu1 %v8735_v29  ;;  %6194 = vmatmul.bf16.vlgmr.msrb.gmra.mxu2 %v11760_v40  ;;  %v8556_v40 = vld [vmem:[%s16572_s1 + $0xd98] sm:$0xf0]  ;;  %v10634_v29 = vld [vmem:[%s16572_s1 + $0xe8c] sm:$0xf] }
 0x2cc   :  { %6242 = vmatpush.bf16.msra.mxu2 %v8863_v0  ;;  %6208 = vmatmul.bf16.vlgmr.msrb.gmra.mxu3 %v11967_v32  ;;  %v8959_v32 = vor.u32 %v10702_v36, %v8956_v52  ;;  %v8684_v0 = vld [vmem:[%s16572_s1 + $0xe98] sm:$0xf0]  ;;  %v8559_v16 = vor.u32 %v10602_v35, %v8556_v40  ;;  %v10694_v47 = vld [vmem:[%s16572_s1 + $0x106c] sm:$0xf] }
 0x2cd   :  { %6256 = vmatpush.bf16.msra.mxu3 %v8991_v7  ;;  %v10698_v7 = vld [vmem:[%s16572_s1 + $0x108c] sm:$0xf]  ;;  %v8687_v17 = vor.u32 %v10634_v29, %v8684_v0  ;;  %v8924_v31 = vld [vmem:[%s16572_s1 + $0x1078] sm:$0xf0] }
 0x2ce   :  { %6215 = vmatpush.bf16.msra.mxu0 %v8591_v27  ;;  %v8815_v27 = vor.u32 %v10666_v53, %v8812_v59  ;;  %v8943_v18 = vor.u32 %v10698_v7, %v8940_v23  ;;  %v8524_v35 = vld [vmem:[%s16572_s1 + $0xd58] sm:$0xf0]  ;;  %v10626_v40 = vld [vmem:[%s16572_s1 + $0xe4c] sm:$0xf]  ;;  %v8927_v29 = vor.u32 %v10694_v47, %v8924_v31  ;;  %v15882_v47 = vpop.f32.mrf.mxu3 }
 0x2cf   :  { %6229 = vmatpush.bf16.msra.mxu1 %v8719_v39  ;;  %v10598_v39 = vld [vmem:[%s16572_s1 + $0xd6c] sm:$0xf]  ;;  %v8780_v53 = vld [vmem:[%s16572_s1 + $0xf58] sm:$0xf0] }
 0x2d0   :  { %6243 = vmatpush.bf16.msra.mxu2 %v8847_v44  ;;  %v8540_v44 = vld [vmem:[%s16572_s1 + $0xd78] sm:$0xf0]  ;;  %v15836_v52 = vpop.f32.mrf.mxu0  ;;  %v10658_v0 = vld [vmem:[%s16572_s1 + $0xf4c] sm:$0xf] }
 0x2d1   :  { %6257 = vmatpush.bf16.msra.mxu3 %v8975_v12  ;;  %v10662_v12 = vld [vmem:[%s16572_s1 + $0xf6c] sm:$0xf]  ;;  %v8543_v36 = vor.u32 %v10598_v39, %v8540_v44  ;;  %v8908_v7 = vld [vmem:[%s16572_s1 + $0x1058] sm:$0xf0]  ;;  %v15884_v31 = vpop.f32.mrf.mxu2 }
 0x2d2   :  { %6216 = vmatpush.bf16.msra.mxu0 %v8575_v20  ;;  %v8671_v20 = vor.u32 %v10630_v30, %v8668_v25  ;;  %v10690_v59 = vld [vmem:[%s16572_s1 + $0x104c] sm:$0xf]  ;;  %v8508_v44 = vld [vmem:[%s16572_s1 + $0xd38] sm:$0xf0] }
 0x2d3   :  { %6230 = vmatpush.bf16.msra.mxu1 %v8703_v58  ;;  %v8799_v58 = vor.u32 %v10662_v12, %v8796_v43  ;;  %v10590_v39 = vld [vmem:[%s16572_s1 + $0xd2c] sm:$0xf]  ;;  %v8636_v25 = vld [vmem:[%s16572_s1 + $0xe38] sm:$0xf0] }
 0x2d4   :  { %6244 = vmatpush.bf16.msra.mxu2 %v8831_v11  ;;  %v10594_v11 = vld [vmem:[%s16572_s1 + $0xd4c] sm:$0xf]  ;;  %v8764_v43 = vld [vmem:[%s16572_s1 + $0xf38] sm:$0xf0] }
 0x2d5   :  { %6258 = vmatpush.bf16.msra.mxu3 %v8959_v32  ;;  %v8652_v32 = vld [vmem:[%s16572_s1 + $0xe58] sm:$0xf0]  ;;  %v8527_v23 = vor.u32 %v10594_v11, %v8524_v35  ;;  %v10622_v30 = vld [vmem:[%s16572_s1 + $0xe2c] sm:$0xf] }
 0x2d6   :  { %6217 = vmatpush.bf16.msra.mxu0 %v8559_v16  ;;  %v15862_v16 = vpop.f32.mrf.mxu1  ;;  %v10654_v12 = vld [vmem:[%s16572_s1 + $0xf2c] sm:$0xf]  ;;  %v8492_v35 = vld [vmem:[%s16572_s1 + $0xd18] sm:$0xf0] }
 0x2d7   :  { %6231 = vmatpush.bf16.msra.mxu1 %v8687_v17  ;;  %v8655_v17 = vor.u32 %v10626_v40, %v8652_v32  ;;  %v10586_v11 = vld [vmem:[%s16572_s1 + $0xd0c] sm:$0xf]  ;;  %v8767_v32 = vor.u32 %v10654_v12, %v8764_v43  ;;  %v9372_v43 = vld [vmem:[%s16572_s1 + $0x13f8] sm:$0xf0] }
 0x2d8   :  { %6245 = vmatpush.bf16.msra.mxu2 %v8815_v27  ;;  %v8783_v27 = vor.u32 %v10658_v0, %v8780_v53  ;;  %v15898_v40 = vpop.f32.mrf.mxu0  ;;  %v10618_v0 = vld [vmem:[%s16572_s1 + $0xe0c] sm:$0xf]  ;;  %v8620_v53 = vld [vmem:[%s16572_s1 + $0xe18] sm:$0xf0] }
 0x2d9   :  { %6259 = vmatpush.bf16.msra.mxu3 %v8943_v18  ;;  %v8911_v18 = vor.u32 %v10690_v59, %v8908_v7  ;;  %v10650_v59 = vld [vmem:[%s16572_s1 + $0xf0c] sm:$0xf]  ;;  %v15944_v19 = vpop.f32.mrf.mxu2 }
 0x2da   :  { %6218 = vmatpush.bf16.msra.mxu0 %v8543_v36  ;;  %v10686_v36 = vld [vmem:[%s16572_s1 + $0x102c] sm:$0xf] }
 0x2db   :  { %6232 = vmatpush.bf16.msra.mxu1 %v8671_v20  ;;  %v8892_v20 = vld [vmem:[%s16572_s1 + $0x1038] sm:$0xf0]  ;;  %v10806_v12 = vld [vmem:[%s16572_s1 + $0x13ec] sm:$0xf] }
 0x2dc   :  { %6246 = vmatpush.bf16.msra.mxu2 %v8799_v58  ;;  %v8511_v58 = vor.u32 %v10590_v39, %v8508_v44  ;;  %v8895_v7 = vor.u32 %v10686_v36, %v8892_v20  ;;  %v10742_v39 = vld [vmem:[%s16572_s1 + $0x11ec] sm:$0xf]  ;;  %v9116_v44 = vld [vmem:[%s16572_s1 + $0x11f8] sm:$0xf0]  ;;  %v8623_v20 = vor.u32 %v10618_v0, %v8620_v53  ;;  %v9375_v13 = vor.u32 %v10806_v12, %v9372_v43 }
 0x2dd   :  { %6260 = vmatpush.bf16.msra.mxu3 %v8927_v29  ;;  %v8639_v29 = vor.u32 %v10622_v30, %v8636_v25  ;;  %v10774_v30 = vld [vmem:[%s16572_s1 + $0x12ec] sm:$0xf]  ;;  %v9244_v25 = vld [vmem:[%s16572_s1 + $0x12f8] sm:$0xf0]  ;;  %v9119_v28 = vor.u32 %v10742_v39, %v9116_v44 }
 0x2de   :  { %6219 = vmatpush.bf16.msra.mxu0 %v8527_v23  ;;  %v8748_v23 = vld [vmem:[%s16572_s1 + $0xf18] sm:$0xf0]  ;;  %v15936_v36 = vpop.f32.mrf.mxu1  ;;  %v9247_v10 = vor.u32 %v10774_v30, %v9244_v25  ;;  %v10770_v0 = vld [vmem:[%s16572_s1 + $0x12cc] sm:$0xf] }
 0x2df   :  { %6233 = vmatpush.bf16.msra.mxu1 %v8655_v17  ;;  %v10682_v17 = vld [vmem:[%s16572_s1 + $0x100c] sm:$0xf]  ;;  %v8751_v63 = vor.u32 %v10650_v59, %v8748_v23  ;;  %v9228_v59 = vld [vmem:[%s16572_s1 + $0x12d8] sm:$0xf0] }
 0x2e0   :  { %6247 = vmatpush.bf16.msra.mxu2 %v8783_v27  ;;  %v8876_v27 = vld [vmem:[%s16572_s1 + $0x1018] sm:$0xf0]  ;;  %v15972_v30 = vpop.f32.mrf.mxu0  ;;  %v10766_v43 = vld [vmem:[%s16572_s1 + $0x12ac] sm:$0xf] }
 0x2e1   :  { %6261 = vmatpush.bf16.msra.mxu3 %v8911_v18  ;;  %v8495_v18 = vor.u32 %v10586_v11, %v8492_v35  ;;  %v9500_v11 = vld [vmem:[%s16572_s1 + $0x14f8] sm:$0xf0]  ;;  %v8879_v35 = vor.u32 %v10682_v17, %v8876_v27  ;;  %v15964_v17 = vpop.f32.mrf.mxu3  ;;  %v10834_v27 = vld [vmem:[%s16572_s1 + $0x14cc] sm:$0xf] }
 0x2e2   :  { %6220 = vmatpush.bf16.msra.mxu0 %v8511_v58  ;;  %v10838_v58 = vld [vmem:[%s16572_s1 + $0x14ec] sm:$0xf]  ;;  %v9356_v23 = vld [vmem:[%s16572_s1 + $0x13d8] sm:$0xf0] }
 0x2e3   :  { %6234 = vmatpush.bf16.msra.mxu1 %v8639_v29  ;;  %v10738_v29 = vld [vmem:[%s16572_s1 + $0x11cc] sm:$0xf]  ;;  %v9503_v53 = vor.u32 %v10838_v58, %v9500_v11  ;;  %v9484_v39 = vld [vmem:[%s16572_s1 + $0x14d8] sm:$0xf0]  ;;  %v16620_v11 = vperm.slane %v12230_v4, 0 }
 0x2e4   :  { %6248 = vmatpush.bf16.msra.mxu2 %v8767_v32  ;;  %v9100_v32 = vld [vmem:[%s16572_s1 + $0x11d8] sm:$0xf0] }
 0x2e5   :  { %6262 = vmatpush.bf16.msra.mxu3 %v8895_v7  ;;  %v10802_v7 = vld [vmem:[%s16572_s1 + $0x13cc] sm:$0xf]  ;;  %v9103_v44 = vor.u32 %v10738_v29, %v9100_v32  ;;  %v9084_v12 = vld [vmem:[%s16572_s1 + $0x11b8] sm:$0xf0]  ;;  %v16007_v29 = vld [vmem:[%s16574_s2] sm:$0xf] }
 0x2e6   :  { %6221 = vmatpush.bf16.msra.mxu0 %v8495_v18  ;;  %v9231_v18 = vor.u32 %v10770_v0, %v9228_v59  ;;  %v9359_v25 = vor.u32 %v10802_v7, %v9356_v23  ;;  %v9468_v58 = vld [vmem:[%s16572_s1 + $0x14b8] sm:$0xf0]  ;;  %v16621_v32 = vperm.slane %v13560_v57, 1  ;;  %v10730_v59 = vld [vmem:[%s16572_s1 + $0x118c] sm:$0xf] }
 0x2e7   :  { %6235 = vmatpush.bf16.msra.mxu1 %v8623_v20  ;;  %v9340_v20 = vld [vmem:[%s16572_s1 + $0x13b8] sm:$0xf0]  ;;  %v10762_v57 = vld [vmem:[%s16572_s1 + $0x128c] sm:$0xf] }
 0x2e8   :  { %6249 = vmatpush.bf16.msra.mxu2 %v8751_v63  ;;  %v10734_v63 = vld [vmem:[%s16572_s1 + $0x11ac] sm:$0xf]  ;;  %v5344_v0 = vadd.f32 %v13718_v24, %v16621_v32  ;;  %v9196_v7 = vld [vmem:[%s16572_s1 + $0x1298] sm:$0xf0] }
 0x2e9   :  { %6263 = vmatpush.bf16.msra.mxu3 %v8879_v35  ;;  %6222 = vmatmul.bf16.vlgmr.msra.gmra.mxu0 %v11980_v41  ;;  %v10830_v41 = vld [vmem:[%s16572_s1 + $0x14ac] sm:$0xf]  ;;  %v4994_v35 = vadd.f32 %v12424_v21, %v16620_v11 }
 0x2ea   :  { %6270 = vmatpush.bf16.msrb.mxu0 %v9119_v28  ;;  %v9487_v28 = vor.u32 %v10834_v27, %v9484_v39  ;;  %6236 = vmatmul.bf16.vlgmr.msra.gmra.mxu1 %v11978_v38  ;;  %v9087_v38 = vor.u32 %v10734_v63, %v9084_v12  ;;  %v9471_v24 = vor.u32 %v10830_v41, %v9468_v58  ;;  %v10794_v23 = vld [vmem:[%s16572_s1 + $0x138c] sm:$0xf]  ;;  %v9324_v27 = vld [vmem:[%s16572_s1 + $0x1398] sm:$0xf0]  ;;  %v16034_v39 = vpop.f32.mrf.mxu3 }
 0x2eb   :  { %6284 = vmatpush.bf16.msrb.mxu1 %v9247_v10  ;;  %v10798_v10 = vld [vmem:[%s16572_s1 + $0x13ac] sm:$0xf]  ;;  %6250 = vmatmul.bf16.vlgmr.msra.gmra.mxu2 %v11988_v46  ;;  %v850_v46 = vperm.slane %v16007_v29, 2  ;;  %v5008_v63 = vadd.f32 %v12456_v45, %v4994_v35  ;;  %v9327_v41 = vor.u32 %v10794_v23, %v9324_v27  ;;  %v9052_v45 = vld [vmem:[%s16572_s1 + $0x1178] sm:$0xf0] }
 0x2ec   :  { %6298 = vmatpush.bf16.msrb.mxu2 %v9375_v13  ;;  %v9212_v13 = vld [vmem:[%s16572_s1 + $0x12b8] sm:$0xf0]  ;;  %6264 = vmatmul.bf16.vlgmr.msra.gmra.mxu3 %v12195_v51  ;;  %v9343_v21 = vor.u32 %v10798_v10, %v9340_v20  ;;  %v16048_v10 = vpop.f32.mrf.mxu0  ;;  %v9199_v20 = vor.u32 %v10762_v57, %v9196_v7  ;;  %v10726_v58 = vld [vmem:[%s16572_s1 + $0x116c] sm:$0xf] }
 0x2ed   :  { %6312 = vmatpush.bf16.msrb.mxu3 %v9503_v53  ;;  %v16014_v53 = vpop.f32.mrf.mxu1  ;;  %v9215_v4 = vor.u32 %v10766_v43, %v9212_v13  ;;  %v9068_v51 = vld [vmem:[%s16572_s1 + $0x1198] sm:$0xf0]  ;;  %v5692_v12 = vadd.f32 %v15662_v9, %v850_v46  ;;  %v5694_v43 = vadd.f32 %v15744_v22, %v850_v46  ;;  %v5358_v13 = vadd.f32 %v13748_v2, %v5344_v0  ;;  %v10758_v9 = vld [vmem:[%s16572_s1 + $0x126c] sm:$0xf] }
 0x2ee   :  { %6271 = vmatpush.bf16.msrb.mxu0 %v9103_v44  ;;  %v16036_v44 = vpop.f32.mrf.mxu2  ;;  %v9180_v22 = vld [vmem:[%s16572_s1 + $0x1278] sm:$0xf0]  ;;  %v10790_v11 = vld [vmem:[%s16572_s1 + $0x136c] sm:$0xf]  ;;  %v5022_v32 = vadd.f32 %v12488_v5, %v5008_v63 }
 0x2ef   :  { %6285 = vmatpush.bf16.msrb.mxu1 %v9231_v18  ;;  %v10826_v18 = vld [vmem:[%s16572_s1 + $0x148c] sm:$0xf]  ;;  %v9308_v35 = vld [vmem:[%s16572_s1 + $0x1378] sm:$0xf0]  ;;  %v5706_v0 = vadd.f32 %v15731_v42, %v5692_v12  ;;  %v9183_v57 = vor.u32 %v10758_v9, %v9180_v22 }
 0x2f0   :  { %6299 = vmatpush.bf16.msrb.mxu2 %v9359_v25  ;;  %v9452_v25 = vld [vmem:[%s16572_s1 + $0x1498] sm:$0xf0]  ;;  %v10822_v46 = vld [vmem:[%s16572_s1 + $0x146c] sm:$0xf]  ;;  %v5036_v12 = vadd.f32 %v12499_v14, %v5022_v32 }
 0x2f1   :  { %6313 = vmatpush.bf16.msrb.mxu3 %v9487_v28  ;;  %v9071_v28 = vor.u32 %v10730_v59, %v9068_v51  ;;  %v9455_v2 = vor.u32 %v10826_v18, %v9452_v25  ;;  %v5372_v59 = vadd.f32 %v13759_v6, %v5358_v13  ;;  %v10722_v7 = vld [vmem:[%s16572_s1 + $0x114c] sm:$0xf]  ;;  %v9036_v5 = vld [vmem:[%s16572_s1 + $0x1158] sm:$0xf0] }
 0x2f2   :  { %6272 = vmatpush.bf16.msrb.mxu0 %v9087_v38  ;;  %v9436_v38 = vld [vmem:[%s16572_s1 + $0x1478] sm:$0xf0]  ;;  %v10754_v42 = vld [vmem:[%s16572_s1 + $0x124c] sm:$0xf]  ;;  %v9039_v13 = vor.u32 %v10722_v7, %v9036_v5 }
 0x2f3   :  { %6286 = vmatpush.bf16.msrb.mxu1 %v9215_v4  ;;  %v5708_v4 = vadd.f32 %v15808_v50, %v5694_v43  ;;  %v9439_v6 = vor.u32 %v10822_v46, %v9436_v38  ;;  %v9164_v50 = vld [vmem:[%s16572_s1 + $0x1258] sm:$0xf0]  ;;  %v10786_v23 = vld [vmem:[%s16572_s1 + $0x134c] sm:$0xf]  ;;  %v5720_v43 = vadd.f32 %v15771_v62, %v5706_v0  ;;  %v5050_v38 = vadd.f32 %v12665_v54, %v5036_v12 }
 0x2f4   :  { %6300 = vmatpush.bf16.msrb.mxu2 %v9343_v21  ;;  %v9055_v21 = vor.u32 %v10726_v58, %v9052_v45  ;;  %v9292_v27 = vld [vmem:[%s16572_s1 + $0x1358] sm:$0xf0]  ;;  %v10818_v25 = vld [vmem:[%s16572_s1 + $0x144c] sm:$0xf]  ;;  %v9167_v58 = vor.u32 %v10754_v42, %v9164_v50 }
 0x2f5   :  { %6314 = vmatpush.bf16.msrb.mxu3 %v9471_v24  ;;  %v16078_v51 = vpop.f32.mrf.mxu1  ;;  %v9311_v24 = vor.u32 %v10790_v11, %v9308_v35  ;;  %v9420_v63 = vld [vmem:[%s16572_s1 + $0x1458] sm:$0xf0]  ;;  %v9295_v45 = vor.u32 %v10786_v23, %v9292_v27  ;;  %v10718_v9 = vld [vmem:[%s16572_s1 + $0x112c] sm:$0xf]  ;;  %v16130_v11 = vpop.f32.mrf.mxu0  ;;  %v5734_v32 = vadd.f32 %v15800_v37, %v5720_v43 }
 0x2f6   :  { %6273 = vmatpush.bf16.msrb.mxu0 %v9071_v28  ;;  %v16098_v18 = vpop.f32.mrf.mxu2  ;;  %v5722_v28 = vadd.f32 %v15836_v52, %v5708_v4  ;;  %v9020_v14 = vld [vmem:[%s16572_s1 + $0x1138] sm:$0xf0]  ;;  %v10750_v62 = vld [vmem:[%s16572_s1 + $0x122c] sm:$0xf] }
 0x2f7   :  { %6287 = vmatpush.bf16.msrb.mxu1 %v9199_v20  ;;  %v5386_v20 = vadd.f32 %v13917_v15, %v5372_v59  ;;  %v9423_v15 = vor.u32 %v10818_v25, %v9420_v63  ;;  %v9148_v52 = vld [vmem:[%s16572_s1 + $0x1238] sm:$0xf0]  ;;  %v10814_v35 = vld [vmem:[%s16572_s1 + $0x142c] sm:$0xf]  ;;  %v9023_v4 = vor.u32 %v10718_v9, %v9020_v14  ;;  %v5748_v12 = vadd.f32 %v15810_v1, %v5734_v32 }
 0x2f8   :  { %6301 = vmatpush.bf16.msrb.mxu2 %v9327_v41  ;;  %v16110_v41 = vpop.f32.mrf.mxu3  ;;  %v9276_v22 = vld [vmem:[%s16572_s1 + $0x1338] sm:$0xf0]  ;;  %v5736_v0 = vadd.f32 %v15862_v16, %v5722_v28  ;;  %v10746_v37 = vld [vmem:[%s16572_s1 + $0x120c] sm:$0xf] }
 0x2f9   :  { %6315 = vmatpush.bf16.msrb.mxu3 %v9455_v2  ;;  %v10782_v2 = vld [vmem:[%s16572_s1 + $0x132c] sm:$0xf]  ;;  %v9404_v46 = vld [vmem:[%s16572_s1 + $0x1438] sm:$0xf0] }
 0x2fa   :  { %6274 = vmatpush.bf16.msrb.mxu0 %v9055_v21  ;;  %v10714_v21 = vld [vmem:[%s16572_s1 + $0x110c] sm:$0xf]  ;;  %v9004_v59 = vld [vmem:[%s16572_s1 + $0x1118] sm:$0xf0]  ;;  %v9279_v54 = vor.u32 %v10782_v2, %v9276_v22  ;;  %v5750_v5 = vadd.f32 %v15884_v31, %v5736_v0  ;;  %v16622_v2 = vld [vmem:[#allocation2_spill] sm:$0xff] }
 0x2fb   :  { %6288 = vmatpush.bf16.msrb.mxu1 %v9183_v57  ;;  %v5400_v57 = vadd.f32 %v13925_v8, %v5386_v20  ;;  %v9132_v16 = vld [vmem:[%s16572_s1 + $0x1218] sm:$0xf0]  ;;  %v10778_v7 = vld [vmem:[%s16572_s1 + $0x130c] sm:$0xf]  ;;  %v9407_v8 = vor.u32 %v10814_v35, %v9404_v46  ;;  %v9007_v43 = vor.u32 %v10714_v21, %v9004_v59  ;;  %v5064_v20 = vadd.f32 %v12673_v61, %v5050_v38  ;;  %v16623_v35 = vld [vmem:[#allocation22_spill] sm:$0xff] }
 0x2fc   :  { %6302 = vmatpush.bf16.msrb.mxu2 %v9311_v24  ;;  %v9151_v24 = vor.u32 %v10750_v62, %v9148_v52  ;;  %v9260_v42 = vld [vmem:[%s16572_s1 + $0x1318] sm:$0xf0]  ;;  %v10870_v31 = vld [vmem:[%s16572_s1 + $0x15ec] sm:$0xf]  ;;  %v9135_v1 = vor.u32 %v10746_v37, %v9132_v16  ;;  %v5762_v59 = vadd.f32 %v15882_v47, %v5748_v12 }
 0x2fd   :  { %6316 = vmatpush.bf16.msrb.mxu3 %v9439_v6  ;;  %v10810_v6 = vld [vmem:[%s16572_s1 + $0x140c] sm:$0xf]  ;;  %v9388_v50 = vld [vmem:[%s16572_s1 + $0x1418] sm:$0xf0]  ;;  %v5414_v23 = vadd.f32 %v13964_v3, %v5400_v57  ;;  %v16168_v27 = vpop.f32.mrf.mxu1  ;;  %v9263_v9 = vor.u32 %v10778_v7, %v9260_v42  ;;  %v5078_v22 = vadd.f32 %v16622_v2, %v5064_v20  ;;  %v16203_v38 = vpop.f32.mrf.mxu0 }
 0x2fe   :  { %6275 = vmatpush.bf16.msrb.mxu0 %v9039_v13  ;;  %v9628_v25 = vld [vmem:[%s16572_s1 + $0x15f8] sm:$0xf0]  ;;  %v10902_v63 = vld [vmem:[%s16572_s1 + $0x16ec] sm:$0xf]  ;;  %v9391_v61 = vor.u32 %v10810_v6, %v9388_v50 }
 0x2ff   :  { %6289 = vmatpush.bf16.msrb.mxu1 %v9167_v58  ;;  %v9756_v3 = vld [vmem:[%s16572_s1 + $0x16f8] sm:$0xf0]  ;;  %v10934_v28 = vld [vmem:[%s16572_s1 + $0x17ec] sm:$0xf]  ;;  %v9631_v52 = vor.u32 %v10870_v31, %v9628_v25  ;;  %v5428_v46 = vadd.f32 %v16623_v35, %v5414_v23 }
 0x300   :  { %6303 = vmatpush.bf16.msrb.mxu2 %v9295_v45  ;;  %v9884_v13 = vld [vmem:[%s16572_s1 + $0x17f8] sm:$0xf0]  ;;  %v16190_v58 = vpop.f32.mrf.mxu3  ;;  %v16192_v45 = vpop.f32.mrf.mxu2  ;;  %v10966_v14 = vld [vmem:[%s16572_s1 + $0x18ec] sm:$0xf]  ;;  %v9759_v32 = vor.u32 %v10902_v63, %v9756_v3 }
 0x301   :  { %6317 = vmatpush.bf16.msrb.mxu3 %v9423_v15  ;;  %v10012_v62 = vld [vmem:[%s16572_s1 + $0x18f8] sm:$0xf0]  ;;  %v5764_v15 = vadd.f32 %v15964_v17, %v5750_v5  ;;  %v9887_v0 = vor.u32 %v10934_v28, %v9884_v13  ;;  %v10898_v17 = vld [vmem:[%s16572_s1 + $0x16cc] sm:$0xf] }
 0x302   :  { %6276 = vmatpush.bf16.msrb.mxu0 %v9023_v4  ;;  %v10866_v4 = vld [vmem:[%s16572_s1 + $0x15cc] sm:$0xf]  ;;  %v9612_v21 = vld [vmem:[%s16572_s1 + $0x15d8] sm:$0xf0] }
 0x303   :  { %6290 = vmatpush.bf16.msrb.mxu1 %v9151_v24  ;;  %v5778_v57 = vadd.f32 %v15972_v30, %v5764_v15  ;;  %v10015_v24 = vor.u32 %v10966_v14, %v10012_v62  ;;  %v10930_v37 = vld [vmem:[%s16572_s1 + $0x17cc] sm:$0xf]  ;;  %v9868_v16 = vld [vmem:[%s16572_s1 + $0x17d8] sm:$0xf0]  ;;  %v9615_v42 = vor.u32 %v10866_v4, %v9612_v21  ;;  %v16627_v14 = vld [vmem:[#allocation24_spill] sm:$0xff] }
 0x304   :  { %6304 = vmatpush.bf16.msrb.mxu2 %v9279_v54  ;;  %v9740_v54 = vld [vmem:[%s16572_s1 + $0x16d8] sm:$0xf0]  ;;  %v10962_v47 = vld [vmem:[%s16572_s1 + $0x18cc] sm:$0xf]  ;;  %v9871_v25 = vor.u32 %v10930_v37, %v9868_v16 }
 0x305   :  { %6318 = vmatpush.bf16.msrb.mxu3 %v9407_v8  ;;  %v16624_v7 = vld [vmem:[#allocation23_spill] sm:$0xff]  ;;  %v5776_v8 = vadd.f32 %v15898_v40, %v5762_v59  ;;  %v16234_v23 = vpop.f32.mrf.mxu1  ;;  %v9743_v31 = vor.u32 %v10898_v17, %v9740_v54  ;;  %v10862_v63 = vld [vmem:[%s16572_s1 + $0x15ac] sm:$0xf] }
 0x306   :  { %6277 = vmatpush.bf16.msrb.mxu0 %v9007_v43  ;;  %v5442_v5 = vadd.f32 %v16624_v7, %v5428_v46  ;;  %v9996_v30 = vld [vmem:[%s16572_s1 + $0x18d8] sm:$0xf0]  ;;  %v10894_v40 = vld [vmem:[%s16572_s1 + $0x16ac] sm:$0xf]  ;;  %v5792_v43 = vadd.f32 %v16014_v53, %v5778_v57  ;;  %v16630_v7 = vld [vmem:[#allocation6_spill] sm:$0xff] }
 0x307   :  { %6291 = vmatpush.bf16.msrb.mxu1 %v9135_v1  ;;  %v16625_v6 = vld [vmem:[#allocation3_spill] sm:$0xff]  ;;  %v9999_v3 = vor.u32 %v10962_v47, %v9996_v30  ;;  %v10926_v13 = vld [vmem:[%s16572_s1 + $0x17ac] sm:$0xf]  ;;  %v16626_v1 = vld [vmem:[#allocation4_spill] sm:$0xff] }
 0x308   :  { %6305 = vmatpush.bf16.msrb.mxu2 %v9263_v9  ;;  %v5092_v50 = vadd.f32 %v16625_v6, %v5078_v22  ;;  %v9596_v12 = vld [vmem:[%s16572_s1 + $0x15b8] sm:$0xf0]  ;;  %v5456_v53 = vadd.f32 %v16627_v14, %v5442_v5  ;;  %v16258_v62 = vpop.f32.mrf.mxu2  ;;  %v16271_v22 = vpop.f32.mrf.mxu3  ;;  %v10858_v35 = vld [vmem:[%s16572_s1 + $0x158c] sm:$0xf]  ;;  %v16631_v6 = vld [vmem:[#allocation26_spill] sm:$0xff] }
 0x309   :  { %6319 = vmatpush.bf16.msrb.mxu3 %v9391_v61  ;;  %6278 = vmatmul.bf16.vlgmr.msrb.gmra.mxu0 %v12208_v56  ;;  %v9724_v28 = vld [vmem:[%s16572_s1 + $0x16b8] sm:$0xf0]  ;;  %v10958_v56 = vld [vmem:[%s16572_s1 + $0x18ac] sm:$0xf]  ;;  %v5790_v61 = vadd.f32 %v15936_v36, %v5776_v8  ;;  %v9599_v2 = vor.u32 %v10862_v63, %v9596_v12 }
 0x30a   :  { %6326 = vmatpush.bf16.msra.mxu0 %v9631_v52  ;;  %v9852_v20 = vld [vmem:[%s16572_s1 + $0x17b8] sm:$0xf0]  ;;  %v5106_v9 = vadd.f32 %v16626_v1, %v5092_v50  ;;  %6292 = vmatmul.bf16.vlgmr.msrb.gmra.mxu1 %v12206_v55  ;;  %v5806_v52 = vadd.f32 %v16036_v44, %v5792_v43  ;;  %v9727_v55 = vor.u32 %v10894_v40, %v9724_v28  ;;  %v16628_v44 = vld [vmem:[#allocation25_spill] sm:$0xff] }
 0x30b   :  { %6340 = vmatpush.bf16.msra.mxu1 %v9759_v32  ;;  %6306 = vmatmul.bf16.vlgmr.msrb.gmra.mxu2 %v12216_v60  ;;  %v9980_v15 = vld [vmem:[%s16572_s1 + $0x18b8] sm:$0xf0]  ;;  %v9855_v60 = vor.u32 %v10926_v13, %v9852_v20  ;;  %v5470_v46 = vadd.f32 %v16628_v44, %v5456_v53  ;;  %v5804_v32 = vadd.f32 %v15944_v19, %v5790_v61  ;;  %v10922_v21 = vld [vmem:[%s16572_s1 + $0x178c] sm:$0xf]  ;;  %v16634_v44 = vld [vmem:[#allocation8_spill] sm:$0xff] }
 0x30c   :  { %6354 = vmatpush.bf16.msra.mxu2 %v9887_v0  ;;  %6320 = vmatmul.bf16.vlgmr.msrb.gmra.mxu3 %v12435_v26  ;;  %v9580_v36 = vld [vmem:[%s16572_s1 + $0x1598] sm:$0xf0]  ;;  %v10890_v26 = vld [vmem:[%s16572_s1 + $0x168c] sm:$0xf]  ;;  %v9983_v0 = vor.u32 %v10958_v56, %v9980_v15  ;;  %v5820_v37 = vadd.f32 %v16110_v41, %v5806_v52 }
 0x30d   :  { %6368 = vmatpush.bf16.msra.mxu3 %v10015_v24  ;;  %v9708_v4 = vld [vmem:[%s16572_s1 + $0x1698] sm:$0xf0]  ;;  %v16629_v59 = vld [vmem:[#allocation5_spill] sm:$0xff]  ;;  %v16294_v24 = vpop.f32.mrf.mxu0  ;;  %v9583_v16 = vor.u32 %v10858_v35, %v9580_v36  ;;  %v5484_v50 = vadd.f32 %v16631_v6, %v5470_v46 }
 0x30e   :  { %6327 = vmatpush.bf16.msra.mxu0 %v9615_v42  ;;  %v9836_v17 = vld [vmem:[%s16572_s1 + $0x1798] sm:$0xf0]  ;;  %v5120_v57 = vadd.f32 %v16629_v59, %v5106_v9  ;;  %v10954_v19 = vld [vmem:[%s16572_s1 + $0x188c] sm:$0xf]  ;;  %v9711_v47 = vor.u32 %v10890_v26, %v9708_v4  ;;  %v16635_v4 = vld [vmem:[#allocation28_spill] sm:$0xff] }
 0x30f   :  { %6341 = vmatpush.bf16.msra.mxu1 %v9743_v31  ;;  %v9964_v54 = vld [vmem:[%s16572_s1 + $0x1898] sm:$0xf0]  ;;  %v9839_v30 = vor.u32 %v10922_v21, %v9836_v17  ;;  %v10854_v8 = vld [vmem:[%s16572_s1 + $0x156c] sm:$0xf]  ;;  %v5818_v31 = vadd.f32 %v16034_v39, %v5804_v32 }
 0x310   :  { %6355 = vmatpush.bf16.msra.mxu2 %v9871_v25  ;;  %v5134_v5 = vadd.f32 %v16630_v7, %v5120_v57  ;;  %v9564_v42 = vld [vmem:[%s16572_s1 + $0x1578] sm:$0xf0]  ;;  %v10886_v41 = vld [vmem:[%s16572_s1 + $0x166c] sm:$0xf]  ;;  %v5834_v25 = vadd.f32 %v16130_v11, %v5820_v37  ;;  %v9967_v63 = vor.u32 %v10954_v19, %v9964_v54  ;;  %v16336_v53 = vpop.f32.mrf.mxu3  ;;  %v16338_v56 = vpop.f32.mrf.mxu2 }
 0x311   :  { %6369 = vmatpush.bf16.msra.mxu3 %v9999_v3  ;;  %v9692_v12 = vld [vmem:[%s16572_s1 + $0x1678] sm:$0xf0]  ;;  %v10918_v40 = vld [vmem:[%s16572_s1 + $0x176c] sm:$0xf]  ;;  %v16325_v3 = vpop.f32.mrf.mxu1  ;;  %v5832_v20 = vadd.f32 %v16048_v10, %v5818_v31  ;;  %v9567_v1 = vor.u32 %v10854_v8, %v9564_v42 }
 0x312   :  { %6328 = vmatpush.bf16.msra.mxu0 %v9599_v2  ;;  %v9820_v43 = vld [vmem:[%s16572_s1 + $0x1778] sm:$0xf0]  ;;  %v10950_v39 = vld [vmem:[%s16572_s1 + $0x186c] sm:$0xf]  ;;  %v9695_v15 = vor.u32 %v10886_v41, %v9692_v12  ;;  %v16638_v12 = vld [vmem:[#allocation10_spill] sm:$0xff] }
 0x313   :  { %6342 = vmatpush.bf16.msra.mxu1 %v9727_v55  ;;  %v9948_v11 = vld [vmem:[%s16572_s1 + $0x1878] sm:$0xf0]  ;;  %v9823_v61 = vor.u32 %v10918_v40, %v9820_v43  ;;  %v10850_v52 = vld [vmem:[%s16572_s1 + $0x154c] sm:$0xf]  ;;  %v5848_v55 = vadd.f32 %v16168_v27, %v5834_v25  ;;  %v5846_v17 = vadd.f32 %v16078_v51, %v5832_v20  ;;  %v16639_v20 = vld [vmem:[#allocation30_spill] sm:$0xff] }
 0x314   :  { %6356 = vmatpush.bf16.msra.mxu2 %v9855_v60  ;;  %v16632_v28 = vld [vmem:[#allocation27_spill] sm:$0xff]  ;;  %v10882_v2 = vld [vmem:[%s16572_s1 + $0x164c] sm:$0xf]  ;;  %v9951_v60 = vor.u32 %v10950_v39, %v9948_v11 }
 0x315   :  { %6370 = vmatpush.bf16.msra.mxu3 %v9983_v0  ;;  %v5498_v13 = vadd.f32 %v16632_v28, %v5484_v50  ;;  %v16633_v9 = vld [vmem:[#allocation7_spill] sm:$0xff]  ;;  %v10914_v36 = vld [vmem:[%s16572_s1 + $0x174c] sm:$0xf]  ;;  %v16360_v32 = vpop.f32.mrf.mxu0  ;;  %v5862_v59 = vadd.f32 %v16192_v45, %v5848_v55 }
 0x316   :  { %6329 = vmatpush.bf16.msra.mxu0 %v9583_v16  ;;  %v5148_v14 = vadd.f32 %v16633_v9, %v5134_v5  ;;  %v9548_v10 = vld [vmem:[%s16572_s1 + $0x1558] sm:$0xf0]  ;;  %v10946_v27 = vld [vmem:[%s16572_s1 + $0x184c] sm:$0xf]  ;;  %v5860_v5 = vadd.f32 %v16098_v18, %v5846_v17 }
 0x317   :  { %6343 = vmatpush.bf16.msra.mxu1 %v9711_v47  ;;  %v9676_v35 = vld [vmem:[%s16572_s1 + $0x1658] sm:$0xf0]  ;;  %v5512_v21 = vadd.f32 %v16635_v4, %v5498_v13  ;;  %v9551_v57 = vor.u32 %v10850_v52, %v9548_v10  ;;  %v10846_v37 = vld [vmem:[%s16572_s1 + $0x152c] sm:$0xf]  ;;  %v5876_v25 = vadd.f32 %v16271_v22, %v5862_v59  ;;  %v16642_v59 = vld [vmem:[#allocation12_spill] sm:$0xff] }
 0x318   :  { %6357 = vmatpush.bf16.msra.mxu2 %v9839_v30  ;;  %v9804_v26 = vld [vmem:[%s16572_s1 + $0x1758] sm:$0xf0]  ;;  %v5162_v46 = vadd.f32 %v16634_v44, %v5148_v14  ;;  %v9679_v19 = vor.u32 %v10882_v2, %v9676_v35  ;;  %v10878_v51 = vld [vmem:[%s16572_s1 + $0x162c] sm:$0xf]  ;;  %v16402_v43 = vpop.f32.mrf.mxu2  ;;  %v5874_v9 = vadd.f32 %v16190_v58, %v5860_v5  ;;  %v5931_v2 = vpop.f32.mrf.mxu3 }
 0x319   :  { %6371 = vmatpush.bf16.msra.mxu3 %v9967_v63  ;;  %v9932_v0 = vld [vmem:[%s16572_s1 + $0x1858] sm:$0xf0]  ;;  %v9807_v54 = vor.u32 %v10914_v36, %v9804_v26  ;;  %v16636_v7 = vld [vmem:[#allocation29_spill] sm:$0xff]  ;;  %v16392_v50 = vpop.f32.mrf.mxu1  ;;  %v5890_v14 = vadd.f32 %v16294_v24, %v5876_v25  ;;  %v16647_v25 = vld [vmem:[#allocation34_spill] sm:$0xff] }
 0x31a   :  { %6330 = vmatpush.bf16.msra.mxu0 %v9567_v1  ;;  %v9532_v16 = vld [vmem:[%s16572_s1 + $0x1538] sm:$0xf0]  ;;  %v5526_v45 = vadd.f32 %v16636_v7, %v5512_v21  ;;  %v9935_v47 = vor.u32 %v10946_v27, %v9932_v0  ;;  %v10910_v8 = vld [vmem:[%s16572_s1 + $0x172c] sm:$0xf]  ;;  %v5888_v35 = vadd.f32 %v16203_v38, %v5874_v9 }
 0x31b   :  { %6344 = vmatpush.bf16.msra.mxu1 %v9695_v15  ;;  %v9660_v30 = vld [vmem:[%s16572_s1 + $0x1638] sm:$0xf0]  ;;  %v16637_v41 = vld [vmem:[#allocation9_spill] sm:$0xff]  ;;  %v9535_v63 = vor.u32 %v10846_v37, %v9532_v16  ;;  %v5904_v4 = vadd.f32 %v16325_v3, %v5890_v14 }
 0x31c   :  { %6358 = vmatpush.bf16.msra.mxu2 %v9823_v61  ;;  %v9788_v42 = vld [vmem:[%s16572_s1 + $0x1738] sm:$0xf0]  ;;  %v5176_v6 = vadd.f32 %v16637_v41, %v5162_v46  ;;  %v10942_v18 = vld [vmem:[%s16572_s1 + $0x182c] sm:$0xf]  ;;  %v9663_v39 = vor.u32 %v10878_v51, %v9660_v30  ;;  %v5540_v1 = vadd.f32 %v16639_v20, %v5526_v45  ;;  %v5902_v3 = vadd.f32 %v16234_v23, %v5888_v35  ;;  %v10973_v20 = vld [vmem:[%s16575_s3 + $0x20] sm:$0xff] }
 0x31d   :  { %6372 = vmatpush.bf16.msra.mxu3 %v9951_v60  ;;  %v9916_v31 = vld [vmem:[%s16572_s1 + $0x1838] sm:$0xf0]  ;;  %v9791_v11 = vor.u32 %v10910_v8, %v9788_v42  ;;  %v10842_v28 = vld [vmem:[%s16572_s1 + $0x150c] sm:$0xf]  ;;  %v5945_v46 = vpop.f32.mrf.mxu0  ;;  %v5918_v16 = vadd.f32 %v16338_v56, %v5904_v4  ;;  %v10983_v56 = vld [vmem:[%s16575_s3 + $0x70] sm:$0xff] }
 0x31e   :  { %6331 = vmatpush.bf16.msra.mxu0 %v9551_v57  ;;  %v5190_v40 = vadd.f32 %v16638_v12, %v5176_v6  ;;  %v9516_v13 = vld [vmem:[%s16572_s1 + $0x1518] sm:$0xf0]  ;;  %v10874_v22 = vld [vmem:[%s16572_s1 + $0x160c] sm:$0xf]  ;;  %v9919_v15 = vor.u32 %v10942_v18, %v9916_v31  ;;  %v5916_v5 = vadd.f32 %v16258_v62, %v5902_v3  ;;  %v10991_v62 = vld [vmem:[%s16575_s3 + $0xb0] sm:$0xff] }
 0x31f   :  { %6345 = vmatpush.bf16.msra.mxu1 %v9679_v19  ;;  %v9644_v61 = vld [vmem:[%s16572_s1 + $0x1618] sm:$0xf0]  ;;  %v10906_v52 = vld [vmem:[%s16572_s1 + $0x170c] sm:$0xf]  ;;  %v9519_v36 = vor.u32 %v10842_v28, %v9516_v13  ;;  %v5932_v41 = vadd.f32 %v5931_v2, %v5918_v16  ;;  %v16646_v6 = vld [vmem:[#allocation14_spill] sm:$0xff] }
 0x320   :  { %6359 = vmatpush.bf16.msra.mxu2 %v9807_v54  ;;  %v9772_v10 = vld [vmem:[%s16572_s1 + $0x1718] sm:$0xf0]  ;;  %v10938_v58 = vld [vmem:[%s16572_s1 + $0x180c] sm:$0xf]  ;;  %v9647_v27 = vor.u32 %v10874_v22, %v9644_v61  ;;  %v16643_v54 = vld [vmem:[#allocation32_spill] sm:$0xff]  ;;  %v5985_v42 = vpop.f32.mrf.mxu3  ;;  %v5973_v23 = vpop.f32.mrf.mxu2  ;;  %v5930_v12 = vadd.f32 %v16336_v53, %v5916_v5 }
 0x321   :  { %6373 = vmatpush.bf16.msra.mxu3 %v9935_v47  ;;  %v9900_v24 = vld [vmem:[%s16572_s1 + $0x1818] sm:$0xf0]  ;;  %v9775_v0 = vor.u32 %v10906_v52, %v9772_v10  ;;  %v5959_v51 = vpop.f32.mrf.mxu1  ;;  %v16644_v7 = vld [vmem:[#allocation33_spill] sm:$0xff]  ;;  %v10975_v47 = vld [vmem:[%s16575_s3 + $0x30] sm:$0xff] }
 0x322   :  { %v16640_v55 = vld [vmem:[#allocation31_spill] sm:$0xff]  ;;  %6332 = vmatpush.bf16.msra.mxu0 %v9535_v63  ;;  %v9903_v21 = vor.u32 %v10938_v58, %v9900_v24  ;;  %v16645_v30 = vld [vmem:[#allocation13_spill] sm:$0xff]  ;;  %v5944_v53 = vadd.f32 %v16360_v32, %v5930_v12  ;;  %v10989_v32 = vld [vmem:[%s16575_s3 + $0xa0] sm:$0xff] }
 0x323   :  { %v5554_v60 = vadd.f32 %v16640_v55, %v5540_v1  ;;  %v16641_v26 = vld [vmem:[#allocation11_spill] sm:$0xff]  ;;  %6346 = vmatpush.bf16.msra.mxu1 %v9663_v39  ;;  %v10974_v39 = vld [vmem:[%s16575_s3 + $0x28] sm:$0xff]  ;;  %v16650_v1 = vld [vmem:[#allocation16_spill] sm:$0xff] }
 0x324   :  { %v5204_v44 = vadd.f32 %v16641_v26, %v5190_v40  ;;  %6360 = vmatpush.bf16.msra.mxu2 %v9791_v11  ;;  %v10976_v17 = vld [vmem:[%s16575_s3 + $0x38] sm:$0xff]  ;;  %v5946_v40 = vadd.f32 %v5945_v46, %v5932_v41  ;;  %v16651_v61 = vld [vmem:[#allocation36_spill] sm:$0xff]  ;;  %v5958_v10 = vadd.f32 %v16392_v50, %v5944_v53  ;;  %v16652_v24 = vld [vmem:[#allocation38_spill] sm:$0xff] }
 0x325   :  { %6374 = vmatpush.bf16.msra.mxu3 %v9919_v15  ;;  %v10984_v38 = vld [vmem:[%s16575_s3 + $0x78] sm:$0xff]  ;;  %v5568_v37 = vadd.f32 %v16643_v54, %v5554_v60  ;;  %v5999_v31 = vpop.f32.mrf.mxu0  ;;  %v10981_v15 = vld [vmem:[%s16575_s3 + $0x60] sm:$0xff]  ;;  %v10987_v54 = vld [vmem:[%s16575_s3 + $0x90] sm:$0xff] }
 0x326   :  { %v5218_v57 = vadd.f32 %v16642_v59, %v5204_v44  ;;  %v10992_v19 = vld [vmem:[%s16575_s3 + $0xb8] sm:$0xff]  ;;  %6333 = vmatpush.bf16.msra.mxu0 %v9519_v36  ;;  %v5960_v22 = vadd.f32 %v5959_v51, %v5946_v40  ;;  %v5972_v60 = vadd.f32 %v16402_v43, %v5958_v10  ;;  %v16653_v36 = vld [vmem:[#allocation17_spill] sm:$0xff]  ;;  %v16654_v43 = vld [vmem:[#allocation18_spill] sm:$0xff] }
 0x327   :  { %6347 = vmatpush.bf16.msra.mxu1 %v9647_v27  ;;  %v5582_v45 = vadd.f32 %v16644_v7, %v5568_v37  ;;  %v16649_v11 = vld [vmem:[#allocation15_spill] sm:$0xff]  ;;  %v16656_v37 = vld [vmem:[#allocation40_spill] sm:$0xff] }
 0x328   :  { %6361 = vmatpush.bf16.msra.mxu2 %v9775_v0  ;;  %v5232_v8 = vadd.f32 %v16645_v30, %v5218_v57  ;;  %v6027_v14 = vpop.f32.mrf.mxu2  ;;  %v5974_v2 = vadd.f32 %v5973_v23, %v5960_v22  ;;  %v5987_v58 = vpop.f32.mrf.mxu3  ;;  %v10972_v35 = vld [vmem:[%s16575_s3 + $0x18] sm:$0xff]  ;;  %v10971_v57 = vld [vmem:[%s16575_s3 + $0x10] sm:$0xff]  ;;  %v16658_v30 = vld [vmem:[#allocation21_spill] sm:$0xff] }
 0x329   :  { %6375 = vmatpush.bf16.msra.mxu3 %v9903_v21  ;;  %6334 = vmatmul.bf16.vlgmr.msra.gmra.mxu0 %v12448_v34  ;;  %v5596_v63 = vadd.f32 %v16647_v25, %v5582_v45  ;;  %v10990_v34 = vld [vmem:[%s16575_s3 + $0xa8] sm:$0xff]  ;;  %v6013_v13 = vpop.f32.mrf.mxu1  ;;  %v10980_v50 = vld [vmem:[%s16575_s3 + $0x58] sm:$0xff]  ;;  %v10969_v25 = vld [vmem:[%s16575_s3] sm:$0xff] }
 0x32a   :  { %6654 = vmatpush.bf16.msrb.mxu0 %v10976_v17  ;;  %6348 = vmatmul.bf16.vlgmr.msra.gmra.mxu1 %v12446_v33  ;;  %v5246_v18 = vadd.f32 %v16646_v6, %v5232_v8  ;;  %v10982_v33 = vld [vmem:[%s16575_s3 + $0x68] sm:$0xff]  ;;  %v10988_v46 = vld [vmem:[%s16575_s3 + $0x98] sm:$0xff]  ;;  %v5988_v27 = vadd.f32 %v5987_v58, %v5974_v2  ;;  %v5986_v17 = vadd.f32 %v5985_v42, %v5972_v60  ;;  %v10977_v12 = vld [vmem:[%s16575_s3 + $0x40] sm:$0xff]  ;;  %v851_v60 = vperm.slane %v16007_v29, 3 }
 0x32b   :  { %6668 = vmatpush.bf16.msrb.mxu1 %v10984_v38  ;;  %6362 = vmatmul.bf16.vlgmr.msra.gmra.mxu2 %v12458_v48  ;;  %v16648_v48 = vld [vmem:[#allocation35_spill] sm:$0xff]  ;;  %v10978_v42 = vld [vmem:[%s16575_s3 + $0x48] sm:$0xff]  ;;  %v10985_v40 = vld [vmem:[%s16575_s3 + $0x80] sm:$0xff] }
 0x32c   :  { %6682 = vmatpush.bf16.msrb.mxu2 %v10992_v19  ;;  %6376 = vmatmul.bf16.vlgmr.msra.gmra.mxu3 %v12654_v49  ;;  %v5610_v49 = vadd.f32 %v16648_v48, %v5596_v63  ;;  %v5260_v28 = vadd.f32 %v16649_v11, %v5246_v18  ;;  %v16655_v4 = vld [vmem:[#allocation39_spill] sm:$0xff]  ;;  %v10979_v19 = vld [vmem:[%s16575_s3 + $0x50] sm:$0xff]  ;;  %v6000_v16 = vadd.f32 %v5999_v31, %v5986_v17  ;;  %v10986_v23 = vld [vmem:[%s16575_s3 + $0x88] sm:$0xff] }
 0x32d   :  { %v6001_v44 = vpop.f32.mrf.mxu0  ;;  %v16657_v51 = vld [vmem:[#allocation19_spill] sm:$0xff] }
 0x32e   :  { %6655 = vmatpush.bf16.msrb.mxu0 %v10975_v47  ;;  %v5274_v9 = vadd.f32 %v16650_v1, %v5260_v28  ;;  %v5624_v52 = vadd.f32 %v16651_v61, %v5610_v49  ;;  %v6002_v59 = vadd.f32 %v6001_v44, %v5988_v27  ;;  %v10970_v47 = vld [vmem:[%s16575_s3 + $0x8] sm:$0xff]  ;;  %v6014_v41 = vadd.f32 %v6013_v13, %v6000_v16  ;;  %v11000_v29 = vld [vmem:[%s16575_s3 + $0xf8] sm:$0xff]  ;;  %v10999_v16 = vld [vmem:[%s16575_s3 + $0xf0] sm:$0xff] }
 0x32f   :  { %6669 = vmatpush.bf16.msrb.mxu1 %v10983_v56  ;;  %v16659_v56 = vld [vmem:[#allocation41_spill] sm:$0xff]  ;;  %6696 = vmatpush.bf16.msrb.mxu3 %v11000_v29 }
 0x330   :  { %6683 = vmatpush.bf16.msrb.mxu2 %v10991_v62  ;;  %v5638_v55 = vadd.f32 %v16652_v24, %v5624_v52  ;;  %v5288_v26 = vadd.f32 %v16653_v36, %v5274_v9  ;;  %v6029_v45 = vpop.f32.mrf.mxu2  ;;  %v6028_v18 = vadd.f32 %v6027_v14, %v6014_v41  ;;  %v6041_v31 = vpop.f32.mrf.mxu3  ;;  %v16661_v49 = vld [vmem:[#allocation37_spill] sm:$0xff] }
 0x331   :  { %v6015_v38 = vpop.f32.mrf.mxu1  ;;  %v6383_v53 = vmax.f32 %v16661_v49, 0.0  ;;  %v6042_v36 = vadd.f32 %v6041_v31, %v851_v60 }
 0x332   :  { %6656 = vmatpush.bf16.msrb.mxu0 %v10974_v39  ;;  %v5302_v0 = vadd.f32 %v16654_v43, %v5288_v26  ;;  %v5652_v21 = vadd.f32 %v16655_v4, %v5638_v55  ;;  %v6016_v5 = vadd.f32 %v6015_v38, %v6002_v59  ;;  %v6384_v11 = vmax.f32 %v6028_v18, 0.0 }
 0x333   :  { %6670 = vmatpush.bf16.msrb.mxu1 %v10982_v33  ;;  %6697 = vmatpush.bf16.msrb.mxu3 %v10999_v16 }
 0x334   :  { %6684 = vmatpush.bf16.msrb.mxu2 %v10990_v34  ;;  %v5666_v3 = vadd.f32 %v16656_v37, %v5652_v21  ;;  %v5316_v7 = vadd.f32 %v16657_v51, %v5302_v0  ;;  %v6030_v6 = vadd.f32 %v6029_v45, %v6016_v5  ;;  %v16660_v34 = vld [vmem:[#allocation20_spill] sm:$0xff] }
 0x335   :  { %v6382_v48 = vmax.f32 %v16660_v34, 0.0  ;;  %v6055_v1 = vpop.f32.mrf.mxu0  ;;  %v10996_v34 = vld [vmem:[%s16575_s3 + $0xd8] sm:$0xff] }
 0x336   :  { %6657 = vmatpush.bf16.msrb.mxu0 %v10973_v20  ;;  %v5330_v8 = vadd.f32 %v16658_v30, %v5316_v7  ;;  %v5680_v62 = vadd.f32 %v16659_v56, %v5666_v3  ;;  %v6388_v33 = vmax.f32 %v6030_v6, 0.0  ;;  %v6056_v44 = vadd.f32 %v6055_v1, %v6042_v36 }
 0x337   :  { %6671 = vmatpush.bf16.msrb.mxu1 %v10981_v15 }
 0x338   :  { %6685 = vmatpush.bf16.msrb.mxu2 %v10989_v32  ;;  %v6386_v63 = vmax.f32 %v5330_v8, 0.0  ;;  %v6387_v39 = vmax.f32 %v5680_v62, 0.0  ;;  %v6392_v22 = vpack.c.bf16 %v6388_v33, %v6384_v11  ;;  %v6043_v20 = vpop.f32.mrf.mxu3  ;;  %v6083_v14 = vpop.f32.mrf.mxu2  ;;  %v10998_v62 = vld [vmem:[%s16575_s3 + $0xe8] sm:$0xff]  ;;  %v10995_v11 = vld [vmem:[%s16575_s3 + $0xd0] sm:$0xff] }
 0x339   :  { %v6069_v9 = vpop.f32.mrf.mxu1  ;;  %v6044_v27 = vadd.f32 %v6043_v20, %v851_v60  ;;  %6698 = vmatpush.bf16.msrb.mxu3 %v10998_v62 }
 0x33a   :  { %6658 = vmatpush.bf16.msrb.mxu0 %v10972_v35  ;;  %v6390_v28 = vpack.c.bf16 %v6386_v63, %v6382_v48  ;;  %v6391_v13 = vpack.c.bf16 %v6387_v39, %v6383_v53  ;;  %v6070_v0 = vadd.f32 %v6069_v9, %v6056_v44  ;;  %v10997_v63 = vld [vmem:[%s16575_s3 + $0xe0] sm:$0xff] }
 0x33b   :  { %6672 = vmatpush.bf16.msrb.mxu1 %v10980_v50 }
 0x33c   :  { %6686 = vmatpush.bf16.msrb.mxu2 %v10988_v46  ;;  %v6084_v17 = vadd.f32 %v6083_v14, %v6070_v0  ;;  %v10994_v14 = vld [vmem:[%s16575_s3 + $0xc8] sm:$0xff] }
 0x33d   :  { %v6057_v32 = vpop.f32.mrf.mxu0  ;;  %6699 = vmatpush.bf16.msrb.mxu3 %v10997_v63 }
 0x33e   :  { %6659 = vmatpush.bf16.msrb.mxu0 %v10971_v57  ;;  %v6058_v21 = vadd.f32 %v6057_v32, %v6044_v27 }
 0x33f   :  { %6673 = vmatpush.bf16.msrb.mxu1 %v10979_v19 }
 0x340   :  { %6687 = vmatpush.bf16.msrb.mxu2 %v10987_v54  ;;  %v6097_v15 = vpop.f32.mrf.mxu3  ;;  %v6085_v52 = vpop.f32.mrf.mxu2 }
 0x341   :  { %v6071_v61 = vpop.f32.mrf.mxu1  ;;  %v6098_v19 = vadd.f32 %v6097_v15, %v6084_v17  ;;  %6700 = vmatpush.bf16.msrb.mxu3 %v10996_v34 }
 0x342   :  { %6660 = vmatpush.bf16.msrb.mxu0 %v10970_v47  ;;  %v6072_v38 = vadd.f32 %v6071_v61, %v6058_v21 }
 0x343   :  { %6674 = vmatpush.bf16.msrb.mxu1 %v10978_v42 }
 0x344   :  { %6688 = vmatpush.bf16.msrb.mxu2 %v10986_v23  ;;  %v6086_v54 = vadd.f32 %v6085_v52, %v6072_v38 }
 0x345   :  { %v6111_v2 = vpop.f32.mrf.mxu0  ;;  %6701 = vmatpush.bf16.msrb.mxu3 %v10995_v11 }
 0x346   :  { %6661 = vmatpush.bf16.msrb.mxu0 %v10969_v25  ;;  %v6112_v3 = vadd.f32 %v6111_v2, %v6098_v19 }
 0x347   :  { %6675 = vmatpush.bf16.msrb.mxu1 %v10977_v12 }
 0x348   :  { %6689 = vmatpush.bf16.msrb.mxu2 %v10985_v40  ;;  %v6099_v10 = vpop.f32.mrf.mxu3  ;;  %v6139_v24 = vpop.f32.mrf.mxu2 }
 0x349   :  { %6662 = vmatmul.bf16.vlgmr.msrb.gmra.mxu0 %v6390_v28  ;;  %v6125_v58 = vpop.f32.mrf.mxu1  ;;  %v6100_v7 = vadd.f32 %v6099_v10, %v6086_v54  ;;  %6702 = vmatpush.bf16.msrb.mxu3 %v10994_v14  ;;  %v10993_v10 = vld [vmem:[%s16575_s3 + $0xc0] sm:$0xff] }
 0x34a   :  { %6676 = vmatmul.bf16.vlgmr.msrb.gmra.mxu1 %v6391_v13  ;;  %v6126_v45 = vadd.f32 %v6125_v58, %v6112_v3 }
 0x34b   :  { %6690 = vmatmul.bf16.vlgmr.msrb.gmra.mxu2 %v6392_v22 }
 0x34c   :  { %v6140_v8 = vadd.f32 %v6139_v24, %v6126_v45 }
 0x34d   :  { %v6113_v35 = vpop.f32.mrf.mxu0  ;;  %6703 = vmatpush.bf16.msrb.mxu3 %v10993_v10 }
 0x34e   :  { %v6114_v5 = vadd.f32 %v6113_v35, %v6100_v7 }
 0x350   :  { %v6153_v55 = vpop.f32.mrf.mxu3  ;;  %v6141_v50 = vpop.f32.mrf.mxu2 }
 0x351   :  { %v6127_v26 = vpop.f32.mrf.mxu1  ;;  %v6154_v41 = vadd.f32 %v6153_v55, %v6140_v8 }
 0x352   :  { %v6128_v23 = vadd.f32 %v6127_v26, %v6114_v5 }
 0x354   :  { %v6142_v6 = vadd.f32 %v6141_v50, %v6128_v23 }
 0x355   :  { %v6167_v43 = vpop.f32.mrf.mxu0 }
 0x356   :  { %v6168_v18 = vadd.f32 %v6167_v43, %v6154_v41 }
 0x358   :  { %v6155_v46 = vpop.f32.mrf.mxu3  ;;  %v6195_v59 = vpop.f32.mrf.mxu2 }
 0x359   :  { %v6181_v4 = vpop.f32.mrf.mxu1  ;;  %v6156_v12 = vadd.f32 %v6155_v46, %v6142_v6 }
 0x35a   :  { %v6182_v40 = vadd.f32 %v6181_v4, %v6168_v18  ;;  %v11001_v18 = vld [vmem:[%s16576_s4] ss:$0 sm:$0xff] }
 0x35c   :  { %v6196_v48 = vadd.f32 %v6195_v59, %v6182_v40 }
 0x35d   :  { %v6169_v37 = vpop.f32.mrf.mxu0 }
 0x35e   :  { %v6170_v39 = vadd.f32 %v6169_v37, %v6156_v12 }
 0x360   :  { %v6209_v57 = vpop.f32.mrf.mxu3  ;;  %v6197_v47 = vpop.f32.mrf.mxu2 }
 0x361   :  { %v6183_v51 = vpop.f32.mrf.mxu1  ;;  %v6210_v28 = vadd.f32 %v6209_v57, %v6196_v48 }
 0x362   :  { %v6184_v53 = vadd.f32 %v6183_v51, %v6170_v39 }
 0x364   :  { %v6198_v13 = vadd.f32 %v6197_v47, %v6184_v53 }
 0x366   :  { %v6223_v42 = vpop.f32.mrf.mxu0 }
 0x367   :  { %v6224_v1 = vadd.f32 %v6223_v42, %v6210_v28 }
 0x368   :  { %v6211_v30 = vpop.f32.mrf.mxu3 }
 0x369   :  { %v6237_v56 = vpop.f32.mrf.mxu1  ;;  %v6212_v15 = vadd.f32 %v6211_v30, %v6198_v13 }
 0x36a   :  { %v6238_v61 = vadd.f32 %v6237_v56, %v6224_v1 }
 0x36e   :  { %v6251_v31 = vpop.f32.mrf.mxu2  ;;  %v6225_v33 = vpop.f32.mrf.mxu0 }
 0x36f   :  { %v6226_v52 = vadd.f32 %v6225_v33, %v6212_v15  ;;  %v6252_v2 = vadd.f32 %v6251_v31, %v6238_v61 }
 0x370   :  { %v6265_v25 = vpop.f32.mrf.mxu3 }
 0x371   :  { %v6239_v49 = vpop.f32.mrf.mxu1  ;;  %v6266_v60 = vadd.f32 %v6265_v25, %v6252_v2 }
 0x372   :  { %v6240_v55 = vadd.f32 %v6239_v49, %v6226_v52 }
 0x376   :  { %v6253_v22 = vpop.f32.mrf.mxu2 }
 0x377   :  { %v6254_v35 = vadd.f32 %v6253_v22, %v6240_v55 }
 0x378   :  { %v6267_v20 = vpop.f32.mrf.mxu3 }
 0x379   :  { %v6268_v50 = vadd.f32 %v6267_v20, %v6254_v35 }
 0x386   :  { %v6279_v9 = vpop.f32.mrf.mxu0 }
 0x387   :  { %v6293_v32 = vpop.f32.mrf.mxu1  ;;  %v6280_v26 = vadd.f32 %v6279_v9, %v6266_v60 }
 0x389   :  { %v6294_v46 = vadd.f32 %v6293_v32, %v6280_v26 }
 0x38e   :  { %v6307_v58 = vpop.f32.mrf.mxu2  ;;  %v6281_v36 = vpop.f32.mrf.mxu0 }
 0x38f   :  { %v6321_v24 = vpop.f32.mrf.mxu3  ;;  %v6295_v44 = vpop.f32.mrf.mxu1  ;;  %v6282_v27 = vadd.f32 %v6281_v36, %v6268_v50  ;;  %v6308_v4 = vadd.f32 %v6307_v58, %v6294_v46 }
 0x391   :  { %v6296_v17 = vadd.f32 %v6295_v44, %v6282_v27  ;;  %v6322_v57 = vadd.f32 %v6321_v24, %v6308_v4 }
 0x396   :  { %v6309_v43 = vpop.f32.mrf.mxu2 }
 0x397   :  { %v6323_v0 = vpop.f32.mrf.mxu3  ;;  %v6310_v38 = vadd.f32 %v6309_v43, %v6296_v17 }
 0x399   :  { %v6324_v29 = vadd.f32 %v6323_v0, %v6310_v38 }
 0x3a6   :  { %v6335_v21 = vpop.f32.mrf.mxu0 }
 0x3a7   :  { %v6349_v59 = vpop.f32.mrf.mxu1  ;;  %v6336_v19 = vadd.f32 %v6335_v21, %v6322_v57 }
 0x3a9   :  { %v6350_v16 = vadd.f32 %v6349_v59, %v6336_v19 }
 0x3ae   :  { %v6363_v54 = vpop.f32.mrf.mxu2  ;;  %v6337_v3 = vpop.f32.mrf.mxu0 }
 0x3af   :  { %v6377_v37 = vpop.f32.mrf.mxu3  ;;  %v6338_v51 = vadd.f32 %v6337_v3, %v6324_v29  ;;  %v6364_v7 = vadd.f32 %v6363_v54, %v6350_v16  ;;  %v6351_v45 = vpop.f32.mrf.mxu1 }
 0x3b1   :  { %v6352_v5 = vadd.f32 %v6351_v45, %v6338_v51  ;;  %v6378_v30 = vadd.f32 %v6377_v37, %v6364_v7 }
 0x3b3   :  { %v6385_v56 = vmax.f32 %v6378_v30, 0.0 }
 0x3b6   :  { %v6365_v47 = vpop.f32.mrf.mxu2 }
 0x3b7   :  { %v6366_v8 = vadd.f32 %v6365_v47, %v6352_v5  ;;  %v6379_v42 = vpop.f32.mrf.mxu3 }
 0x3b9   :  { %v6380_v23 = vadd.f32 %v6379_v42, %v6366_v8 }
 0x3bb   :  { %v6389_v62 = vmax.f32 %v6380_v23, 0.0 }
 0x3bd   :  { %v6393_v41 = vpack.c.bf16 %v6389_v62, %v6385_v56 }
 0x3bf   :  { %6704 = vmatmul.bf16.vlgmr.msrb.gmra.mxu3 %v6393_v41 }
 0x3c6   :  { %v6663_v6 = vpop.f32.mrf.mxu0 }
 0x3c7   :  { %v6664_v31 = vadd.f32 %v11001_v18, %v6663_v6  ;;  %v6677_v25 = vpop.f32.mrf.mxu1 }
 0x3c9   :  { %v6678_v12 = vadd.f32 %v6677_v25, %v6664_v31 }
 0x3ce   :  { %v6691_v63 = vpop.f32.mrf.mxu2  ;;  %v6665_v40 = vpop.f32.mrf.mxu0 }
 0x3cf   :  { %v6692_v39 = vadd.f32 %v6691_v63, %v6678_v12  ;;  %v6666_v34 = vadd.f32 %v11001_v18, %v6665_v40  ;;  %v6679_v49 = vpop.f32.mrf.mxu1 }
 0x3d1   :  { %v6680_v11 = vadd.f32 %v6679_v49, %v6666_v34 }
 0x3d6   :  { %v6693_v53 = vpop.f32.mrf.mxu2 }
 0x3d7   :  { %v6694_v28 = vadd.f32 %v6693_v53, %v6680_v11 }
 0x442   :  { %v6705_v33 = vpop.f32.mrf.mxu3 }
 0x443   :  { %v6706_v48 = vadd.f32 %v6705_v33, %v6692_v39 }
 0x445   :  { %6710 = vst [vmem:[%s16577_s5] sm:$0xff] %v6706_v48 }
 0x44a   :  { %v6707_v13 = vpop.f32.mrf.mxu3 }
 0x44b   :  { %v6708_v22 = vadd.f32 %v6707_v13, %v6694_v28 }
 0x44d   :  { %6711 = vst [vmem:[%s16577_s5 + $0x8] sm:$0xff] %v6708_v22 }

</bundles_post_ra>
